<compile_context>
chip_gen: v7x
topology: tpu7x:2x2x1
jax: 0.10.0
libtpu: 0.0.40
codegen_flags: <defaults>
</compile_context>

<pallas_src>
import functools

import jax
import jax.numpy as jnp
from jax.experimental import pallas as pl
from jax.experimental.pallas import tpu as pltpu

FEATURE_CHANNEL = 1024  # fixed by the module definition
CONV_OUT = 512          # 3x3 conv output channels


# ---------------------------------------------------------------------------
# Fused kernel: 3x3 conv (+bias+ReLU) + both 1x1 heads (+sigmoid on class).
#   grid = (B, H); one output row (W, 128-padded head channels) per step.
# ---------------------------------------------------------------------------
def _rpn_fused_kernel(x0_ref, x1_ref, x2_ref, w1_ref, b1_ref, wh_ref, bh_ref,
                      o_ref, *, anchor_num):
    W, _ = o_ref.shape                      # (W, DH)
    x_refs = (x0_ref, x1_ref, x2_ref)       # padded rows h, h+1, h+2: (W+2, C)

    # 3x3 conv as 9 shifted matmuls, f32 accumulation on the MXU.
    acc = jnp.zeros((W, CONV_OUT), jnp.float32)
    for kh in range(3):
        for kw in range(3):
            lhs = x_refs[kh][kw:kw + W, :]                  # (W, C) bf16
            acc = acc + jnp.dot(lhs, w1_ref[kh * 3 + kw],
                                preferred_element_type=jnp.float32)

    feat = jnp.maximum(acc + b1_ref[...], 0.0)              # (W, 512) f32

    # Fused heads: single lane-dense (512, DH) matmul, sigmoid on class cols.
    head = jnp.dot(feat.astype(wh_ref.dtype), wh_ref[...],
                   preferred_element_type=jnp.float32) + bh_ref[...]
    col = jax.lax.broadcasted_iota(jnp.int32, head.shape, 1)
    head = jnp.where(col < anchor_num, jax.nn.sigmoid(head), head)
    o_ref[...] = head.astype(o_ref.dtype)


def rpn_fused_pallas(xpad, w1, b1, wh, bh, anchor_num):
    """xpad: (B, H+2, W+2, C) bf16; w1: (9, C, 512) bf16; b1: (1, 512) f32;
    wh: (512, DH) bf16; bh: (1, DH) f32  ->  (B, H, W, DH) f32."""
    B, Hp2, Wp2, C = xpad.shape
    H, W = Hp2 - 2, Wp2 - 2
    DH = wh.shape[1]

    def x_spec(kh):
        # Row h+kh of the padded input for output row h (kh bound at def time).
        return pl.BlockSpec((None, None, Wp2, C),
                            lambda b, h, kh=kh: (b, h + kh, 0, 0))

    # Explicit VMEM budget: resident weights + double-buffered row/output blocks.
    blk_bytes = (
        2 * w1.size * w1.dtype.itemsize            # conv weight (bf16, resident)
        + 2 * 3 * Wp2 * C * xpad.dtype.itemsize    # 3 padded input rows
        + 2 * (wh.size * wh.dtype.itemsize + bh.size * 4 + b1.size * 4)
        + 2 * W * DH * 4                           # output block
    )
    vmem_limit = int(min(64 * 1024 * 1024, blk_bytes + (8 << 20)))

    kernel = functools.partial(_rpn_fused_kernel, anchor_num=anchor_num)
    return pl.pallas_call(
        kernel,
        out_shape=jax.ShapeDtypeStruct((B, H, W, DH), jnp.float32),
        grid_spec=pltpu.PrefetchScalarGridSpec(
            num_scalar_prefetch=0,
            grid=(B, H),
            in_specs=[
                x_spec(0), x_spec(1), x_spec(2),
                pl.BlockSpec((9, C, CONV_OUT), lambda b, h: (0, 0, 0)),
                pl.BlockSpec((1, CONV_OUT), lambda b, h: (0, 0)),
                pl.BlockSpec((CONV_OUT, DH), lambda b, h: (0, 0)),
                pl.BlockSpec((1, DH), lambda b, h: (0, 0)),
            ],
            out_specs=pl.BlockSpec((None, None, W, DH),
                                   lambda b, h: (b, h, 0, 0)),
        ),
        compiler_params=pltpu.CompilerParams(
            dimension_semantics=("parallel", "parallel"),
            vmem_limit_bytes=vmem_limit,
        ),
    )(xpad, xpad, xpad, w1, b1, wh, bh)


# ---------------------------------------------------------------------------
# Parameter preparation (outside jit): layout + bf16 cast done once.
# ---------------------------------------------------------------------------
def prepare_rpn_params(params, anchor_num):
    A = anchor_num
    C = params["w1"].shape[1]
    # OIHW (512, C, 3, 3) -> (kh, kw, C, 512) -> (9, C, 512), bf16.
    w1 = jnp.transpose(params["w1"], (2, 3, 1, 0)).reshape(9, C, CONV_OUT)
    w1 = w1.astype(jnp.bfloat16)
    b1 = params["b1"].reshape(1, CONV_OUT).astype(jnp.float32)

    # Concatenate the two 1x1 heads into one lane-dense, 128-padded matrix.
    wc = params["wc"].reshape(A, CONV_OUT).T            # (512, A)
    wr = params["wr"].reshape(4 * A, CONV_OUT).T        # (512, 4A)
    wh = jnp.concatenate([wc, wr], axis=1)              # (512, 5A)
    bh = jnp.concatenate([params["bc"], params["br"]]).reshape(1, 5 * A)
    DH = max(128, ((5 * A + 127) // 128) * 128)
    wh = jnp.pad(wh, ((0, 0), (0, DH - 5 * A))).astype(jnp.bfloat16)
    bh = jnp.pad(bh, ((0, 0), (0, DH - 5 * A))).astype(jnp.float32)
    return {"w1": w1, "b1": b1, "wh": wh, "bh": bh}


@functools.partial(jax.jit, static_argnames=("anchor_num",))
def rpn_forward(x, prep, anchor_num):
    B, C, H, W = x.shape
    A = anchor_num

    # NCHW -> padded NHWC in bf16 (only 1x activation traffic, no im2col).
    x_nhwc = jnp.transpose(x, (0, 2, 3, 1)).astype(jnp.bfloat16)
    xpad = jnp.pad(x_nhwc, ((0, 0), (1, 1), (1, 1), (0, 0)))

    out = rpn_fused_pallas(xpad, prep["w1"], prep["b1"], prep["wh"], prep["bh"], A)

    cls_nhwc = out[..., :A]              # (B, H, W, A)
    reg_nhwc = out[..., A:5 * A]         # (B, H, W, 4A)

    # Back to NCHW, then PyTorch .view(B, -1, 1) / .view(B, -1, 4) semantics.
    class_result = jnp.transpose(cls_nhwc, (0, 3, 1, 2)).reshape(B, -1, 1)
    regress_result = jnp.transpose(reg_nhwc, (0, 3, 1, 2)).reshape(B, -1, 4)
    return class_result, regress_result


# ---------------------------------------------------------------------------
# Pure-JAX reference (lax.conv, f32) for a sanity check.
# ---------------------------------------------------------------------------
def rpn_reference(x, params, anchor_num):
    B = x.shape[0]
    dn = ("NCHW", "OIHW", "NCHW")
    f = jax.lax.conv_general_dilated(x, params["w1"], (1, 1), "SAME",
                                     dimension_numbers=dn)
    f = jnp.maximum(f + params["b1"][None, :, None, None], 0.0)
    cls = jax.lax.conv_general_dilated(f, params["wc"], (1, 1), "SAME",
                                       dimension_numbers=dn)
    cls = jax.nn.sigmoid(cls + params["bc"][None, :, None, None])
    reg = jax.lax.conv_general_dilated(f, params["wr"], (1, 1), "SAME",
                                       dimension_numbers=dn)
    reg = reg + params["br"][None, :, None, None]
    return cls.reshape(B, -1, 1), reg.reshape(B, -1, 4)


def init_params(key, anchor_num):
    k1, k2, k3 = jax.random.split(key, 3)
    scale = 0.02
    return {
        "w1": scale * jax.random.normal(k1, (CONV_OUT, FEATURE_CHANNEL, 3, 3), jnp.float32),
        "b1": jnp.linspace(-0.1, 0.1, CONV_OUT, dtype=jnp.float32),
        "wc": scale * jax.random.normal(k2, (anchor_num, CONV_OUT, 1, 1), jnp.float32),
        "bc": jnp.linspace(-0.05, 0.05, anchor_num, dtype=jnp.float32),
        "wr": scale * jax.random.normal(k3, (4 * anchor_num, CONV_OUT, 1, 1), jnp.float32),
        "br": jnp.linspace(-0.05, 0.05, 4 * anchor_num, dtype=jnp.float32),
    }


if __name__ == "__main__":
    key = jax.random.PRNGKey(0)
    kx, kp = jax.random.split(key)

    B, H, W = 2, 8, 16
    anchor_num = 3
    x = jax.random.normal(kx, (B, FEATURE_CHANNEL, H, W), jnp.float32)
    params = init_params(kp, anchor_num)
    prep = prepare_rpn_params(params, anchor_num)

    class_result, regress_result = rpn_forward(x, prep, anchor_num)
    class_result = jax.block_until_ready(class_result)
    regress_result = jax.block_until_ready(regress_result)

    assert class_result.shape == (B, anchor_num * H * W, 1)
    assert regress_result.shape == (B, anchor_num * H * W, 4)

    # Sanity check against a pure-JAX f32 conv reference (bf16 MXU operands,
    # f32 accumulation -> slightly looser tolerance).
    ref_cls, ref_reg = rpn_reference(x, params, anchor_num)
    assert jnp.allclose(class_result, ref_cls, atol=2e-2, rtol=2e-2)
    assert jnp.allclose(regress_result, ref_reg, atol=2e-2, rtol=2e-2)

    print("KERNEL_OK")
</pallas_src>

<mosaic_0001>
module attributes {stable_mosaic.version = 11 : i64} {
  func.func @_rpn_fused_kernel(%arg0: i32, %arg1: i32, %arg2: memref<1x1x18x1024xbf16, #tpu.memory_space<vmem>>, %arg3: memref<1x1x18x1024xbf16, #tpu.memory_space<vmem>>, %arg4: memref<1x1x18x1024xbf16, #tpu.memory_space<vmem>>, %arg5: memref<9x1024x512xbf16, #tpu.memory_space<vmem>>, %arg6: memref<1x512xf32, #tpu.memory_space<vmem>>, %arg7: memref<512x128xbf16, #tpu.memory_space<vmem>>, %arg8: memref<1x128xf32, #tpu.memory_space<vmem>>, %arg9: memref<1x1x16x128xf32, #tpu.memory_space<vmem>>) attributes {dimension_semantics = [#tpu.dimension_semantics<parallel>, #tpu.dimension_semantics<parallel>], iteration_bounds = array<i64: 2, 8>, scalar_prefetch = 0 : i64, scratch_operands = 0 : i64, tpu.core_type = #tpu.core_type<tc>, window_params = [{transform_indices = @transform_0, window_bounds = array<i64: 1, 1, 18, 1024>}, {transform_indices = @transform_1, window_bounds = array<i64: 1, 1, 18, 1024>}, {transform_indices = @transform_2, window_bounds = array<i64: 1, 1, 18, 1024>}, {pipeline_mode = #tpu.pipeline_mode<synchronous>, transform_indices = @transform_3, window_bounds = array<i64: 9, 1024, 512>}, {pipeline_mode = #tpu.pipeline_mode<synchronous>, transform_indices = @transform_4, window_bounds = array<i64: 1, 512>}, {pipeline_mode = #tpu.pipeline_mode<synchronous>, transform_indices = @transform_5, window_bounds = array<i64: 512, 128>}, {pipeline_mode = #tpu.pipeline_mode<synchronous>, transform_indices = @transform_6, window_bounds = array<i64: 1, 128>}, {transform_indices = @transform_7, window_bounds = array<i64: 1, 1, 16, 128>}]} {
    %cst = arith.constant 0.000000e+00 : f32
    %0 = vector.broadcast %cst : f32 to vector<16x512xf32>
    %c0 = arith.constant 0 : index
    %c0_0 = arith.constant 0 : index
    %c0_1 = arith.constant 0 : index
    %c0_2 = arith.constant 0 : index
    %1 = vector.load %arg2[%c0, %c0_0, %c0_1, %c0_2] : memref<1x1x18x1024xbf16, #tpu.memory_space<vmem>>, vector<1x1x16x1024xbf16>
    %2 = vector.shape_cast %1 : vector<1x1x16x1024xbf16> to vector<16x1024xbf16>
    %c0_3 = arith.constant 0 : index
    %c0_4 = arith.constant 0 : index
    %c0_5 = arith.constant 0 : index
    %3 = vector.load %arg5[%c0_3, %c0_4, %c0_5] : memref<9x1024x512xbf16, #tpu.memory_space<vmem>>, vector<1x1024x512xbf16>
    %4 = vector.shape_cast %3 : vector<1x1024x512xbf16> to vector<1024x512xbf16>
    %cst_6 = arith.constant dense<0.000000e+00> : vector<16x512xf32>
    %5 = tpu.matmul %2, %4, %cst_6 {dimension_numbers = #tpu.dot_dimension_numbers<[1], [0], [0], [1], [0, 0, 1, 1], [], []>} : vector<16x1024xbf16>, vector<1024x512xbf16>, vector<16x512xf32> -> vector<16x512xf32>
    %6 = arith.addf %0, %5 : vector<16x512xf32>
    %c0_7 = arith.constant 0 : index
    %c0_8 = arith.constant 0 : index
    %c1 = arith.constant 1 : index
    %c0_9 = arith.constant 0 : index
    %7 = vector.load %arg2[%c0_7, %c0_8, %c1, %c0_9] : memref<1x1x18x1024xbf16, #tpu.memory_space<vmem>>, vector<1x1x16x1024xbf16>
    %8 = vector.shape_cast %7 : vector<1x1x16x1024xbf16> to vector<16x1024xbf16>
    %c1_10 = arith.constant 1 : index
    %c0_11 = arith.constant 0 : index
    %c0_12 = arith.constant 0 : index
    %9 = vector.load %arg5[%c1_10, %c0_11, %c0_12] : memref<9x1024x512xbf16, #tpu.memory_space<vmem>>, vector<1x1024x512xbf16>
    %10 = vector.shape_cast %9 : vector<1x1024x512xbf16> to vector<1024x512xbf16>
    %cst_13 = arith.constant dense<0.000000e+00> : vector<16x512xf32>
    %11 = tpu.matmul %8, %10, %cst_13 {dimension_numbers = #tpu.dot_dimension_numbers<[1], [0], [0], [1], [0, 0, 1, 1], [], []>} : vector<16x1024xbf16>, vector<1024x512xbf16>, vector<16x512xf32> -> vector<16x512xf32>
    %12 = arith.addf %6, %11 : vector<16x512xf32>
    %c0_14 = arith.constant 0 : index
    %c0_15 = arith.constant 0 : index
    %c2 = arith.constant 2 : index
    %c0_16 = arith.constant 0 : index
    %13 = vector.load %arg2[%c0_14, %c0_15, %c2, %c0_16] : memref<1x1x18x1024xbf16, #tpu.memory_space<vmem>>, vector<1x1x16x1024xbf16>
    %14 = vector.shape_cast %13 : vector<1x1x16x1024xbf16> to vector<16x1024xbf16>
    %c2_17 = arith.constant 2 : index
    %c0_18 = arith.constant 0 : index
    %c0_19 = arith.constant 0 : index
    %15 = vector.load %arg5[%c2_17, %c0_18, %c0_19] : memref<9x1024x512xbf16, #tpu.memory_space<vmem>>, vector<1x1024x512xbf16>
    %16 = vector.shape_cast %15 : vector<1x1024x512xbf16> to vector<1024x512xbf16>
    %cst_20 = arith.constant dense<0.000000e+00> : vector<16x512xf32>
    %17 = tpu.matmul %14, %16, %cst_20 {dimension_numbers = #tpu.dot_dimension_numbers<[1], [0], [0], [1], [0, 0, 1, 1], [], []>} : vector<16x1024xbf16>, vector<1024x512xbf16>, vector<16x512xf32> -> vector<16x512xf32>
    %18 = arith.addf %12, %17 : vector<16x512xf32>
    %c0_21 = arith.constant 0 : index
    %c0_22 = arith.constant 0 : index
    %c0_23 = arith.constant 0 : index
    %c0_24 = arith.constant 0 : index
    %19 = vector.load %arg3[%c0_21, %c0_22, %c0_23, %c0_24] : memref<1x1x18x1024xbf16, #tpu.memory_space<vmem>>, vector<1x1x16x1024xbf16>
    %20 = vector.shape_cast %19 : vector<1x1x16x1024xbf16> to vector<16x1024xbf16>
    %c3 = arith.constant 3 : index
    %c0_25 = arith.constant 0 : index
    %c0_26 = arith.constant 0 : index
    %21 = vector.load %arg5[%c3, %c0_25, %c0_26] : memref<9x1024x512xbf16, #tpu.memory_space<vmem>>, vector<1x1024x512xbf16>
    %22 = vector.shape_cast %21 : vector<1x1024x512xbf16> to vector<1024x512xbf16>
    %cst_27 = arith.constant dense<0.000000e+00> : vector<16x512xf32>
    %23 = tpu.matmul %20, %22, %cst_27 {dimension_numbers = #tpu.dot_dimension_numbers<[1], [0], [0], [1], [0, 0, 1, 1], [], []>} : vector<16x1024xbf16>, vector<1024x512xbf16>, vector<16x512xf32> -> vector<16x512xf32>
    %24 = arith.addf %18, %23 : vector<16x512xf32>
    %c0_28 = arith.constant 0 : index
    %c0_29 = arith.constant 0 : index
    %c1_30 = arith.constant 1 : index
    %c0_31 = arith.constant 0 : index
    %25 = vector.load %arg3[%c0_28, %c0_29, %c1_30, %c0_31] : memref<1x1x18x1024xbf16, #tpu.memory_space<vmem>>, vector<1x1x16x1024xbf16>
    %26 = vector.shape_cast %25 : vector<1x1x16x1024xbf16> to vector<16x1024xbf16>
    %c4 = arith.constant 4 : index
    %c0_32 = arith.constant 0 : index
    %c0_33 = arith.constant 0 : index
    %27 = vector.load %arg5[%c4, %c0_32, %c0_33] : memref<9x1024x512xbf16, #tpu.memory_space<vmem>>, vector<1x1024x512xbf16>
    %28 = vector.shape_cast %27 : vector<1x1024x512xbf16> to vector<1024x512xbf16>
    %cst_34 = arith.constant dense<0.000000e+00> : vector<16x512xf32>
    %29 = tpu.matmul %26, %28, %cst_34 {dimension_numbers = #tpu.dot_dimension_numbers<[1], [0], [0], [1], [0, 0, 1, 1], [], []>} : vector<16x1024xbf16>, vector<1024x512xbf16>, vector<16x512xf32> -> vector<16x512xf32>
    %30 = arith.addf %24, %29 : vector<16x512xf32>
    %c0_35 = arith.constant 0 : index
    %c0_36 = arith.constant 0 : index
    %c2_37 = arith.constant 2 : index
    %c0_38 = arith.constant 0 : index
    %31 = vector.load %arg3[%c0_35, %c0_36, %c2_37, %c0_38] : memref<1x1x18x1024xbf16, #tpu.memory_space<vmem>>, vector<1x1x16x1024xbf16>
    %32 = vector.shape_cast %31 : vector<1x1x16x1024xbf16> to vector<16x1024xbf16>
    %c5 = arith.constant 5 : index
    %c0_39 = arith.constant 0 : index
    %c0_40 = arith.constant 0 : index
    %33 = vector.load %arg5[%c5, %c0_39, %c0_40] : memref<9x1024x512xbf16, #tpu.memory_space<vmem>>, vector<1x1024x512xbf16>
    %34 = vector.shape_cast %33 : vector<1x1024x512xbf16> to vector<1024x512xbf16>
    %cst_41 = arith.constant dense<0.000000e+00> : vector<16x512xf32>
    %35 = tpu.matmul %32, %34, %cst_41 {dimension_numbers = #tpu.dot_dimension_numbers<[1], [0], [0], [1], [0, 0, 1, 1], [], []>} : vector<16x1024xbf16>, vector<1024x512xbf16>, vector<16x512xf32> -> vector<16x512xf32>
    %36 = arith.addf %30, %35 : vector<16x512xf32>
    %c0_42 = arith.constant 0 : index
    %c0_43 = arith.constant 0 : index
    %c0_44 = arith.constant 0 : index
    %c0_45 = arith.constant 0 : index
    %37 = vector.load %arg4[%c0_42, %c0_43, %c0_44, %c0_45] : memref<1x1x18x1024xbf16, #tpu.memory_space<vmem>>, vector<1x1x16x1024xbf16>
    %38 = vector.shape_cast %37 : vector<1x1x16x1024xbf16> to vector<16x1024xbf16>
    %c6 = arith.constant 6 : index
    %c0_46 = arith.constant 0 : index
    %c0_47 = arith.constant 0 : index
    %39 = vector.load %arg5[%c6, %c0_46, %c0_47] : memref<9x1024x512xbf16, #tpu.memory_space<vmem>>, vector<1x1024x512xbf16>
    %40 = vector.shape_cast %39 : vector<1x1024x512xbf16> to vector<1024x512xbf16>
    %cst_48 = arith.constant dense<0.000000e+00> : vector<16x512xf32>
    %41 = tpu.matmul %38, %40, %cst_48 {dimension_numbers = #tpu.dot_dimension_numbers<[1], [0], [0], [1], [0, 0, 1, 1], [], []>} : vector<16x1024xbf16>, vector<1024x512xbf16>, vector<16x512xf32> -> vector<16x512xf32>
    %42 = arith.addf %36, %41 : vector<16x512xf32>
    %c0_49 = arith.constant 0 : index
    %c0_50 = arith.constant 0 : index
    %c1_51 = arith.constant 1 : index
    %c0_52 = arith.constant 0 : index
    %43 = vector.load %arg4[%c0_49, %c0_50, %c1_51, %c0_52] : memref<1x1x18x1024xbf16, #tpu.memory_space<vmem>>, vector<1x1x16x1024xbf16>
    %44 = vector.shape_cast %43 : vector<1x1x16x1024xbf16> to vector<16x1024xbf16>
    %c7 = arith.constant 7 : index
    %c0_53 = arith.constant 0 : index
    %c0_54 = arith.constant 0 : index
    %45 = vector.load %arg5[%c7, %c0_53, %c0_54] : memref<9x1024x512xbf16, #tpu.memory_space<vmem>>, vector<1x1024x512xbf16>
    %46 = vector.shape_cast %45 : vector<1x1024x512xbf16> to vector<1024x512xbf16>
    %cst_55 = arith.constant dense<0.000000e+00> : vector<16x512xf32>
    %47 = tpu.matmul %44, %46, %cst_55 {dimension_numbers = #tpu.dot_dimension_numbers<[1], [0], [0], [1], [0, 0, 1, 1], [], []>} : vector<16x1024xbf16>, vector<1024x512xbf16>, vector<16x512xf32> -> vector<16x512xf32>
    %48 = arith.addf %42, %47 : vector<16x512xf32>
    %c0_56 = arith.constant 0 : index
    %c0_57 = arith.constant 0 : index
    %c2_58 = arith.constant 2 : index
    %c0_59 = arith.constant 0 : index
    %49 = vector.load %arg4[%c0_56, %c0_57, %c2_58, %c0_59] : memref<1x1x18x1024xbf16, #tpu.memory_space<vmem>>, vector<1x1x16x1024xbf16>
    %50 = vector.shape_cast %49 : vector<1x1x16x1024xbf16> to vector<16x1024xbf16>
    %c8 = arith.constant 8 : index
    %c0_60 = arith.constant 0 : index
    %c0_61 = arith.constant 0 : index
    %51 = vector.load %arg5[%c8, %c0_60, %c0_61] : memref<9x1024x512xbf16, #tpu.memory_space<vmem>>, vector<1x1024x512xbf16>
    %52 = vector.shape_cast %51 : vector<1x1024x512xbf16> to vector<1024x512xbf16>
    %cst_62 = arith.constant dense<0.000000e+00> : vector<16x512xf32>
    %53 = tpu.matmul %50, %52, %cst_62 {dimension_numbers = #tpu.dot_dimension_numbers<[1], [0], [0], [1], [0, 0, 1, 1], [], []>} : vector<16x1024xbf16>, vector<1024x512xbf16>, vector<16x512xf32> -> vector<16x512xf32>
    %54 = arith.addf %48, %53 : vector<16x512xf32>
    %c0_63 = arith.constant 0 : index
    %c0_64 = arith.constant 0 : index
    %55 = vector.load %arg6[%c0_63, %c0_64] : memref<1x512xf32, #tpu.memory_space<vmem>>, vector<1x512xf32>
    %56 = vector.broadcast %55 : vector<1x512xf32> to vector<16x512xf32>
    %57 = arith.addf %54, %56 : vector<16x512xf32>
    %cst_65 = arith.constant 0.000000e+00 : f32
    %58 = vector.broadcast %cst_65 : f32 to vector<16x512xf32>
    %59 = arith.maximumf %57, %58 : vector<16x512xf32>
    %60 = arith.truncf %59 : vector<16x512xf32> to vector<16x512xbf16>
    %c0_66 = arith.constant 0 : index
    %c0_67 = arith.constant 0 : index
    %61 = vector.load %arg7[%c0_66, %c0_67] : memref<512x128xbf16, #tpu.memory_space<vmem>>, vector<512x128xbf16>
    %cst_68 = arith.constant dense<0.000000e+00> : vector<16x128xf32>
    %62 = tpu.matmul %60, %61, %cst_68 {dimension_numbers = #tpu.dot_dimension_numbers<[1], [0], [0], [1], [0, 0, 1, 1], [], []>} : vector<16x512xbf16>, vector<512x128xbf16>, vector<16x128xf32> -> vector<16x128xf32>
    %c0_69 = arith.constant 0 : index
    %c0_70 = arith.constant 0 : index
    %63 = vector.load %arg8[%c0_69, %c0_70] : memref<1x128xf32, #tpu.memory_space<vmem>>, vector<1x128xf32>
    %64 = vector.broadcast %63 : vector<1x128xf32> to vector<16x128xf32>
    %65 = arith.addf %62, %64 : vector<16x128xf32>
    %66 = tpu.iota {dimensions = array<i32: 1>} : vector<16x128xi32>
    %c3_i32 = arith.constant 3 : i32
    %67 = vector.broadcast %c3_i32 : i32 to vector<16x128xi32>
    %68 = arith.cmpi slt, %66, %67 : vector<16x128xi32>
    %69 = arith.negf %65 : vector<16x128xf32>
    %70 = math.exp %69 : vector<16x128xf32>
    %cst_71 = arith.constant 1.000000e+00 : f32
    %71 = vector.broadcast %cst_71 : f32 to vector<16x128xf32>
    %72 = arith.addf %71, %70 : vector<16x128xf32>
    %73 = arith.divf %71, %72 : vector<16x128xf32>
    %74 = arith.select %68, %73, %65 : vector<16x128xi1>, vector<16x128xf32>
    %c0_72 = arith.constant 0 : index
    %c0_73 = arith.constant 0 : index
    %c0_74 = arith.constant 0 : index
    %c0_75 = arith.constant 0 : index
    %75 = vector.load %arg9[%c0_72, %c0_73, %c0_74, %c0_75] : memref<1x1x16x128xf32, #tpu.memory_space<vmem>>, vector<1x1x16x128xf32>
    %76 = vector.shape_cast %75 : vector<1x1x16x128xf32> to vector<16x128xf32>
    %77 = vector.shape_cast %74 : vector<16x128xf32> to vector<1x1x16x128xf32>
    tpu.vector_store %arg9[%c0_72, %c0_73, %c0_74, %c0_75], %77 {strides = array<i32>} : memref<1x1x16x128xf32, #tpu.memory_space<vmem>>, vector<1x1x16x128xf32>,
    return
  }
  func.func @transform_0(%arg0: i32, %arg1: i32) -> (i32, i32, i32, i32) {
    %c0_i32 = arith.constant 0 : i32
    %0 = arith.addi %arg1, %c0_i32 : i32
    %c0_i32_0 = arith.constant 0 : i32
    %c0_i32_1 = arith.constant 0 : i32
    %c0_i32_2 = arith.constant 0 : i32
    return %arg0, %0, %c0_i32_0, %c0_i32_1 : i32, i32, i32, i32
  }
  func.func @transform_1(%arg0: i32, %arg1: i32) -> (i32, i32, i32, i32) {
    %c1_i32 = arith.constant 1 : i32
    %0 = arith.addi %arg1, %c1_i32 : i32
    %c0_i32 = arith.constant 0 : i32
    %c0_i32_0 = arith.constant 0 : i32
    %c0_i32_1 = arith.constant 0 : i32
    return %arg0, %0, %c0_i32, %c0_i32_0 : i32, i32, i32, i32
  }
  func.func @transform_2(%arg0: i32, %arg1: i32) -> (i32, i32, i32, i32) {
    %c2_i32 = arith.constant 2 : i32
    %0 = arith.addi %arg1, %c2_i32 : i32
    %c0_i32 = arith.constant 0 : i32
    %c0_i32_0 = arith.constant 0 : i32
    %c0_i32_1 = arith.constant 0 : i32
    return %arg0, %0, %c0_i32, %c0_i32_0 : i32, i32, i32, i32
  }
  func.func @transform_3(%arg0: i32, %arg1: i32) -> (i32, i32, i32) {
    %c0_i32 = arith.constant 0 : i32
    %c0_i32_0 = arith.constant 0 : i32
    %c0_i32_1 = arith.constant 0 : i32
    %c0_i32_2 = arith.constant 0 : i32
    return %c0_i32, %c0_i32_0, %c0_i32_1 : i32, i32, i32
  }
  func.func @transform_4(%arg0: i32, %arg1: i32) -> (i32, i32) {
    %c0_i32 = arith.constant 0 : i32
    %c0_i32_0 = arith.constant 0 : i32
    %c0_i32_1 = arith.constant 0 : i32
    return %c0_i32, %c0_i32_0 : i32, i32
  }
  func.func @transform_5(%arg0: i32, %arg1: i32) -> (i32, i32) {
    %c0_i32 = arith.constant 0 : i32
    %c0_i32_0 = arith.constant 0 : i32
    %c0_i32_1 = arith.constant 0 : i32
    return %c0_i32, %c0_i32_0 : i32, i32
  }
  func.func @transform_6(%arg0: i32, %arg1: i32) -> (i32, i32) {
    %c0_i32 = arith.constant 0 : i32
    %c0_i32_0 = arith.constant 0 : i32
    %c0_i32_1 = arith.constant 0 : i32
    return %c0_i32, %c0_i32_0 : i32, i32
  }
  func.func @transform_7(%arg0: i32, %arg1: i32) -> (i32, i32, i32, i32) {
    %c0_i32 = arith.constant 0 : i32
    %c0_i32_0 = arith.constant 0 : i32
    %c0_i32_1 = arith.constant 0 : i32
    return %arg0, %arg1, %c0_i32, %c0_i32_0 : i32, i32, i32, i32
  }
}

</mosaic_0001>

<bundles_post_ra>
// kernel: rpn_forward.1
= control target key start
LH: loop header
LB: loop body
LE: loop exit
PB: predicated region body
PF: predicated region fallthrough
CT: control target
= control target key end

     0   :  { %s26190_s0 = inlined_call_operand.vmem [shape: bf16[2,10,18,1024], index: 0, kind: input, shape index: {}, may-alias: {0,1,2}]   ;;  %s26191_s1 = inlined_call_operand.vmem [shape: bf16[2,10,18,1024], index: 1, kind: input, shape index: {}, may-alias: {0,1,2}]   ;;  %s26192_s2 = inlined_call_operand.vmem [shape: bf16[2,10,18,1024], index: 2, kind: input, shape index: {}, may-alias: {0,1,2}]   ;;  %s26193_s3 = inlined_call_operand.hbm [shape: bf16[9,1024,512], index: 3, kind: input, shape index: {}]   ;;  %s26194_s4 = inlined_call_operand.hbm [shape: f32[1,512], index: 4, kind: input, shape index: {}]   ;;  %s26195_s5 = inlined_call_operand.hbm [shape: bf16[512,128], index: 5, kind: input, shape index: {}]   ;;  %s26196_s6 = inlined_call_operand.hbm [shape: f32[1,128], index: 6, kind: input, shape index: {}]   ;;  %s26197_s7 = inlined_call_operand.vmem [shape: f32[2,8,16,128], index: 7, kind: output, shape index: {}]  }
   0x1   :  { %26202 = sst [smem:[#allocation13_spill]] %s26194_s4 }
   0x2   :  { %12 = vsyncpa [#allocation3], 0 }
   0x3   :  { %13 = vsyncpa [#allocation5], 0 }
   0x4   :  { %14 = vsyncpa [#allocation8], 0  ;;  %s25405_s24 = smov 0   ;;  %s25407_s25 = smov 0  }
   0x5   :  { %s25409_s26 = smov 0   ;;  %s25411_s27 = smov 0  }
   0x6   :  { %s25413_s28 = smov 0  }
   0x7 LB: > { %s25357_s29 = smov [#allocation4]   ;;  %s18800_s8 = sadd.s32 4294967295, %s25355_s28   ;;  %s25355_s28 = sphi %s25413_s28, %s20_s28   ;;  %s25351_s27 = sphi %s25411_s27, %s26217_s27   ;;  %s25347_s26 = sphi %s25409_s26, %s26216_s26   ;;  %s25343_s25 = sphi %s25407_s25, %s26215_s25   ;;  %s25339_s24 = sphi %s25405_s24, %s26214_s24  }
   0x8   : > { %s263_s30 = sshll.u32 %s25357_s29, 4  ;;  %p18802_p0 = scmp.ge.s32.totalorder %s25355_s28, 1  ;;  %s264_s30 = int_to_ptr.vmem [resolvable:$true] %s263_s30 }
   0x9   : > { %p237_p1 = scmp.lt.s32.totalorder %s25355_s28, 17  ;;  %p25433_p2 = scmp.eq.s32.totalorder %s18800_s8, 0 }
   0xa   : > { %s29_s12 = sadd.s32 1, %s25347_s26  ;;  %s26207_s4 = sld [smem:[#allocation13_spill]] }
   0xb   : > { %s26203_s9 = scalar_select %p25433_p2, 1, 0 }
   0xc   : > { %p25437_p3 = pnand %p18802_p0, %p237_p1  ;;  %p25450_p6 = scmp.ge.s32.totalorder %s29_s12, 8 }
   0xe   : > { %s26204_s10 = scalar_select %p25437_p3, 1, 0 }
   0xf   : > { %p21592_p4 = pneg %p25437_p3 }
  0x10   : > { %s26206_s13 = scalar_select %p25450_p6, 1, 0 }
  0x11   : > { %p25445_p5 = pnand %p25433_p2, %p21592_p4  ;;  %s25193_s16 = scalar_lea.hbm %s26207_s4, 64 }
  0x12   : > { %p25194_p7 = scmp.ne.s32.totalorder %s26207_s4, %s25193_s16  ;;  %p25200_p11 = scmp.lt.u32.totalorder %s25193_s16, %s26207_s4 }
  0x13   : > { %p25462_p8 = pneg %p25445_p5 }
  0x15   : > { %p25196_p9 = pnand %p25462_p8, %p25194_p7 }
  0x17   : > { %p25197_p10 = pneg %p25196_p9 }
  0x19   : > { %p25202_p12 = pnand %p25200_p11, %p25197_p10 }
  0x1b   : > { %25205 = shalt.err (!%p25202_p12)
}
  0x1c   : > { %s25206_s22 = scalar_lea.vmem %s264_s30, 64  ;;  %p25214_p4 = scmp.lt.s32.totalorder %s264_s30, %s264_s30 }
  0x1d   : > { %p25207_p13 = scmp.ne.s32.totalorder %s264_s30, %s25206_s22  ;;  %p25215_p2 = scmp.lt.s32.totalorder %s25206_s22, %s25206_s22 }
  0x1f   : > { %p25209_p0 = pnand %p25207_p13, %p25462_p8  ;;  %p25216_p3 = por %p25215_p2, %p25214_p4 }
  0x21   : > { %p25210_p1 = pneg %p25209_p0 }
  0x23   : > { %p25217_p6 = pnand %p25216_p3, %p25210_p1 }
  0x25   : > { %25220 = shalt.err (!%p25217_p6)
}
  0x26   : > { %21598 = dma.hbm_to_vmem [thread:$0]  (!%p25445_p5), %s26207_s4, 64, %s264_s30, [#allocation5]  }
  0x27   : > { %p26209_p7 = scmp.ne.s32.totalorder %s26206_s13, 0  ;;  %s32_s8 = sadd.s32 1, %s25351_s27 }
  0x28   : > { %s25358_s14 = smov [#allocation2]   ;;  %s25221_s18 = scalar_lea.hbm %s26193_s3, 294912 }
  0x29   : > { %s26219_s12 = smov (%p26209_p7, %s29_s12), 0  ;;  %s26221_s8 = smov (!%p26209_p7, %s32_s8), %s25351_s27 }
  0x2a   : > { %s249_s15 = sshll.u32 %s25358_s14, 4  ;;  %p34_p2 = scmp.ge.s32.totalorder %s26221_s8, 2  ;;  %s250_s15 = int_to_ptr.vmem [resolvable:$true] %s249_s15 }
  0x2b   : > { %p25222_p3 = scmp.ne.s32.totalorder %s26193_s3, %s25221_s18  ;;  %p25228_p10 = scmp.lt.u32.totalorder %s25221_s18, %s26193_s3 }
  0x2c   : > { %s26223_s8 = smov (%p34_p2, %s26221_s8), 0 }
  0x2d   : > { %26210 = sst [smem:[#allocation12_spill]] %s26223_s8  ;;  %p25224_p6 = pnand %p25222_p3, %p25462_p8 }
  0x2f   : > { %p25225_p9 = pneg %p25224_p6 }
  0x31   : > { %p25230_p11 = pnand %p25228_p10, %p25225_p9 }
  0x33   : > { %25233 = shalt.err (!%p25230_p11)
}
  0x34   : > { %s25234_s22 = scalar_lea.vmem %s250_s15, 294912  ;;  %p25242_p1 = scmp.lt.s32.totalorder %s250_s15, %s250_s15 }
  0x35   : > { %p25235_p12 = scmp.ne.s32.totalorder %s250_s15, %s25234_s22  ;;  %p25243_p4 = scmp.lt.s32.totalorder %s25234_s22, %s25234_s22 }
  0x37   : > { %p25237_p13 = pnand %p25235_p12, %p25462_p8  ;;  %p25244_p7 = por %p25243_p4, %p25242_p1 }
  0x39   : > { %p25238_p0 = pneg %p25237_p13 }
  0x3b   : > { %p25245_p2 = pnand %p25244_p7, %p25238_p0 }
  0x3d   : > { %25248 = shalt.err (!%p25245_p2)
}
  0x3e   : > { %s25359_s23 = smov 256   ;;  %s25360_s29 = smov 16  }
  0x3f   : > { %21595 = dma.hbm_to_vmem [thread:$0]  (!%p25445_p5), %s26193_s3, 294912, %s250_s15, [#allocation3], %s25359_s23, %s25359_s23, %s25360_s29  }
  0x40   : > { %s25361_s17 = smov [#allocation6]   ;;  %s25249_s30 = scalar_lea.hbm %s26195_s5, 4096 }
  0x41   : > { %s273_s18 = sshll.u32 %s25361_s17, 4  ;;  %p25250_p3 = scmp.ne.s32.totalorder %s26195_s5, %s25249_s30  ;;  %s274_s18 = int_to_ptr.vmem [resolvable:$true] %s273_s18 }
  0x42   : > { %p25256_p10 = scmp.lt.u32.totalorder %s25249_s30, %s26195_s5 }
  0x43   : > { %p25252_p6 = pnand %p25250_p3, %p25462_p8 }
  0x45   : > { %p25253_p9 = pneg %p25252_p6 }
  0x47   : > { %p25258_p11 = pnand %p25256_p10, %p25253_p9 }
  0x49   : > { %25261 = shalt.err (!%p25258_p11)
}
  0x4a   : > { %s25262_s15 = scalar_lea.vmem %s274_s18, 4096  ;;  %p25270_p1 = scmp.lt.s32.totalorder %s274_s18, %s274_s18 }
  0x4b   : > { %p25263_p12 = scmp.ne.s32.totalorder %s274_s18, %s25262_s15  ;;  %p25271_p4 = scmp.lt.s32.totalorder %s25262_s15, %s25262_s15 }
  0x4d   : > { %p25265_p13 = pnand %p25263_p12, %p25462_p8  ;;  %p25272_p7 = por %p25271_p4, %p25270_p1 }
  0x4f   : > { %p25266_p0 = pneg %p25265_p13 }
  0x51   : > { %p25273_p2 = pnand %p25272_p7, %p25266_p0 }
  0x53   : > { %25276 = shalt.err (!%p25273_p2)
}
  0x54   : > { %s25362_s23 = smov 64   ;;  %s25363_s29 = smov 4  }
  0x55   : > { %21601 = dma.hbm_to_vmem [thread:$0]  (!%p25445_p5), %s26195_s5, 4096, %s274_s18, [#allocation5], %s25362_s23, %s25362_s23, %s25363_s29  }
  0x56   : > { %s25364_s14 = smov [#allocation7]   ;;  %s25277_s21 = scalar_lea.hbm %s26196_s6, 16 }
  0x57   : > { %s287_s16 = sshll.u32 %s25364_s14, 4  ;;  %p25278_p3 = scmp.ne.s32.totalorder %s26196_s6, %s25277_s21  ;;  %s288_s16 = int_to_ptr.vmem [resolvable:$true] %s287_s16 }
  0x58   : > { %p25284_p10 = scmp.lt.u32.totalorder %s25277_s21, %s26196_s6 }
  0x59   : > { %p25280_p6 = pnand %p25278_p3, %p25462_p8 }
  0x5b   : > { %p25281_p9 = pneg %p25280_p6 }
  0x5d   : > { %p25286_p11 = pnand %p25284_p10, %p25281_p9 }
  0x5f   : > { %25289 = shalt.err (!%p25286_p11)
}
  0x60   : > { %s25290_s18 = scalar_lea.vmem %s288_s16, 16  ;;  %s25297_s23 = scalar_lea.vmem %s288_s16, 32 }
  0x61   : > { %p25291_p12 = scmp.ne.s32.totalorder %s288_s16, %s25290_s18  ;;  %p25298_p1 = scmp.lt.s32.totalorder %s288_s16, %s288_s16 }
  0x62   : > { %p25299_p4 = scmp.lt.s32.totalorder %s25297_s23, %s25290_s18 }
  0x63   : > { %p25293_p13 = pnand %p25291_p12, %p25462_p8 }
  0x64   : > { %p25300_p7 = por %p25299_p4, %p25298_p1 }
  0x65   : > { %p25294_p0 = pneg %p25293_p13 }
  0x67   : > { %p25301_p2 = pnand %p25300_p7, %p25294_p0 }
  0x69   : > { %25304 = shalt.err (!%p25301_p2)
}
  0x6a   : > { %21604 = dma.hbm_to_vmem [thread:$0]  (!%p25445_p5), %s26196_s6, 16, %s288_s16, [#allocation8]  }
  0x6b   : > { %p26211_p3 = scmp.ne.s32.totalorder %s26204_s10, 0 }
  0x6c   : > { %p26212_p6 = scmp.ne.s32.totalorder (!%p26211_p3), %s26203_s9, 0 }
  0x6d   : > { %340 = sbr.rel (%p26211_p3) target bundleno = 2897 (0xb51), region = 48 }
  0x74   : > { %25326 = dma.done.wait (%p26212_p6), [#allocation3], 294912  }
  0x75   : > { %25328 = vsyncadd (%p26212_p6), [#allocation3], 4294672384 }
  0x76   : > { %25330 = dma.done.wait (%p26212_p6), [#allocation5], 4160  }
  0x77   : > { %25332 = vsyncadd (%p26212_p6), [#allocation5], 4294963136 }
  0x78   : > { %25334 = dma.done.wait (%p26212_p6), [#allocation8], 16  }
  0x79   : > { %25336 = vsyncadd (%p26212_p6), [#allocation8], 4294967280  ;;  %v21661_v0 = vld [vmem:[#allocation2 + $0x804] ss:$16 sps:$4 sm:$0xff]   ;;  %v21663_v1 = vld [vmem:[#allocation2 + $0x80c] ss:$16 sps:$4 sm:$0xff]  }
  0x7a   : > { %2415 = vmatprep.subr.bf16.mxu0 %v21661_v0  ;;  %v21665_v2 = vld [vmem:[#allocation2 + $0x800] ss:$16 sps:$4 sm:$0xff]   ;;  %v21666_v3 = vld [vmem:[#allocation2 + $0x808] ss:$16 sps:$4 sm:$0xff]   ;;  %2587 = vmatprep.subr.bf16.mxu1 %v21663_v1  ;;  %v21667_v4 = vld [vmem:[#allocation2 + $0x824] ss:$16 sps:$4 sm:$0xff]  }
  0x7b   : > { %2416 = vmatpush1.bf16.msra.mxu0 %v21665_v2  ;;  %2588 = vmatpush1.bf16.msra.mxu1 %v21666_v3  ;;  %v21669_v5 = vld [vmem:[#allocation2 + $0x82c] ss:$16 sps:$4 sm:$0xff]   ;;  %v21671_v6 = vld [vmem:[#allocation2 + $0x820] ss:$16 sps:$4 sm:$0xff]   ;;  %v21672_v7 = vld [vmem:[#allocation2 + $0x828] ss:$16 sps:$4 sm:$0xff]  }
  0x7c   : > { %2417 = vmatprep.subr.bf16.mxu0 %v21667_v4  ;;  %2589 = vmatprep.subr.bf16.mxu1 %v21669_v5  ;;  %v21673_v8 = vld [vmem:[#allocation2 + $0x844] ss:$16 sps:$4 sm:$0xff]   ;;  %v21675_v9 = vld [vmem:[#allocation2 + $0x84c] ss:$16 sps:$4 sm:$0xff]   ;;  %v21677_v10 = vld [vmem:[#allocation2 + $0x840] ss:$16 sps:$4 sm:$0xff]  }
  0x7d   : > { %v21678_v11 = vld [vmem:[#allocation2 + $0x848] ss:$16 sps:$4 sm:$0xff]   ;;  %v21679_v12 = vld [vmem:[#allocation2 + $0x864] ss:$16 sps:$4 sm:$0xff]   ;;  %v21681_v13 = vld [vmem:[#allocation2 + $0x86c] ss:$16 sps:$4 sm:$0xff]  }
  0x7e   : > { %v21683_v14 = vld [vmem:[#allocation2 + $0x860] ss:$16 sps:$4 sm:$0xff]   ;;  %v21684_v15 = vld [vmem:[#allocation2 + $0x868] ss:$16 sps:$4 sm:$0xff]   ;;  %v21685_v16 = vld [vmem:[#allocation2 + $0x884] ss:$16 sps:$4 sm:$0xff]  }
  0x7f   : > { %2418 = vmatpush1.bf16.msra.mxu0 %v21671_v6  ;;  %2590 = vmatpush1.bf16.msra.mxu1 %v21672_v7  ;;  %v21687_v17 = vld [vmem:[#allocation2 + $0x88c] ss:$16 sps:$4 sm:$0xff]   ;;  %v21689_v18 = vld [vmem:[#allocation2 + $0x880] ss:$16 sps:$4 sm:$0xff]   ;;  %v21690_v19 = vld [vmem:[#allocation2 + $0x888] ss:$16 sps:$4 sm:$0xff]  }
  0x80   : > { %2419 = vmatprep.subr.bf16.mxu0 %v21673_v8  ;;  %2591 = vmatprep.subr.bf16.mxu1 %v21675_v9  ;;  %v21691_v20 = vld [vmem:[#allocation2 + $0x8a4] ss:$16 sps:$4 sm:$0xff]   ;;  %v21693_v21 = vld [vmem:[#allocation2 + $0x8ac] ss:$16 sps:$4 sm:$0xff]   ;;  %v21695_v22 = vld [vmem:[#allocation2 + $0x8a0] ss:$16 sps:$4 sm:$0xff]  }
  0x81   : > { %v21696_v23 = vld [vmem:[#allocation2 + $0x8a8] ss:$16 sps:$4 sm:$0xff]   ;;  %v21697_v24 = vld [vmem:[#allocation2 + $0x8c4] ss:$16 sps:$4 sm:$0xff]   ;;  %p412_p5 = scmp.lt.s32.totalorder %s25343_s25, 1  ;;  %p414_p8 = scmp.lt.s32.totalorder %s25339_s24, 9 }
  0x82   : > { %v21699_v25 = vld [vmem:[#allocation2 + $0x8cc] ss:$16 sps:$4 sm:$0xff]   ;;  %v21701_v26 = vld [vmem:[#allocation2 + $0x8c0] ss:$16 sps:$4 sm:$0xff]   ;;  %v21702_v27 = vld [vmem:[#allocation2 + $0x8c8] ss:$16 sps:$4 sm:$0xff]  }
  0x83   : > { %2420 = vmatpush1.bf16.msra.mxu0 %v21677_v10  ;;  %2592 = vmatpush1.bf16.msra.mxu1 %v21678_v11  ;;  %v21703_v28 = vld [vmem:[#allocation2 + $0x8e4] ss:$16 sps:$4 sm:$0xff]   ;;  %s26225_s25 = smov (!%p412_p5, %s25343_s25), 1  ;;  %v21705_v29 = vld [vmem:[#allocation2 + $0x8ec] ss:$16 sps:$4 sm:$0xff]   ;;  %vm4672_vm1 = vcmask 1046528  }
  0x84   : > { %2421 = vmatprep.subr.bf16.mxu0 %v21679_v12  ;;  %2593 = vmatprep.subr.bf16.mxu1 %v21681_v13  ;;  %s415_s9 = scalar_select %p414_p8, %s25339_s24, 9  ;;  %v21707_v30 = vld [vmem:[#allocation2 + $0x8e0] ss:$16 sps:$4 sm:$0xff]   ;;  %v21708_v31 = vld [vmem:[#allocation2 + $0x8e8] ss:$16 sps:$4 sm:$0xff]  }
  0x85   : > { %v21709_v32 = vld [vmem:[#allocation2 + $0x904] ss:$16 sps:$4 sm:$0xff]   ;;  %s25563_s10 = smul.u32 240, %s26225_s25  ;;  %v21711_v33 = vld [vmem:[#allocation2 + $0x90c] ss:$16 sps:$4 sm:$0xff]   ;;  %s421_s20 = sadd.s32 1, %s25339_s24 }
  0x86   : > { %s21572_s11 = smul.u32 24, %s415_s9  ;;  %v21713_v34 = vld [vmem:[#allocation2 + $0x900] ss:$16 sps:$4 sm:$0xff]   ;;  %v21714_v35 = vld [vmem:[#allocation2 + $0x908] ss:$16 sps:$4 sm:$0xff]   ;;  %p424_p9 = scmp.lt.s32.totalorder %s421_s20, 9 }
  0x87   : > { %2422 = vmatpush1.bf16.msra.mxu0 %v21683_v14  ;;  %2594 = vmatpush1.bf16.msra.mxu1 %v21684_v15  ;;  %v21715_v36 = vld [vmem:[#allocation2 + $0x924] ss:$16 sps:$4 sm:$0xff]   ;;  %v21717_v37 = vld [vmem:[#allocation2 + $0x92c] ss:$16 sps:$4 sm:$0xff]   ;;  %v21719_v38 = vld [vmem:[#allocation2 + $0x920] ss:$16 sps:$4 sm:$0xff]  }
  0x88   : > { %2423 = vmatprep.subr.bf16.mxu0 %v21685_v16  ;;  %2595 = vmatprep.subr.bf16.mxu1 %v21687_v17  ;;  %s418_s19 = sadd.s32 %s25563_s10, %s21572_s11  ;;  %v21720_v39 = vld [vmem:[#allocation2 + $0x928] ss:$16 sps:$4 sm:$0xff]   ;;  %v21721_v40 = vld [vmem:[#allocation2 + $0x944] ss:$16 sps:$4 sm:$0xff]   ;;  %v21723_v41 = vld [vmem:[#allocation2 + $0x94c] ss:$16 sps:$4 sm:$0xff]  }
  0x89   : > { %s18813_s8 = sshll.u32 %s418_s19, 2  ;;  %v21725_v42 = vld [vmem:[#allocation2 + $0x940] ss:$16 sps:$4 sm:$0xff]   ;;  %v21726_v43 = vld [vmem:[#allocation2 + $0x948] ss:$16 sps:$4 sm:$0xff]   ;;  %s26227_s20 = smov (!%p424_p9, %s421_s20), 9 }
  0x8a   : > { %s25569_s17 = scalar_lea.vmem %s26190_s0, %s18813_s8  ;;  %v21727_v44 = vld [vmem:[#allocation2 + $0x964] ss:$16 sps:$4 sm:$0xff]   ;;  %v21729_v45 = vld [vmem:[#allocation2 + $0x96c] ss:$16 sps:$4 sm:$0xff]   ;;  %v21731_v46 = vld [vmem:[#allocation2 + $0x960] ss:$16 sps:$4 sm:$0xff]  }
  0x8b   : > { %2424 = vmatpush1.bf16.msra.mxu0 %v21689_v18  ;;  %2596 = vmatpush1.bf16.msra.mxu1 %v21690_v19  ;;  %v453_v47 = vld [vmem:[%s25569_s17] sm:$0xff]  ;;  %v21732_v50 = vld [vmem:[#allocation2 + $0x968] ss:$16 sps:$4 sm:$0xff]   ;;  %v21735_v54 = vld [vmem:[#allocation2 + $0x98c] ss:$16 sps:$4 sm:$0xff]   ;;  %s21574_s21 = smul.u32 24, %s26227_s20 }
  0x8c   : > { %2425 = vmatprep.subr.bf16.mxu0 %v21691_v20  ;;  %2597 = vmatprep.subr.bf16.mxu1 %v21693_v21  ;;  %v457_v48 = vld [vmem:[%s25569_s17 + $0x20] sm:$0xff]  ;;  %v21738_v59 = vld [vmem:[#allocation2 + $0x988] ss:$16 sps:$4 sm:$0xff]   ;;  %v21741_v0 = vld [vmem:[#allocation2 + $0x9ac] ss:$16 sps:$4 sm:$0xff]   ;;  %s432_s23 = sadd.s32 2, %s25339_s24 }
  0x8d   : > { %v717_v49 = vld [vmem:[%s25569_s17 + $0x40] sm:$0x11]  ;;  %v25574_v52 = vcombine.high %v453_v47, %v457_v48  ;;  %v25581_v62 = vcombine.low %v453_v47, %v457_v48  ;;  %vm1030_vm0 = vsmask.f32 7424  ;;  %v21744_v3 = vld [vmem:[#allocation2 + $0x9a8] ss:$16 sps:$4 sm:$0xff]   ;;  %s428_s30 = sadd.s32 %s21574_s21, %s25563_s10 }
  0x8e   : > { %v21733_v51 = vld [vmem:[#allocation2 + $0x984] ss:$16 sps:$4 sm:$0xff]   ;;  %v25576_v53 = vcombine.high %v717_v49, %v717_v49  ;;  %v21737_v58 = vld [vmem:[#allocation2 + $0x980] ss:$16 sps:$4 sm:$0xff]   ;;  %v25584_v5 = vcombine.low %v717_v49, %v717_v49  ;;  %v21747_v8 = vld [vmem:[#allocation2 + $0x9cc] ss:$16 sps:$4 sm:$0xff]  }
  0x8f   : > { %2426 = vmatpush1.bf16.msra.mxu0 %v21695_v22  ;;  %2598 = vmatpush1.bf16.msra.mxu1 %v21696_v23  ;;  %v1044_v55 = vshrl.u32 %v25574_v52, 16  ;;  %v1046_v56 = vshll.u32 %v25574_v52, 16  ;;  %v21739_v63 = vld [vmem:[#allocation2 + $0x9a4] ss:$16 sps:$4 sm:$0xff]   ;;  %v21743_v2 = vld [vmem:[#allocation2 + $0x9a0] ss:$16 sps:$4 sm:$0xff]  }
  0x90   : > { %2427 = vmatprep.subr.bf16.mxu0 %v21697_v24  ;;  %2599 = vmatprep.subr.bf16.mxu1 %v21699_v25  ;;  %v1051_v57 = vshll.u32 %v25576_v53, 16  ;;  %v1034_v6 = vshll.u32 %v25581_v62, 16  ;;  %v21745_v7 = vld [vmem:[#allocation2 + $0x9c4] ss:$16 sps:$4 sm:$0xff]   ;;  %v21749_v9 = vld [vmem:[#allocation2 + $0x9c0] ss:$16 sps:$4 sm:$0xff]  }
  0x91   : > { %v1048_v60 = vrot.slane %v1046_v56, 1  ;;  %v21750_v10 = vld [vmem:[#allocation2 + $0x9c8] ss:$16 sps:$4 sm:$0xff]   ;;  %v1032_v11 = vshrl.u32 %v25581_v62, 16  ;;  %v1039_v13 = vshll.u32 %v25584_v5, 16  ;;  %s18814_s13 = sshll.u32 %s428_s30, 2 }
  0x92   : > { %v1053_v61 = vrot.slane %v1051_v57, 1  ;;  %v1036_v12 = vrot.slane %v1034_v6, 1  ;;  %v21751_v14 = vld [vmem:[#allocation2 + $0x9e4] ss:$16 sps:$4 sm:$0xff]   ;;  %v21753_v15 = vld [vmem:[#allocation2 + $0x9ec] ss:$16 sps:$4 sm:$0xff]   ;;  %s25764_s18 = scalar_lea.vmem %s26191_s1, %s18814_s13 }
  0x93   : > { %2428 = vmatpush1.bf16.msra.mxu0 %v21701_v26  ;;  %2600 = vmatpush1.bf16.msra.mxu1 %v21702_v27  ;;  %v1049_v1 = vor.u32 %v1048_v60, %v1044_v55  ;;  %v21755_v16 = vld [vmem:[#allocation2 + $0x9e0] ss:$16 sps:$4 sm:$0xff]   ;;  %v21756_v17 = vld [vmem:[#allocation2 + $0x9e8] ss:$16 sps:$4 sm:$0xff]   ;;  %v1041_v19 = vrot.slane %v1039_v13, 1  ;;  %p435_p10 = scmp.lt.s32.totalorder %s432_s23, 9 }
  0x94   : > { %2429 = vmatprep.subr.bf16.mxu0 %v21703_v28  ;;  %2601 = vmatprep.subr.bf16.mxu1 %v21705_v29  ;;  %v1037_v18 = vor.u32 %v1036_v12, %v1032_v11  ;;  %v21760_v20 = vld [vmem:[#allocation2 + $0xa04] ss:$16 sps:$4 sm:$0xff]   ;;  %v21763_v21 = vld [vmem:[#allocation2 + $0xa0c] ss:$16 sps:$4 sm:$0xff]   ;;  %v21758_v22 = vld [vmem:[#allocation2 + $0xa00] ss:$16 sps:$4 sm:$0xff]  }
  0x95   : > { %v1054_v4 = vsel %vm1030_vm0, %v1049_v1, %v1053_v61  ;;  %v21761_v23 = vld [vmem:[#allocation2 + $0xa08] ss:$16 sps:$4 sm:$0xff]   ;;  %v21767_v25 = vld [vmem:[#allocation2 + $0xa24] ss:$16 sps:$4 sm:$0xff]   ;;  %v21770_v26 = vld [vmem:[#allocation2 + $0xa2c] ss:$16 sps:$4 sm:$0xff]  }
  0x96   : > { %2447 = vmatprep.mubr.bf16.mxu0 %v1054_v4  ;;  %2619 = vmatprep.mubr.bf16.mxu1 %v1054_v4  ;;  %v1042_v24 = vsel %vm1030_vm0, %v1037_v18, %v1041_v19  ;;  %v21765_v27 = vld [vmem:[#allocation2 + $0xa20] ss:$16 sps:$4 sm:$0xff]   ;;  %v21768_v28 = vld [vmem:[#allocation2 + $0xa28] ss:$16 sps:$4 sm:$0xff]   ;;  %v21773_v29 = vld [vmem:[#allocation2 + $0xa44] ss:$16 sps:$4 sm:$0xff]  }
  0x97   : > { %2430 = vmatpush1.bf16.msra.mxu0 %v21707_v30  ;;  %2602 = vmatpush1.bf16.msra.mxu1 %v21708_v31  ;;  %v21776_v30 = vld [vmem:[#allocation2 + $0xa4c] ss:$16 sps:$4 sm:$0xff]   ;;  %v21771_v31 = vld [vmem:[#allocation2 + $0xa40] ss:$16 sps:$4 sm:$0xff]   ;;  %v21798_v48 = vld [vmem:[#allocation2 + $0xac8] ss:$16 sps:$4 sm:$0xff]  }
  0x98   : > { %2431 = vmatprep.subr.bf16.mxu0 %v21709_v32  ;;  %2603 = vmatprep.subr.bf16.mxu1 %v21711_v33  ;;  %v21774_v32 = vld [vmem:[#allocation2 + $0xa48] ss:$16 sps:$4 sm:$0xff]   ;;  %v21779_v33 = vld [vmem:[#allocation2 + $0xa64] ss:$16 sps:$4 sm:$0xff]   ;;  %v21795_v47 = vld [vmem:[#allocation2 + $0xac0] ss:$16 sps:$4 sm:$0xff]  }
  0x99   : > { %v25591_v49 = vld [vmem:[%s25569_s17 + $0x8] sm:$0xff]  ;;  %v21803_v55 = vld [vmem:[#allocation2 + $0xae4] ss:$16 sps:$4 sm:$0xff]   ;;  %v21801_v60 = vld [vmem:[#allocation2 + $0xae0] ss:$16 sps:$4 sm:$0xff]   ;;  %s26229_s23 = smov (!%p435_p10, %s432_s23), 9 }
  0x9a   : > { %v21806_v56 = vld [vmem:[#allocation2 + $0xaec] ss:$16 sps:$4 sm:$0xff]   ;;  %v21804_v61 = vld [vmem:[#allocation2 + $0xae8] ss:$16 sps:$4 sm:$0xff]   ;;  %v21807_v6 = vld [vmem:[#allocation2 + $0xb00] ss:$16 sps:$4 sm:$0xff]  }
  0x9b   : > { %2432 = vmatpush1.bf16.msra.mxu0 %v21713_v34  ;;  %2604 = vmatpush1.bf16.msra.mxu1 %v21714_v35  ;;  %v21782_v34 = vld [vmem:[#allocation2 + $0xa6c] ss:$16 sps:$4 sm:$0xff]   ;;  %v21777_v35 = vld [vmem:[#allocation2 + $0xa60] ss:$16 sps:$4 sm:$0xff]   ;;  %v21816_v12 = vld [vmem:[#allocation2 + $0xb28] ss:$16 sps:$4 sm:$0xff]  }
  0x9c   : > { %2433 = vmatprep.subr.bf16.mxu0 %v21715_v36  ;;  %2605 = vmatprep.subr.bf16.mxu1 %v21717_v37  ;;  %v21780_v36 = vld [vmem:[#allocation2 + $0xa68] ss:$16 sps:$4 sm:$0xff]   ;;  %v21785_v37 = vld [vmem:[#allocation2 + $0xa84] ss:$16 sps:$4 sm:$0xff]   ;;  %v21812_v1 = vld [vmem:[#allocation2 + $0xb0c] ss:$16 sps:$4 sm:$0xff]  }
  0x9d   : > { %v21813_v11 = vld [vmem:[#allocation2 + $0xb20] ss:$16 sps:$4 sm:$0xff]   ;;  %v21821_v13 = vld [vmem:[#allocation2 + $0xb44] ss:$16 sps:$4 sm:$0xff]   ;;  %v21830_v18 = vld [vmem:[#allocation2 + $0xb6c] ss:$16 sps:$4 sm:$0xff]  }
  0x9e   : > { %v21825_v19 = vld [vmem:[#allocation2 + $0xb60] ss:$16 sps:$4 sm:$0xff]   ;;  %s21575_s29 = smul.u32 24, %s26229_s23  ;;  %p445_p11 = scmp.lt.s32.totalorder %s25339_s24, 7 }
  0x9f   : > { %2434 = vmatpush1.bf16.msra.mxu0 %v21719_v38  ;;  %2606 = vmatpush1.bf16.msra.mxu1 %v21720_v39  ;;  %v21788_v38 = vld [vmem:[#allocation2 + $0xa8c] ss:$16 sps:$4 sm:$0xff]   ;;  %v21783_v39 = vld [vmem:[#allocation2 + $0xa80] ss:$16 sps:$4 sm:$0xff]   ;;  %s18817_s14 = sshll.u32 %s26225_s25, 4 }
  0xa0   : > { %2435 = vmatprep.subr.bf16.mxu0 %v21721_v40  ;;  %2607 = vmatprep.subr.bf16.mxu1 %v21723_v41  ;;  %v21786_v40 = vld [vmem:[#allocation2 + $0xa88] ss:$16 sps:$4 sm:$0xff]   ;;  %v21791_v41 = vld [vmem:[#allocation2 + $0xaa4] ss:$16 sps:$4 sm:$0xff]   ;;  %s439_s4 = sadd.s32 %s21575_s29, %s25563_s10  ;;  %s26231_s24 = smov (!%p445_p11, %s25339_s24), 7 }
  0xa1   : > { %s18815_s9 = sshll.u32 %s439_s4, 2  ;;  %s18816_s10 = sshll.u32 %s26231_s24, 1 }
  0xa2   : > { %s25967_s8 = scalar_lea.vmem %s26192_s2, %s18815_s9  ;;  %s449_s16 = sadd.s32 %s18817_s14, %s18816_s10 }
  0xa3   : > { %2436 = vmatpush1.bf16.msra.mxu0 %v21725_v42  ;;  %2608 = vmatpush1.bf16.msra.mxu1 %v21726_v43  ;;  %v21794_v42 = vld [vmem:[#allocation2 + $0xaac] ss:$16 sps:$4 sm:$0xff]   ;;  %v21789_v43 = vld [vmem:[#allocation2 + $0xaa0] ss:$16 sps:$4 sm:$0xff]  }
  0xa4   : > { %2437 = vmatprep.subr.bf16.mxu0 %v21727_v44  ;;  %2609 = vmatprep.subr.bf16.mxu1 %v21729_v45  ;;  %v21792_v44 = vld [vmem:[#allocation2 + $0xaa8] ss:$16 sps:$4 sm:$0xff]   ;;  %v21797_v45 = vld [vmem:[#allocation2 + $0xac4] ss:$16 sps:$4 sm:$0xff]  }
  0xa7   : > { %2438 = vmatpush1.bf16.msra.mxu0 %v21731_v46  ;;  %2610 = vmatpush1.bf16.msra.mxu1 %v21732_v50  ;;  %v21800_v46 = vld [vmem:[#allocation2 + $0xacc] ss:$16 sps:$4 sm:$0xff]  }
  0xa8   : > { %2439 = vmatprep.subr.bf16.mxu0 %v21733_v51  ;;  %2611 = vmatprep.subr.bf16.mxu1 %v21735_v54  ;;  %v25594_v50 = vld [vmem:[%s25569_s17 + $0x28] sm:$0xff] }
  0xa9   : > { %v25597_v51 = vld [vmem:[%s25569_s17 + $0x48] sm:$0x11]  ;;  %v25601_v54 = vcombine.high %v25591_v49, %v25594_v50 }
  0xaa   : > { %v25605_v57 = vcombine.high %v25597_v51, %v25597_v51 }
  0xab   : > { %2440 = vmatpush1.bf16.msra.mxu0 %v21737_v58  ;;  %2612 = vmatpush1.bf16.msra.mxu1 %v21738_v59  ;;  %v1068_v58 = vshrl.u32 %v25601_v54, 16  ;;  %v1070_v59 = vshll.u32 %v25601_v54, 16 }
  0xac   : > { %2441 = vmatprep.subr.bf16.mxu0 %v21739_v63  ;;  %2613 = vmatprep.subr.bf16.mxu1 %v21741_v0  ;;  %v1075_v63 = vshll.u32 %v25605_v57, 16  ;;  %v21809_v0 = vld [vmem:[#allocation2 + $0xb04] ss:$16 sps:$4 sm:$0xff]  }
  0xaf   : > { %2442 = vmatpush1.bf16.msra.mxu0 %v21743_v2  ;;  %2614 = vmatpush1.bf16.msra.mxu1 %v21744_v3  ;;  %v1072_v2 = vrot.slane %v1070_v59, 1  ;;  %v1077_v3 = vrot.slane %v1075_v63, 1  ;;  %v25627_v59 = vld [vmem:[%s25569_s17 + $0x30] sm:$0xff]  ;;  %v21874_v63 = vld [vmem:[#allocation2 + $0xc4c] ss:$16 sps:$4 sm:$0xff]  }
  0xb0   : > { %2443 = vmatprep.subr.bf16.mxu0 %v21745_v7  ;;  %2615 = vmatprep.subr.bf16.mxu1 %v21747_v8  ;;  %v21810_v7 = vld [vmem:[#allocation2 + $0xb08] ss:$16 sps:$4 sm:$0xff]   ;;  %v21815_v8 = vld [vmem:[#allocation2 + $0xb24] ss:$16 sps:$4 sm:$0xff]  }
  0xb1   : > { %v1073_v4 = vor.u32 %v1072_v2, %v1068_v58  ;;  %v25624_v58 = vld [vmem:[%s25569_s17 + $0x10] sm:$0xff] }
  0xb2   : > { %v21869_v2 = vld [vmem:[#allocation2 + $0xc40] ss:$16 sps:$4 sm:$0xff]  }
  0xb3   : > { %2444 = vmatpush1.bf16.msra.mxu0 %v21749_v9  ;;  %2616 = vmatpush1.bf16.msra.mxu1 %v21750_v10  ;;  %v1078_v9 = vsel %vm1030_vm0, %v1073_v4, %v1077_v3  ;;  %v21818_v10 = vld [vmem:[#allocation2 + $0xb2c] ss:$16 sps:$4 sm:$0xff]   ;;  %v21872_v3 = vld [vmem:[#allocation2 + $0xc48] ss:$16 sps:$4 sm:$0xff]  }
  0xb4   : > { %2445 = vmatprep.subr.bf16.mxu0 %v21751_v14  ;;  %2617 = vmatprep.subr.bf16.mxu1 %v21753_v15  ;;  %v21824_v14 = vld [vmem:[#allocation2 + $0xb4c] ss:$16 sps:$4 sm:$0xff]   ;;  %v21819_v15 = vld [vmem:[#allocation2 + $0xb40] ss:$16 sps:$4 sm:$0xff]  }
  0xb7   : > { %2446 = vmatpush1.bf16.msra.mxu0 %v21755_v16  ;;  %2618 = vmatpush1.bf16.msra.mxu1 %v21756_v17  ;;  %v21822_v16 = vld [vmem:[#allocation2 + $0xb48] ss:$16 sps:$4 sm:$0xff]   ;;  %v21827_v17 = vld [vmem:[#allocation2 + $0xb64] ss:$16 sps:$4 sm:$0xff]  }
  0xb8   : > { %2458 = vmatprep.subr.bf16.mxu0 %v21760_v20  ;;  %2630 = vmatprep.subr.bf16.mxu1 %v21763_v21  ;;  %v21828_v20 = vld [vmem:[#allocation2 + $0xb68] ss:$16 sps:$4 sm:$0xff]   ;;  %v21833_v21 = vld [vmem:[#allocation2 + $0xb84] ss:$16 sps:$4 sm:$0xff]  }
  0xba   : > { %2448 = vmatmul.mubr.bf16.vlgmr.msra.gmra.mrb[0].mxu0 %v1042_v24  ;;  %2620 = vmatmul.mubr.bf16.vlgmr.msra.gmra.mrb[0].mxu1 %v1042_v24  ;;  %v21834_v24 = vld [vmem:[#allocation2 + $0xb88] ss:$16 sps:$4 sm:$0xff]  }
  0xbb   : > { %2459 = vmatpush1.bf16.msra.mxu0 %v21758_v22  ;;  %2631 = vmatpush1.bf16.msra.mxu1 %v21761_v23  ;;  %v21836_v22 = vld [vmem:[#allocation2 + $0xb8c] ss:$16 sps:$4 sm:$0xff]   ;;  %v21831_v23 = vld [vmem:[#allocation2 + $0xb80] ss:$16 sps:$4 sm:$0xff]  }
  0xbc   : > { %2460 = vmatprep.subr.bf16.mxu0 %v21767_v25  ;;  %2632 = vmatprep.subr.bf16.mxu1 %v21770_v26  ;;  %v21839_v25 = vld [vmem:[#allocation2 + $0xba4] ss:$16 sps:$4 sm:$0xff]   ;;  %v25613_v26 = vcombine.low %v25591_v49, %v25594_v50 }
  0xbd   : > { %2490 = vmatprep.mubr.bf16.mxu0 %v1078_v9  ;;  %2662 = vmatprep.mubr.bf16.mxu1 %v1078_v9  ;;  %v21865_v50 = vld [vmem:[#allocation2 + $0xc24] ss:$16 sps:$4 sm:$0xff]   ;;  %v21880_v9 = vld [vmem:[#allocation2 + $0xc6c] ss:$16 sps:$4 sm:$0xff]  }
  0xbf   : > { %2461 = vmatpush1.bf16.msra.mxu0 %v21765_v27  ;;  %2633 = vmatpush1.bf16.msra.mxu1 %v21768_v28  ;;  %v21842_v27 = vld [vmem:[#allocation2 + $0xbac] ss:$16 sps:$4 sm:$0xff]   ;;  %v21837_v28 = vld [vmem:[#allocation2 + $0xba0] ss:$16 sps:$4 sm:$0xff]  }
  0xc0   : > { %2462 = vmatprep.subr.bf16.mxu0 %v21773_v29  ;;  %2634 = vmatprep.subr.bf16.mxu1 %v21776_v30  ;;  %v21840_v29 = vld [vmem:[#allocation2 + $0xba8] ss:$16 sps:$4 sm:$0xff]   ;;  %v21845_v30 = vld [vmem:[#allocation2 + $0xbc4] ss:$16 sps:$4 sm:$0xff]  }
  0xc3   : > { %2463 = vmatpush1.bf16.msra.mxu0 %v21771_v31  ;;  %2635 = vmatpush1.bf16.msra.mxu1 %v21774_v32  ;;  %v25617_v31 = vcombine.low %v25597_v51, %v25597_v51  ;;  %v1058_v32 = vshll.u32 %v25613_v26, 16  ;;  %v21868_v51 = vld [vmem:[#allocation2 + $0xc2c] ss:$16 sps:$4 sm:$0xff]  }
  0xc4   : > { %2464 = vmatprep.subr.bf16.mxu0 %v21779_v33  ;;  %2636 = vmatprep.subr.bf16.mxu1 %v21782_v34  ;;  %v21848_v33 = vld [vmem:[#allocation2 + $0xbcc] ss:$16 sps:$4 sm:$0xff]   ;;  %v21843_v34 = vld [vmem:[#allocation2 + $0xbc0] ss:$16 sps:$4 sm:$0xff]  }
  0xc7   : > { %2465 = vmatpush1.bf16.msra.mxu0 %v21777_v35  ;;  %2637 = vmatpush1.bf16.msra.mxu1 %v21780_v36  ;;  %v21846_v35 = vld [vmem:[#allocation2 + $0xbc8] ss:$16 sps:$4 sm:$0xff]   ;;  %v21851_v36 = vld [vmem:[#allocation2 + $0xbe4] ss:$16 sps:$4 sm:$0xff]  }
  0xc8   : > { %2466 = vmatprep.subr.bf16.mxu0 %v21785_v37  ;;  %2638 = vmatprep.subr.bf16.mxu1 %v21788_v38  ;;  %v1056_v37 = vshrl.u32 %v25613_v26, 16  ;;  %v1060_v38 = vrot.slane %v1058_v32, 1  ;;  %v21899_v32 = vld [vmem:[#allocation2 + $0xce0] ss:$16 sps:$4 sm:$0xff]  }
  0xcb   : > { %2467 = vmatpush1.bf16.msra.mxu0 %v21783_v39  ;;  %2639 = vmatpush1.bf16.msra.mxu1 %v21786_v40  ;;  %v1063_v39 = vshll.u32 %v25617_v31, 16  ;;  %v21854_v40 = vld [vmem:[#allocation2 + $0xbec] ss:$16 sps:$4 sm:$0xff]  }
  0xcc   : > { %2468 = vmatprep.subr.bf16.mxu0 %v21791_v41  ;;  %2640 = vmatprep.subr.bf16.mxu1 %v21794_v42  ;;  %v21849_v41 = vld [vmem:[#allocation2 + $0xbe0] ss:$16 sps:$4 sm:$0xff]   ;;  %v21852_v42 = vld [vmem:[#allocation2 + $0xbe8] ss:$16 sps:$4 sm:$0xff]  }
  0xcf   : > { %2469 = vmatpush1.bf16.msra.mxu0 %v21789_v43  ;;  %2641 = vmatpush1.bf16.msra.mxu1 %v21792_v44  ;;  %v21858_v43 = vld [vmem:[#allocation2 + $0xc04] ss:$16 sps:$4 sm:$0xff]   ;;  %v1061_v44 = vor.u32 %v1060_v38, %v1056_v37  ;;  %v21908_v37 = vld [vmem:[#allocation2 + $0xd08] ss:$16 sps:$4 sm:$0xff]  }
  0xd0   : > { %2470 = vmatprep.subr.bf16.mxu0 %v21797_v45  ;;  %2642 = vmatprep.subr.bf16.mxu1 %v21800_v46  ;;  %v1065_v45 = vrot.slane %v1063_v39, 1  ;;  %v21861_v46 = vld [vmem:[#allocation2 + $0xc0c] ss:$16 sps:$4 sm:$0xff]   ;;  %v21913_v38 = vld [vmem:[#allocation2 + $0xd24] ss:$16 sps:$4 sm:$0xff]  }
  0xd1   : > { %v21916_v39 = vld [vmem:[#allocation2 + $0xd2c] ss:$16 sps:$4 sm:$0xff]  }
  0xd2   : > { %v1066_v49 = vsel %vm1030_vm0, %v1061_v44, %v1065_v45  ;;  %v21917_v44 = vld [vmem:[#allocation2 + $0xd40] ss:$16 sps:$4 sm:$0xff]   ;;  %v21920_v45 = vld [vmem:[#allocation2 + $0xd48] ss:$16 sps:$4 sm:$0xff]  }
  0xd3   : > { %2471 = vmatpush1.bf16.msra.mxu0 %v21795_v47  ;;  %2643 = vmatpush1.bf16.msra.mxu1 %v21798_v48  ;;  %v21856_v47 = vld [vmem:[#allocation2 + $0xc00] ss:$16 sps:$4 sm:$0xff]   ;;  %v21859_v48 = vld [vmem:[#allocation2 + $0xc08] ss:$16 sps:$4 sm:$0xff]  }
  0xd4   : > { %2472 = vmatprep.subr.bf16.mxu0 %v21803_v55  ;;  %2644 = vmatprep.subr.bf16.mxu1 %v21806_v56  ;;  %v21863_v55 = vld [vmem:[#allocation2 + $0xc20] ss:$16 sps:$4 sm:$0xff]   ;;  %v21866_v56 = vld [vmem:[#allocation2 + $0xc28] ss:$16 sps:$4 sm:$0xff]  }
  0xd7   : > { %2473 = vmatpush1.bf16.msra.mxu0 %v21801_v60  ;;  %2645 = vmatpush1.bf16.msra.mxu1 %v21804_v61  ;;  %v25630_v60 = vld [vmem:[%s25569_s17 + $0x50] sm:$0x11] }
  0xd8   : > { %2474 = vmatprep.subr.bf16.mxu0 %v21809_v0  ;;  %2646 = vmatprep.subr.bf16.mxu1 %v21812_v1  ;;  %v21871_v61 = vld [vmem:[#allocation2 + $0xc44] ss:$16 sps:$4 sm:$0xff]   ;;  %v25634_v0 = vcombine.high %v25624_v58, %v25627_v59  ;;  %v25638_v1 = vcombine.high %v25630_v60, %v25630_v60 }
  0xda   : > { %v1092_v4 = vshrl.u32 %v25634_v0, 16 }
  0xdb   : > { %2475 = vmatpush1.bf16.msra.mxu0 %v21807_v6  ;;  %2647 = vmatpush1.bf16.msra.mxu1 %v21810_v7  ;;  %v1094_v6 = vshll.u32 %v25634_v0, 16  ;;  %v1099_v7 = vshll.u32 %v25638_v1, 16 }
  0xdc   : > { %2476 = vmatprep.subr.bf16.mxu0 %v21815_v8  ;;  %2648 = vmatprep.subr.bf16.mxu1 %v21818_v10  ;;  %v21877_v8 = vld [vmem:[#allocation2 + $0xc64] ss:$16 sps:$4 sm:$0xff]  }
  0xdd   : > { %v1096_v10 = vrot.slane %v1094_v6, 1  ;;  %v21935_v6 = vld [vmem:[#allocation2 + $0xda0] ss:$16 sps:$4 sm:$0xff]  }
  0xdf   : > { %2477 = vmatpush1.bf16.msra.mxu0 %v21813_v11  ;;  %2649 = vmatpush1.bf16.msra.mxu1 %v21816_v12  ;;  %v1101_v11 = vrot.slane %v1099_v7, 1  ;;  %v21875_v12 = vld [vmem:[#allocation2 + $0xc60] ss:$16 sps:$4 sm:$0xff]  }
  0xe0   : > { %2478 = vmatprep.subr.bf16.mxu0 %v21821_v13  ;;  %2650 = vmatprep.subr.bf16.mxu1 %v21824_v14  ;;  %v1097_v13 = vor.u32 %v1096_v10, %v1092_v4  ;;  %v21878_v14 = vld [vmem:[#allocation2 + $0xc68] ss:$16 sps:$4 sm:$0xff]   ;;  %v21940_v4 = vld [vmem:[#allocation2 + $0xdac] ss:$16 sps:$4 sm:$0xff]   ;;  %v21943_v10 = vld [vmem:[#allocation2 + $0xdc4] ss:$16 sps:$4 sm:$0xff]  }
  0xe3   : > { %2479 = vmatpush1.bf16.msra.mxu0 %v21819_v15  ;;  %2651 = vmatpush1.bf16.msra.mxu1 %v21822_v16  ;;  %v21883_v15 = vld [vmem:[#allocation2 + $0xc84] ss:$16 sps:$4 sm:$0xff]   ;;  %v21886_v16 = vld [vmem:[#allocation2 + $0xc8c] ss:$16 sps:$4 sm:$0xff]  }
  0xe4   : > { %2480 = vmatprep.subr.bf16.mxu0 %v21827_v17  ;;  %2652 = vmatprep.subr.bf16.mxu1 %v21830_v18  ;;  %v1102_v17 = vsel %vm1030_vm0, %v1097_v13, %v1101_v11  ;;  %v21881_v18 = vld [vmem:[#allocation2 + $0xc80] ss:$16 sps:$4 sm:$0xff]   ;;  %v21946_v11 = vld [vmem:[#allocation2 + $0xdcc] ss:$16 sps:$4 sm:$0xff]  }
  0xe7   : > { %2481 = vmatpush1.bf16.msra.mxu0 %v21825_v19  ;;  %2653 = vmatpush1.bf16.msra.mxu1 %v21828_v20  ;;  %v21884_v19 = vld [vmem:[#allocation2 + $0xc88] ss:$16 sps:$4 sm:$0xff]   ;;  %v21889_v20 = vld [vmem:[#allocation2 + $0xca4] ss:$16 sps:$4 sm:$0xff]  }
  0xe8   : > { %2482 = vmatprep.subr.bf16.mxu0 %v21833_v21  ;;  %2654 = vmatprep.subr.bf16.mxu1 %v21836_v22  ;;  %v21892_v21 = vld [vmem:[#allocation2 + $0xcac] ss:$16 sps:$4 sm:$0xff]   ;;  %v21887_v22 = vld [vmem:[#allocation2 + $0xca0] ss:$16 sps:$4 sm:$0xff]  }
  0xeb   : > { %2483 = vmatpush1.bf16.msra.mxu0 %v21831_v23  ;;  %2655 = vmatpush1.bf16.msra.mxu1 %v21834_v24  ;;  %v21890_v23 = vld [vmem:[#allocation2 + $0xca8] ss:$16 sps:$4 sm:$0xff]   ;;  %v21895_v24 = vld [vmem:[#allocation2 + $0xcc4] ss:$16 sps:$4 sm:$0xff]  }
  0xec   : > { %2484 = vmatprep.subr.bf16.mxu0 %v21839_v25  ;;  %2656 = vmatprep.subr.bf16.mxu1 %v21842_v27  ;;  %v21898_v25 = vld [vmem:[#allocation2 + $0xccc] ss:$16 sps:$4 sm:$0xff]   ;;  %v21893_v27 = vld [vmem:[#allocation2 + $0xcc0] ss:$16 sps:$4 sm:$0xff]  }
  0xef   : > { %2485 = vmatpush1.bf16.msra.mxu0 %v21837_v28  ;;  %2657 = vmatpush1.bf16.msra.mxu1 %v21840_v29  ;;  %v21896_v28 = vld [vmem:[#allocation2 + $0xcc8] ss:$16 sps:$4 sm:$0xff]   ;;  %v21901_v29 = vld [vmem:[#allocation2 + $0xce4] ss:$16 sps:$4 sm:$0xff]  }
  0xf0   : > { %2486 = vmatprep.subr.bf16.mxu0 %v21845_v30  ;;  %2658 = vmatprep.subr.bf16.mxu1 %v21848_v33  ;;  %v21904_v30 = vld [vmem:[#allocation2 + $0xcec] ss:$16 sps:$4 sm:$0xff]   ;;  %v21902_v33 = vld [vmem:[#allocation2 + $0xce8] ss:$16 sps:$4 sm:$0xff]  }
  0xf3   : > { %2487 = vmatpush1.bf16.msra.mxu0 %v21843_v34  ;;  %2659 = vmatpush1.bf16.msra.mxu1 %v21846_v35  ;;  %v21907_v34 = vld [vmem:[#allocation2 + $0xd04] ss:$16 sps:$4 sm:$0xff]   ;;  %v21910_v35 = vld [vmem:[#allocation2 + $0xd0c] ss:$16 sps:$4 sm:$0xff]  }
  0xf4   : > { %2488 = vmatprep.subr.bf16.mxu0 %v21851_v36  ;;  %2660 = vmatprep.subr.bf16.mxu1 %v21854_v40  ;;  %v21905_v36 = vld [vmem:[#allocation2 + $0xd00] ss:$16 sps:$4 sm:$0xff]  }
  0xf5   : > { %v21911_v40 = vld [vmem:[#allocation2 + $0xd20] ss:$16 sps:$4 sm:$0xff]  }
  0xf7   : > { %2489 = vmatpush1.bf16.msra.mxu0 %v21849_v41  ;;  %2661 = vmatpush1.bf16.msra.mxu1 %v21852_v42  ;;  %v21914_v41 = vld [vmem:[#allocation2 + $0xd28] ss:$16 sps:$4 sm:$0xff]   ;;  %v21919_v42 = vld [vmem:[#allocation2 + $0xd44] ss:$16 sps:$4 sm:$0xff]  }
  0xf8   : > { %2501 = vmatprep.subr.bf16.mxu0 %v21858_v43  ;;  %2673 = vmatprep.subr.bf16.mxu1 %v21861_v46  ;;  %v21922_v43 = vld [vmem:[#allocation2 + $0xd4c] ss:$16 sps:$4 sm:$0xff]   ;;  %v21925_v46 = vld [vmem:[#allocation2 + $0xd64] ss:$16 sps:$4 sm:$0xff]  }
  0xfa   : > { %2491 = vmatmul.mubr.bf16.vlgmr.msra.gmra.mrb[0].mxu0 %v1066_v49  ;;  %2663 = vmatmul.mubr.bf16.vlgmr.msra.gmra.mrb[0].mxu1 %v1066_v49  ;;  %v21926_v49 = vld [vmem:[#allocation2 + $0xd68] ss:$16 sps:$4 sm:$0xff]  }
  0xfb   : > { %2502 = vmatpush1.bf16.msra.mxu0 %v21856_v47  ;;  %2674 = vmatpush1.bf16.msra.mxu1 %v21859_v48  ;;  %v21928_v47 = vld [vmem:[#allocation2 + $0xd6c] ss:$16 sps:$4 sm:$0xff]   ;;  %v21923_v48 = vld [vmem:[#allocation2 + $0xd60] ss:$16 sps:$4 sm:$0xff]  }
  0xfc   : > { %2503 = vmatprep.subr.bf16.mxu0 %v21865_v50  ;;  %2675 = vmatprep.subr.bf16.mxu1 %v21868_v51  ;;  %v21931_v50 = vld [vmem:[#allocation2 + $0xd84] ss:$16 sps:$4 sm:$0xff]   ;;  %v21934_v51 = vld [vmem:[#allocation2 + $0xd8c] ss:$16 sps:$4 sm:$0xff]  }
  0xfd   : > { %2533 = vmatprep.mubr.bf16.mxu0 %v1102_v17  ;;  %2705 = vmatprep.mubr.bf16.mxu1 %v1102_v17 }
  0xff   : > { %2504 = vmatpush1.bf16.msra.mxu0 %v21863_v55  ;;  %2676 = vmatpush1.bf16.msra.mxu1 %v21866_v56  ;;  %v21929_v55 = vld [vmem:[#allocation2 + $0xd80] ss:$16 sps:$4 sm:$0xff]   ;;  %v21932_v56 = vld [vmem:[#allocation2 + $0xd88] ss:$16 sps:$4 sm:$0xff]  }
 0x100   : > { %2505 = vmatprep.subr.bf16.mxu0 %v21871_v61  ;;  %2677 = vmatprep.subr.bf16.mxu1 %v21874_v63  ;;  %v21937_v61 = vld [vmem:[#allocation2 + $0xda4] ss:$16 sps:$4 sm:$0xff]   ;;  %v25646_v63 = vcombine.low %v25624_v58, %v25627_v59  ;;  %v25664_v59 = vld [vmem:[%s25569_s17 + $0x58] sm:$0x11] }
 0x101   : > { %v25668_v13 = vcombine.high %v25664_v59, %v25664_v59 }
 0x102   : > { %v1082_v58 = vshll.u32 %v25646_v63, 16 }
 0x103   : > { %2506 = vmatpush1.bf16.msra.mxu0 %v21869_v2  ;;  %2678 = vmatpush1.bf16.msra.mxu1 %v21872_v3  ;;  %v25649_v2 = vld [vmem:[%s25569_s17 + $0x18] sm:$0xff] }
 0x104   : > { %2507 = vmatprep.subr.bf16.mxu0 %v21877_v8  ;;  %2679 = vmatprep.subr.bf16.mxu1 %v21880_v9  ;;  %v25652_v3 = vld [vmem:[%s25569_s17 + $0x38] sm:$0xff]  ;;  %v25660_v9 = vcombine.low %v25630_v60, %v25630_v60  ;;  %v1080_v60 = vshrl.u32 %v25646_v63, 16 }
 0x105   : > { %v25656_v7 = vcombine.high %v25649_v2, %v25652_v3  ;;  %v21938_v8 = vld [vmem:[#allocation2 + $0xda8] ss:$16 sps:$4 sm:$0xff]  }
 0x106   : > { %v1087_v17 = vshll.u32 %v25660_v9, 16 }
 0x107   : > { %2508 = vmatpush1.bf16.msra.mxu0 %v21875_v12  ;;  %2680 = vmatpush1.bf16.msra.mxu1 %v21878_v14  ;;  %v21941_v12 = vld [vmem:[#allocation2 + $0xdc0] ss:$16 sps:$4 sm:$0xff]   ;;  %v1118_v14 = vshll.u32 %v25656_v7, 16 }
 0x108   : > { %2509 = vmatprep.subr.bf16.mxu0 %v21883_v15  ;;  %2681 = vmatprep.subr.bf16.mxu1 %v21886_v16  ;;  %v21944_v15 = vld [vmem:[#allocation2 + $0xdc8] ss:$16 sps:$4 sm:$0xff]   ;;  %v1084_v16 = vrot.slane %v1082_v58, 1  ;;  %v21996_v58 = vld [vmem:[#allocation2 + $0xecc] ss:$16 sps:$4 sm:$0xff]  }
 0x10b   : > { %2510 = vmatpush1.bf16.msra.mxu0 %v21881_v18  ;;  %2682 = vmatpush1.bf16.msra.mxu1 %v21884_v19  ;;  %v21949_v18 = vld [vmem:[#allocation2 + $0xde4] ss:$16 sps:$4 sm:$0xff]   ;;  %v21952_v19 = vld [vmem:[#allocation2 + $0xdec] ss:$16 sps:$4 sm:$0xff]  }
 0x10c   : > { %2511 = vmatprep.subr.bf16.mxu0 %v21889_v20  ;;  %2683 = vmatprep.subr.bf16.mxu1 %v21892_v21  ;;  %v1116_v20 = vshrl.u32 %v25656_v7, 16  ;;  %v1120_v21 = vrot.slane %v1118_v14, 1  ;;  %v22002_v14 = vld [vmem:[#allocation2 + $0xeec] ss:$16 sps:$4 sm:$0xff]  }
 0x10f   : > { %2512 = vmatpush1.bf16.msra.mxu0 %v21887_v22  ;;  %2684 = vmatpush1.bf16.msra.mxu1 %v21890_v23  ;;  %v1123_v22 = vshll.u32 %v25668_v13, 16  ;;  %v21947_v23 = vld [vmem:[#allocation2 + $0xde0] ss:$16 sps:$4 sm:$0xff]  }
 0x110   : > { %2513 = vmatprep.subr.bf16.mxu0 %v21895_v24  ;;  %2685 = vmatprep.subr.bf16.mxu1 %v21898_v25  ;;  %v21950_v24 = vld [vmem:[#allocation2 + $0xde8] ss:$16 sps:$4 sm:$0xff]   ;;  %v1085_v25 = vor.u32 %v1084_v16, %v1080_v60  ;;  %v22005_v16 = vld [vmem:[#allocation2 + $0xf04] ss:$16 sps:$4 sm:$0xff]  }
 0x111   : > { %v22000_v60 = vld [vmem:[#allocation2 + $0xee8] ss:$16 sps:$4 sm:$0xff]  }
 0x113   : > { %2514 = vmatpush1.bf16.msra.mxu0 %v21893_v27  ;;  %2686 = vmatpush1.bf16.msra.mxu1 %v21896_v28  ;;  %v1089_v27 = vrot.slane %v1087_v17, 1  ;;  %v21956_v28 = vld [vmem:[#allocation2 + $0xe04] ss:$16 sps:$4 sm:$0xff]   ;;  %v22008_v17 = vld [vmem:[#allocation2 + $0xf0c] ss:$16 sps:$4 sm:$0xff]  }
 0x114   : > { %2515 = vmatprep.subr.bf16.mxu0 %v21901_v29  ;;  %2687 = vmatprep.subr.bf16.mxu1 %v21904_v30  ;;  %v21959_v29 = vld [vmem:[#allocation2 + $0xe0c] ss:$16 sps:$4 sm:$0xff]   ;;  %v1121_v30 = vor.u32 %v1120_v21, %v1116_v20  ;;  %v22011_v20 = vld [vmem:[#allocation2 + $0xf24] ss:$16 sps:$4 sm:$0xff]  }
 0x115   : > { %v22014_v21 = vld [vmem:[#allocation2 + $0xf2c] ss:$16 sps:$4 sm:$0xff]  }
 0x117   : > { %2516 = vmatpush1.bf16.msra.mxu0 %v21899_v32  ;;  %2688 = vmatpush1.bf16.msra.mxu1 %v21902_v33  ;;  %v1125_v32 = vrot.slane %v1123_v22, 1  ;;  %v21954_v33 = vld [vmem:[#allocation2 + $0xe00] ss:$16 sps:$4 sm:$0xff]  }
 0x118   : > { %2517 = vmatprep.subr.bf16.mxu0 %v21907_v34  ;;  %2689 = vmatprep.subr.bf16.mxu1 %v21910_v35  ;;  %v21957_v34 = vld [vmem:[#allocation2 + $0xe08] ss:$16 sps:$4 sm:$0xff]   ;;  %v1090_v35 = vsel %vm1030_vm0, %v1085_v25, %v1089_v27  ;;  %v22009_v22 = vld [vmem:[#allocation2 + $0xf20] ss:$16 sps:$4 sm:$0xff]   ;;  %v22020_v25 = vld [vmem:[#allocation2 + $0xf4c] ss:$16 sps:$4 sm:$0xff]  }
 0x119   : > { %v22015_v27 = vld [vmem:[#allocation2 + $0xf40] ss:$16 sps:$4 sm:$0xff]  }
 0x11b   : > { %2518 = vmatpush1.bf16.msra.mxu0 %v21905_v36  ;;  %2690 = vmatpush1.bf16.msra.mxu1 %v21908_v37  ;;  %v21963_v36 = vld [vmem:[#allocation2 + $0xe24] ss:$16 sps:$4 sm:$0xff]   ;;  %v21966_v37 = vld [vmem:[#allocation2 + $0xe2c] ss:$16 sps:$4 sm:$0xff]  }
 0x11c   : > { %2519 = vmatprep.subr.bf16.mxu0 %v21913_v38  ;;  %2691 = vmatprep.subr.bf16.mxu1 %v21916_v39  ;;  %v1126_v38 = vsel %vm1030_vm0, %v1121_v30, %v1125_v32  ;;  %v21961_v39 = vld [vmem:[#allocation2 + $0xe20] ss:$16 sps:$4 sm:$0xff]   ;;  %v22026_v30 = vld [vmem:[#allocation2 + $0xf6c] ss:$16 sps:$4 sm:$0xff]  }
 0x11d   : > { %v22021_v32 = vld [vmem:[#allocation2 + $0xf60] ss:$16 sps:$4 sm:$0xff]  }
 0x11f   : > { %2520 = vmatpush1.bf16.msra.mxu0 %v21911_v40  ;;  %2692 = vmatpush1.bf16.msra.mxu1 %v21914_v41  ;;  %v21964_v40 = vld [vmem:[#allocation2 + $0xe28] ss:$16 sps:$4 sm:$0xff]   ;;  %v21969_v41 = vld [vmem:[#allocation2 + $0xe44] ss:$16 sps:$4 sm:$0xff]  }
 0x120   : > { %2521 = vmatprep.subr.bf16.mxu0 %v21919_v42  ;;  %2693 = vmatprep.subr.bf16.mxu1 %v21922_v43  ;;  %v21972_v42 = vld [vmem:[#allocation2 + $0xe4c] ss:$16 sps:$4 sm:$0xff]   ;;  %v21967_v43 = vld [vmem:[#allocation2 + $0xe40] ss:$16 sps:$4 sm:$0xff]  }
 0x123   : > { %2522 = vmatpush1.bf16.msra.mxu0 %v21917_v44  ;;  %2694 = vmatpush1.bf16.msra.mxu1 %v21920_v45  ;;  %v21970_v44 = vld [vmem:[#allocation2 + $0xe48] ss:$16 sps:$4 sm:$0xff]   ;;  %v21975_v45 = vld [vmem:[#allocation2 + $0xe64] ss:$16 sps:$4 sm:$0xff]  }
 0x124   : > { %2523 = vmatprep.subr.bf16.mxu0 %v21925_v46  ;;  %2695 = vmatprep.subr.bf16.mxu1 %v21928_v47  ;;  %v21978_v46 = vld [vmem:[#allocation2 + $0xe6c] ss:$16 sps:$4 sm:$0xff]   ;;  %v21973_v47 = vld [vmem:[#allocation2 + $0xe60] ss:$16 sps:$4 sm:$0xff]  }
 0x127   : > { %2524 = vmatpush1.bf16.msra.mxu0 %v21923_v48  ;;  %2696 = vmatpush1.bf16.msra.mxu1 %v21926_v49  ;;  %v21976_v48 = vld [vmem:[#allocation2 + $0xe68] ss:$16 sps:$4 sm:$0xff]   ;;  %v21981_v49 = vld [vmem:[#allocation2 + $0xe84] ss:$16 sps:$4 sm:$0xff]  }
 0x128   : > { %2525 = vmatprep.subr.bf16.mxu0 %v21931_v50  ;;  %2697 = vmatprep.subr.bf16.mxu1 %v21934_v51  ;;  %v21984_v50 = vld [vmem:[#allocation2 + $0xe8c] ss:$16 sps:$4 sm:$0xff]   ;;  %v21979_v51 = vld [vmem:[#allocation2 + $0xe80] ss:$16 sps:$4 sm:$0xff]  }
 0x12b   : > { %2526 = vmatpush1.bf16.msra.mxu0 %v21929_v55  ;;  %2698 = vmatpush1.bf16.msra.mxu1 %v21932_v56  ;;  %v21982_v55 = vld [vmem:[#allocation2 + $0xe88] ss:$16 sps:$4 sm:$0xff]   ;;  %v21987_v56 = vld [vmem:[#allocation2 + $0xea4] ss:$16 sps:$4 sm:$0xff]  }
 0x12c   : > { %2527 = vmatprep.subr.bf16.mxu0 %v21937_v61  ;;  %2699 = vmatprep.subr.bf16.mxu1 %v21940_v4  ;;  %v21990_v61 = vld [vmem:[#allocation2 + $0xeac] ss:$16 sps:$4 sm:$0xff]   ;;  %v21985_v4 = vld [vmem:[#allocation2 + $0xea0] ss:$16 sps:$4 sm:$0xff]  }
 0x12f   : > { %2528 = vmatpush1.bf16.msra.mxu0 %v21935_v6  ;;  %2700 = vmatpush1.bf16.msra.mxu1 %v21938_v8  ;;  %v21988_v6 = vld [vmem:[#allocation2 + $0xea8] ss:$16 sps:$4 sm:$0xff]   ;;  %v21993_v8 = vld [vmem:[#allocation2 + $0xec4] ss:$16 sps:$4 sm:$0xff]  }
 0x130   : > { %2529 = vmatprep.subr.bf16.mxu0 %v21943_v10  ;;  %2701 = vmatprep.subr.bf16.mxu1 %v21946_v11  ;;  %v21991_v10 = vld [vmem:[#allocation2 + $0xec0] ss:$16 sps:$4 sm:$0xff]   ;;  %v21994_v11 = vld [vmem:[#allocation2 + $0xec8] ss:$16 sps:$4 sm:$0xff]  }
 0x133   : > { %2530 = vmatpush1.bf16.msra.mxu0 %v21941_v12  ;;  %2702 = vmatpush1.bf16.msra.mxu1 %v21944_v15  ;;  %v21999_v12 = vld [vmem:[#allocation2 + $0xee4] ss:$16 sps:$4 sm:$0xff]   ;;  %v21997_v15 = vld [vmem:[#allocation2 + $0xee0] ss:$16 sps:$4 sm:$0xff]  }
 0x134   : > { %2531 = vmatprep.subr.bf16.mxu0 %v21949_v18  ;;  %2703 = vmatprep.subr.bf16.mxu1 %v21952_v19  ;;  %v22003_v18 = vld [vmem:[#allocation2 + $0xf00] ss:$16 sps:$4 sm:$0xff]   ;;  %v22006_v19 = vld [vmem:[#allocation2 + $0xf08] ss:$16 sps:$4 sm:$0xff]  }
 0x137   : > { %2532 = vmatpush1.bf16.msra.mxu0 %v21947_v23  ;;  %2704 = vmatpush1.bf16.msra.mxu1 %v21950_v24  ;;  %v22012_v23 = vld [vmem:[#allocation2 + $0xf28] ss:$16 sps:$4 sm:$0xff]   ;;  %v22017_v24 = vld [vmem:[#allocation2 + $0xf44] ss:$16 sps:$4 sm:$0xff]  }
 0x138   : > { %2544 = vmatprep.subr.bf16.mxu0 %v21956_v28  ;;  %2716 = vmatprep.subr.bf16.mxu1 %v21959_v29  ;;  %v22018_v28 = vld [vmem:[#allocation2 + $0xf48] ss:$16 sps:$4 sm:$0xff]   ;;  %v22023_v29 = vld [vmem:[#allocation2 + $0xf64] ss:$16 sps:$4 sm:$0xff]  }
 0x13a   : > { %2534 = vmatmul.mubr.bf16.vlgmr.msra.gmra.mrb[0].mxu0 %v1090_v35  ;;  %2706 = vmatmul.mubr.bf16.vlgmr.msra.gmra.mrb[0].mxu1 %v1090_v35  ;;  %v22032_v35 = vld [vmem:[#allocation2 + $0xf8c] ss:$16 sps:$4 sm:$0xff]  }
 0x13b   : > { %2545 = vmatpush1.bf16.msra.mxu0 %v21954_v33  ;;  %2717 = vmatpush1.bf16.msra.mxu1 %v21957_v34  ;;  %v22024_v33 = vld [vmem:[#allocation2 + $0xf68] ss:$16 sps:$4 sm:$0xff]   ;;  %v22029_v34 = vld [vmem:[#allocation2 + $0xf84] ss:$16 sps:$4 sm:$0xff]  }
 0x13c   : > { %2546 = vmatprep.subr.bf16.mxu0 %v21963_v36  ;;  %2718 = vmatprep.subr.bf16.mxu1 %v21966_v37  ;;  %v22027_v36 = vld [vmem:[#allocation2 + $0xf80] ss:$16 sps:$4 sm:$0xff]   ;;  %v22030_v37 = vld [vmem:[#allocation2 + $0xf88] ss:$16 sps:$4 sm:$0xff]  }
 0x13d   : > { %2576 = vmatprep.mubr.bf16.mxu0 %v1126_v38  ;;  %2748 = vmatprep.mubr.bf16.mxu1 %v1126_v38  ;;  %v25679_v38 = vcombine.low %v25649_v2, %v25652_v3  ;;  %v22039_v2 = vld [vmem:[#allocation2 + $0xfc0] ss:$16 sps:$4 sm:$0xff]   ;;  %v22042_v3 = vld [vmem:[#allocation2 + $0xfc8] ss:$16 sps:$4 sm:$0xff]  }
 0x13f   : > { %2547 = vmatpush1.bf16.msra.mxu0 %v21961_v39  ;;  %2719 = vmatpush1.bf16.msra.mxu1 %v21964_v40  ;;  %v22035_v39 = vld [vmem:[#allocation2 + $0xfa4] ss:$16 sps:$4 sm:$0xff]   ;;  %v22038_v40 = vld [vmem:[#allocation2 + $0xfac] ss:$16 sps:$4 sm:$0xff]  }
 0x140   : > { %2548 = vmatprep.subr.bf16.mxu0 %v21969_v41  ;;  %2720 = vmatprep.subr.bf16.mxu1 %v21972_v42  ;;  %v22033_v41 = vld [vmem:[#allocation2 + $0xfa0] ss:$16 sps:$4 sm:$0xff]   ;;  %v22036_v42 = vld [vmem:[#allocation2 + $0xfa8] ss:$16 sps:$4 sm:$0xff]  }
 0x143   : > { %2549 = vmatpush1.bf16.msra.mxu0 %v21967_v43  ;;  %2721 = vmatpush1.bf16.msra.mxu1 %v21970_v44  ;;  %v25683_v43 = vcombine.low %v25664_v59, %v25664_v59  ;;  %v1106_v44 = vshll.u32 %v25679_v38, 16  ;;  %v22050_v59 = vld [vmem:[#allocation2 + $0xfec] ss:$16 sps:$4 sm:$0xff]  }
 0x144   : > { %2550 = vmatprep.subr.bf16.mxu0 %v21975_v45  ;;  %2722 = vmatprep.subr.bf16.mxu1 %v21978_v46  ;;  %v22041_v45 = vld [vmem:[#allocation2 + $0xfc4] ss:$16 sps:$4 sm:$0xff]   ;;  %v22044_v46 = vld [vmem:[#allocation2 + $0xfcc] ss:$16 sps:$4 sm:$0xff]  }
 0x147   : > { %2551 = vmatpush1.bf16.msra.mxu0 %v21973_v47  ;;  %2723 = vmatpush1.bf16.msra.mxu1 %v21976_v48  ;;  %v1104_v47 = vshrl.u32 %v25679_v38, 16  ;;  %v1108_v48 = vrot.slane %v1106_v44, 1  ;;  %v22101_v44 = vld [vmem:[#allocation2 + $0x100] ss:$16 sps:$4 sm:$0xff]  }
 0x148   : > { %2552 = vmatprep.subr.bf16.mxu0 %v21981_v49  ;;  %2724 = vmatprep.subr.bf16.mxu1 %v21984_v50  ;;  %v1111_v49 = vshll.u32 %v25683_v43, 16  ;;  %v22047_v50 = vld [vmem:[#allocation2 + $0xfe4] ss:$16 sps:$4 sm:$0xff]  }
 0x14b   : > { %2553 = vmatpush1.bf16.msra.mxu0 %v21979_v51  ;;  %2725 = vmatpush1.bf16.msra.mxu1 %v21982_v55  ;;  %v22045_v51 = vld [vmem:[#allocation2 + $0xfe0] ss:$16 sps:$4 sm:$0xff]   ;;  %v22048_v55 = vld [vmem:[#allocation2 + $0xfe8] ss:$16 sps:$4 sm:$0xff]  }
 0x14c   : > { %2554 = vmatprep.subr.bf16.mxu0 %v21987_v56  ;;  %2726 = vmatprep.subr.bf16.mxu1 %v21990_v61  ;;  %v1109_v56 = vor.u32 %v1108_v48, %v1104_v47  ;;  %v1113_v61 = vrot.slane %v1111_v49, 1  ;;  %v22110_v47 = vld [vmem:[#allocation2 + $0x128] ss:$16 sps:$4 sm:$0xff]   ;;  %v22115_v48 = vld [vmem:[#allocation2 + $0x144] ss:$16 sps:$4 sm:$0xff]  }
 0x14d   : > { %v22118_v49 = vld [vmem:[#allocation2 + $0x14c] ss:$16 sps:$4 sm:$0xff]  }
 0x14f   : > { %2555 = vmatpush1.bf16.msra.mxu0 %v21985_v4  ;;  %2727 = vmatpush1.bf16.msra.mxu1 %v21988_v6  ;;  %v22054_v4 = vld [vmem:[#allocation2 + $0x4] ss:$16 sps:$4 sm:$0xff]   ;;  %v22057_v6 = vld [vmem:[#allocation2 + $0xc] ss:$16 sps:$4 sm:$0xff]  }
 0x150   : > { %2556 = vmatprep.subr.bf16.mxu0 %v21993_v8  ;;  %2728 = vmatprep.subr.bf16.mxu1 %v21996_v58  ;;  %v22052_v8 = vld [vmem:[#allocation2] ss:$16 sps:$4 sm:$0xff]   ;;  %v22055_v58 = vld [vmem:[#allocation2 + $0x8] ss:$16 sps:$4 sm:$0xff]  }
 0x153   : > { %2557 = vmatpush1.bf16.msra.mxu0 %v21991_v10  ;;  %2729 = vmatpush1.bf16.msra.mxu1 %v21994_v11  ;;  %v1114_v10 = vsel %vm1030_vm0, %v1109_v56, %v1113_v61  ;;  %v22061_v11 = vld [vmem:[#allocation2 + $0x24] ss:$16 sps:$4 sm:$0xff]   ;;  %v22119_v56 = vld [vmem:[#allocation2 + $0x160] ss:$16 sps:$4 sm:$0xff]   ;;  %v22122_v61 = vld [vmem:[#allocation2 + $0x168] ss:$16 sps:$4 sm:$0xff]  }
 0x154   : > { %2558 = vmatprep.subr.bf16.mxu0 %v21999_v12  ;;  %2730 = vmatprep.subr.bf16.mxu1 %v22002_v14  ;;  %v22064_v12 = vld [vmem:[#allocation2 + $0x2c] ss:$16 sps:$4 sm:$0xff]   ;;  %v22059_v14 = vld [vmem:[#allocation2 + $0x20] ss:$16 sps:$4 sm:$0xff]  }
 0x157   : > { %2559 = vmatpush1.bf16.msra.mxu0 %v21997_v15  ;;  %2731 = vmatpush1.bf16.msra.mxu1 %v22000_v60  ;;  %v22062_v15 = vld [vmem:[#allocation2 + $0x28] ss:$16 sps:$4 sm:$0xff]   ;;  %v22067_v60 = vld [vmem:[#allocation2 + $0x44] ss:$16 sps:$4 sm:$0xff]  }
 0x158   : > { %2560 = vmatprep.subr.bf16.mxu0 %v22005_v16  ;;  %2732 = vmatprep.subr.bf16.mxu1 %v22008_v17  ;;  %v22070_v16 = vld [vmem:[#allocation2 + $0x4c] ss:$16 sps:$4 sm:$0xff]   ;;  %v22065_v17 = vld [vmem:[#allocation2 + $0x40] ss:$16 sps:$4 sm:$0xff]  }
 0x15b   : > { %2561 = vmatpush1.bf16.msra.mxu0 %v22003_v18  ;;  %2733 = vmatpush1.bf16.msra.mxu1 %v22006_v19  ;;  %v22068_v18 = vld [vmem:[#allocation2 + $0x48] ss:$16 sps:$4 sm:$0xff]   ;;  %v22073_v19 = vld [vmem:[#allocation2 + $0x64] ss:$16 sps:$4 sm:$0xff]  }
 0x15c   : > { %2562 = vmatprep.subr.bf16.mxu0 %v22011_v20  ;;  %2734 = vmatprep.subr.bf16.mxu1 %v22014_v21  ;;  %v22076_v20 = vld [vmem:[#allocation2 + $0x6c] ss:$16 sps:$4 sm:$0xff]   ;;  %v22071_v21 = vld [vmem:[#allocation2 + $0x60] ss:$16 sps:$4 sm:$0xff]  }
 0x15f   : > { %2563 = vmatpush1.bf16.msra.mxu0 %v22009_v22  ;;  %2735 = vmatpush1.bf16.msra.mxu1 %v22012_v23  ;;  %v22074_v22 = vld [vmem:[#allocation2 + $0x68] ss:$16 sps:$4 sm:$0xff]   ;;  %v22079_v23 = vld [vmem:[#allocation2 + $0x84] ss:$16 sps:$4 sm:$0xff]  }
 0x160   : > { %2564 = vmatprep.subr.bf16.mxu0 %v22017_v24  ;;  %2736 = vmatprep.subr.bf16.mxu1 %v22020_v25  ;;  %v22082_v24 = vld [vmem:[#allocation2 + $0x8c] ss:$16 sps:$4 sm:$0xff]   ;;  %v22077_v25 = vld [vmem:[#allocation2 + $0x80] ss:$16 sps:$4 sm:$0xff]  }
 0x163   : > { %2565 = vmatpush1.bf16.msra.mxu0 %v22015_v27  ;;  %2737 = vmatpush1.bf16.msra.mxu1 %v22018_v28  ;;  %v22085_v27 = vld [vmem:[#allocation2 + $0xa4] ss:$16 sps:$4 sm:$0xff]   ;;  %v22088_v28 = vld [vmem:[#allocation2 + $0xac] ss:$16 sps:$4 sm:$0xff]  }
 0x164   : > { %2566 = vmatprep.subr.bf16.mxu0 %v22023_v29  ;;  %2738 = vmatprep.subr.bf16.mxu1 %v22026_v30  ;;  %v22083_v29 = vld [vmem:[#allocation2 + $0xa0] ss:$16 sps:$4 sm:$0xff]   ;;  %v22086_v30 = vld [vmem:[#allocation2 + $0xa8] ss:$16 sps:$4 sm:$0xff]  }
 0x167   : > { %2567 = vmatpush1.bf16.msra.mxu0 %v22021_v32  ;;  %2739 = vmatpush1.bf16.msra.mxu1 %v22024_v33  ;;  %v22091_v32 = vld [vmem:[#allocation2 + $0xc4] ss:$16 sps:$4 sm:$0xff]   ;;  %v22094_v33 = vld [vmem:[#allocation2 + $0xcc] ss:$16 sps:$4 sm:$0xff]  }
 0x168   : > { %2568 = vmatprep.subr.bf16.mxu0 %v22029_v34  ;;  %2740 = vmatprep.subr.bf16.mxu1 %v22032_v35  ;;  %v22089_v34 = vld [vmem:[#allocation2 + $0xc0] ss:$16 sps:$4 sm:$0xff]   ;;  %v22092_v35 = vld [vmem:[#allocation2 + $0xc8] ss:$16 sps:$4 sm:$0xff]  }
 0x16b   : > { %2569 = vmatpush1.bf16.msra.mxu0 %v22027_v36  ;;  %2741 = vmatpush1.bf16.msra.mxu1 %v22030_v37  ;;  %v22097_v36 = vld [vmem:[#allocation2 + $0xe4] ss:$16 sps:$4 sm:$0xff]   ;;  %v22100_v37 = vld [vmem:[#allocation2 + $0xec] ss:$16 sps:$4 sm:$0xff]  }
 0x16c   : > { %2570 = vmatprep.subr.bf16.mxu0 %v22035_v39  ;;  %2742 = vmatprep.subr.bf16.mxu1 %v22038_v40  ;;  %v22095_v39 = vld [vmem:[#allocation2 + $0xe0] ss:$16 sps:$4 sm:$0xff]   ;;  %v22098_v40 = vld [vmem:[#allocation2 + $0xe8] ss:$16 sps:$4 sm:$0xff]  }
 0x16f   : > { %2571 = vmatpush1.bf16.msra.mxu0 %v22033_v41  ;;  %2743 = vmatpush1.bf16.msra.mxu1 %v22036_v42  ;;  %v22103_v41 = vld [vmem:[#allocation2 + $0x104] ss:$16 sps:$4 sm:$0xff]   ;;  %v22106_v42 = vld [vmem:[#allocation2 + $0x10c] ss:$16 sps:$4 sm:$0xff]  }
 0x170   : > { %2572 = vmatprep.subr.bf16.mxu0 %v22041_v45  ;;  %2744 = vmatprep.subr.bf16.mxu1 %v22044_v46  ;;  %v22104_v45 = vld [vmem:[#allocation2 + $0x108] ss:$16 sps:$4 sm:$0xff]   ;;  %v22109_v46 = vld [vmem:[#allocation2 + $0x124] ss:$16 sps:$4 sm:$0xff]  }
 0x173   : > { %2573 = vmatpush1.bf16.msra.mxu0 %v22039_v2  ;;  %2745 = vmatpush1.bf16.msra.mxu1 %v22042_v3  ;;  %v22112_v2 = vld [vmem:[#allocation2 + $0x12c] ss:$16 sps:$4 sm:$0xff]   ;;  %v22107_v3 = vld [vmem:[#allocation2 + $0x120] ss:$16 sps:$4 sm:$0xff]  }
 0x174   : > { %2574 = vmatprep.subr.bf16.mxu0 %v22047_v50  ;;  %2746 = vmatprep.subr.bf16.mxu1 %v22050_v59  ;;  %v22113_v50 = vld [vmem:[#allocation2 + $0x140] ss:$16 sps:$4 sm:$0xff]   ;;  %v22116_v59 = vld [vmem:[#allocation2 + $0x148] ss:$16 sps:$4 sm:$0xff]  }
 0x177   : > { %2575 = vmatpush1.bf16.msra.mxu0 %v22045_v51  ;;  %2747 = vmatpush1.bf16.msra.mxu1 %v22048_v55  ;;  %v22121_v51 = vld [vmem:[#allocation2 + $0x164] ss:$16 sps:$4 sm:$0xff]   ;;  %v22124_v55 = vld [vmem:[#allocation2 + $0x16c] ss:$16 sps:$4 sm:$0xff]  }
 0x178   : > { %4047 = vmatprep.subr.bf16.mxu0 %v22054_v4  ;;  %4219 = vmatprep.subr.bf16.mxu1 %v22057_v6  ;;  %v22127_v4 = vld [vmem:[#allocation2 + $0x184] ss:$16 sps:$4 sm:$0xff]   ;;  %v22130_v6 = vld [vmem:[#allocation2 + $0x18c] ss:$16 sps:$4 sm:$0xff]  }
 0x17a   : > { %2577 = vmatmul.mubr.bf16.vlgmr.msra.gmra.mrb[0].mxu0 %v1114_v10  ;;  %2749 = vmatmul.mubr.bf16.vlgmr.msra.gmra.mrb[0].mxu1 %v1114_v10  ;;  %v22133_v10 = vld [vmem:[#allocation2 + $0x1a4] ss:$16 sps:$4 sm:$0xff]  }
 0x17b   : > { %4048 = vmatpush1.bf16.msra.mxu0 %v22052_v8  ;;  %4220 = vmatpush1.bf16.msra.mxu1 %v22055_v58  ;;  %v22125_v8 = vld [vmem:[#allocation2 + $0x180] ss:$16 sps:$4 sm:$0xff]   ;;  %v22128_v58 = vld [vmem:[#allocation2 + $0x188] ss:$16 sps:$4 sm:$0xff]  }
 0x17c   : > { %4049 = vmatprep.subr.bf16.mxu0 %v22061_v11  ;;  %4221 = vmatprep.subr.bf16.mxu1 %v22064_v12  ;;  %v22136_v11 = vld [vmem:[#allocation2 + $0x1ac] ss:$16 sps:$4 sm:$0xff]   ;;  %v22131_v12 = vld [vmem:[#allocation2 + $0x1a0] ss:$16 sps:$4 sm:$0xff]  }
 0x17d   : > { %4079 = vmatprep.mubr.bf16.mxu0 %v25574_v52  ;;  %4251 = vmatprep.mubr.bf16.mxu1 %v25574_v52  ;;  %v22080_v52 = vld [vmem:[#allocation2 + $0x88] ss:$16 sps:$4 sm:$0xff]  }
 0x17f   : > { %4050 = vmatpush1.bf16.msra.mxu0 %v22059_v14  ;;  %4222 = vmatpush1.bf16.msra.mxu1 %v22062_v15  ;;  %v22134_v14 = vld [vmem:[#allocation2 + $0x1a8] ss:$16 sps:$4 sm:$0xff]   ;;  %v22139_v15 = vld [vmem:[#allocation2 + $0x1c4] ss:$16 sps:$4 sm:$0xff]  }
 0x180   : > { %4051 = vmatprep.subr.bf16.mxu0 %v22067_v60  ;;  %4223 = vmatprep.subr.bf16.mxu1 %v22070_v16  ;;  %v22142_v60 = vld [vmem:[#allocation2 + $0x1cc] ss:$16 sps:$4 sm:$0xff]   ;;  %v22137_v16 = vld [vmem:[#allocation2 + $0x1c0] ss:$16 sps:$4 sm:$0xff]  }
 0x183   : > { %4052 = vmatpush1.bf16.msra.mxu0 %v22065_v17  ;;  %4224 = vmatpush1.bf16.msra.mxu1 %v22068_v18  ;;  %v22140_v17 = vld [vmem:[#allocation2 + $0x1c8] ss:$16 sps:$4 sm:$0xff]   ;;  %v22145_v18 = vld [vmem:[#allocation2 + $0x1e4] ss:$16 sps:$4 sm:$0xff]  }
 0x184   : > { %4053 = vmatprep.subr.bf16.mxu0 %v22073_v19  ;;  %4225 = vmatprep.subr.bf16.mxu1 %v22076_v20  ;;  %v22148_v19 = vld [vmem:[#allocation2 + $0x1ec] ss:$16 sps:$4 sm:$0xff]   ;;  %v22143_v20 = vld [vmem:[#allocation2 + $0x1e0] ss:$16 sps:$4 sm:$0xff]  }
 0x187   : > { %4054 = vmatpush1.bf16.msra.mxu0 %v22071_v21  ;;  %4226 = vmatpush1.bf16.msra.mxu1 %v22074_v22  ;;  %v22146_v21 = vld [vmem:[#allocation2 + $0x1e8] ss:$16 sps:$4 sm:$0xff]   ;;  %v22151_v22 = vld [vmem:[#allocation2 + $0x204] ss:$16 sps:$4 sm:$0xff]  }
 0x188   : > { %4055 = vmatprep.subr.bf16.mxu0 %v22079_v23  ;;  %4227 = vmatprep.subr.bf16.mxu1 %v22082_v24  ;;  %v22154_v23 = vld [vmem:[#allocation2 + $0x20c] ss:$16 sps:$4 sm:$0xff]   ;;  %v22149_v24 = vld [vmem:[#allocation2 + $0x200] ss:$16 sps:$4 sm:$0xff]  }
 0x18b   : > { %4056 = vmatpush1.bf16.msra.mxu0 %v22077_v25  ;;  %4228 = vmatpush1.bf16.msra.mxu1 %v22080_v52  ;;  %v22152_v25 = vld [vmem:[#allocation2 + $0x208] ss:$16 sps:$4 sm:$0xff]   ;;  %v22157_v52 = vld [vmem:[#allocation2 + $0x224] ss:$16 sps:$4 sm:$0xff]  }
 0x18c   : > { %4057 = vmatprep.subr.bf16.mxu0 %v22085_v27  ;;  %4229 = vmatprep.subr.bf16.mxu1 %v22088_v28  ;;  %v22160_v27 = vld [vmem:[#allocation2 + $0x22c] ss:$16 sps:$4 sm:$0xff]   ;;  %v22155_v28 = vld [vmem:[#allocation2 + $0x220] ss:$16 sps:$4 sm:$0xff]  }
 0x18f   : > { %4058 = vmatpush1.bf16.msra.mxu0 %v22083_v29  ;;  %4230 = vmatpush1.bf16.msra.mxu1 %v22086_v30  ;;  %v22158_v29 = vld [vmem:[#allocation2 + $0x228] ss:$16 sps:$4 sm:$0xff]   ;;  %v22163_v30 = vld [vmem:[#allocation2 + $0x244] ss:$16 sps:$4 sm:$0xff]  }
 0x190   : > { %4059 = vmatprep.subr.bf16.mxu0 %v22091_v32  ;;  %4231 = vmatprep.subr.bf16.mxu1 %v22094_v33  ;;  %v22166_v32 = vld [vmem:[#allocation2 + $0x24c] ss:$16 sps:$4 sm:$0xff]   ;;  %v22161_v33 = vld [vmem:[#allocation2 + $0x240] ss:$16 sps:$4 sm:$0xff]  }
 0x193   : > { %4060 = vmatpush1.bf16.msra.mxu0 %v22089_v34  ;;  %4232 = vmatpush1.bf16.msra.mxu1 %v22092_v35  ;;  %v22164_v34 = vld [vmem:[#allocation2 + $0x248] ss:$16 sps:$4 sm:$0xff]   ;;  %v22169_v35 = vld [vmem:[#allocation2 + $0x264] ss:$16 sps:$4 sm:$0xff]  }
 0x194   : > { %4061 = vmatprep.subr.bf16.mxu0 %v22097_v36  ;;  %4233 = vmatprep.subr.bf16.mxu1 %v22100_v37  ;;  %v22167_v36 = vld [vmem:[#allocation2 + $0x260] ss:$16 sps:$4 sm:$0xff]   ;;  %v22170_v37 = vld [vmem:[#allocation2 + $0x268] ss:$16 sps:$4 sm:$0xff]  }
 0x197   : > { %4062 = vmatpush1.bf16.msra.mxu0 %v22095_v39  ;;  %4234 = vmatpush1.bf16.msra.mxu1 %v22098_v40  ;;  %v22175_v39 = vld [vmem:[#allocation2 + $0x284] ss:$16 sps:$4 sm:$0xff]   ;;  %v22178_v40 = vld [vmem:[#allocation2 + $0x28c] ss:$16 sps:$4 sm:$0xff]  }
 0x198   : > { %4063 = vmatprep.subr.bf16.mxu0 %v22103_v41  ;;  %4235 = vmatprep.subr.bf16.mxu1 %v22106_v42  ;;  %v22173_v41 = vld [vmem:[#allocation2 + $0x280] ss:$16 sps:$4 sm:$0xff]   ;;  %v22181_v42 = vld [vmem:[#allocation2 + $0x2a4] ss:$16 sps:$4 sm:$0xff]  }
 0x19b   : > { %4064 = vmatpush1.bf16.msra.mxu0 %v22101_v44  ;;  %4236 = vmatpush1.bf16.msra.mxu1 %v22104_v45  ;;  %v22184_v44 = vld [vmem:[#allocation2 + $0x2ac] ss:$16 sps:$4 sm:$0xff]   ;;  %v22179_v45 = vld [vmem:[#allocation2 + $0x2a0] ss:$16 sps:$4 sm:$0xff]  }
 0x19c   : > { %4065 = vmatprep.subr.bf16.mxu0 %v22109_v46  ;;  %4237 = vmatprep.subr.bf16.mxu1 %v22112_v2  ;;  %v22182_v46 = vld [vmem:[#allocation2 + $0x2a8] ss:$16 sps:$4 sm:$0xff]   ;;  %v22187_v2 = vld [vmem:[#allocation2 + $0x2c4] ss:$16 sps:$4 sm:$0xff]  }
 0x19f   : > { %4066 = vmatpush1.bf16.msra.mxu0 %v22107_v3  ;;  %4238 = vmatpush1.bf16.msra.mxu1 %v22110_v47  ;;  %v22190_v3 = vld [vmem:[#allocation2 + $0x2cc] ss:$16 sps:$4 sm:$0xff]   ;;  %v22185_v47 = vld [vmem:[#allocation2 + $0x2c0] ss:$16 sps:$4 sm:$0xff]  }
 0x1a0   : > { %4067 = vmatprep.subr.bf16.mxu0 %v22115_v48  ;;  %4239 = vmatprep.subr.bf16.mxu1 %v22118_v49  ;;  %v22188_v48 = vld [vmem:[#allocation2 + $0x2c8] ss:$16 sps:$4 sm:$0xff]   ;;  %v22193_v49 = vld [vmem:[#allocation2 + $0x2e4] ss:$16 sps:$4 sm:$0xff]  }
 0x1a3   : > { %4068 = vmatpush1.bf16.msra.mxu0 %v22113_v50  ;;  %4240 = vmatpush1.bf16.msra.mxu1 %v22116_v59  ;;  %v22196_v50 = vld [vmem:[#allocation2 + $0x2ec] ss:$16 sps:$4 sm:$0xff]   ;;  %v22191_v59 = vld [vmem:[#allocation2 + $0x2e0] ss:$16 sps:$4 sm:$0xff]  }
 0x1a4   : > { %4069 = vmatprep.subr.bf16.mxu0 %v22121_v51  ;;  %4241 = vmatprep.subr.bf16.mxu1 %v22124_v55  ;;  %v22194_v51 = vld [vmem:[#allocation2 + $0x2e8] ss:$16 sps:$4 sm:$0xff]   ;;  %v22199_v55 = vld [vmem:[#allocation2 + $0x304] ss:$16 sps:$4 sm:$0xff]  }
 0x1a7   : > { %4070 = vmatpush1.bf16.msra.mxu0 %v22119_v56  ;;  %4242 = vmatpush1.bf16.msra.mxu1 %v22122_v61  ;;  %v22202_v56 = vld [vmem:[#allocation2 + $0x30c] ss:$16 sps:$4 sm:$0xff]   ;;  %v22197_v61 = vld [vmem:[#allocation2 + $0x300] ss:$16 sps:$4 sm:$0xff]  }
 0x1a8   : > { %4071 = vmatprep.subr.bf16.mxu0 %v22127_v4  ;;  %4243 = vmatprep.subr.bf16.mxu1 %v22130_v6  ;;  %v22200_v4 = vld [vmem:[#allocation2 + $0x308] ss:$16 sps:$4 sm:$0xff]   ;;  %v22205_v6 = vld [vmem:[#allocation2 + $0x324] ss:$16 sps:$4 sm:$0xff]  }
 0x1ab   : > { %4072 = vmatpush1.bf16.msra.mxu0 %v22125_v8  ;;  %4244 = vmatpush1.bf16.msra.mxu1 %v22128_v58  ;;  %v22208_v8 = vld [vmem:[#allocation2 + $0x32c] ss:$16 sps:$4 sm:$0xff]   ;;  %v22203_v58 = vld [vmem:[#allocation2 + $0x320] ss:$16 sps:$4 sm:$0xff]  }
 0x1ac   : > { %4073 = vmatprep.subr.bf16.mxu0 %v22133_v10  ;;  %4245 = vmatprep.subr.bf16.mxu1 %v22136_v11  ;;  %v22206_v10 = vld [vmem:[#allocation2 + $0x328] ss:$16 sps:$4 sm:$0xff]   ;;  %v22211_v11 = vld [vmem:[#allocation2 + $0x344] ss:$16 sps:$4 sm:$0xff]  }
 0x1af   : > { %4074 = vmatpush1.bf16.msra.mxu0 %v22131_v12  ;;  %4246 = vmatpush1.bf16.msra.mxu1 %v22134_v14  ;;  %v22214_v12 = vld [vmem:[#allocation2 + $0x34c] ss:$16 sps:$4 sm:$0xff]   ;;  %v22209_v14 = vld [vmem:[#allocation2 + $0x340] ss:$16 sps:$4 sm:$0xff]  }
 0x1b0   : > { %4075 = vmatprep.subr.bf16.mxu0 %v22139_v15  ;;  %4247 = vmatprep.subr.bf16.mxu1 %v22142_v60  ;;  %v22212_v15 = vld [vmem:[#allocation2 + $0x348] ss:$16 sps:$4 sm:$0xff]   ;;  %v22217_v60 = vld [vmem:[#allocation2 + $0x364] ss:$16 sps:$4 sm:$0xff]  }
 0x1b3   : > { %4076 = vmatpush1.bf16.msra.mxu0 %v22137_v16  ;;  %4248 = vmatpush1.bf16.msra.mxu1 %v22140_v17  ;;  %v22220_v16 = vld [vmem:[#allocation2 + $0x36c] ss:$16 sps:$4 sm:$0xff]   ;;  %v22215_v17 = vld [vmem:[#allocation2 + $0x360] ss:$16 sps:$4 sm:$0xff]  }
 0x1b4   : > { %4077 = vmatprep.subr.bf16.mxu0 %v22145_v18  ;;  %4249 = vmatprep.subr.bf16.mxu1 %v22148_v19  ;;  %v22218_v18 = vld [vmem:[#allocation2 + $0x368] ss:$16 sps:$4 sm:$0xff]   ;;  %v22223_v19 = vld [vmem:[#allocation2 + $0x384] ss:$16 sps:$4 sm:$0xff]  }
 0x1b7   : > { %4078 = vmatpush1.bf16.msra.mxu0 %v22143_v20  ;;  %4250 = vmatpush1.bf16.msra.mxu1 %v22146_v21  ;;  %v22226_v20 = vld [vmem:[#allocation2 + $0x38c] ss:$16 sps:$4 sm:$0xff]   ;;  %v22221_v21 = vld [vmem:[#allocation2 + $0x380] ss:$16 sps:$4 sm:$0xff]  }
 0x1b8   : > { %4090 = vmatprep.subr.bf16.mxu0 %v22151_v22  ;;  %4262 = vmatprep.subr.bf16.mxu1 %v22154_v23  ;;  %v22224_v22 = vld [vmem:[#allocation2 + $0x388] ss:$16 sps:$4 sm:$0xff]   ;;  %v22229_v23 = vld [vmem:[#allocation2 + $0x3a4] ss:$16 sps:$4 sm:$0xff]  }
 0x1ba   : > { %4080 = vmatmul.mubr.bf16.vlgmr.msra.gmra.mrb[0].mxu0 %v25581_v62  ;;  %4252 = vmatmul.mubr.bf16.vlgmr.msra.gmra.mrb[0].mxu1 %v25581_v62  ;;  %v22172_v62 = vld [vmem:[#allocation2 + $0x26c] ss:$16 sps:$4 sm:$0xff]  }
 0x1bb   : > { %4091 = vmatpush1.bf16.msra.mxu0 %v22149_v24  ;;  %4263 = vmatpush1.bf16.msra.mxu1 %v22152_v25  ;;  %v22232_v24 = vld [vmem:[#allocation2 + $0x3ac] ss:$16 sps:$4 sm:$0xff]   ;;  %v22227_v25 = vld [vmem:[#allocation2 + $0x3a0] ss:$16 sps:$4 sm:$0xff]  }
 0x1bc   : > { %4092 = vmatprep.subr.bf16.mxu0 %v22157_v52  ;;  %4264 = vmatprep.subr.bf16.mxu1 %v22160_v27  ;;  %v22230_v52 = vld [vmem:[#allocation2 + $0x3a8] ss:$16 sps:$4 sm:$0xff]   ;;  %v22235_v27 = vld [vmem:[#allocation2 + $0x3c4] ss:$16 sps:$4 sm:$0xff]  }
 0x1bd   : > { %4122 = vmatprep.mubr.bf16.mxu0 %v25601_v54  ;;  %4294 = vmatprep.mubr.bf16.mxu1 %v25601_v54  ;;  %v22176_v54 = vld [vmem:[#allocation2 + $0x288] ss:$16 sps:$4 sm:$0xff]  }
 0x1bf   : > { %4093 = vmatpush1.bf16.msra.mxu0 %v22155_v28  ;;  %4265 = vmatpush1.bf16.msra.mxu1 %v22158_v29  ;;  %v22238_v28 = vld [vmem:[#allocation2 + $0x3cc] ss:$16 sps:$4 sm:$0xff]   ;;  %v22233_v29 = vld [vmem:[#allocation2 + $0x3c0] ss:$16 sps:$4 sm:$0xff]  }
 0x1c0   : > { %4094 = vmatprep.subr.bf16.mxu0 %v22163_v30  ;;  %4266 = vmatprep.subr.bf16.mxu1 %v22166_v32  ;;  %v22236_v30 = vld [vmem:[#allocation2 + $0x3c8] ss:$16 sps:$4 sm:$0xff]   ;;  %v22241_v32 = vld [vmem:[#allocation2 + $0x3e4] ss:$16 sps:$4 sm:$0xff]  }
 0x1c3   : > { %4095 = vmatpush1.bf16.msra.mxu0 %v22161_v33  ;;  %4267 = vmatpush1.bf16.msra.mxu1 %v22164_v34  ;;  %v22244_v33 = vld [vmem:[#allocation2 + $0x3ec] ss:$16 sps:$4 sm:$0xff]   ;;  %v22239_v34 = vld [vmem:[#allocation2 + $0x3e0] ss:$16 sps:$4 sm:$0xff]  }
 0x1c4   : > { %4096 = vmatprep.subr.bf16.mxu0 %v22169_v35  ;;  %4268 = vmatprep.subr.bf16.mxu1 %v22172_v62  ;;  %v22242_v35 = vld [vmem:[#allocation2 + $0x3e8] ss:$16 sps:$4 sm:$0xff]   ;;  %v22247_v62 = vld [vmem:[#allocation2 + $0x404] ss:$16 sps:$4 sm:$0xff]  }
 0x1c7   : > { %4097 = vmatpush1.bf16.msra.mxu0 %v22167_v36  ;;  %4269 = vmatpush1.bf16.msra.mxu1 %v22170_v37  ;;  %v22250_v36 = vld [vmem:[#allocation2 + $0x40c] ss:$16 sps:$4 sm:$0xff]   ;;  %v22245_v37 = vld [vmem:[#allocation2 + $0x400] ss:$16 sps:$4 sm:$0xff]  }
 0x1c8   : > { %4098 = vmatprep.subr.bf16.mxu0 %v22175_v39  ;;  %4270 = vmatprep.subr.bf16.mxu1 %v22178_v40  ;;  %v22248_v39 = vld [vmem:[#allocation2 + $0x408] ss:$16 sps:$4 sm:$0xff]   ;;  %v22253_v40 = vld [vmem:[#allocation2 + $0x424] ss:$16 sps:$4 sm:$0xff]  }
 0x1cb   : > { %4099 = vmatpush1.bf16.msra.mxu0 %v22173_v41  ;;  %4271 = vmatpush1.bf16.msra.mxu1 %v22176_v54  ;;  %v22256_v41 = vld [vmem:[#allocation2 + $0x42c] ss:$16 sps:$4 sm:$0xff]   ;;  %v22251_v54 = vld [vmem:[#allocation2 + $0x420] ss:$16 sps:$4 sm:$0xff]  }
 0x1cc   : > { %4100 = vmatprep.subr.bf16.mxu0 %v22181_v42  ;;  %4272 = vmatprep.subr.bf16.mxu1 %v22184_v44  ;;  %v22254_v42 = vld [vmem:[#allocation2 + $0x428] ss:$16 sps:$4 sm:$0xff]   ;;  %v22259_v44 = vld [vmem:[#allocation2 + $0x444] ss:$16 sps:$4 sm:$0xff]  }
 0x1cf   : > { %4101 = vmatpush1.bf16.msra.mxu0 %v22179_v45  ;;  %4273 = vmatpush1.bf16.msra.mxu1 %v22182_v46  ;;  %v22262_v45 = vld [vmem:[#allocation2 + $0x44c] ss:$16 sps:$4 sm:$0xff]   ;;  %v22257_v46 = vld [vmem:[#allocation2 + $0x440] ss:$16 sps:$4 sm:$0xff]  }
 0x1d0   : > { %4102 = vmatprep.subr.bf16.mxu0 %v22187_v2  ;;  %4274 = vmatprep.subr.bf16.mxu1 %v22190_v3  ;;  %v22260_v2 = vld [vmem:[#allocation2 + $0x448] ss:$16 sps:$4 sm:$0xff]   ;;  %v22265_v3 = vld [vmem:[#allocation2 + $0x464] ss:$16 sps:$4 sm:$0xff]  }
 0x1d3   : > { %4103 = vmatpush1.bf16.msra.mxu0 %v22185_v47  ;;  %4275 = vmatpush1.bf16.msra.mxu1 %v22188_v48  ;;  %v22263_v47 = vld [vmem:[#allocation2 + $0x460] ss:$16 sps:$4 sm:$0xff]   ;;  %v22266_v48 = vld [vmem:[#allocation2 + $0x468] ss:$16 sps:$4 sm:$0xff]  }
 0x1d4   : > { %4104 = vmatprep.subr.bf16.mxu0 %v22193_v49  ;;  %4276 = vmatprep.subr.bf16.mxu1 %v22196_v50  ;;  %v22271_v49 = vld [vmem:[#allocation2 + $0x484] ss:$16 sps:$4 sm:$0xff]   ;;  %v22274_v50 = vld [vmem:[#allocation2 + $0x48c] ss:$16 sps:$4 sm:$0xff]  }
 0x1d7   : > { %4105 = vmatpush1.bf16.msra.mxu0 %v22191_v59  ;;  %4277 = vmatpush1.bf16.msra.mxu1 %v22194_v51  ;;  %v22269_v59 = vld [vmem:[#allocation2 + $0x480] ss:$16 sps:$4 sm:$0xff]   ;;  %v22277_v51 = vld [vmem:[#allocation2 + $0x4a4] ss:$16 sps:$4 sm:$0xff]  }
 0x1d8   : > { %4106 = vmatprep.subr.bf16.mxu0 %v22199_v55  ;;  %4278 = vmatprep.subr.bf16.mxu1 %v22202_v56  ;;  %v22280_v55 = vld [vmem:[#allocation2 + $0x4ac] ss:$16 sps:$4 sm:$0xff]   ;;  %v22275_v56 = vld [vmem:[#allocation2 + $0x4a0] ss:$16 sps:$4 sm:$0xff]  }
 0x1db   : > { %4107 = vmatpush1.bf16.msra.mxu0 %v22197_v61  ;;  %4279 = vmatpush1.bf16.msra.mxu1 %v22200_v4  ;;  %v22278_v61 = vld [vmem:[#allocation2 + $0x4a8] ss:$16 sps:$4 sm:$0xff]   ;;  %v22283_v4 = vld [vmem:[#allocation2 + $0x4c4] ss:$16 sps:$4 sm:$0xff]  }
 0x1dc   : > { %4108 = vmatprep.subr.bf16.mxu0 %v22205_v6  ;;  %4280 = vmatprep.subr.bf16.mxu1 %v22208_v8  ;;  %v22286_v6 = vld [vmem:[#allocation2 + $0x4cc] ss:$16 sps:$4 sm:$0xff]   ;;  %v22281_v8 = vld [vmem:[#allocation2 + $0x4c0] ss:$16 sps:$4 sm:$0xff]  }
 0x1df   : > { %4109 = vmatpush1.bf16.msra.mxu0 %v22203_v58  ;;  %4281 = vmatpush1.bf16.msra.mxu1 %v22206_v10  ;;  %v22284_v58 = vld [vmem:[#allocation2 + $0x4c8] ss:$16 sps:$4 sm:$0xff]   ;;  %v22289_v10 = vld [vmem:[#allocation2 + $0x4e4] ss:$16 sps:$4 sm:$0xff]  }
 0x1e0   : > { %4110 = vmatprep.subr.bf16.mxu0 %v22211_v11  ;;  %4282 = vmatprep.subr.bf16.mxu1 %v22214_v12  ;;  %v22292_v11 = vld [vmem:[#allocation2 + $0x4ec] ss:$16 sps:$4 sm:$0xff]   ;;  %v22287_v12 = vld [vmem:[#allocation2 + $0x4e0] ss:$16 sps:$4 sm:$0xff]  }
 0x1e3   : > { %4111 = vmatpush1.bf16.msra.mxu0 %v22209_v14  ;;  %4283 = vmatpush1.bf16.msra.mxu1 %v22212_v15  ;;  %v22290_v14 = vld [vmem:[#allocation2 + $0x4e8] ss:$16 sps:$4 sm:$0xff]   ;;  %v22295_v15 = vld [vmem:[#allocation2 + $0x504] ss:$16 sps:$4 sm:$0xff]  }
 0x1e4   : > { %4112 = vmatprep.subr.bf16.mxu0 %v22217_v60  ;;  %4284 = vmatprep.subr.bf16.mxu1 %v22220_v16  ;;  %v22298_v60 = vld [vmem:[#allocation2 + $0x50c] ss:$16 sps:$4 sm:$0xff]   ;;  %v22293_v16 = vld [vmem:[#allocation2 + $0x500] ss:$16 sps:$4 sm:$0xff]  }
 0x1e7   : > { %4113 = vmatpush1.bf16.msra.mxu0 %v22215_v17  ;;  %4285 = vmatpush1.bf16.msra.mxu1 %v22218_v18  ;;  %v22296_v17 = vld [vmem:[#allocation2 + $0x508] ss:$16 sps:$4 sm:$0xff]   ;;  %v22301_v18 = vld [vmem:[#allocation2 + $0x524] ss:$16 sps:$4 sm:$0xff]  }
 0x1e8   : > { %4114 = vmatprep.subr.bf16.mxu0 %v22223_v19  ;;  %4286 = vmatprep.subr.bf16.mxu1 %v22226_v20  ;;  %v22304_v19 = vld [vmem:[#allocation2 + $0x52c] ss:$16 sps:$4 sm:$0xff]   ;;  %v22299_v20 = vld [vmem:[#allocation2 + $0x520] ss:$16 sps:$4 sm:$0xff]  }
 0x1eb   : > { %4115 = vmatpush1.bf16.msra.mxu0 %v22221_v21  ;;  %4287 = vmatpush1.bf16.msra.mxu1 %v22224_v22  ;;  %v22302_v21 = vld [vmem:[#allocation2 + $0x528] ss:$16 sps:$4 sm:$0xff]   ;;  %v22307_v22 = vld [vmem:[#allocation2 + $0x544] ss:$16 sps:$4 sm:$0xff]  }
 0x1ec   : > { %4116 = vmatprep.subr.bf16.mxu0 %v22229_v23  ;;  %4288 = vmatprep.subr.bf16.mxu1 %v22232_v24  ;;  %v22310_v23 = vld [vmem:[#allocation2 + $0x54c] ss:$16 sps:$4 sm:$0xff]   ;;  %v22305_v24 = vld [vmem:[#allocation2 + $0x540] ss:$16 sps:$4 sm:$0xff]  }
 0x1ef   : > { %4117 = vmatpush1.bf16.msra.mxu0 %v22227_v25  ;;  %4289 = vmatpush1.bf16.msra.mxu1 %v22230_v52  ;;  %v22308_v25 = vld [vmem:[#allocation2 + $0x548] ss:$16 sps:$4 sm:$0xff]   ;;  %v22313_v52 = vld [vmem:[#allocation2 + $0x564] ss:$16 sps:$4 sm:$0xff]  }
 0x1f0   : > { %4118 = vmatprep.subr.bf16.mxu0 %v22235_v27  ;;  %4290 = vmatprep.subr.bf16.mxu1 %v22238_v28  ;;  %v22316_v27 = vld [vmem:[#allocation2 + $0x56c] ss:$16 sps:$4 sm:$0xff]   ;;  %v22311_v28 = vld [vmem:[#allocation2 + $0x560] ss:$16 sps:$4 sm:$0xff]  }
 0x1f3   : > { %4119 = vmatpush1.bf16.msra.mxu0 %v22233_v29  ;;  %4291 = vmatpush1.bf16.msra.mxu1 %v22236_v30  ;;  %v22314_v29 = vld [vmem:[#allocation2 + $0x568] ss:$16 sps:$4 sm:$0xff]   ;;  %v22319_v30 = vld [vmem:[#allocation2 + $0x584] ss:$16 sps:$4 sm:$0xff]  }
 0x1f4   : > { %4120 = vmatprep.subr.bf16.mxu0 %v22241_v32  ;;  %4292 = vmatprep.subr.bf16.mxu1 %v22244_v33  ;;  %v22322_v32 = vld [vmem:[#allocation2 + $0x58c] ss:$16 sps:$4 sm:$0xff]   ;;  %v22317_v33 = vld [vmem:[#allocation2 + $0x580] ss:$16 sps:$4 sm:$0xff]  }
 0x1f7   : > { %4121 = vmatpush1.bf16.msra.mxu0 %v22239_v34  ;;  %4293 = vmatpush1.bf16.msra.mxu1 %v22242_v35  ;;  %v22320_v34 = vld [vmem:[#allocation2 + $0x588] ss:$16 sps:$4 sm:$0xff]   ;;  %v22325_v35 = vld [vmem:[#allocation2 + $0x5a4] ss:$16 sps:$4 sm:$0xff]  }
 0x1f8   : > { %4133 = vmatprep.subr.bf16.mxu0 %v22247_v62  ;;  %4305 = vmatprep.subr.bf16.mxu1 %v22250_v36  ;;  %v22328_v62 = vld [vmem:[#allocation2 + $0x5ac] ss:$16 sps:$4 sm:$0xff]   ;;  %v22323_v36 = vld [vmem:[#allocation2 + $0x5a0] ss:$16 sps:$4 sm:$0xff]  }
 0x1fa   : > { %4123 = vmatmul.mubr.bf16.vlgmr.msra.gmra.mrb[0].mxu0 %v25613_v26  ;;  %4295 = vmatmul.mubr.bf16.vlgmr.msra.gmra.mrb[0].mxu1 %v25613_v26  ;;  %v22268_v26 = vld [vmem:[#allocation2 + $0x46c] ss:$16 sps:$4 sm:$0xff]  }
 0x1fb   : > { %4134 = vmatpush1.bf16.msra.mxu0 %v22245_v37  ;;  %4306 = vmatpush1.bf16.msra.mxu1 %v22248_v39  ;;  %v22326_v37 = vld [vmem:[#allocation2 + $0x5a8] ss:$16 sps:$4 sm:$0xff]   ;;  %v22331_v39 = vld [vmem:[#allocation2 + $0x5c4] ss:$16 sps:$4 sm:$0xff]  }
 0x1fc   : > { %4135 = vmatprep.subr.bf16.mxu0 %v22253_v40  ;;  %4307 = vmatprep.subr.bf16.mxu1 %v22256_v41  ;;  %v22334_v40 = vld [vmem:[#allocation2 + $0x5cc] ss:$16 sps:$4 sm:$0xff]   ;;  %v22329_v41 = vld [vmem:[#allocation2 + $0x5c0] ss:$16 sps:$4 sm:$0xff]  }
 0x1fd   : > { %4165 = vmatprep.mubr.bf16.mxu0 %v25634_v0  ;;  %4337 = vmatprep.mubr.bf16.mxu1 %v25634_v0  ;;  %v22272_v0 = vld [vmem:[#allocation2 + $0x488] ss:$16 sps:$4 sm:$0xff]  }
 0x1ff   : > { %4136 = vmatpush1.bf16.msra.mxu0 %v22251_v54  ;;  %4308 = vmatpush1.bf16.msra.mxu1 %v22254_v42  ;;  %v22332_v54 = vld [vmem:[#allocation2 + $0x5c8] ss:$16 sps:$4 sm:$0xff]   ;;  %v22337_v42 = vld [vmem:[#allocation2 + $0x5e4] ss:$16 sps:$4 sm:$0xff]  }
 0x200   : > { %4137 = vmatprep.subr.bf16.mxu0 %v22259_v44  ;;  %4309 = vmatprep.subr.bf16.mxu1 %v22262_v45  ;;  %v22340_v44 = vld [vmem:[#allocation2 + $0x5ec] ss:$16 sps:$4 sm:$0xff]   ;;  %v22335_v45 = vld [vmem:[#allocation2 + $0x5e0] ss:$16 sps:$4 sm:$0xff]  }
 0x203   : > { %4138 = vmatpush1.bf16.msra.mxu0 %v22257_v46  ;;  %4310 = vmatpush1.bf16.msra.mxu1 %v22260_v2  ;;  %v22338_v46 = vld [vmem:[#allocation2 + $0x5e8] ss:$16 sps:$4 sm:$0xff]   ;;  %v22343_v2 = vld [vmem:[#allocation2 + $0x604] ss:$16 sps:$4 sm:$0xff]  }
 0x204   : > { %4139 = vmatprep.subr.bf16.mxu0 %v22265_v3  ;;  %4311 = vmatprep.subr.bf16.mxu1 %v22268_v26  ;;  %v22346_v3 = vld [vmem:[#allocation2 + $0x60c] ss:$16 sps:$4 sm:$0xff]   ;;  %v22341_v26 = vld [vmem:[#allocation2 + $0x600] ss:$16 sps:$4 sm:$0xff]  }
 0x207   : > { %4140 = vmatpush1.bf16.msra.mxu0 %v22263_v47  ;;  %4312 = vmatpush1.bf16.msra.mxu1 %v22266_v48  ;;  %v22344_v47 = vld [vmem:[#allocation2 + $0x608] ss:$16 sps:$4 sm:$0xff]   ;;  %v22349_v48 = vld [vmem:[#allocation2 + $0x624] ss:$16 sps:$4 sm:$0xff]  }
 0x208   : > { %4141 = vmatprep.subr.bf16.mxu0 %v22271_v49  ;;  %4313 = vmatprep.subr.bf16.mxu1 %v22274_v50  ;;  %v22352_v49 = vld [vmem:[#allocation2 + $0x62c] ss:$16 sps:$4 sm:$0xff]   ;;  %v22347_v50 = vld [vmem:[#allocation2 + $0x620] ss:$16 sps:$4 sm:$0xff]  }
 0x20b   : > { %4142 = vmatpush1.bf16.msra.mxu0 %v22269_v59  ;;  %4314 = vmatpush1.bf16.msra.mxu1 %v22272_v0  ;;  %v22350_v59 = vld [vmem:[#allocation2 + $0x628] ss:$16 sps:$4 sm:$0xff]   ;;  %v22355_v0 = vld [vmem:[#allocation2 + $0x644] ss:$16 sps:$4 sm:$0xff]  }
 0x20c   : > { %4143 = vmatprep.subr.bf16.mxu0 %v22277_v51  ;;  %4315 = vmatprep.subr.bf16.mxu1 %v22280_v55  ;;  %v22358_v51 = vld [vmem:[#allocation2 + $0x64c] ss:$16 sps:$4 sm:$0xff]   ;;  %v22353_v55 = vld [vmem:[#allocation2 + $0x640] ss:$16 sps:$4 sm:$0xff]  }
 0x20f   : > { %4144 = vmatpush1.bf16.msra.mxu0 %v22275_v56  ;;  %4316 = vmatpush1.bf16.msra.mxu1 %v22278_v61  ;;  %v22356_v56 = vld [vmem:[#allocation2 + $0x648] ss:$16 sps:$4 sm:$0xff]   ;;  %v22361_v61 = vld [vmem:[#allocation2 + $0x664] ss:$16 sps:$4 sm:$0xff]  }
 0x210   : > { %4145 = vmatprep.subr.bf16.mxu0 %v22283_v4  ;;  %4317 = vmatprep.subr.bf16.mxu1 %v22286_v6  ;;  %v22359_v4 = vld [vmem:[#allocation2 + $0x660] ss:$16 sps:$4 sm:$0xff]   ;;  %v22362_v6 = vld [vmem:[#allocation2 + $0x668] ss:$16 sps:$4 sm:$0xff]  }
 0x213   : > { %4146 = vmatpush1.bf16.msra.mxu0 %v22281_v8  ;;  %4318 = vmatpush1.bf16.msra.mxu1 %v22284_v58  ;;  %v22367_v8 = vld [vmem:[#allocation2 + $0x684] ss:$16 sps:$4 sm:$0xff]   ;;  %v22370_v58 = vld [vmem:[#allocation2 + $0x68c] ss:$16 sps:$4 sm:$0xff]  }
 0x214   : > { %4147 = vmatprep.subr.bf16.mxu0 %v22289_v10  ;;  %4319 = vmatprep.subr.bf16.mxu1 %v22292_v11  ;;  %v22365_v10 = vld [vmem:[#allocation2 + $0x680] ss:$16 sps:$4 sm:$0xff]   ;;  %v22373_v11 = vld [vmem:[#allocation2 + $0x6a4] ss:$16 sps:$4 sm:$0xff]  }
 0x217   : > { %4148 = vmatpush1.bf16.msra.mxu0 %v22287_v12  ;;  %4320 = vmatpush1.bf16.msra.mxu1 %v22290_v14  ;;  %v22376_v12 = vld [vmem:[#allocation2 + $0x6ac] ss:$16 sps:$4 sm:$0xff]   ;;  %v22371_v14 = vld [vmem:[#allocation2 + $0x6a0] ss:$16 sps:$4 sm:$0xff]  }
 0x218   : > { %4149 = vmatprep.subr.bf16.mxu0 %v22295_v15  ;;  %4321 = vmatprep.subr.bf16.mxu1 %v22298_v60  ;;  %v22374_v15 = vld [vmem:[#allocation2 + $0x6a8] ss:$16 sps:$4 sm:$0xff]   ;;  %v22379_v60 = vld [vmem:[#allocation2 + $0x6c4] ss:$16 sps:$4 sm:$0xff]  }
 0x21b   : > { %4150 = vmatpush1.bf16.msra.mxu0 %v22293_v16  ;;  %4322 = vmatpush1.bf16.msra.mxu1 %v22296_v17  ;;  %v22382_v16 = vld [vmem:[#allocation2 + $0x6cc] ss:$16 sps:$4 sm:$0xff]   ;;  %v22377_v17 = vld [vmem:[#allocation2 + $0x6c0] ss:$16 sps:$4 sm:$0xff]  }
 0x21c   : > { %4151 = vmatprep.subr.bf16.mxu0 %v22301_v18  ;;  %4323 = vmatprep.subr.bf16.mxu1 %v22304_v19  ;;  %v22380_v18 = vld [vmem:[#allocation2 + $0x6c8] ss:$16 sps:$4 sm:$0xff]   ;;  %v22385_v19 = vld [vmem:[#allocation2 + $0x6e4] ss:$16 sps:$4 sm:$0xff]  }
 0x21f   : > { %4152 = vmatpush1.bf16.msra.mxu0 %v22299_v20  ;;  %4324 = vmatpush1.bf16.msra.mxu1 %v22302_v21  ;;  %v22388_v20 = vld [vmem:[#allocation2 + $0x6ec] ss:$16 sps:$4 sm:$0xff]   ;;  %v22383_v21 = vld [vmem:[#allocation2 + $0x6e0] ss:$16 sps:$4 sm:$0xff]  }
 0x220   : > { %4153 = vmatprep.subr.bf16.mxu0 %v22307_v22  ;;  %4325 = vmatprep.subr.bf16.mxu1 %v22310_v23  ;;  %v22386_v22 = vld [vmem:[#allocation2 + $0x6e8] ss:$16 sps:$4 sm:$0xff]   ;;  %v22391_v23 = vld [vmem:[#allocation2 + $0x704] ss:$16 sps:$4 sm:$0xff]  }
 0x223   : > { %4154 = vmatpush1.bf16.msra.mxu0 %v22305_v24  ;;  %4326 = vmatpush1.bf16.msra.mxu1 %v22308_v25  ;;  %v22394_v24 = vld [vmem:[#allocation2 + $0x70c] ss:$16 sps:$4 sm:$0xff]   ;;  %v22389_v25 = vld [vmem:[#allocation2 + $0x700] ss:$16 sps:$4 sm:$0xff]  }
 0x224   : > { %4155 = vmatprep.subr.bf16.mxu0 %v22313_v52  ;;  %4327 = vmatprep.subr.bf16.mxu1 %v22316_v27  ;;  %v22392_v52 = vld [vmem:[#allocation2 + $0x708] ss:$16 sps:$4 sm:$0xff]   ;;  %v22397_v27 = vld [vmem:[#allocation2 + $0x724] ss:$16 sps:$4 sm:$0xff]  }
 0x227   : > { %4156 = vmatpush1.bf16.msra.mxu0 %v22311_v28  ;;  %4328 = vmatpush1.bf16.msra.mxu1 %v22314_v29  ;;  %v22400_v28 = vld [vmem:[#allocation2 + $0x72c] ss:$16 sps:$4 sm:$0xff]   ;;  %v22395_v29 = vld [vmem:[#allocation2 + $0x720] ss:$16 sps:$4 sm:$0xff]  }
 0x228   : > { %4157 = vmatprep.subr.bf16.mxu0 %v22319_v30  ;;  %4329 = vmatprep.subr.bf16.mxu1 %v22322_v32  ;;  %v22398_v30 = vld [vmem:[#allocation2 + $0x728] ss:$16 sps:$4 sm:$0xff]   ;;  %v22403_v32 = vld [vmem:[#allocation2 + $0x744] ss:$16 sps:$4 sm:$0xff]  }
 0x22b   : > { %4158 = vmatpush1.bf16.msra.mxu0 %v22317_v33  ;;  %4330 = vmatpush1.bf16.msra.mxu1 %v22320_v34  ;;  %v22406_v33 = vld [vmem:[#allocation2 + $0x74c] ss:$16 sps:$4 sm:$0xff]   ;;  %v22401_v34 = vld [vmem:[#allocation2 + $0x740] ss:$16 sps:$4 sm:$0xff]  }
 0x22c   : > { %4159 = vmatprep.subr.bf16.mxu0 %v22325_v35  ;;  %4331 = vmatprep.subr.bf16.mxu1 %v22328_v62  ;;  %v22404_v35 = vld [vmem:[#allocation2 + $0x748] ss:$16 sps:$4 sm:$0xff]   ;;  %v22409_v62 = vld [vmem:[#allocation2 + $0x764] ss:$16 sps:$4 sm:$0xff]  }
 0x22f   : > { %4160 = vmatpush1.bf16.msra.mxu0 %v22323_v36  ;;  %4332 = vmatpush1.bf16.msra.mxu1 %v22326_v37  ;;  %v22412_v36 = vld [vmem:[#allocation2 + $0x76c] ss:$16 sps:$4 sm:$0xff]   ;;  %v22407_v37 = vld [vmem:[#allocation2 + $0x760] ss:$16 sps:$4 sm:$0xff]  }
 0x230   : > { %4161 = vmatprep.subr.bf16.mxu0 %v22331_v39  ;;  %4333 = vmatprep.subr.bf16.mxu1 %v22334_v40  ;;  %v22410_v39 = vld [vmem:[#allocation2 + $0x768] ss:$16 sps:$4 sm:$0xff]   ;;  %v22415_v40 = vld [vmem:[#allocation2 + $0x784] ss:$16 sps:$4 sm:$0xff]  }
 0x233   : > { %4162 = vmatpush1.bf16.msra.mxu0 %v22329_v41  ;;  %4334 = vmatpush1.bf16.msra.mxu1 %v22332_v54  ;;  %v22418_v41 = vld [vmem:[#allocation2 + $0x78c] ss:$16 sps:$4 sm:$0xff]   ;;  %v22413_v54 = vld [vmem:[#allocation2 + $0x780] ss:$16 sps:$4 sm:$0xff]  }
 0x234   : > { %4163 = vmatprep.subr.bf16.mxu0 %v22337_v42  ;;  %4335 = vmatprep.subr.bf16.mxu1 %v22340_v44  ;;  %v22416_v42 = vld [vmem:[#allocation2 + $0x788] ss:$16 sps:$4 sm:$0xff]   ;;  %v22421_v44 = vld [vmem:[#allocation2 + $0x7a4] ss:$16 sps:$4 sm:$0xff]  }
 0x237   : > { %4164 = vmatpush1.bf16.msra.mxu0 %v22335_v45  ;;  %4336 = vmatpush1.bf16.msra.mxu1 %v22338_v46  ;;  %v22424_v45 = vld [vmem:[#allocation2 + $0x7ac] ss:$16 sps:$4 sm:$0xff]   ;;  %v22419_v46 = vld [vmem:[#allocation2 + $0x7a0] ss:$16 sps:$4 sm:$0xff]  }
 0x238   : > { %4176 = vmatprep.subr.bf16.mxu0 %v22343_v2  ;;  %4348 = vmatprep.subr.bf16.mxu1 %v22346_v3  ;;  %v22422_v2 = vld [vmem:[#allocation2 + $0x7a8] ss:$16 sps:$4 sm:$0xff]   ;;  %v22427_v3 = vld [vmem:[#allocation2 + $0x7c4] ss:$16 sps:$4 sm:$0xff]  }
 0x23a   : > { %4166 = vmatmul.mubr.bf16.vlgmr.msra.gmra.mrb[0].mxu0 %v25646_v63  ;;  %4338 = vmatmul.mubr.bf16.vlgmr.msra.gmra.mrb[0].mxu1 %v25646_v63  ;;  %v22364_v63 = vld [vmem:[#allocation2 + $0x66c] ss:$16 sps:$4 sm:$0xff]  }
 0x23b   : > { %4177 = vmatpush1.bf16.msra.mxu0 %v22341_v26  ;;  %4349 = vmatpush1.bf16.msra.mxu1 %v22344_v47  ;;  %v22430_v26 = vld [vmem:[#allocation2 + $0x7cc] ss:$16 sps:$4 sm:$0xff]   ;;  %v22425_v47 = vld [vmem:[#allocation2 + $0x7c0] ss:$16 sps:$4 sm:$0xff]  }
 0x23c   : > { %4178 = vmatprep.subr.bf16.mxu0 %v22349_v48  ;;  %4350 = vmatprep.subr.bf16.mxu1 %v22352_v49  ;;  %v22428_v48 = vld [vmem:[#allocation2 + $0x7c8] ss:$16 sps:$4 sm:$0xff]   ;;  %v25704_v49 = vld [vmem:[%s25569_s17] sm:$0xee] }
 0x23d   : > { %4208 = vmatprep.mubr.bf16.mxu0 %v25656_v7  ;;  %4380 = vmatprep.mubr.bf16.mxu1 %v25656_v7  ;;  %v22368_v7 = vld [vmem:[#allocation2 + $0x688] ss:$16 sps:$4 sm:$0xff]  }
 0x23f   : > { %4179 = vmatpush1.bf16.msra.mxu0 %v22347_v50  ;;  %4351 = vmatpush1.bf16.msra.mxu1 %v22350_v59  ;;  %v22433_v50 = vld [vmem:[#allocation2 + $0x7e4] ss:$16 sps:$4 sm:$0xff]   ;;  %v22436_v59 = vld [vmem:[#allocation2 + $0x7ec] ss:$16 sps:$4 sm:$0xff]  }
 0x240   : > { %4180 = vmatprep.subr.bf16.mxu0 %v22355_v0  ;;  %4352 = vmatprep.subr.bf16.mxu1 %v22358_v51  ;;  %v25707_v0 = vld [vmem:[%s25569_s17 + $0x20] sm:$0xff] }
 0x241   : > { %v19348_v51 = vcombine.high %v25704_v49, %v25707_v0 }
 0x243   : > { %4181 = vmatpush1.bf16.msra.mxu0 %v22353_v55  ;;  %4353 = vmatpush1.bf16.msra.mxu1 %v22356_v56  ;;  %v22431_v55 = vld [vmem:[#allocation2 + $0x7e0] ss:$16 sps:$4 sm:$0xff]   ;;  %v22434_v56 = vld [vmem:[#allocation2 + $0x7e8] ss:$16 sps:$4 sm:$0xff]  }
 0x244   : > { %4182 = vmatprep.subr.bf16.mxu0 %v22361_v61  ;;  %4354 = vmatprep.subr.bf16.mxu1 %v22364_v63  ;;  %v22439_v61 = vld [vmem:[#allocation2 + $0x1004] ss:$16 sps:$4 sm:$0xff]   ;;  %v22442_v63 = vld [vmem:[#allocation2 + $0x100c] ss:$16 sps:$4 sm:$0xff]  }
 0x247   : > { %4183 = vmatpush1.bf16.msra.mxu0 %v22359_v4  ;;  %4355 = vmatpush1.bf16.msra.mxu1 %v22362_v6  ;;  %v4676_v4 = vrot.slane %v19348_v51, 1  ;;  %v4677_v6 = vrot.slane %v25576_v53, 1  ;;  %v22451_v53 = vld [vmem:[#allocation2 + $0x1044] ss:$16 sps:$4 sm:$0xff]   ;;  %v22514_v51 = vld [vmem:[#allocation2 + $0x118c] ss:$16 sps:$4 sm:$0xff]  }
 0x248   : > { %4184 = vmatprep.subr.bf16.mxu0 %v22367_v8  ;;  %4356 = vmatprep.subr.bf16.mxu1 %v22370_v58  ;;  %v22437_v8 = vld [vmem:[#allocation2 + $0x1000] ss:$16 sps:$4 sm:$0xff]   ;;  %v22440_v58 = vld [vmem:[#allocation2 + $0x1008] ss:$16 sps:$4 sm:$0xff]  }
 0x24b   : > { %4185 = vmatpush1.bf16.msra.mxu0 %v22365_v10  ;;  %4357 = vmatpush1.bf16.msra.mxu1 %v22368_v7  ;;  %v22445_v10 = vld [vmem:[#allocation2 + $0x1024] ss:$16 sps:$4 sm:$0xff]   ;;  %v22448_v7 = vld [vmem:[#allocation2 + $0x102c] ss:$16 sps:$4 sm:$0xff]  }
 0x24c   : > { %4186 = vmatprep.subr.bf16.mxu0 %v22373_v11  ;;  %4358 = vmatprep.subr.bf16.mxu1 %v22376_v12  ;;  %v4678_v11 = vsel %vm4672_vm1, %v4676_v4, %v4677_v6  ;;  %v22443_v12 = vld [vmem:[#allocation2 + $0x1020] ss:$16 sps:$4 sm:$0xff]   ;;  %v22518_v6 = vld [vmem:[#allocation2 + $0x11a8] ss:$16 sps:$4 sm:$0xff]  }
 0x24d   : > { %v22515_v4 = vld [vmem:[#allocation2 + $0x11a0] ss:$16 sps:$4 sm:$0xff]  }
 0x24f   : > { %4187 = vmatpush1.bf16.msra.mxu0 %v22371_v14  ;;  %4359 = vmatpush1.bf16.msra.mxu1 %v22374_v15  ;;  %v22446_v14 = vld [vmem:[#allocation2 + $0x1028] ss:$16 sps:$4 sm:$0xff]   ;;  %v22454_v15 = vld [vmem:[#allocation2 + $0x104c] ss:$16 sps:$4 sm:$0xff]  }
 0x250   : > { %4188 = vmatprep.subr.bf16.mxu0 %v22379_v60  ;;  %4360 = vmatprep.subr.bf16.mxu1 %v22382_v16  ;;  %v22449_v60 = vld [vmem:[#allocation2 + $0x1040] ss:$16 sps:$4 sm:$0xff]   ;;  %v22452_v16 = vld [vmem:[#allocation2 + $0x1048] ss:$16 sps:$4 sm:$0xff]  }
 0x253   : > { %4189 = vmatpush1.bf16.msra.mxu0 %v22377_v17  ;;  %4361 = vmatpush1.bf16.msra.mxu1 %v22380_v18  ;;  %v22457_v17 = vld [vmem:[#allocation2 + $0x1064] ss:$16 sps:$4 sm:$0xff]   ;;  %v22455_v18 = vld [vmem:[#allocation2 + $0x1060] ss:$16 sps:$4 sm:$0xff]  }
 0x254   : > { %4190 = vmatprep.subr.bf16.mxu0 %v22385_v19  ;;  %4362 = vmatprep.subr.bf16.mxu1 %v22388_v20  ;;  %v22458_v19 = vld [vmem:[#allocation2 + $0x1068] ss:$16 sps:$4 sm:$0xff]   ;;  %v22463_v20 = vld [vmem:[#allocation2 + $0x1084] ss:$16 sps:$4 sm:$0xff]  }
 0x257   : > { %4191 = vmatpush1.bf16.msra.mxu0 %v22383_v21  ;;  %4363 = vmatpush1.bf16.msra.mxu1 %v22386_v22  ;;  %v22466_v21 = vld [vmem:[#allocation2 + $0x108c] ss:$16 sps:$4 sm:$0xff]   ;;  %v22461_v22 = vld [vmem:[#allocation2 + $0x1080] ss:$16 sps:$4 sm:$0xff]  }
 0x258   : > { %4192 = vmatprep.subr.bf16.mxu0 %v22391_v23  ;;  %4364 = vmatprep.subr.bf16.mxu1 %v22394_v24  ;;  %v22464_v23 = vld [vmem:[#allocation2 + $0x1088] ss:$16 sps:$4 sm:$0xff]   ;;  %v22469_v24 = vld [vmem:[#allocation2 + $0x10a4] ss:$16 sps:$4 sm:$0xff]  }
 0x25b   : > { %4193 = vmatpush1.bf16.msra.mxu0 %v22389_v25  ;;  %4365 = vmatpush1.bf16.msra.mxu1 %v22392_v52  ;;  %v22472_v25 = vld [vmem:[#allocation2 + $0x10ac] ss:$16 sps:$4 sm:$0xff]   ;;  %v22467_v52 = vld [vmem:[#allocation2 + $0x10a0] ss:$16 sps:$4 sm:$0xff]  }
 0x25c   : > { %4194 = vmatprep.subr.bf16.mxu0 %v22397_v27  ;;  %4366 = vmatprep.subr.bf16.mxu1 %v22400_v28  ;;  %v22470_v27 = vld [vmem:[#allocation2 + $0x10a8] ss:$16 sps:$4 sm:$0xff]   ;;  %v22475_v28 = vld [vmem:[#allocation2 + $0x10c4] ss:$16 sps:$4 sm:$0xff]  }
 0x25f   : > { %4195 = vmatpush1.bf16.msra.mxu0 %v22395_v29  ;;  %4367 = vmatpush1.bf16.msra.mxu1 %v22398_v30  ;;  %v22478_v29 = vld [vmem:[#allocation2 + $0x10cc] ss:$16 sps:$4 sm:$0xff]   ;;  %v22473_v30 = vld [vmem:[#allocation2 + $0x10c0] ss:$16 sps:$4 sm:$0xff]  }
 0x260   : > { %4196 = vmatprep.subr.bf16.mxu0 %v22403_v32  ;;  %4368 = vmatprep.subr.bf16.mxu1 %v22406_v33  ;;  %v22476_v32 = vld [vmem:[#allocation2 + $0x10c8] ss:$16 sps:$4 sm:$0xff]   ;;  %v22481_v33 = vld [vmem:[#allocation2 + $0x10e4] ss:$16 sps:$4 sm:$0xff]  }
 0x263   : > { %4197 = vmatpush1.bf16.msra.mxu0 %v22401_v34  ;;  %4369 = vmatpush1.bf16.msra.mxu1 %v22404_v35  ;;  %v22484_v34 = vld [vmem:[#allocation2 + $0x10ec] ss:$16 sps:$4 sm:$0xff]   ;;  %v22479_v35 = vld [vmem:[#allocation2 + $0x10e0] ss:$16 sps:$4 sm:$0xff]  }
 0x264   : > { %4198 = vmatprep.subr.bf16.mxu0 %v22409_v62  ;;  %4370 = vmatprep.subr.bf16.mxu1 %v22412_v36  ;;  %v22482_v62 = vld [vmem:[#allocation2 + $0x10e8] ss:$16 sps:$4 sm:$0xff]   ;;  %v22487_v36 = vld [vmem:[#allocation2 + $0x1104] ss:$16 sps:$4 sm:$0xff]  }
 0x267   : > { %4199 = vmatpush1.bf16.msra.mxu0 %v22407_v37  ;;  %4371 = vmatpush1.bf16.msra.mxu1 %v22410_v39  ;;  %v22490_v37 = vld [vmem:[#allocation2 + $0x110c] ss:$16 sps:$4 sm:$0xff]   ;;  %v22485_v39 = vld [vmem:[#allocation2 + $0x1100] ss:$16 sps:$4 sm:$0xff]  }
 0x268   : > { %4200 = vmatprep.subr.bf16.mxu0 %v22415_v40  ;;  %4372 = vmatprep.subr.bf16.mxu1 %v22418_v41  ;;  %v22488_v40 = vld [vmem:[#allocation2 + $0x1108] ss:$16 sps:$4 sm:$0xff]   ;;  %v22493_v41 = vld [vmem:[#allocation2 + $0x1124] ss:$16 sps:$4 sm:$0xff]  }
 0x26b   : > { %4201 = vmatpush1.bf16.msra.mxu0 %v22413_v54  ;;  %4373 = vmatpush1.bf16.msra.mxu1 %v22416_v42  ;;  %v22496_v54 = vld [vmem:[#allocation2 + $0x112c] ss:$16 sps:$4 sm:$0xff]   ;;  %v22491_v42 = vld [vmem:[#allocation2 + $0x1120] ss:$16 sps:$4 sm:$0xff]  }
 0x26c   : > { %4202 = vmatprep.subr.bf16.mxu0 %v22421_v44  ;;  %4374 = vmatprep.subr.bf16.mxu1 %v22424_v45  ;;  %v22494_v44 = vld [vmem:[#allocation2 + $0x1128] ss:$16 sps:$4 sm:$0xff]   ;;  %v22499_v45 = vld [vmem:[#allocation2 + $0x1144] ss:$16 sps:$4 sm:$0xff]  }
 0x26f   : > { %4203 = vmatpush1.bf16.msra.mxu0 %v22419_v46  ;;  %4375 = vmatpush1.bf16.msra.mxu1 %v22422_v2  ;;  %v22502_v46 = vld [vmem:[#allocation2 + $0x114c] ss:$16 sps:$4 sm:$0xff]   ;;  %v22497_v2 = vld [vmem:[#allocation2 + $0x1140] ss:$16 sps:$4 sm:$0xff]  }
 0x270   : > { %4204 = vmatprep.subr.bf16.mxu0 %v22427_v3  ;;  %4376 = vmatprep.subr.bf16.mxu1 %v22430_v26  ;;  %v22500_v3 = vld [vmem:[#allocation2 + $0x1148] ss:$16 sps:$4 sm:$0xff]   ;;  %v22505_v26 = vld [vmem:[#allocation2 + $0x1164] ss:$16 sps:$4 sm:$0xff]  }
 0x273   : > { %4205 = vmatpush1.bf16.msra.mxu0 %v22425_v47  ;;  %4377 = vmatpush1.bf16.msra.mxu1 %v22428_v48  ;;  %v22508_v47 = vld [vmem:[#allocation2 + $0x116c] ss:$16 sps:$4 sm:$0xff]   ;;  %v22503_v48 = vld [vmem:[#allocation2 + $0x1160] ss:$16 sps:$4 sm:$0xff]  }
 0x274   : > { %4206 = vmatprep.subr.bf16.mxu0 %v22433_v50  ;;  %4378 = vmatprep.subr.bf16.mxu1 %v22436_v59  ;;  %v22506_v50 = vld [vmem:[#allocation2 + $0x1168] ss:$16 sps:$4 sm:$0xff]   ;;  %v22511_v59 = vld [vmem:[#allocation2 + $0x1184] ss:$16 sps:$4 sm:$0xff]  }
 0x277   : > { %4207 = vmatpush1.bf16.msra.mxu0 %v22431_v55  ;;  %4379 = vmatpush1.bf16.msra.mxu1 %v22434_v56  ;;  %v22509_v55 = vld [vmem:[#allocation2 + $0x1180] ss:$16 sps:$4 sm:$0xff]   ;;  %v22512_v56 = vld [vmem:[#allocation2 + $0x1188] ss:$16 sps:$4 sm:$0xff]  }
 0x278   : > { %5985 = vmatprep.subr.bf16.mxu0 %v22439_v61  ;;  %6157 = vmatprep.subr.bf16.mxu1 %v22442_v63  ;;  %v22517_v61 = vld [vmem:[#allocation2 + $0x11a4] ss:$16 sps:$4 sm:$0xff]   ;;  %v22520_v63 = vld [vmem:[#allocation2 + $0x11ac] ss:$16 sps:$4 sm:$0xff]  }
 0x27a   : > { %4209 = vmatmul.mubr.bf16.vlgmr.msra.gmra.mrb[0].mxu0 %v25679_v38  ;;  %4381 = vmatmul.mubr.bf16.vlgmr.msra.gmra.mrb[0].mxu1 %v25679_v38  ;;  %v22460_v38 = vld [vmem:[#allocation2 + $0x106c] ss:$16 sps:$4 sm:$0xff]  }
 0x27b   : > { %5986 = vmatpush1.bf16.msra.mxu0 %v22437_v8  ;;  %6158 = vmatpush1.bf16.msra.mxu1 %v22440_v58  ;;  %v22523_v8 = vld [vmem:[#allocation2 + $0x11c4] ss:$16 sps:$4 sm:$0xff]   ;;  %v22526_v58 = vld [vmem:[#allocation2 + $0x11cc] ss:$16 sps:$4 sm:$0xff]  }
 0x27c   : > { %5987 = vmatprep.subr.bf16.mxu0 %v22445_v10  ;;  %6159 = vmatprep.subr.bf16.mxu1 %v22448_v7  ;;  %v22521_v10 = vld [vmem:[#allocation2 + $0x11c0] ss:$16 sps:$4 sm:$0xff]   ;;  %v22524_v7 = vld [vmem:[#allocation2 + $0x11c8] ss:$16 sps:$4 sm:$0xff]  }
 0x27d   : > { %6017 = vmatprep.mubr.bf16.mxu0 %v4678_v11  ;;  %6189 = vmatprep.mubr.bf16.mxu1 %v4678_v11  ;;  %v19347_v11 = vcombine.low %v25704_v49, %v25707_v0  ;;  %v22535_v49 = vld [vmem:[#allocation2 + $0x1204] ss:$16 sps:$4 sm:$0xff]   ;;  %v22538_v0 = vld [vmem:[#allocation2 + $0x120c] ss:$16 sps:$4 sm:$0xff]  }
 0x27f   : > { %5988 = vmatpush1.bf16.msra.mxu0 %v22443_v12  ;;  %6160 = vmatpush1.bf16.msra.mxu1 %v22446_v14  ;;  %v25718_v12 = vld [vmem:[%s25569_s17 + $0x8] sm:$0xee]  ;;  %v22529_v14 = vld [vmem:[#allocation2 + $0x11e4] ss:$16 sps:$4 sm:$0xff]  }
 0x280   : > { %5989 = vmatprep.subr.bf16.mxu0 %v22451_v53  ;;  %6161 = vmatprep.subr.bf16.mxu1 %v22454_v15  ;;  %v22532_v53 = vld [vmem:[#allocation2 + $0x11ec] ss:$16 sps:$4 sm:$0xff]   ;;  %v22527_v15 = vld [vmem:[#allocation2 + $0x11e0] ss:$16 sps:$4 sm:$0xff]  }
 0x283   : > { %5990 = vmatpush1.bf16.msra.mxu0 %v22449_v60  ;;  %6162 = vmatpush1.bf16.msra.mxu1 %v22452_v16  ;;  %v25721_v60 = vld [vmem:[%s25569_s17 + $0x28] sm:$0xff] }
 0x284   : > { %5991 = vmatprep.subr.bf16.mxu0 %v22457_v17  ;;  %6163 = vmatprep.subr.bf16.mxu1 %v22460_v38  ;;  %v19350_v16 = vcombine.high %v25718_v12, %v25721_v60  ;;  %v22530_v17 = vld [vmem:[#allocation2 + $0x11e8] ss:$16 sps:$4 sm:$0xff]   ;;  %v4673_v38 = vrot.slane %v19347_v11, 1  ;;  %v22604_v11 = vld [vmem:[#allocation2 + $0x136c] ss:$16 sps:$4 sm:$0xff]  }
 0x287   : > { %5992 = vmatpush1.bf16.msra.mxu0 %v22455_v18  ;;  %6164 = vmatpush1.bf16.msra.mxu1 %v22458_v19  ;;  %v4674_v18 = vrot.slane %v25584_v5, 1  ;;  %v4682_v19 = vrot.slane %v19350_v16, 1  ;;  %v22610_v16 = vld [vmem:[#allocation2 + $0x138c] ss:$16 sps:$4 sm:$0xff]  }
 0x288   : > { %5993 = vmatprep.subr.bf16.mxu0 %v22463_v20  ;;  %6165 = vmatprep.subr.bf16.mxu1 %v22466_v21  ;;  %v4683_v20 = vrot.slane %v25605_v57, 1  ;;  %v22533_v21 = vld [vmem:[#allocation2 + $0x1200] ss:$16 sps:$4 sm:$0xff]   ;;  %v22547_v57 = vld [vmem:[#allocation2 + $0x1244] ss:$16 sps:$4 sm:$0xff]  }
 0x28a   : > { %v4684_v5 = vsel %vm4672_vm1, %v4682_v19, %v4683_v20  ;;  %v22614_v19 = vld [vmem:[#allocation2 + $0x13a8] ss:$16 sps:$4 sm:$0xff]   ;;  %v22619_v20 = vld [vmem:[#allocation2 + $0x13c4] ss:$16 sps:$4 sm:$0xff]  }
 0x28b   : > { %5994 = vmatpush1.bf16.msra.mxu0 %v22461_v22  ;;  %6166 = vmatpush1.bf16.msra.mxu1 %v22464_v23  ;;  %v22536_v22 = vld [vmem:[#allocation2 + $0x1208] ss:$16 sps:$4 sm:$0xff]   ;;  %v4675_v23 = vsel %vm4672_vm1, %v4673_v38, %v4674_v18  ;;  %v22613_v18 = vld [vmem:[#allocation2 + $0x13a4] ss:$16 sps:$4 sm:$0xff]  }
 0x28c   : > { %5995 = vmatprep.subr.bf16.mxu0 %v22469_v24  ;;  %6167 = vmatprep.subr.bf16.mxu1 %v22472_v25  ;;  %v22541_v24 = vld [vmem:[#allocation2 + $0x1224] ss:$16 sps:$4 sm:$0xff]   ;;  %v22544_v25 = vld [vmem:[#allocation2 + $0x122c] ss:$16 sps:$4 sm:$0xff]   ;;  %v22608_v38 = vld [vmem:[#allocation2 + $0x1388] ss:$16 sps:$4 sm:$0xff]  }
 0x28f   : > { %5996 = vmatpush1.bf16.msra.mxu0 %v22467_v52  ;;  %6168 = vmatpush1.bf16.msra.mxu1 %v22470_v27  ;;  %v22539_v52 = vld [vmem:[#allocation2 + $0x1220] ss:$16 sps:$4 sm:$0xff]   ;;  %v22542_v27 = vld [vmem:[#allocation2 + $0x1228] ss:$16 sps:$4 sm:$0xff]  }
 0x290   : > { %5997 = vmatprep.subr.bf16.mxu0 %v22475_v28  ;;  %6169 = vmatprep.subr.bf16.mxu1 %v22478_v29  ;;  %v22550_v28 = vld [vmem:[#allocation2 + $0x124c] ss:$16 sps:$4 sm:$0xff]   ;;  %v22545_v29 = vld [vmem:[#allocation2 + $0x1240] ss:$16 sps:$4 sm:$0xff]  }
 0x293   : > { %5998 = vmatpush1.bf16.msra.mxu0 %v22473_v30  ;;  %6170 = vmatpush1.bf16.msra.mxu1 %v22476_v32  ;;  %v22548_v30 = vld [vmem:[#allocation2 + $0x1248] ss:$16 sps:$4 sm:$0xff]   ;;  %v22553_v32 = vld [vmem:[#allocation2 + $0x1264] ss:$16 sps:$4 sm:$0xff]  }
 0x294   : > { %5999 = vmatprep.subr.bf16.mxu0 %v22481_v33  ;;  %6171 = vmatprep.subr.bf16.mxu1 %v22484_v34  ;;  %v22556_v33 = vld [vmem:[#allocation2 + $0x126c] ss:$16 sps:$4 sm:$0xff]   ;;  %v22551_v34 = vld [vmem:[#allocation2 + $0x1260] ss:$16 sps:$4 sm:$0xff]  }
 0x297   : > { %6000 = vmatpush1.bf16.msra.mxu0 %v22479_v35  ;;  %6172 = vmatpush1.bf16.msra.mxu1 %v22482_v62  ;;  %v22554_v35 = vld [vmem:[#allocation2 + $0x1268] ss:$16 sps:$4 sm:$0xff]   ;;  %v22559_v62 = vld [vmem:[#allocation2 + $0x1284] ss:$16 sps:$4 sm:$0xff]  }
 0x298   : > { %6001 = vmatprep.subr.bf16.mxu0 %v22487_v36  ;;  %6173 = vmatprep.subr.bf16.mxu1 %v22490_v37  ;;  %v22562_v36 = vld [vmem:[#allocation2 + $0x128c] ss:$16 sps:$4 sm:$0xff]   ;;  %v22557_v37 = vld [vmem:[#allocation2 + $0x1280] ss:$16 sps:$4 sm:$0xff]  }
 0x29b   : > { %6002 = vmatpush1.bf16.msra.mxu0 %v22485_v39  ;;  %6174 = vmatpush1.bf16.msra.mxu1 %v22488_v40  ;;  %v22560_v39 = vld [vmem:[#allocation2 + $0x1288] ss:$16 sps:$4 sm:$0xff]   ;;  %v22565_v40 = vld [vmem:[#allocation2 + $0x12a4] ss:$16 sps:$4 sm:$0xff]  }
 0x29c   : > { %6003 = vmatprep.subr.bf16.mxu0 %v22493_v41  ;;  %6175 = vmatprep.subr.bf16.mxu1 %v22496_v54  ;;  %v22568_v41 = vld [vmem:[#allocation2 + $0x12ac] ss:$16 sps:$4 sm:$0xff]   ;;  %v22563_v54 = vld [vmem:[#allocation2 + $0x12a0] ss:$16 sps:$4 sm:$0xff]  }
 0x29f   : > { %6004 = vmatpush1.bf16.msra.mxu0 %v22491_v42  ;;  %6176 = vmatpush1.bf16.msra.mxu1 %v22494_v44  ;;  %v22566_v42 = vld [vmem:[#allocation2 + $0x12a8] ss:$16 sps:$4 sm:$0xff]   ;;  %v22571_v44 = vld [vmem:[#allocation2 + $0x12c4] ss:$16 sps:$4 sm:$0xff]  }
 0x2a0   : > { %6005 = vmatprep.subr.bf16.mxu0 %v22499_v45  ;;  %6177 = vmatprep.subr.bf16.mxu1 %v22502_v46  ;;  %v22574_v45 = vld [vmem:[#allocation2 + $0x12cc] ss:$16 sps:$4 sm:$0xff]   ;;  %v22569_v46 = vld [vmem:[#allocation2 + $0x12c0] ss:$16 sps:$4 sm:$0xff]  }
 0x2a3   : > { %6006 = vmatpush1.bf16.msra.mxu0 %v22497_v2  ;;  %6178 = vmatpush1.bf16.msra.mxu1 %v22500_v3  ;;  %v22572_v2 = vld [vmem:[#allocation2 + $0x12c8] ss:$16 sps:$4 sm:$0xff]   ;;  %v22577_v3 = vld [vmem:[#allocation2 + $0x12e4] ss:$16 sps:$4 sm:$0xff]  }
 0x2a4   : > { %6007 = vmatprep.subr.bf16.mxu0 %v22505_v26  ;;  %6179 = vmatprep.subr.bf16.mxu1 %v22508_v47  ;;  %v22580_v26 = vld [vmem:[#allocation2 + $0x12ec] ss:$16 sps:$4 sm:$0xff]   ;;  %v22575_v47 = vld [vmem:[#allocation2 + $0x12e0] ss:$16 sps:$4 sm:$0xff]  }
 0x2a7   : > { %6008 = vmatpush1.bf16.msra.mxu0 %v22503_v48  ;;  %6180 = vmatpush1.bf16.msra.mxu1 %v22506_v50  ;;  %v22578_v48 = vld [vmem:[#allocation2 + $0x12e8] ss:$16 sps:$4 sm:$0xff]   ;;  %v22583_v50 = vld [vmem:[#allocation2 + $0x1304] ss:$16 sps:$4 sm:$0xff]  }
 0x2a8   : > { %6009 = vmatprep.subr.bf16.mxu0 %v22511_v59  ;;  %6181 = vmatprep.subr.bf16.mxu1 %v22514_v51  ;;  %v22586_v59 = vld [vmem:[#allocation2 + $0x130c] ss:$16 sps:$4 sm:$0xff]   ;;  %v22581_v51 = vld [vmem:[#allocation2 + $0x1300] ss:$16 sps:$4 sm:$0xff]  }
 0x2ab   : > { %6010 = vmatpush1.bf16.msra.mxu0 %v22509_v55  ;;  %6182 = vmatpush1.bf16.msra.mxu1 %v22512_v56  ;;  %v22584_v55 = vld [vmem:[#allocation2 + $0x1308] ss:$16 sps:$4 sm:$0xff]   ;;  %v22589_v56 = vld [vmem:[#allocation2 + $0x1324] ss:$16 sps:$4 sm:$0xff]  }
 0x2ac   : > { %6011 = vmatprep.subr.bf16.mxu0 %v22517_v61  ;;  %6183 = vmatprep.subr.bf16.mxu1 %v22520_v63  ;;  %v22592_v61 = vld [vmem:[#allocation2 + $0x132c] ss:$16 sps:$4 sm:$0xff]   ;;  %v22587_v63 = vld [vmem:[#allocation2 + $0x1320] ss:$16 sps:$4 sm:$0xff]  }
 0x2af   : > { %6012 = vmatpush1.bf16.msra.mxu0 %v22515_v4  ;;  %6184 = vmatpush1.bf16.msra.mxu1 %v22518_v6  ;;  %v22590_v4 = vld [vmem:[#allocation2 + $0x1328] ss:$16 sps:$4 sm:$0xff]   ;;  %v22595_v6 = vld [vmem:[#allocation2 + $0x1344] ss:$16 sps:$4 sm:$0xff]  }
 0x2b0   : > { %6013 = vmatprep.subr.bf16.mxu0 %v22523_v8  ;;  %6185 = vmatprep.subr.bf16.mxu1 %v22526_v58  ;;  %v22598_v8 = vld [vmem:[#allocation2 + $0x134c] ss:$16 sps:$4 sm:$0xff]   ;;  %v22593_v58 = vld [vmem:[#allocation2 + $0x1340] ss:$16 sps:$4 sm:$0xff]  }
 0x2b3   : > { %6014 = vmatpush1.bf16.msra.mxu0 %v22521_v10  ;;  %6186 = vmatpush1.bf16.msra.mxu1 %v22524_v7  ;;  %v22596_v10 = vld [vmem:[#allocation2 + $0x1348] ss:$16 sps:$4 sm:$0xff]   ;;  %v22601_v7 = vld [vmem:[#allocation2 + $0x1364] ss:$16 sps:$4 sm:$0xff]  }
 0x2b4   : > { %6015 = vmatprep.subr.bf16.mxu0 %v22529_v14  ;;  %6187 = vmatprep.subr.bf16.mxu1 %v22532_v53  ;;  %v22599_v14 = vld [vmem:[#allocation2 + $0x1360] ss:$16 sps:$4 sm:$0xff]   ;;  %v22602_v53 = vld [vmem:[#allocation2 + $0x1368] ss:$16 sps:$4 sm:$0xff]  }
 0x2b7   : > { %6016 = vmatpush1.bf16.msra.mxu0 %v22527_v15  ;;  %6188 = vmatpush1.bf16.msra.mxu1 %v22530_v17  ;;  %v22607_v15 = vld [vmem:[#allocation2 + $0x1384] ss:$16 sps:$4 sm:$0xff]   ;;  %v22605_v17 = vld [vmem:[#allocation2 + $0x1380] ss:$16 sps:$4 sm:$0xff]  }
 0x2b8   : > { %6028 = vmatprep.subr.bf16.mxu0 %v22535_v49  ;;  %6200 = vmatprep.subr.bf16.mxu1 %v22538_v0  ;;  %v22616_v49 = vld [vmem:[#allocation2 + $0x13ac] ss:$16 sps:$4 sm:$0xff]   ;;  %v22611_v0 = vld [vmem:[#allocation2 + $0x13a0] ss:$16 sps:$4 sm:$0xff]  }
 0x2ba   : > { %6018 = vmatmul.mubr.bf16.vlgmr.msra.gmra.mrb[0].mxu0 %v4675_v23  ;;  %6190 = vmatmul.mubr.bf16.vlgmr.msra.gmra.mrb[0].mxu1 %v4675_v23  ;;  %v22620_v23 = vld [vmem:[#allocation2 + $0x13c8] ss:$16 sps:$4 sm:$0xff]  }
 0x2bb   : > { %6029 = vmatpush1.bf16.msra.mxu0 %v22533_v21  ;;  %6201 = vmatpush1.bf16.msra.mxu1 %v22536_v22  ;;  %v22622_v21 = vld [vmem:[#allocation2 + $0x13cc] ss:$16 sps:$4 sm:$0xff]   ;;  %v22617_v22 = vld [vmem:[#allocation2 + $0x13c0] ss:$16 sps:$4 sm:$0xff]  }
 0x2bc   : > { %6030 = vmatprep.subr.bf16.mxu0 %v22541_v24  ;;  %6202 = vmatprep.subr.bf16.mxu1 %v22544_v25  ;;  %v19349_v24 = vcombine.low %v25718_v12, %v25721_v60  ;;  %v25732_v25 = vld [vmem:[%s25569_s17 + $0x10] sm:$0xee]  ;;  %v22634_v60 = vld [vmem:[#allocation2 + $0x140c] ss:$16 sps:$4 sm:$0xff]  }
 0x2bd   : > { %6060 = vmatprep.mubr.bf16.mxu0 %v4684_v5  ;;  %6232 = vmatprep.mubr.bf16.mxu1 %v4684_v5  ;;  %v22625_v5 = vld [vmem:[#allocation2 + $0x13e4] ss:$16 sps:$4 sm:$0xff]  }
 0x2be   : > { %v22631_v12 = vld [vmem:[#allocation2 + $0x1404] ss:$16 sps:$4 sm:$0xff]  }
 0x2bf   : > { %6031 = vmatpush1.bf16.msra.mxu0 %v22539_v52  ;;  %6203 = vmatpush1.bf16.msra.mxu1 %v22542_v27  ;;  %v22628_v52 = vld [vmem:[#allocation2 + $0x13ec] ss:$16 sps:$4 sm:$0xff]   ;;  %v22623_v27 = vld [vmem:[#allocation2 + $0x13e0] ss:$16 sps:$4 sm:$0xff]  }
 0x2c0   : > { %6032 = vmatprep.subr.bf16.mxu0 %v22547_v57  ;;  %6204 = vmatprep.subr.bf16.mxu1 %v22550_v28  ;;  %v25735_v57 = vld [vmem:[%s25569_s17 + $0x30] sm:$0xff] }
 0x2c1   : > { %v19352_v28 = vcombine.high %v25732_v25, %v25735_v57 }
 0x2c3   : > { %6033 = vmatpush1.bf16.msra.mxu0 %v22545_v29  ;;  %6205 = vmatpush1.bf16.msra.mxu1 %v22548_v30  ;;  %v22626_v29 = vld [vmem:[#allocation2 + $0x13e8] ss:$16 sps:$4 sm:$0xff]   ;;  %v4679_v30 = vrot.slane %v19349_v24, 1 }
 0x2c4   : > { %6034 = vmatprep.subr.bf16.mxu0 %v22553_v32  ;;  %6206 = vmatprep.subr.bf16.mxu1 %v22556_v33  ;;  %v4680_v32 = vrot.slane %v25617_v31, 1  ;;  %v4688_v33 = vrot.slane %v19352_v28, 1  ;;  %v22698_v24 = vld [vmem:[#allocation2 + $0x1568] ss:$16 sps:$4 sm:$0xff]  }
 0x2c5   : > { %v22704_v28 = vld [vmem:[#allocation2 + $0x1588] ss:$16 sps:$4 sm:$0xff]  }
 0x2c7   : > { %6035 = vmatpush1.bf16.msra.mxu0 %v22551_v34  ;;  %6207 = vmatpush1.bf16.msra.mxu1 %v22554_v35  ;;  %v4689_v34 = vrot.slane %v25638_v1, 1  ;;  %v22629_v35 = vld [vmem:[#allocation2 + $0x1400] ss:$16 sps:$4 sm:$0xff]   ;;  %v22643_v1 = vld [vmem:[#allocation2 + $0x1444] ss:$16 sps:$4 sm:$0xff]  }
 0x2c8   : > { %6036 = vmatprep.subr.bf16.mxu0 %v22559_v62  ;;  %6208 = vmatprep.subr.bf16.mxu1 %v22562_v36  ;;  %v22632_v62 = vld [vmem:[#allocation2 + $0x1408] ss:$16 sps:$4 sm:$0xff]   ;;  %v4681_v36 = vsel %vm4672_vm1, %v4679_v30, %v4680_v32  ;;  %v22712_v30 = vld [vmem:[#allocation2 + $0x15ac] ss:$16 sps:$4 sm:$0xff]   ;;  %v22707_v32 = vld [vmem:[#allocation2 + $0x15a0] ss:$16 sps:$4 sm:$0xff]  }
 0x2c9   : > { %v4690_v31 = vsel %vm4672_vm1, %v4688_v33, %v4689_v34  ;;  %v22718_v33 = vld [vmem:[#allocation2 + $0x15cc] ss:$16 sps:$4 sm:$0xff]   ;;  %v22713_v34 = vld [vmem:[#allocation2 + $0x15c0] ss:$16 sps:$4 sm:$0xff]  }
 0x2cb   : > { %6037 = vmatpush1.bf16.msra.mxu0 %v22557_v37  ;;  %6209 = vmatpush1.bf16.msra.mxu1 %v22560_v39  ;;  %v22637_v37 = vld [vmem:[#allocation2 + $0x1424] ss:$16 sps:$4 sm:$0xff]   ;;  %v22640_v39 = vld [vmem:[#allocation2 + $0x142c] ss:$16 sps:$4 sm:$0xff]  }
 0x2cc   : > { %6038 = vmatprep.subr.bf16.mxu0 %v22565_v40  ;;  %6210 = vmatprep.subr.bf16.mxu1 %v22568_v41  ;;  %v22635_v40 = vld [vmem:[#allocation2 + $0x1420] ss:$16 sps:$4 sm:$0xff]   ;;  %v22638_v41 = vld [vmem:[#allocation2 + $0x1428] ss:$16 sps:$4 sm:$0xff]  }
 0x2cf   : > { %6039 = vmatpush1.bf16.msra.mxu0 %v22563_v54  ;;  %6211 = vmatpush1.bf16.msra.mxu1 %v22566_v42  ;;  %v22646_v54 = vld [vmem:[#allocation2 + $0x144c] ss:$16 sps:$4 sm:$0xff]   ;;  %v22641_v42 = vld [vmem:[#allocation2 + $0x1440] ss:$16 sps:$4 sm:$0xff]  }
 0x2d0   : > { %6040 = vmatprep.subr.bf16.mxu0 %v22571_v44  ;;  %6212 = vmatprep.subr.bf16.mxu1 %v22574_v45  ;;  %v22644_v44 = vld [vmem:[#allocation2 + $0x1448] ss:$16 sps:$4 sm:$0xff]   ;;  %v22649_v45 = vld [vmem:[#allocation2 + $0x1464] ss:$16 sps:$4 sm:$0xff]  }
 0x2d3   : > { %6041 = vmatpush1.bf16.msra.mxu0 %v22569_v46  ;;  %6213 = vmatpush1.bf16.msra.mxu1 %v22572_v2  ;;  %v22652_v46 = vld [vmem:[#allocation2 + $0x146c] ss:$16 sps:$4 sm:$0xff]   ;;  %v22647_v2 = vld [vmem:[#allocation2 + $0x1460] ss:$16 sps:$4 sm:$0xff]  }
 0x2d4   : > { %6042 = vmatprep.subr.bf16.mxu0 %v22577_v3  ;;  %6214 = vmatprep.subr.bf16.mxu1 %v22580_v26  ;;  %v22650_v3 = vld [vmem:[#allocation2 + $0x1468] ss:$16 sps:$4 sm:$0xff]   ;;  %v22655_v26 = vld [vmem:[#allocation2 + $0x1484] ss:$16 sps:$4 sm:$0xff]  }
 0x2d7   : > { %6043 = vmatpush1.bf16.msra.mxu0 %v22575_v47  ;;  %6215 = vmatpush1.bf16.msra.mxu1 %v22578_v48  ;;  %v22658_v47 = vld [vmem:[#allocation2 + $0x148c] ss:$16 sps:$4 sm:$0xff]   ;;  %v22653_v48 = vld [vmem:[#allocation2 + $0x1480] ss:$16 sps:$4 sm:$0xff]  }
 0x2d8   : > { %6044 = vmatprep.subr.bf16.mxu0 %v22583_v50  ;;  %6216 = vmatprep.subr.bf16.mxu1 %v22586_v59  ;;  %v22656_v50 = vld [vmem:[#allocation2 + $0x1488] ss:$16 sps:$4 sm:$0xff]   ;;  %v22661_v59 = vld [vmem:[#allocation2 + $0x14a4] ss:$16 sps:$4 sm:$0xff]  }
 0x2db   : > { %6045 = vmatpush1.bf16.msra.mxu0 %v22581_v51  ;;  %6217 = vmatpush1.bf16.msra.mxu1 %v22584_v55  ;;  %v22664_v51 = vld [vmem:[#allocation2 + $0x14ac] ss:$16 sps:$4 sm:$0xff]   ;;  %v22659_v55 = vld [vmem:[#allocation2 + $0x14a0] ss:$16 sps:$4 sm:$0xff]  }
 0x2dc   : > { %6046 = vmatprep.subr.bf16.mxu0 %v22589_v56  ;;  %6218 = vmatprep.subr.bf16.mxu1 %v22592_v61  ;;  %v22662_v56 = vld [vmem:[#allocation2 + $0x14a8] ss:$16 sps:$4 sm:$0xff]   ;;  %v22667_v61 = vld [vmem:[#allocation2 + $0x14c4] ss:$16 sps:$4 sm:$0xff]  }
 0x2df   : > { %6047 = vmatpush1.bf16.msra.mxu0 %v22587_v63  ;;  %6219 = vmatpush1.bf16.msra.mxu1 %v22590_v4  ;;  %v22670_v63 = vld [vmem:[#allocation2 + $0x14cc] ss:$16 sps:$4 sm:$0xff]   ;;  %v22665_v4 = vld [vmem:[#allocation2 + $0x14c0] ss:$16 sps:$4 sm:$0xff]  }
 0x2e0   : > { %6048 = vmatprep.subr.bf16.mxu0 %v22595_v6  ;;  %6220 = vmatprep.subr.bf16.mxu1 %v22598_v8  ;;  %v22668_v6 = vld [vmem:[#allocation2 + $0x14c8] ss:$16 sps:$4 sm:$0xff]   ;;  %v22673_v8 = vld [vmem:[#allocation2 + $0x14e4] ss:$16 sps:$4 sm:$0xff]  }
 0x2e3   : > { %6049 = vmatpush1.bf16.msra.mxu0 %v22593_v58  ;;  %6221 = vmatpush1.bf16.msra.mxu1 %v22596_v10  ;;  %v22676_v58 = vld [vmem:[#allocation2 + $0x14ec] ss:$16 sps:$4 sm:$0xff]   ;;  %v22671_v10 = vld [vmem:[#allocation2 + $0x14e0] ss:$16 sps:$4 sm:$0xff]  }
 0x2e4   : > { %6050 = vmatprep.subr.bf16.mxu0 %v22601_v7  ;;  %6222 = vmatprep.subr.bf16.mxu1 %v22604_v11  ;;  %v22674_v7 = vld [vmem:[#allocation2 + $0x14e8] ss:$16 sps:$4 sm:$0xff]   ;;  %v22679_v11 = vld [vmem:[#allocation2 + $0x1504] ss:$16 sps:$4 sm:$0xff]  }
 0x2e7   : > { %6051 = vmatpush1.bf16.msra.mxu0 %v22599_v14  ;;  %6223 = vmatpush1.bf16.msra.mxu1 %v22602_v53  ;;  %v22682_v14 = vld [vmem:[#allocation2 + $0x150c] ss:$16 sps:$4 sm:$0xff]   ;;  %v22677_v53 = vld [vmem:[#allocation2 + $0x1500] ss:$16 sps:$4 sm:$0xff]  }
 0x2e8   : > { %6052 = vmatprep.subr.bf16.mxu0 %v22607_v15  ;;  %6224 = vmatprep.subr.bf16.mxu1 %v22610_v16  ;;  %v22680_v15 = vld [vmem:[#allocation2 + $0x1508] ss:$16 sps:$4 sm:$0xff]   ;;  %v22685_v16 = vld [vmem:[#allocation2 + $0x1524] ss:$16 sps:$4 sm:$0xff]  }
 0x2eb   : > { %6053 = vmatpush1.bf16.msra.mxu0 %v22605_v17  ;;  %6225 = vmatpush1.bf16.msra.mxu1 %v22608_v38  ;;  %v22688_v17 = vld [vmem:[#allocation2 + $0x152c] ss:$16 sps:$4 sm:$0xff]   ;;  %v22683_v38 = vld [vmem:[#allocation2 + $0x1520] ss:$16 sps:$4 sm:$0xff]  }
 0x2ec   : > { %6054 = vmatprep.subr.bf16.mxu0 %v22613_v18  ;;  %6226 = vmatprep.subr.bf16.mxu1 %v22616_v49  ;;  %v22686_v18 = vld [vmem:[#allocation2 + $0x1528] ss:$16 sps:$4 sm:$0xff]   ;;  %v22691_v49 = vld [vmem:[#allocation2 + $0x1544] ss:$16 sps:$4 sm:$0xff]  }
 0x2ef   : > { %6055 = vmatpush1.bf16.msra.mxu0 %v22611_v0  ;;  %6227 = vmatpush1.bf16.msra.mxu1 %v22614_v19  ;;  %v22694_v0 = vld [vmem:[#allocation2 + $0x154c] ss:$16 sps:$4 sm:$0xff]   ;;  %v22689_v19 = vld [vmem:[#allocation2 + $0x1540] ss:$16 sps:$4 sm:$0xff]  }
 0x2f0   : > { %6056 = vmatprep.subr.bf16.mxu0 %v22619_v20  ;;  %6228 = vmatprep.subr.bf16.mxu1 %v22622_v21  ;;  %v22692_v20 = vld [vmem:[#allocation2 + $0x1548] ss:$16 sps:$4 sm:$0xff]   ;;  %v22697_v21 = vld [vmem:[#allocation2 + $0x1564] ss:$16 sps:$4 sm:$0xff]  }
 0x2f3   : > { %6057 = vmatpush1.bf16.msra.mxu0 %v22617_v22  ;;  %6229 = vmatpush1.bf16.msra.mxu1 %v22620_v23  ;;  %v22700_v22 = vld [vmem:[#allocation2 + $0x156c] ss:$16 sps:$4 sm:$0xff]   ;;  %v22695_v23 = vld [vmem:[#allocation2 + $0x1560] ss:$16 sps:$4 sm:$0xff]  }
 0x2f4   : > { %6058 = vmatprep.subr.bf16.mxu0 %v22625_v5  ;;  %6230 = vmatprep.subr.bf16.mxu1 %v22628_v52  ;;  %v22703_v5 = vld [vmem:[#allocation2 + $0x1584] ss:$16 sps:$4 sm:$0xff]   ;;  %v22706_v52 = vld [vmem:[#allocation2 + $0x158c] ss:$16 sps:$4 sm:$0xff]  }
 0x2f7   : > { %6059 = vmatpush1.bf16.msra.mxu0 %v22623_v27  ;;  %6231 = vmatpush1.bf16.msra.mxu1 %v22626_v29  ;;  %v22701_v27 = vld [vmem:[#allocation2 + $0x1580] ss:$16 sps:$4 sm:$0xff]   ;;  %v22709_v29 = vld [vmem:[#allocation2 + $0x15a4] ss:$16 sps:$4 sm:$0xff]  }
 0x2f8   : > { %6071 = vmatprep.subr.bf16.mxu0 %v22631_v12  ;;  %6243 = vmatprep.subr.bf16.mxu1 %v22634_v60  ;;  %v22710_v12 = vld [vmem:[#allocation2 + $0x15a8] ss:$16 sps:$4 sm:$0xff]   ;;  %v22715_v60 = vld [vmem:[#allocation2 + $0x15c4] ss:$16 sps:$4 sm:$0xff]  }
 0x2fa   : > { %6061 = vmatmul.mubr.bf16.vlgmr.msra.gmra.mrb[0].mxu0 %v4681_v36  ;;  %6233 = vmatmul.mubr.bf16.vlgmr.msra.gmra.mrb[0].mxu1 %v4681_v36  ;;  %v25746_v36 = vld [vmem:[%s25569_s17 + $0x18] sm:$0xee] }
 0x2fb   : > { %6072 = vmatpush1.bf16.msra.mxu0 %v22629_v35  ;;  %6244 = vmatpush1.bf16.msra.mxu1 %v22632_v62  ;;  %v22716_v35 = vld [vmem:[#allocation2 + $0x15c8] ss:$16 sps:$4 sm:$0xff]   ;;  %v19351_v62 = vcombine.low %v25732_v25, %v25735_v57  ;;  %v22727_v25 = vld [vmem:[#allocation2 + $0x1604] ss:$16 sps:$4 sm:$0xff]   ;;  %v22730_v57 = vld [vmem:[#allocation2 + $0x160c] ss:$16 sps:$4 sm:$0xff]  }
 0x2fc   : > { %6073 = vmatprep.subr.bf16.mxu0 %v22637_v37  ;;  %6245 = vmatprep.subr.bf16.mxu1 %v22640_v39  ;;  %v22721_v37 = vld [vmem:[#allocation2 + $0x15e4] ss:$16 sps:$4 sm:$0xff]   ;;  %v22724_v39 = vld [vmem:[#allocation2 + $0x15ec] ss:$16 sps:$4 sm:$0xff]  }
 0x2fd   : > { %6103 = vmatprep.mubr.bf16.mxu0 %v4690_v31  ;;  %6275 = vmatprep.mubr.bf16.mxu1 %v4690_v31  ;;  %v22719_v31 = vld [vmem:[#allocation2 + $0x15e0] ss:$16 sps:$4 sm:$0xff]  }
 0x2ff   : > { %6074 = vmatpush1.bf16.msra.mxu0 %v22635_v40  ;;  %6246 = vmatpush1.bf16.msra.mxu1 %v22638_v41  ;;  %v25749_v40 = vld [vmem:[%s25569_s17 + $0x38] sm:$0xff]  ;;  %s18818_s17 = sshll.u32 %s449_s16, 3 }
 0x300   : > { %6075 = vmatprep.subr.bf16.mxu0 %v22643_v1  ;;  %6247 = vmatprep.subr.bf16.mxu1 %v22646_v54  ;;  %v19354_v41 = vcombine.high %v25746_v36, %v25749_v40  ;;  %v22722_v1 = vld [vmem:[#allocation2 + $0x15e8] ss:$16 sps:$4 sm:$0xff]   ;;  %v4685_v54 = vrot.slane %v19351_v62, 1  ;;  %v22802_v62 = vld [vmem:[#allocation2 + $0x178c] ss:$16 sps:$4 sm:$0xff]   ;;  %s451_s30 = scalar_lea.vmem %s26197_s7, %s18818_s17 }
 0x303   : > { %6076 = vmatpush1.bf16.msra.mxu0 %v22641_v42  ;;  %6248 = vmatpush1.bf16.msra.mxu1 %v22644_v44  ;;  %v4686_v42 = vrot.slane %v25660_v9, 1  ;;  %v4694_v44 = vrot.slane %v19354_v41, 1  ;;  %v22808_v41 = vld [vmem:[#allocation2 + $0x17ac] ss:$16 sps:$4 sm:$0xff]  }
 0x304   : > { %6077 = vmatprep.subr.bf16.mxu0 %v22649_v45  ;;  %6249 = vmatprep.subr.bf16.mxu1 %v22652_v46  ;;  %v4695_v45 = vrot.slane %v25668_v13, 1  ;;  %v22725_v46 = vld [vmem:[#allocation2 + $0x1600] ss:$16 sps:$4 sm:$0xff]   ;;  %v22739_v13 = vld [vmem:[#allocation2 + $0x1644] ss:$16 sps:$4 sm:$0xff]  }
 0x306   : > { %v4696_v9 = vsel %vm4672_vm1, %v4694_v44, %v4695_v45  ;;  %v22812_v44 = vld [vmem:[#allocation2 + $0x17c8] ss:$16 sps:$4 sm:$0xff]   ;;  %v19353_v45 = vcombine.low %v25746_v36, %v25749_v40  ;;  %v4692_v36 = vrot.slane %v25683_v43, 1  ;;  %v25768_v40 = vld [vmem:[%s25764_s18] sm:$0xff] }
 0x307   : > { %6078 = vmatpush1.bf16.msra.mxu0 %v22647_v2  ;;  %6250 = vmatpush1.bf16.msra.mxu1 %v22650_v3  ;;  %v22728_v2 = vld [vmem:[#allocation2 + $0x1608] ss:$16 sps:$4 sm:$0xff]   ;;  %v4687_v3 = vsel %vm4672_vm1, %v4685_v54, %v4686_v42  ;;  %v22811_v42 = vld [vmem:[#allocation2 + $0x17c4] ss:$16 sps:$4 sm:$0xff]   ;;  %v22827_v43 = vld [vmem:[#allocation2 + $0x1820] ss:$16 sps:$4 sm:$0xff]  }
 0x308   : > { %6079 = vmatprep.subr.bf16.mxu0 %v22655_v26  ;;  %6251 = vmatprep.subr.bf16.mxu1 %v22658_v47  ;;  %v22733_v26 = vld [vmem:[#allocation2 + $0x1624] ss:$16 sps:$4 sm:$0xff]   ;;  %v22736_v47 = vld [vmem:[#allocation2 + $0x162c] ss:$16 sps:$4 sm:$0xff]   ;;  %v22806_v54 = vld [vmem:[#allocation2 + $0x17a8] ss:$16 sps:$4 sm:$0xff]  }
 0x30b   : > { %6080 = vmatpush1.bf16.msra.mxu0 %v22653_v48  ;;  %6252 = vmatpush1.bf16.msra.mxu1 %v22656_v50  ;;  %v22731_v48 = vld [vmem:[#allocation2 + $0x1620] ss:$16 sps:$4 sm:$0xff]   ;;  %v22734_v50 = vld [vmem:[#allocation2 + $0x1628] ss:$16 sps:$4 sm:$0xff]  }
 0x30c   : > { %6081 = vmatprep.subr.bf16.mxu0 %v22661_v59  ;;  %6253 = vmatprep.subr.bf16.mxu1 %v22664_v51  ;;  %v22742_v59 = vld [vmem:[#allocation2 + $0x164c] ss:$16 sps:$4 sm:$0xff]   ;;  %v22737_v51 = vld [vmem:[#allocation2 + $0x1640] ss:$16 sps:$4 sm:$0xff]  }
 0x30f   : > { %6082 = vmatpush1.bf16.msra.mxu0 %v22659_v55  ;;  %6254 = vmatpush1.bf16.msra.mxu1 %v22662_v56  ;;  %v22740_v55 = vld [vmem:[#allocation2 + $0x1648] ss:$16 sps:$4 sm:$0xff]   ;;  %v22745_v56 = vld [vmem:[#allocation2 + $0x1664] ss:$16 sps:$4 sm:$0xff]  }
 0x310   : > { %6083 = vmatprep.subr.bf16.mxu0 %v22667_v61  ;;  %6255 = vmatprep.subr.bf16.mxu1 %v22670_v63  ;;  %v22748_v61 = vld [vmem:[#allocation2 + $0x166c] ss:$16 sps:$4 sm:$0xff]   ;;  %v22743_v63 = vld [vmem:[#allocation2 + $0x1660] ss:$16 sps:$4 sm:$0xff]  }
 0x313   : > { %6084 = vmatpush1.bf16.msra.mxu0 %v22665_v4  ;;  %6256 = vmatpush1.bf16.msra.mxu1 %v22668_v6  ;;  %v22746_v4 = vld [vmem:[#allocation2 + $0x1668] ss:$16 sps:$4 sm:$0xff]   ;;  %v22751_v6 = vld [vmem:[#allocation2 + $0x1684] ss:$16 sps:$4 sm:$0xff]  }
 0x314   : > { %6085 = vmatprep.subr.bf16.mxu0 %v22673_v8  ;;  %6257 = vmatprep.subr.bf16.mxu1 %v22676_v58  ;;  %v22754_v8 = vld [vmem:[#allocation2 + $0x168c] ss:$16 sps:$4 sm:$0xff]   ;;  %v22749_v58 = vld [vmem:[#allocation2 + $0x1680] ss:$16 sps:$4 sm:$0xff]  }
 0x317   : > { %6086 = vmatpush1.bf16.msra.mxu0 %v22671_v10  ;;  %6258 = vmatpush1.bf16.msra.mxu1 %v22674_v7  ;;  %v22752_v10 = vld [vmem:[#allocation2 + $0x1688] ss:$16 sps:$4 sm:$0xff]   ;;  %v22757_v7 = vld [vmem:[#allocation2 + $0x16a4] ss:$16 sps:$4 sm:$0xff]  }
 0x318   : > { %6087 = vmatprep.subr.bf16.mxu0 %v22679_v11  ;;  %6259 = vmatprep.subr.bf16.mxu1 %v22682_v14  ;;  %v22760_v11 = vld [vmem:[#allocation2 + $0x16ac] ss:$16 sps:$4 sm:$0xff]   ;;  %v22755_v14 = vld [vmem:[#allocation2 + $0x16a0] ss:$16 sps:$4 sm:$0xff]  }
 0x31b   : > { %6088 = vmatpush1.bf16.msra.mxu0 %v22677_v53  ;;  %6260 = vmatpush1.bf16.msra.mxu1 %v22680_v15  ;;  %v22758_v53 = vld [vmem:[#allocation2 + $0x16a8] ss:$16 sps:$4 sm:$0xff]   ;;  %v22763_v15 = vld [vmem:[#allocation2 + $0x16c4] ss:$16 sps:$4 sm:$0xff]  }
 0x31c   : > { %6089 = vmatprep.subr.bf16.mxu0 %v22685_v16  ;;  %6261 = vmatprep.subr.bf16.mxu1 %v22688_v17  ;;  %v22766_v16 = vld [vmem:[#allocation2 + $0x16cc] ss:$16 sps:$4 sm:$0xff]   ;;  %v22761_v17 = vld [vmem:[#allocation2 + $0x16c0] ss:$16 sps:$4 sm:$0xff]  }
 0x31f   : > { %6090 = vmatpush1.bf16.msra.mxu0 %v22683_v38  ;;  %6262 = vmatpush1.bf16.msra.mxu1 %v22686_v18  ;;  %v22764_v38 = vld [vmem:[#allocation2 + $0x16c8] ss:$16 sps:$4 sm:$0xff]   ;;  %v22769_v18 = vld [vmem:[#allocation2 + $0x16e4] ss:$16 sps:$4 sm:$0xff]  }
 0x320   : > { %6091 = vmatprep.subr.bf16.mxu0 %v22691_v49  ;;  %6263 = vmatprep.subr.bf16.mxu1 %v22694_v0  ;;  %v22772_v49 = vld [vmem:[#allocation2 + $0x16ec] ss:$16 sps:$4 sm:$0xff]   ;;  %v22767_v0 = vld [vmem:[#allocation2 + $0x16e0] ss:$16 sps:$4 sm:$0xff]  }
 0x323   : > { %6092 = vmatpush1.bf16.msra.mxu0 %v22689_v19  ;;  %6264 = vmatpush1.bf16.msra.mxu1 %v22692_v20  ;;  %v22770_v19 = vld [vmem:[#allocation2 + $0x16e8] ss:$16 sps:$4 sm:$0xff]   ;;  %v22775_v20 = vld [vmem:[#allocation2 + $0x1704] ss:$16 sps:$4 sm:$0xff]  }
 0x324   : > { %6093 = vmatprep.subr.bf16.mxu0 %v22697_v21  ;;  %6265 = vmatprep.subr.bf16.mxu1 %v22700_v22  ;;  %v22778_v21 = vld [vmem:[#allocation2 + $0x170c] ss:$16 sps:$4 sm:$0xff]   ;;  %v22773_v22 = vld [vmem:[#allocation2 + $0x1700] ss:$16 sps:$4 sm:$0xff]  }
 0x327   : > { %6094 = vmatpush1.bf16.msra.mxu0 %v22695_v23  ;;  %6266 = vmatpush1.bf16.msra.mxu1 %v22698_v24  ;;  %v22776_v23 = vld [vmem:[#allocation2 + $0x1708] ss:$16 sps:$4 sm:$0xff]   ;;  %v22781_v24 = vld [vmem:[#allocation2 + $0x1724] ss:$16 sps:$4 sm:$0xff]  }
 0x328   : > { %6095 = vmatprep.subr.bf16.mxu0 %v22703_v5  ;;  %6267 = vmatprep.subr.bf16.mxu1 %v22706_v52  ;;  %v22784_v5 = vld [vmem:[#allocation2 + $0x172c] ss:$16 sps:$4 sm:$0xff]   ;;  %v22779_v52 = vld [vmem:[#allocation2 + $0x1720] ss:$16 sps:$4 sm:$0xff]  }
 0x32b   : > { %6096 = vmatpush1.bf16.msra.mxu0 %v22701_v27  ;;  %6268 = vmatpush1.bf16.msra.mxu1 %v22704_v28  ;;  %v22782_v27 = vld [vmem:[#allocation2 + $0x1728] ss:$16 sps:$4 sm:$0xff]   ;;  %v22787_v28 = vld [vmem:[#allocation2 + $0x1744] ss:$16 sps:$4 sm:$0xff]  }
 0x32c   : > { %6097 = vmatprep.subr.bf16.mxu0 %v22709_v29  ;;  %6269 = vmatprep.subr.bf16.mxu1 %v22712_v30  ;;  %v22790_v29 = vld [vmem:[#allocation2 + $0x174c] ss:$16 sps:$4 sm:$0xff]   ;;  %v22785_v30 = vld [vmem:[#allocation2 + $0x1740] ss:$16 sps:$4 sm:$0xff]  }
 0x32f   : > { %6098 = vmatpush1.bf16.msra.mxu0 %v22707_v32  ;;  %6270 = vmatpush1.bf16.msra.mxu1 %v22710_v12  ;;  %v22788_v32 = vld [vmem:[#allocation2 + $0x1748] ss:$16 sps:$4 sm:$0xff]   ;;  %v22793_v12 = vld [vmem:[#allocation2 + $0x1764] ss:$16 sps:$4 sm:$0xff]  }
 0x330   : > { %6099 = vmatprep.subr.bf16.mxu0 %v22715_v60  ;;  %6271 = vmatprep.subr.bf16.mxu1 %v22718_v33  ;;  %v22796_v60 = vld [vmem:[#allocation2 + $0x176c] ss:$16 sps:$4 sm:$0xff]   ;;  %v22791_v33 = vld [vmem:[#allocation2 + $0x1760] ss:$16 sps:$4 sm:$0xff]  }
 0x333   : > { %6100 = vmatpush1.bf16.msra.mxu0 %v22713_v34  ;;  %6272 = vmatpush1.bf16.msra.mxu1 %v22716_v35  ;;  %v22794_v34 = vld [vmem:[#allocation2 + $0x1768] ss:$16 sps:$4 sm:$0xff]   ;;  %v22799_v35 = vld [vmem:[#allocation2 + $0x1784] ss:$16 sps:$4 sm:$0xff]  }
 0x334   : > { %6101 = vmatprep.subr.bf16.mxu0 %v22721_v37  ;;  %6273 = vmatprep.subr.bf16.mxu1 %v22724_v39  ;;  %v22797_v37 = vld [vmem:[#allocation2 + $0x1780] ss:$16 sps:$4 sm:$0xff]   ;;  %v22800_v39 = vld [vmem:[#allocation2 + $0x1788] ss:$16 sps:$4 sm:$0xff]  }
 0x337   : > { %6102 = vmatpush1.bf16.msra.mxu0 %v22719_v31  ;;  %6274 = vmatpush1.bf16.msra.mxu1 %v22722_v1  ;;  %v22805_v31 = vld [vmem:[#allocation2 + $0x17a4] ss:$16 sps:$4 sm:$0xff]   ;;  %v22803_v1 = vld [vmem:[#allocation2 + $0x17a0] ss:$16 sps:$4 sm:$0xff]  }
 0x338   : > { %6114 = vmatprep.subr.bf16.mxu0 %v22727_v25  ;;  %6286 = vmatprep.subr.bf16.mxu1 %v22730_v57  ;;  %v22814_v25 = vld [vmem:[#allocation2 + $0x17cc] ss:$16 sps:$4 sm:$0xff]   ;;  %v22809_v57 = vld [vmem:[#allocation2 + $0x17c0] ss:$16 sps:$4 sm:$0xff]  }
 0x33a   : > { %6104 = vmatmul.mubr.bf16.vlgmr.msra.gmra.mrb[0].mxu0 %v4687_v3  ;;  %6276 = vmatmul.mubr.bf16.vlgmr.msra.gmra.mrb[0].mxu1 %v4687_v3  ;;  %v22815_v3 = vld [vmem:[#allocation2 + $0x17e0] ss:$16 sps:$4 sm:$0xff]  }
 0x33b   : > { %6115 = vmatpush1.bf16.msra.mxu0 %v22725_v46  ;;  %6287 = vmatpush1.bf16.msra.mxu1 %v22728_v2  ;;  %v22817_v46 = vld [vmem:[#allocation2 + $0x17e4] ss:$16 sps:$4 sm:$0xff]   ;;  %v22820_v2 = vld [vmem:[#allocation2 + $0x17ec] ss:$16 sps:$4 sm:$0xff]  }
 0x33c   : > { %6116 = vmatprep.subr.bf16.mxu0 %v22733_v26  ;;  %6288 = vmatprep.subr.bf16.mxu1 %v22736_v47  ;;  %v22818_v26 = vld [vmem:[#allocation2 + $0x17e8] ss:$16 sps:$4 sm:$0xff]   ;;  %v22823_v47 = vld [vmem:[#allocation2 + $0x1804] ss:$16 sps:$4 sm:$0xff]  }
 0x33d   : > { %6146 = vmatprep.mubr.bf16.mxu0 %v4696_v9  ;;  %6318 = vmatprep.mubr.bf16.mxu1 %v4696_v9  ;;  %v22826_v9 = vld [vmem:[#allocation2 + $0x180c] ss:$16 sps:$4 sm:$0xff]  }
 0x33f   : > { %6117 = vmatpush1.bf16.msra.mxu0 %v22731_v48  ;;  %6289 = vmatpush1.bf16.msra.mxu1 %v22734_v50  ;;  %v4691_v48 = vrot.slane %v19353_v45, 1  ;;  %v25771_v50 = vld [vmem:[%s25764_s18 + $0x20] sm:$0xff]  ;;  %v22904_v45 = vld [vmem:[#allocation2 + $0x19ac] ss:$16 sps:$4 sm:$0xff]  }
 0x340   : > { %6118 = vmatprep.subr.bf16.mxu0 %v22739_v13  ;;  %6290 = vmatprep.subr.bf16.mxu1 %v22742_v59  ;;  %v22821_v13 = vld [vmem:[#allocation2 + $0x1800] ss:$16 sps:$4 sm:$0xff]   ;;  %v22824_v59 = vld [vmem:[#allocation2 + $0x1808] ss:$16 sps:$4 sm:$0xff]  }
 0x343   : > { %6119 = vmatpush1.bf16.msra.mxu0 %v22737_v51  ;;  %6291 = vmatpush1.bf16.msra.mxu1 %v22740_v55  ;;  %v4693_v51 = vsel %vm4672_vm1, %v4691_v48, %v4692_v36  ;;  %v22829_v55 = vld [vmem:[#allocation2 + $0x1824] ss:$16 sps:$4 sm:$0xff]   ;;  %v22916_v36 = vld [vmem:[#allocation2 + $0x19ec] ss:$16 sps:$4 sm:$0xff]  }
 0x344   : > { %6120 = vmatprep.subr.bf16.mxu0 %v22745_v56  ;;  %6292 = vmatprep.subr.bf16.mxu1 %v22748_v61  ;;  %v22832_v56 = vld [vmem:[#allocation2 + $0x182c] ss:$16 sps:$4 sm:$0xff]   ;;  %v19612_v61 = vcombine.high %v25768_v40, %v25771_v50  ;;  %v22913_v48 = vld [vmem:[#allocation2 + $0x19e4] ss:$16 sps:$4 sm:$0xff]  }
 0x347   : > { %6121 = vmatpush1.bf16.msra.mxu0 %v22743_v63  ;;  %6293 = vmatpush1.bf16.msra.mxu1 %v22746_v4  ;;  %v22830_v63 = vld [vmem:[#allocation2 + $0x1828] ss:$16 sps:$4 sm:$0xff]   ;;  %v22835_v4 = vld [vmem:[#allocation2 + $0x1844] ss:$16 sps:$4 sm:$0xff]  }
 0x348   : > { %6122 = vmatprep.subr.bf16.mxu0 %v22751_v6  ;;  %6294 = vmatprep.subr.bf16.mxu1 %v22754_v8  ;;  %v22838_v6 = vld [vmem:[#allocation2 + $0x184c] ss:$16 sps:$4 sm:$0xff]   ;;  %v22833_v8 = vld [vmem:[#allocation2 + $0x1840] ss:$16 sps:$4 sm:$0xff]  }
 0x34b   : > { %6123 = vmatpush1.bf16.msra.mxu0 %v22749_v58  ;;  %6295 = vmatpush1.bf16.msra.mxu1 %v22752_v10  ;;  %v22836_v58 = vld [vmem:[#allocation2 + $0x1848] ss:$16 sps:$4 sm:$0xff]   ;;  %v22841_v10 = vld [vmem:[#allocation2 + $0x1864] ss:$16 sps:$4 sm:$0xff]  }
 0x34c   : > { %6124 = vmatprep.subr.bf16.mxu0 %v22757_v7  ;;  %6296 = vmatprep.subr.bf16.mxu1 %v22760_v11  ;;  %v22844_v7 = vld [vmem:[#allocation2 + $0x186c] ss:$16 sps:$4 sm:$0xff]   ;;  %v22839_v11 = vld [vmem:[#allocation2 + $0x1860] ss:$16 sps:$4 sm:$0xff]  }
 0x34f   : > { %6125 = vmatpush1.bf16.msra.mxu0 %v22755_v14  ;;  %6297 = vmatpush1.bf16.msra.mxu1 %v22758_v53  ;;  %v22842_v14 = vld [vmem:[#allocation2 + $0x1868] ss:$16 sps:$4 sm:$0xff]   ;;  %v22847_v53 = vld [vmem:[#allocation2 + $0x1884] ss:$16 sps:$4 sm:$0xff]  }
 0x350   : > { %6126 = vmatprep.subr.bf16.mxu0 %v22763_v15  ;;  %6298 = vmatprep.subr.bf16.mxu1 %v22766_v16  ;;  %v22850_v15 = vld [vmem:[#allocation2 + $0x188c] ss:$16 sps:$4 sm:$0xff]   ;;  %v22845_v16 = vld [vmem:[#allocation2 + $0x1880] ss:$16 sps:$4 sm:$0xff]  }
 0x353   : > { %6127 = vmatpush1.bf16.msra.mxu0 %v22761_v17  ;;  %6299 = vmatpush1.bf16.msra.mxu1 %v22764_v38  ;;  %v22848_v17 = vld [vmem:[#allocation2 + $0x1888] ss:$16 sps:$4 sm:$0xff]   ;;  %v22853_v38 = vld [vmem:[#allocation2 + $0x18a4] ss:$16 sps:$4 sm:$0xff]  }
 0x354   : > { %6128 = vmatprep.subr.bf16.mxu0 %v22769_v18  ;;  %6300 = vmatprep.subr.bf16.mxu1 %v22772_v49  ;;  %v22856_v18 = vld [vmem:[#allocation2 + $0x18ac] ss:$16 sps:$4 sm:$0xff]   ;;  %v22851_v49 = vld [vmem:[#allocation2 + $0x18a0] ss:$16 sps:$4 sm:$0xff]  }
 0x357   : > { %6129 = vmatpush1.bf16.msra.mxu0 %v22767_v0  ;;  %6301 = vmatpush1.bf16.msra.mxu1 %v22770_v19  ;;  %v22854_v0 = vld [vmem:[#allocation2 + $0x18a8] ss:$16 sps:$4 sm:$0xff]   ;;  %v22859_v19 = vld [vmem:[#allocation2 + $0x18c4] ss:$16 sps:$4 sm:$0xff]  }
 0x358   : > { %6130 = vmatprep.subr.bf16.mxu0 %v22775_v20  ;;  %6302 = vmatprep.subr.bf16.mxu1 %v22778_v21  ;;  %v22862_v20 = vld [vmem:[#allocation2 + $0x18cc] ss:$16 sps:$4 sm:$0xff]   ;;  %v22857_v21 = vld [vmem:[#allocation2 + $0x18c0] ss:$16 sps:$4 sm:$0xff]  }
 0x35b   : > { %6131 = vmatpush1.bf16.msra.mxu0 %v22773_v22  ;;  %6303 = vmatpush1.bf16.msra.mxu1 %v22776_v23  ;;  %v22860_v22 = vld [vmem:[#allocation2 + $0x18c8] ss:$16 sps:$4 sm:$0xff]   ;;  %v22865_v23 = vld [vmem:[#allocation2 + $0x18e4] ss:$16 sps:$4 sm:$0xff]  }
 0x35c   : > { %6132 = vmatprep.subr.bf16.mxu0 %v22781_v24  ;;  %6304 = vmatprep.subr.bf16.mxu1 %v22784_v5  ;;  %v22868_v24 = vld [vmem:[#allocation2 + $0x18ec] ss:$16 sps:$4 sm:$0xff]   ;;  %v22863_v5 = vld [vmem:[#allocation2 + $0x18e0] ss:$16 sps:$4 sm:$0xff]  }
 0x35f   : > { %6133 = vmatpush1.bf16.msra.mxu0 %v22779_v52  ;;  %6305 = vmatpush1.bf16.msra.mxu1 %v22782_v27  ;;  %v22866_v52 = vld [vmem:[#allocation2 + $0x18e8] ss:$16 sps:$4 sm:$0xff]   ;;  %v22871_v27 = vld [vmem:[#allocation2 + $0x1904] ss:$16 sps:$4 sm:$0xff]  }
 0x360   : > { %6134 = vmatprep.subr.bf16.mxu0 %v22787_v28  ;;  %6306 = vmatprep.subr.bf16.mxu1 %v22790_v29  ;;  %v22874_v28 = vld [vmem:[#allocation2 + $0x190c] ss:$16 sps:$4 sm:$0xff]   ;;  %v22869_v29 = vld [vmem:[#allocation2 + $0x1900] ss:$16 sps:$4 sm:$0xff]  }
 0x363   : > { %6135 = vmatpush1.bf16.msra.mxu0 %v22785_v30  ;;  %6307 = vmatpush1.bf16.msra.mxu1 %v22788_v32  ;;  %v22872_v30 = vld [vmem:[#allocation2 + $0x1908] ss:$16 sps:$4 sm:$0xff]   ;;  %v22877_v32 = vld [vmem:[#allocation2 + $0x1924] ss:$16 sps:$4 sm:$0xff]  }
 0x364   : > { %6136 = vmatprep.subr.bf16.mxu0 %v22793_v12  ;;  %6308 = vmatprep.subr.bf16.mxu1 %v22796_v60  ;;  %v22880_v12 = vld [vmem:[#allocation2 + $0x192c] ss:$16 sps:$4 sm:$0xff]   ;;  %v22875_v60 = vld [vmem:[#allocation2 + $0x1920] ss:$16 sps:$4 sm:$0xff]  }
 0x367   : > { %6137 = vmatpush1.bf16.msra.mxu0 %v22791_v33  ;;  %6309 = vmatpush1.bf16.msra.mxu1 %v22794_v34  ;;  %v22878_v33 = vld [vmem:[#allocation2 + $0x1928] ss:$16 sps:$4 sm:$0xff]   ;;  %v22883_v34 = vld [vmem:[#allocation2 + $0x1944] ss:$16 sps:$4 sm:$0xff]  }
 0x368   : > { %6138 = vmatprep.subr.bf16.mxu0 %v22799_v35  ;;  %6310 = vmatprep.subr.bf16.mxu1 %v22802_v62  ;;  %v22886_v35 = vld [vmem:[#allocation2 + $0x194c] ss:$16 sps:$4 sm:$0xff]   ;;  %v22881_v62 = vld [vmem:[#allocation2 + $0x1940] ss:$16 sps:$4 sm:$0xff]  }
 0x36b   : > { %6139 = vmatpush1.bf16.msra.mxu0 %v22797_v37  ;;  %6311 = vmatpush1.bf16.msra.mxu1 %v22800_v39  ;;  %v22884_v37 = vld [vmem:[#allocation2 + $0x1948] ss:$16 sps:$4 sm:$0xff]   ;;  %v22889_v39 = vld [vmem:[#allocation2 + $0x1964] ss:$16 sps:$4 sm:$0xff]  }
 0x36c   : > { %6140 = vmatprep.subr.bf16.mxu0 %v22805_v31  ;;  %6312 = vmatprep.subr.bf16.mxu1 %v22808_v41  ;;  %v22892_v31 = vld [vmem:[#allocation2 + $0x196c] ss:$16 sps:$4 sm:$0xff]   ;;  %v22887_v41 = vld [vmem:[#allocation2 + $0x1960] ss:$16 sps:$4 sm:$0xff]  }
 0x36f   : > { %6141 = vmatpush1.bf16.msra.mxu0 %v22803_v1  ;;  %6313 = vmatpush1.bf16.msra.mxu1 %v22806_v54  ;;  %v22890_v1 = vld [vmem:[#allocation2 + $0x1968] ss:$16 sps:$4 sm:$0xff]   ;;  %v22895_v54 = vld [vmem:[#allocation2 + $0x1984] ss:$16 sps:$4 sm:$0xff]  }
 0x370   : > { %6142 = vmatprep.subr.bf16.mxu0 %v22811_v42  ;;  %6314 = vmatprep.subr.bf16.mxu1 %v22814_v25  ;;  %v22898_v42 = vld [vmem:[#allocation2 + $0x198c] ss:$16 sps:$4 sm:$0xff]   ;;  %v22893_v25 = vld [vmem:[#allocation2 + $0x1980] ss:$16 sps:$4 sm:$0xff]  }
 0x373   : > { %6143 = vmatpush1.bf16.msra.mxu0 %v22809_v57  ;;  %6315 = vmatpush1.bf16.msra.mxu1 %v22812_v44  ;;  %v22896_v57 = vld [vmem:[#allocation2 + $0x1988] ss:$16 sps:$4 sm:$0xff]   ;;  %v22901_v44 = vld [vmem:[#allocation2 + $0x19a4] ss:$16 sps:$4 sm:$0xff]  }
 0x374   : > { %6144 = vmatprep.subr.bf16.mxu0 %v22817_v46  ;;  %6316 = vmatprep.subr.bf16.mxu1 %v22820_v2  ;;  %v22899_v46 = vld [vmem:[#allocation2 + $0x19a0] ss:$16 sps:$4 sm:$0xff]   ;;  %v22902_v2 = vld [vmem:[#allocation2 + $0x19a8] ss:$16 sps:$4 sm:$0xff]  }
 0x377   : > { %6145 = vmatpush1.bf16.msra.mxu0 %v22815_v3  ;;  %6317 = vmatpush1.bf16.msra.mxu1 %v22818_v26  ;;  %v22907_v3 = vld [vmem:[#allocation2 + $0x19c4] ss:$16 sps:$4 sm:$0xff]   ;;  %v22910_v26 = vld [vmem:[#allocation2 + $0x19cc] ss:$16 sps:$4 sm:$0xff]  }
 0x378   : > { %7922 = vmatprep.subr.bf16.mxu0 %v22823_v47  ;;  %8094 = vmatprep.subr.bf16.mxu1 %v22826_v9  ;;  %v22905_v47 = vld [vmem:[#allocation2 + $0x19c0] ss:$16 sps:$4 sm:$0xff]   ;;  %v22908_v9 = vld [vmem:[#allocation2 + $0x19c8] ss:$16 sps:$4 sm:$0xff]  }
 0x37a   : > { %6147 = vmatmul.mubr.bf16.vlgmr.msra.gmra.mrb[0].mxu0 %v4693_v51  ;;  %6319 = vmatmul.mubr.bf16.vlgmr.msra.gmra.mrb[0].mxu1 %v4693_v51  ;;  %v22919_v51 = vld [vmem:[#allocation2 + $0x1a04] ss:$16 sps:$4 sm:$0xff]  }
 0x37b   : > { %7923 = vmatpush1.bf16.msra.mxu0 %v22821_v13  ;;  %8095 = vmatpush1.bf16.msra.mxu1 %v22824_v59  ;;  %v22911_v13 = vld [vmem:[#allocation2 + $0x19e0] ss:$16 sps:$4 sm:$0xff]   ;;  %v22914_v59 = vld [vmem:[#allocation2 + $0x19e8] ss:$16 sps:$4 sm:$0xff]  }
 0x37c   : > { %7924 = vmatprep.subr.bf16.mxu0 %v22829_v55  ;;  %8096 = vmatprep.subr.bf16.mxu1 %v22832_v56  ;;  %v22922_v55 = vld [vmem:[#allocation2 + $0x1a0c] ss:$16 sps:$4 sm:$0xff]  }
 0x37d   : > { %7954 = vmatprep.mubr.bf16.mxu0 %v19612_v61  ;;  %8126 = vmatprep.mubr.bf16.mxu1 %v19612_v61  ;;  %v25777_v56 = vld [vmem:[%s25764_s18 + $0x8] sm:$0xff] }
 0x37e   : > { %v25780_v61 = vld [vmem:[%s25764_s18 + $0x28] sm:$0xff] }
 0x37f   : > { %7925 = vmatpush1.bf16.msra.mxu0 %v22827_v43  ;;  %8097 = vmatpush1.bf16.msra.mxu1 %v22830_v63  ;;  %v19611_v43 = vcombine.low %v25768_v40, %v25771_v50  ;;  %v22917_v63 = vld [vmem:[#allocation2 + $0x1a00] ss:$16 sps:$4 sm:$0xff]   ;;  %v22931_v40 = vld [vmem:[#allocation2 + $0x1a44] ss:$16 sps:$4 sm:$0xff]   ;;  %v22934_v50 = vld [vmem:[#allocation2 + $0x1a4c] ss:$16 sps:$4 sm:$0xff]  }
 0x380   : > { %7926 = vmatprep.subr.bf16.mxu0 %v22835_v4  ;;  %8098 = vmatprep.subr.bf16.mxu1 %v22838_v6  ;;  %v22920_v4 = vld [vmem:[#allocation2 + $0x1a08] ss:$16 sps:$4 sm:$0xff]   ;;  %v22925_v6 = vld [vmem:[#allocation2 + $0x1a24] ss:$16 sps:$4 sm:$0xff]  }
 0x383   : > { %7927 = vmatpush1.bf16.msra.mxu0 %v22833_v8  ;;  %8099 = vmatpush1.bf16.msra.mxu1 %v22836_v58  ;;  %v22928_v8 = vld [vmem:[#allocation2 + $0x1a2c] ss:$16 sps:$4 sm:$0xff]   ;;  %v19614_v58 = vcombine.high %v25777_v56, %v25780_v61 }
 0x384   : > { %7928 = vmatprep.subr.bf16.mxu0 %v22841_v10  ;;  %8100 = vmatprep.subr.bf16.mxu1 %v22844_v7  ;;  %v22923_v10 = vld [vmem:[#allocation2 + $0x1a20] ss:$16 sps:$4 sm:$0xff]   ;;  %v22926_v7 = vld [vmem:[#allocation2 + $0x1a28] ss:$16 sps:$4 sm:$0xff]  }
 0x387   : > { %7929 = vmatpush1.bf16.msra.mxu0 %v22839_v11  ;;  %8101 = vmatpush1.bf16.msra.mxu1 %v22842_v14  ;;  %v22929_v11 = vld [vmem:[#allocation2 + $0x1a40] ss:$16 sps:$4 sm:$0xff]   ;;  %v22932_v14 = vld [vmem:[#allocation2 + $0x1a48] ss:$16 sps:$4 sm:$0xff]  }
 0x388   : > { %7930 = vmatprep.subr.bf16.mxu0 %v22847_v53  ;;  %8102 = vmatprep.subr.bf16.mxu1 %v22850_v15  ;;  %v22937_v53 = vld [vmem:[#allocation2 + $0x1a64] ss:$16 sps:$4 sm:$0xff]   ;;  %v22940_v15 = vld [vmem:[#allocation2 + $0x1a6c] ss:$16 sps:$4 sm:$0xff]  }
 0x38b   : > { %7931 = vmatpush1.bf16.msra.mxu0 %v22845_v16  ;;  %8103 = vmatpush1.bf16.msra.mxu1 %v22848_v17  ;;  %v22935_v16 = vld [vmem:[#allocation2 + $0x1a60] ss:$16 sps:$4 sm:$0xff]   ;;  %v22938_v17 = vld [vmem:[#allocation2 + $0x1a68] ss:$16 sps:$4 sm:$0xff]  }
 0x38c   : > { %7932 = vmatprep.subr.bf16.mxu0 %v22853_v38  ;;  %8104 = vmatprep.subr.bf16.mxu1 %v22856_v18  ;;  %v22943_v38 = vld [vmem:[#allocation2 + $0x1a84] ss:$16 sps:$4 sm:$0xff]   ;;  %v22946_v18 = vld [vmem:[#allocation2 + $0x1a8c] ss:$16 sps:$4 sm:$0xff]  }
 0x38f   : > { %7933 = vmatpush1.bf16.msra.mxu0 %v22851_v49  ;;  %8105 = vmatpush1.bf16.msra.mxu1 %v22854_v0  ;;  %v22941_v49 = vld [vmem:[#allocation2 + $0x1a80] ss:$16 sps:$4 sm:$0xff]   ;;  %v22944_v0 = vld [vmem:[#allocation2 + $0x1a88] ss:$16 sps:$4 sm:$0xff]  }
 0x390   : > { %7934 = vmatprep.subr.bf16.mxu0 %v22859_v19  ;;  %8106 = vmatprep.subr.bf16.mxu1 %v22862_v20  ;;  %v22949_v19 = vld [vmem:[#allocation2 + $0x1aa4] ss:$16 sps:$4 sm:$0xff]   ;;  %v22952_v20 = vld [vmem:[#allocation2 + $0x1aac] ss:$16 sps:$4 sm:$0xff]  }
 0x393   : > { %7935 = vmatpush1.bf16.msra.mxu0 %v22857_v21  ;;  %8107 = vmatpush1.bf16.msra.mxu1 %v22860_v22  ;;  %v22947_v21 = vld [vmem:[#allocation2 + $0x1aa0] ss:$16 sps:$4 sm:$0xff]   ;;  %v22950_v22 = vld [vmem:[#allocation2 + $0x1aa8] ss:$16 sps:$4 sm:$0xff]  }
 0x394   : > { %7936 = vmatprep.subr.bf16.mxu0 %v22865_v23  ;;  %8108 = vmatprep.subr.bf16.mxu1 %v22868_v24  ;;  %v22955_v23 = vld [vmem:[#allocation2 + $0x1ac4] ss:$16 sps:$4 sm:$0xff]   ;;  %v22958_v24 = vld [vmem:[#allocation2 + $0x1acc] ss:$16 sps:$4 sm:$0xff]  }
 0x397   : > { %7937 = vmatpush1.bf16.msra.mxu0 %v22863_v5  ;;  %8109 = vmatpush1.bf16.msra.mxu1 %v22866_v52  ;;  %v22953_v5 = vld [vmem:[#allocation2 + $0x1ac0] ss:$16 sps:$4 sm:$0xff]   ;;  %v22956_v52 = vld [vmem:[#allocation2 + $0x1ac8] ss:$16 sps:$4 sm:$0xff]  }
 0x398   : > { %7938 = vmatprep.subr.bf16.mxu0 %v22871_v27  ;;  %8110 = vmatprep.subr.bf16.mxu1 %v22874_v28  ;;  %v22961_v27 = vld [vmem:[#allocation2 + $0x1ae4] ss:$16 sps:$4 sm:$0xff]   ;;  %v22964_v28 = vld [vmem:[#allocation2 + $0x1aec] ss:$16 sps:$4 sm:$0xff]  }
 0x39b   : > { %7939 = vmatpush1.bf16.msra.mxu0 %v22869_v29  ;;  %8111 = vmatpush1.bf16.msra.mxu1 %v22872_v30  ;;  %v22959_v29 = vld [vmem:[#allocation2 + $0x1ae0] ss:$16 sps:$4 sm:$0xff]   ;;  %v22962_v30 = vld [vmem:[#allocation2 + $0x1ae8] ss:$16 sps:$4 sm:$0xff]  }
 0x39c   : > { %7940 = vmatprep.subr.bf16.mxu0 %v22877_v32  ;;  %8112 = vmatprep.subr.bf16.mxu1 %v22880_v12  ;;  %v22967_v32 = vld [vmem:[#allocation2 + $0x1b04] ss:$16 sps:$4 sm:$0xff]   ;;  %v22970_v12 = vld [vmem:[#allocation2 + $0x1b0c] ss:$16 sps:$4 sm:$0xff]  }
 0x39f   : > { %7941 = vmatpush1.bf16.msra.mxu0 %v22875_v60  ;;  %8113 = vmatpush1.bf16.msra.mxu1 %v22878_v33  ;;  %v22965_v60 = vld [vmem:[#allocation2 + $0x1b00] ss:$16 sps:$4 sm:$0xff]   ;;  %v22968_v33 = vld [vmem:[#allocation2 + $0x1b08] ss:$16 sps:$4 sm:$0xff]  }
 0x3a0   : > { %7942 = vmatprep.subr.bf16.mxu0 %v22883_v34  ;;  %8114 = vmatprep.subr.bf16.mxu1 %v22886_v35  ;;  %v22973_v34 = vld [vmem:[#allocation2 + $0x1b24] ss:$16 sps:$4 sm:$0xff]   ;;  %v22976_v35 = vld [vmem:[#allocation2 + $0x1b2c] ss:$16 sps:$4 sm:$0xff]  }
 0x3a3   : > { %7943 = vmatpush1.bf16.msra.mxu0 %v22881_v62  ;;  %8115 = vmatpush1.bf16.msra.mxu1 %v22884_v37  ;;  %v22971_v62 = vld [vmem:[#allocation2 + $0x1b20] ss:$16 sps:$4 sm:$0xff]   ;;  %v22974_v37 = vld [vmem:[#allocation2 + $0x1b28] ss:$16 sps:$4 sm:$0xff]  }
 0x3a4   : > { %7944 = vmatprep.subr.bf16.mxu0 %v22889_v39  ;;  %8116 = vmatprep.subr.bf16.mxu1 %v22892_v31  ;;  %v22979_v39 = vld [vmem:[#allocation2 + $0x1b44] ss:$16 sps:$4 sm:$0xff]   ;;  %v22982_v31 = vld [vmem:[#allocation2 + $0x1b4c] ss:$16 sps:$4 sm:$0xff]  }
 0x3a7   : > { %7945 = vmatpush1.bf16.msra.mxu0 %v22887_v41  ;;  %8117 = vmatpush1.bf16.msra.mxu1 %v22890_v1  ;;  %v22977_v41 = vld [vmem:[#allocation2 + $0x1b40] ss:$16 sps:$4 sm:$0xff]   ;;  %v22980_v1 = vld [vmem:[#allocation2 + $0x1b48] ss:$16 sps:$4 sm:$0xff]  }
 0x3a8   : > { %7946 = vmatprep.subr.bf16.mxu0 %v22895_v54  ;;  %8118 = vmatprep.subr.bf16.mxu1 %v22898_v42  ;;  %v22985_v54 = vld [vmem:[#allocation2 + $0x1b64] ss:$16 sps:$4 sm:$0xff]   ;;  %v22988_v42 = vld [vmem:[#allocation2 + $0x1b6c] ss:$16 sps:$4 sm:$0xff]  }
 0x3ab   : > { %7947 = vmatpush1.bf16.msra.mxu0 %v22893_v25  ;;  %8119 = vmatpush1.bf16.msra.mxu1 %v22896_v57  ;;  %v22983_v25 = vld [vmem:[#allocation2 + $0x1b60] ss:$16 sps:$4 sm:$0xff]   ;;  %v22986_v57 = vld [vmem:[#allocation2 + $0x1b68] ss:$16 sps:$4 sm:$0xff]  }
 0x3ac   : > { %7948 = vmatprep.subr.bf16.mxu0 %v22901_v44  ;;  %8120 = vmatprep.subr.bf16.mxu1 %v22904_v45  ;;  %v22991_v44 = vld [vmem:[#allocation2 + $0x1b84] ss:$16 sps:$4 sm:$0xff]   ;;  %v22994_v45 = vld [vmem:[#allocation2 + $0x1b8c] ss:$16 sps:$4 sm:$0xff]  }
 0x3af   : > { %7949 = vmatpush1.bf16.msra.mxu0 %v22899_v46  ;;  %8121 = vmatpush1.bf16.msra.mxu1 %v22902_v2  ;;  %v22989_v46 = vld [vmem:[#allocation2 + $0x1b80] ss:$16 sps:$4 sm:$0xff]   ;;  %v22992_v2 = vld [vmem:[#allocation2 + $0x1b88] ss:$16 sps:$4 sm:$0xff]  }
 0x3b0   : > { %7950 = vmatprep.subr.bf16.mxu0 %v22907_v3  ;;  %8122 = vmatprep.subr.bf16.mxu1 %v22910_v26  ;;  %v22997_v3 = vld [vmem:[#allocation2 + $0x1ba4] ss:$16 sps:$4 sm:$0xff]   ;;  %v23000_v26 = vld [vmem:[#allocation2 + $0x1bac] ss:$16 sps:$4 sm:$0xff]  }
 0x3b3   : > { %7951 = vmatpush1.bf16.msra.mxu0 %v22905_v47  ;;  %8123 = vmatpush1.bf16.msra.mxu1 %v22908_v9  ;;  %v22995_v47 = vld [vmem:[#allocation2 + $0x1ba0] ss:$16 sps:$4 sm:$0xff]   ;;  %v22998_v9 = vld [vmem:[#allocation2 + $0x1ba8] ss:$16 sps:$4 sm:$0xff]  }
 0x3b4   : > { %7952 = vmatprep.subr.bf16.mxu0 %v22913_v48  ;;  %8124 = vmatprep.subr.bf16.mxu1 %v22916_v36  ;;  %v23003_v48 = vld [vmem:[#allocation2 + $0x1bc4] ss:$16 sps:$4 sm:$0xff]   ;;  %v23006_v36 = vld [vmem:[#allocation2 + $0x1bcc] ss:$16 sps:$4 sm:$0xff]  }
 0x3b7   : > { %7953 = vmatpush1.bf16.msra.mxu0 %v22911_v13  ;;  %8125 = vmatpush1.bf16.msra.mxu1 %v22914_v59  ;;  %v23001_v13 = vld [vmem:[#allocation2 + $0x1bc0] ss:$16 sps:$4 sm:$0xff]   ;;  %v23004_v59 = vld [vmem:[#allocation2 + $0x1bc8] ss:$16 sps:$4 sm:$0xff]  }
 0x3b8   : > { %7965 = vmatprep.subr.bf16.mxu0 %v22919_v51  ;;  %8137 = vmatprep.subr.bf16.mxu1 %v22922_v55  ;;  %v23009_v51 = vld [vmem:[#allocation2 + $0x1be4] ss:$16 sps:$4 sm:$0xff]   ;;  %v23012_v55 = vld [vmem:[#allocation2 + $0x1bec] ss:$16 sps:$4 sm:$0xff]  }
 0x3ba   : > { %7955 = vmatmul.mubr.bf16.vlgmr.msra.gmra.mrb[0].mxu0 %v19611_v43  ;;  %8127 = vmatmul.mubr.bf16.vlgmr.msra.gmra.mrb[0].mxu1 %v19611_v43  ;;  %v23007_v43 = vld [vmem:[#allocation2 + $0x1be0] ss:$16 sps:$4 sm:$0xff]  }
 0x3bb   : > { %7966 = vmatpush1.bf16.msra.mxu0 %v22917_v63  ;;  %8138 = vmatpush1.bf16.msra.mxu1 %v22920_v4  ;;  %v23010_v63 = vld [vmem:[#allocation2 + $0x1be8] ss:$16 sps:$4 sm:$0xff]   ;;  %v23015_v4 = vld [vmem:[#allocation2 + $0x1c04] ss:$16 sps:$4 sm:$0xff]  }
 0x3bc   : > { %7967 = vmatprep.subr.bf16.mxu0 %v22925_v6  ;;  %8139 = vmatprep.subr.bf16.mxu1 %v22928_v8  ;;  %v23018_v6 = vld [vmem:[#allocation2 + $0x1c0c] ss:$16 sps:$4 sm:$0xff]   ;;  %v25787_v8 = vld [vmem:[%s25764_s18 + $0x10] sm:$0xff] }
 0x3bd   : > { %7997 = vmatprep.mubr.bf16.mxu0 %v19614_v58  ;;  %8169 = vmatprep.mubr.bf16.mxu1 %v19614_v58  ;;  %v25790_v58 = vld [vmem:[%s25764_s18 + $0x30] sm:$0xff] }
 0x3bf   : > { %7968 = vmatpush1.bf16.msra.mxu0 %v22923_v10  ;;  %8140 = vmatpush1.bf16.msra.mxu1 %v22926_v7  ;;  %v19613_v10 = vcombine.low %v25777_v56, %v25780_v61  ;;  %v23013_v7 = vld [vmem:[#allocation2 + $0x1c00] ss:$16 sps:$4 sm:$0xff]   ;;  %v23027_v56 = vld [vmem:[#allocation2 + $0x1c44] ss:$16 sps:$4 sm:$0xff]   ;;  %v23030_v61 = vld [vmem:[#allocation2 + $0x1c4c] ss:$16 sps:$4 sm:$0xff]  }
 0x3c0   : > { %7969 = vmatprep.subr.bf16.mxu0 %v22931_v40  ;;  %8141 = vmatprep.subr.bf16.mxu1 %v22934_v50  ;;  %v23016_v40 = vld [vmem:[#allocation2 + $0x1c08] ss:$16 sps:$4 sm:$0xff]   ;;  %v23021_v50 = vld [vmem:[#allocation2 + $0x1c24] ss:$16 sps:$4 sm:$0xff]  }
 0x3c3   : > { %7970 = vmatpush1.bf16.msra.mxu0 %v22929_v11  ;;  %8142 = vmatpush1.bf16.msra.mxu1 %v22932_v14  ;;  %v23024_v11 = vld [vmem:[#allocation2 + $0x1c2c] ss:$16 sps:$4 sm:$0xff]   ;;  %v19616_v14 = vcombine.high %v25787_v8, %v25790_v58 }
 0x3c4   : > { %7971 = vmatprep.subr.bf16.mxu0 %v22937_v53  ;;  %8143 = vmatprep.subr.bf16.mxu1 %v22940_v15  ;;  %v23019_v53 = vld [vmem:[#allocation2 + $0x1c20] ss:$16 sps:$4 sm:$0xff]   ;;  %v23022_v15 = vld [vmem:[#allocation2 + $0x1c28] ss:$16 sps:$4 sm:$0xff]  }
 0x3c7   : > { %7972 = vmatpush1.bf16.msra.mxu0 %v22935_v16  ;;  %8144 = vmatpush1.bf16.msra.mxu1 %v22938_v17  ;;  %v23025_v16 = vld [vmem:[#allocation2 + $0x1c40] ss:$16 sps:$4 sm:$0xff]   ;;  %v23028_v17 = vld [vmem:[#allocation2 + $0x1c48] ss:$16 sps:$4 sm:$0xff]  }
 0x3c8   : > { %7973 = vmatprep.subr.bf16.mxu0 %v22943_v38  ;;  %8145 = vmatprep.subr.bf16.mxu1 %v22946_v18  ;;  %v23033_v38 = vld [vmem:[#allocation2 + $0x1c64] ss:$16 sps:$4 sm:$0xff]   ;;  %v23036_v18 = vld [vmem:[#allocation2 + $0x1c6c] ss:$16 sps:$4 sm:$0xff]  }
 0x3cb   : > { %7974 = vmatpush1.bf16.msra.mxu0 %v22941_v49  ;;  %8146 = vmatpush1.bf16.msra.mxu1 %v22944_v0  ;;  %v23031_v49 = vld [vmem:[#allocation2 + $0x1c60] ss:$16 sps:$4 sm:$0xff]   ;;  %v23034_v0 = vld [vmem:[#allocation2 + $0x1c68] ss:$16 sps:$4 sm:$0xff]  }
 0x3cc   : > { %7975 = vmatprep.subr.bf16.mxu0 %v22949_v19  ;;  %8147 = vmatprep.subr.bf16.mxu1 %v22952_v20  ;;  %v23039_v19 = vld [vmem:[#allocation2 + $0x1c84] ss:$16 sps:$4 sm:$0xff]   ;;  %v23042_v20 = vld [vmem:[#allocation2 + $0x1c8c] ss:$16 sps:$4 sm:$0xff]  }
 0x3cf   : > { %7976 = vmatpush1.bf16.msra.mxu0 %v22947_v21  ;;  %8148 = vmatpush1.bf16.msra.mxu1 %v22950_v22  ;;  %v23037_v21 = vld [vmem:[#allocation2 + $0x1c80] ss:$16 sps:$4 sm:$0xff]   ;;  %v23040_v22 = vld [vmem:[#allocation2 + $0x1c88] ss:$16 sps:$4 sm:$0xff]  }
 0x3d0   : > { %7977 = vmatprep.subr.bf16.mxu0 %v22955_v23  ;;  %8149 = vmatprep.subr.bf16.mxu1 %v22958_v24  ;;  %v23045_v23 = vld [vmem:[#allocation2 + $0x1ca4] ss:$16 sps:$4 sm:$0xff]   ;;  %v23048_v24 = vld [vmem:[#allocation2 + $0x1cac] ss:$16 sps:$4 sm:$0xff]  }
 0x3d3   : > { %7978 = vmatpush1.bf16.msra.mxu0 %v22953_v5  ;;  %8150 = vmatpush1.bf16.msra.mxu1 %v22956_v52  ;;  %v23043_v5 = vld [vmem:[#allocation2 + $0x1ca0] ss:$16 sps:$4 sm:$0xff]   ;;  %v23046_v52 = vld [vmem:[#allocation2 + $0x1ca8] ss:$16 sps:$4 sm:$0xff]  }
 0x3d4   : > { %7979 = vmatprep.subr.bf16.mxu0 %v22961_v27  ;;  %8151 = vmatprep.subr.bf16.mxu1 %v22964_v28  ;;  %v23051_v27 = vld [vmem:[#allocation2 + $0x1cc4] ss:$16 sps:$4 sm:$0xff]   ;;  %v23054_v28 = vld [vmem:[#allocation2 + $0x1ccc] ss:$16 sps:$4 sm:$0xff]  }
 0x3d7   : > { %7980 = vmatpush1.bf16.msra.mxu0 %v22959_v29  ;;  %8152 = vmatpush1.bf16.msra.mxu1 %v22962_v30  ;;  %v23049_v29 = vld [vmem:[#allocation2 + $0x1cc0] ss:$16 sps:$4 sm:$0xff]   ;;  %v23052_v30 = vld [vmem:[#allocation2 + $0x1cc8] ss:$16 sps:$4 sm:$0xff]  }
 0x3d8   : > { %7981 = vmatprep.subr.bf16.mxu0 %v22967_v32  ;;  %8153 = vmatprep.subr.bf16.mxu1 %v22970_v12  ;;  %v23057_v32 = vld [vmem:[#allocation2 + $0x1ce4] ss:$16 sps:$4 sm:$0xff]   ;;  %v23060_v12 = vld [vmem:[#allocation2 + $0x1cec] ss:$16 sps:$4 sm:$0xff]  }
 0x3db   : > { %7982 = vmatpush1.bf16.msra.mxu0 %v22965_v60  ;;  %8154 = vmatpush1.bf16.msra.mxu1 %v22968_v33  ;;  %v23055_v60 = vld [vmem:[#allocation2 + $0x1ce0] ss:$16 sps:$4 sm:$0xff]   ;;  %v23058_v33 = vld [vmem:[#allocation2 + $0x1ce8] ss:$16 sps:$4 sm:$0xff]  }
 0x3dc   : > { %7983 = vmatprep.subr.bf16.mxu0 %v22973_v34  ;;  %8155 = vmatprep.subr.bf16.mxu1 %v22976_v35  ;;  %v23063_v34 = vld [vmem:[#allocation2 + $0x1d04] ss:$16 sps:$4 sm:$0xff]   ;;  %v23066_v35 = vld [vmem:[#allocation2 + $0x1d0c] ss:$16 sps:$4 sm:$0xff]  }
 0x3df   : > { %7984 = vmatpush1.bf16.msra.mxu0 %v22971_v62  ;;  %8156 = vmatpush1.bf16.msra.mxu1 %v22974_v37  ;;  %v23061_v62 = vld [vmem:[#allocation2 + $0x1d00] ss:$16 sps:$4 sm:$0xff]   ;;  %v23064_v37 = vld [vmem:[#allocation2 + $0x1d08] ss:$16 sps:$4 sm:$0xff]  }
 0x3e0   : > { %7985 = vmatprep.subr.bf16.mxu0 %v22979_v39  ;;  %8157 = vmatprep.subr.bf16.mxu1 %v22982_v31  ;;  %v23069_v39 = vld [vmem:[#allocation2 + $0x1d24] ss:$16 sps:$4 sm:$0xff]   ;;  %v23072_v31 = vld [vmem:[#allocation2 + $0x1d2c] ss:$16 sps:$4 sm:$0xff]  }
 0x3e3   : > { %7986 = vmatpush1.bf16.msra.mxu0 %v22977_v41  ;;  %8158 = vmatpush1.bf16.msra.mxu1 %v22980_v1  ;;  %v23067_v41 = vld [vmem:[#allocation2 + $0x1d20] ss:$16 sps:$4 sm:$0xff]   ;;  %v23070_v1 = vld [vmem:[#allocation2 + $0x1d28] ss:$16 sps:$4 sm:$0xff]  }
 0x3e4   : > { %7987 = vmatprep.subr.bf16.mxu0 %v22985_v54  ;;  %8159 = vmatprep.subr.bf16.mxu1 %v22988_v42  ;;  %v23075_v54 = vld [vmem:[#allocation2 + $0x1d44] ss:$16 sps:$4 sm:$0xff]   ;;  %v23078_v42 = vld [vmem:[#allocation2 + $0x1d4c] ss:$16 sps:$4 sm:$0xff]  }
 0x3e7   : > { %7988 = vmatpush1.bf16.msra.mxu0 %v22983_v25  ;;  %8160 = vmatpush1.bf16.msra.mxu1 %v22986_v57  ;;  %v23073_v25 = vld [vmem:[#allocation2 + $0x1d40] ss:$16 sps:$4 sm:$0xff]   ;;  %v23076_v57 = vld [vmem:[#allocation2 + $0x1d48] ss:$16 sps:$4 sm:$0xff]  }
 0x3e8   : > { %7989 = vmatprep.subr.bf16.mxu0 %v22991_v44  ;;  %8161 = vmatprep.subr.bf16.mxu1 %v22994_v45  ;;  %v23081_v44 = vld [vmem:[#allocation2 + $0x1d64] ss:$16 sps:$4 sm:$0xff]   ;;  %v23084_v45 = vld [vmem:[#allocation2 + $0x1d6c] ss:$16 sps:$4 sm:$0xff]  }
 0x3eb   : > { %7990 = vmatpush1.bf16.msra.mxu0 %v22989_v46  ;;  %8162 = vmatpush1.bf16.msra.mxu1 %v22992_v2  ;;  %v23079_v46 = vld [vmem:[#allocation2 + $0x1d60] ss:$16 sps:$4 sm:$0xff]   ;;  %v23082_v2 = vld [vmem:[#allocation2 + $0x1d68] ss:$16 sps:$4 sm:$0xff]  }
 0x3ec   : > { %7991 = vmatprep.subr.bf16.mxu0 %v22997_v3  ;;  %8163 = vmatprep.subr.bf16.mxu1 %v23000_v26  ;;  %v23087_v3 = vld [vmem:[#allocation2 + $0x1d84] ss:$16 sps:$4 sm:$0xff]   ;;  %v23090_v26 = vld [vmem:[#allocation2 + $0x1d8c] ss:$16 sps:$4 sm:$0xff]  }
 0x3ef   : > { %7992 = vmatpush1.bf16.msra.mxu0 %v22995_v47  ;;  %8164 = vmatpush1.bf16.msra.mxu1 %v22998_v9  ;;  %v23085_v47 = vld [vmem:[#allocation2 + $0x1d80] ss:$16 sps:$4 sm:$0xff]   ;;  %v23088_v9 = vld [vmem:[#allocation2 + $0x1d88] ss:$16 sps:$4 sm:$0xff]  }
 0x3f0   : > { %7993 = vmatprep.subr.bf16.mxu0 %v23003_v48  ;;  %8165 = vmatprep.subr.bf16.mxu1 %v23006_v36  ;;  %v23093_v48 = vld [vmem:[#allocation2 + $0x1da4] ss:$16 sps:$4 sm:$0xff]   ;;  %v23096_v36 = vld [vmem:[#allocation2 + $0x1dac] ss:$16 sps:$4 sm:$0xff]  }
 0x3f3   : > { %7994 = vmatpush1.bf16.msra.mxu0 %v23001_v13  ;;  %8166 = vmatpush1.bf16.msra.mxu1 %v23004_v59  ;;  %v23091_v13 = vld [vmem:[#allocation2 + $0x1da0] ss:$16 sps:$4 sm:$0xff]   ;;  %v23094_v59 = vld [vmem:[#allocation2 + $0x1da8] ss:$16 sps:$4 sm:$0xff]  }
 0x3f4   : > { %7995 = vmatprep.subr.bf16.mxu0 %v23009_v51  ;;  %8167 = vmatprep.subr.bf16.mxu1 %v23012_v55  ;;  %v23099_v51 = vld [vmem:[#allocation2 + $0x1dc4] ss:$16 sps:$4 sm:$0xff]   ;;  %v23102_v55 = vld [vmem:[#allocation2 + $0x1dcc] ss:$16 sps:$4 sm:$0xff]  }
 0x3f7   : > { %7996 = vmatpush1.bf16.msra.mxu0 %v23007_v43  ;;  %8168 = vmatpush1.bf16.msra.mxu1 %v23010_v63  ;;  %v23097_v43 = vld [vmem:[#allocation2 + $0x1dc0] ss:$16 sps:$4 sm:$0xff]   ;;  %v23100_v63 = vld [vmem:[#allocation2 + $0x1dc8] ss:$16 sps:$4 sm:$0xff]  }
 0x3f8   : > { %8008 = vmatprep.subr.bf16.mxu0 %v23015_v4  ;;  %8180 = vmatprep.subr.bf16.mxu1 %v23018_v6  ;;  %v23105_v4 = vld [vmem:[#allocation2 + $0x1de4] ss:$16 sps:$4 sm:$0xff]   ;;  %v23108_v6 = vld [vmem:[#allocation2 + $0x1dec] ss:$16 sps:$4 sm:$0xff]  }
 0x3fa   : > { %7998 = vmatmul.mubr.bf16.vlgmr.msra.gmra.mrb[0].mxu0 %v19613_v10  ;;  %8170 = vmatmul.mubr.bf16.vlgmr.msra.gmra.mrb[0].mxu1 %v19613_v10  ;;  %v23103_v10 = vld [vmem:[#allocation2 + $0x1de0] ss:$16 sps:$4 sm:$0xff]  }
 0x3fb   : > { %8009 = vmatpush1.bf16.msra.mxu0 %v23013_v7  ;;  %8181 = vmatpush1.bf16.msra.mxu1 %v23016_v40  ;;  %v23106_v7 = vld [vmem:[#allocation2 + $0x1de8] ss:$16 sps:$4 sm:$0xff]   ;;  %v23111_v40 = vld [vmem:[#allocation2 + $0x1e04] ss:$16 sps:$4 sm:$0xff]  }
 0x3fc   : > { %8010 = vmatprep.subr.bf16.mxu0 %v23021_v50  ;;  %8182 = vmatprep.subr.bf16.mxu1 %v23024_v11  ;;  %v23114_v50 = vld [vmem:[#allocation2 + $0x1e0c] ss:$16 sps:$4 sm:$0xff]  }
 0x3fd   : > { %8040 = vmatprep.mubr.bf16.mxu0 %v19616_v14  ;;  %8212 = vmatprep.mubr.bf16.mxu1 %v19616_v14  ;;  %v25797_v11 = vld [vmem:[%s25764_s18 + $0x18] sm:$0xff]  ;;  %v19615_v14 = vcombine.low %v25787_v8, %v25790_v58  ;;  %v23123_v8 = vld [vmem:[#allocation2 + $0x1e44] ss:$16 sps:$4 sm:$0xff]  }
 0x3fe   : > { %v23126_v58 = vld [vmem:[#allocation2 + $0x1e4c] ss:$16 sps:$4 sm:$0xff]  }
 0x3ff   : > { %8011 = vmatpush1.bf16.msra.mxu0 %v23019_v53  ;;  %8183 = vmatpush1.bf16.msra.mxu1 %v23022_v15  ;;  %v25802_v53 = vld [vmem:[%s25764_s18 + $0x38] sm:$0xff]  ;;  %v23109_v15 = vld [vmem:[#allocation2 + $0x1e00] ss:$16 sps:$4 sm:$0xff]  }
 0x400   : > { %8012 = vmatprep.subr.bf16.mxu0 %v23027_v56  ;;  %8184 = vmatprep.subr.bf16.mxu1 %v23030_v61  ;;  %v23112_v56 = vld [vmem:[#allocation2 + $0x1e08] ss:$16 sps:$4 sm:$0xff]   ;;  %v23117_v61 = vld [vmem:[#allocation2 + $0x1e24] ss:$16 sps:$4 sm:$0xff]  }
 0x403   : > { %8013 = vmatpush1.bf16.msra.mxu0 %v23025_v16  ;;  %8185 = vmatpush1.bf16.msra.mxu1 %v23028_v17  ;;  %v23120_v16 = vld [vmem:[#allocation2 + $0x1e2c] ss:$16 sps:$4 sm:$0xff]   ;;  %v19618_v17 = vcombine.high %v25797_v11, %v25802_v53 }
 0x404   : > { %8014 = vmatprep.subr.bf16.mxu0 %v23033_v38  ;;  %8186 = vmatprep.subr.bf16.mxu1 %v23036_v18  ;;  %v23115_v38 = vld [vmem:[#allocation2 + $0x1e20] ss:$16 sps:$4 sm:$0xff]   ;;  %v23118_v18 = vld [vmem:[#allocation2 + $0x1e28] ss:$16 sps:$4 sm:$0xff]  }
 0x407   : > { %8015 = vmatpush1.bf16.msra.mxu0 %v23031_v49  ;;  %8187 = vmatpush1.bf16.msra.mxu1 %v23034_v0  ;;  %v23121_v49 = vld [vmem:[#allocation2 + $0x1e40] ss:$16 sps:$4 sm:$0xff]   ;;  %v23124_v0 = vld [vmem:[#allocation2 + $0x1e48] ss:$16 sps:$4 sm:$0xff]  }
 0x408   : > { %8016 = vmatprep.subr.bf16.mxu0 %v23039_v19  ;;  %8188 = vmatprep.subr.bf16.mxu1 %v23042_v20  ;;  %v23129_v19 = vld [vmem:[#allocation2 + $0x1e64] ss:$16 sps:$4 sm:$0xff]   ;;  %v23132_v20 = vld [vmem:[#allocation2 + $0x1e6c] ss:$16 sps:$4 sm:$0xff]  }
 0x40b   : > { %8017 = vmatpush1.bf16.msra.mxu0 %v23037_v21  ;;  %8189 = vmatpush1.bf16.msra.mxu1 %v23040_v22  ;;  %v23127_v21 = vld [vmem:[#allocation2 + $0x1e60] ss:$16 sps:$4 sm:$0xff]   ;;  %v23130_v22 = vld [vmem:[#allocation2 + $0x1e68] ss:$16 sps:$4 sm:$0xff]  }
 0x40c   : > { %8018 = vmatprep.subr.bf16.mxu0 %v23045_v23  ;;  %8190 = vmatprep.subr.bf16.mxu1 %v23048_v24  ;;  %v23135_v23 = vld [vmem:[#allocation2 + $0x1e84] ss:$16 sps:$4 sm:$0xff]   ;;  %v23138_v24 = vld [vmem:[#allocation2 + $0x1e8c] ss:$16 sps:$4 sm:$0xff]  }
 0x40f   : > { %8019 = vmatpush1.bf16.msra.mxu0 %v23043_v5  ;;  %8191 = vmatpush1.bf16.msra.mxu1 %v23046_v52  ;;  %v23133_v5 = vld [vmem:[#allocation2 + $0x1e80] ss:$16 sps:$4 sm:$0xff]   ;;  %v23136_v52 = vld [vmem:[#allocation2 + $0x1e88] ss:$16 sps:$4 sm:$0xff]  }
 0x410   : > { %8020 = vmatprep.subr.bf16.mxu0 %v23051_v27  ;;  %8192 = vmatprep.subr.bf16.mxu1 %v23054_v28  ;;  %v23141_v27 = vld [vmem:[#allocation2 + $0x1ea4] ss:$16 sps:$4 sm:$0xff]   ;;  %v23144_v28 = vld [vmem:[#allocation2 + $0x1eac] ss:$16 sps:$4 sm:$0xff]  }
 0x413   : > { %8021 = vmatpush1.bf16.msra.mxu0 %v23049_v29  ;;  %8193 = vmatpush1.bf16.msra.mxu1 %v23052_v30  ;;  %v23139_v29 = vld [vmem:[#allocation2 + $0x1ea0] ss:$16 sps:$4 sm:$0xff]   ;;  %v23142_v30 = vld [vmem:[#allocation2 + $0x1ea8] ss:$16 sps:$4 sm:$0xff]  }
 0x414   : > { %8022 = vmatprep.subr.bf16.mxu0 %v23057_v32  ;;  %8194 = vmatprep.subr.bf16.mxu1 %v23060_v12  ;;  %v23147_v32 = vld [vmem:[#allocation2 + $0x1ec4] ss:$16 sps:$4 sm:$0xff]   ;;  %v23150_v12 = vld [vmem:[#allocation2 + $0x1ecc] ss:$16 sps:$4 sm:$0xff]  }
 0x417   : > { %8023 = vmatpush1.bf16.msra.mxu0 %v23055_v60  ;;  %8195 = vmatpush1.bf16.msra.mxu1 %v23058_v33  ;;  %v23145_v60 = vld [vmem:[#allocation2 + $0x1ec0] ss:$16 sps:$4 sm:$0xff]   ;;  %v23148_v33 = vld [vmem:[#allocation2 + $0x1ec8] ss:$16 sps:$4 sm:$0xff]  }
 0x418   : > { %8024 = vmatprep.subr.bf16.mxu0 %v23063_v34  ;;  %8196 = vmatprep.subr.bf16.mxu1 %v23066_v35  ;;  %v23153_v34 = vld [vmem:[#allocation2 + $0x1ee4] ss:$16 sps:$4 sm:$0xff]   ;;  %v23156_v35 = vld [vmem:[#allocation2 + $0x1eec] ss:$16 sps:$4 sm:$0xff]  }
 0x41b   : > { %8025 = vmatpush1.bf16.msra.mxu0 %v23061_v62  ;;  %8197 = vmatpush1.bf16.msra.mxu1 %v23064_v37  ;;  %v23151_v62 = vld [vmem:[#allocation2 + $0x1ee0] ss:$16 sps:$4 sm:$0xff]   ;;  %v23154_v37 = vld [vmem:[#allocation2 + $0x1ee8] ss:$16 sps:$4 sm:$0xff]  }
 0x41c   : > { %8026 = vmatprep.subr.bf16.mxu0 %v23069_v39  ;;  %8198 = vmatprep.subr.bf16.mxu1 %v23072_v31  ;;  %v23159_v39 = vld [vmem:[#allocation2 + $0x1f04] ss:$16 sps:$4 sm:$0xff]   ;;  %v23162_v31 = vld [vmem:[#allocation2 + $0x1f0c] ss:$16 sps:$4 sm:$0xff]  }
 0x41f   : > { %8027 = vmatpush1.bf16.msra.mxu0 %v23067_v41  ;;  %8199 = vmatpush1.bf16.msra.mxu1 %v23070_v1  ;;  %v23157_v41 = vld [vmem:[#allocation2 + $0x1f00] ss:$16 sps:$4 sm:$0xff]   ;;  %v23160_v1 = vld [vmem:[#allocation2 + $0x1f08] ss:$16 sps:$4 sm:$0xff]  }
 0x420   : > { %8028 = vmatprep.subr.bf16.mxu0 %v23075_v54  ;;  %8200 = vmatprep.subr.bf16.mxu1 %v23078_v42  ;;  %v23165_v54 = vld [vmem:[#allocation2 + $0x1f24] ss:$16 sps:$4 sm:$0xff]   ;;  %v23168_v42 = vld [vmem:[#allocation2 + $0x1f2c] ss:$16 sps:$4 sm:$0xff]  }
 0x423   : > { %8029 = vmatpush1.bf16.msra.mxu0 %v23073_v25  ;;  %8201 = vmatpush1.bf16.msra.mxu1 %v23076_v57  ;;  %v23163_v25 = vld [vmem:[#allocation2 + $0x1f20] ss:$16 sps:$4 sm:$0xff]   ;;  %v23166_v57 = vld [vmem:[#allocation2 + $0x1f28] ss:$16 sps:$4 sm:$0xff]  }
 0x424   : > { %8030 = vmatprep.subr.bf16.mxu0 %v23081_v44  ;;  %8202 = vmatprep.subr.bf16.mxu1 %v23084_v45  ;;  %v23171_v44 = vld [vmem:[#allocation2 + $0x1f44] ss:$16 sps:$4 sm:$0xff]   ;;  %v23174_v45 = vld [vmem:[#allocation2 + $0x1f4c] ss:$16 sps:$4 sm:$0xff]  }
 0x427   : > { %8031 = vmatpush1.bf16.msra.mxu0 %v23079_v46  ;;  %8203 = vmatpush1.bf16.msra.mxu1 %v23082_v2  ;;  %v23169_v46 = vld [vmem:[#allocation2 + $0x1f40] ss:$16 sps:$4 sm:$0xff]   ;;  %v23172_v2 = vld [vmem:[#allocation2 + $0x1f48] ss:$16 sps:$4 sm:$0xff]  }
 0x428   : > { %8032 = vmatprep.subr.bf16.mxu0 %v23087_v3  ;;  %8204 = vmatprep.subr.bf16.mxu1 %v23090_v26  ;;  %v23177_v3 = vld [vmem:[#allocation2 + $0x1f64] ss:$16 sps:$4 sm:$0xff]   ;;  %v23180_v26 = vld [vmem:[#allocation2 + $0x1f6c] ss:$16 sps:$4 sm:$0xff]  }
 0x42b   : > { %8033 = vmatpush1.bf16.msra.mxu0 %v23085_v47  ;;  %8205 = vmatpush1.bf16.msra.mxu1 %v23088_v9  ;;  %v23175_v47 = vld [vmem:[#allocation2 + $0x1f60] ss:$16 sps:$4 sm:$0xff]   ;;  %v23178_v9 = vld [vmem:[#allocation2 + $0x1f68] ss:$16 sps:$4 sm:$0xff]  }
 0x42c   : > { %8034 = vmatprep.subr.bf16.mxu0 %v23093_v48  ;;  %8206 = vmatprep.subr.bf16.mxu1 %v23096_v36  ;;  %v23183_v48 = vld [vmem:[#allocation2 + $0x1f84] ss:$16 sps:$4 sm:$0xff]   ;;  %v23186_v36 = vld [vmem:[#allocation2 + $0x1f8c] ss:$16 sps:$4 sm:$0xff]  }
 0x42f   : > { %8035 = vmatpush1.bf16.msra.mxu0 %v23091_v13  ;;  %8207 = vmatpush1.bf16.msra.mxu1 %v23094_v59  ;;  %v23181_v13 = vld [vmem:[#allocation2 + $0x1f80] ss:$16 sps:$4 sm:$0xff]   ;;  %v23184_v59 = vld [vmem:[#allocation2 + $0x1f88] ss:$16 sps:$4 sm:$0xff]  }
 0x430   : > { %8036 = vmatprep.subr.bf16.mxu0 %v23099_v51  ;;  %8208 = vmatprep.subr.bf16.mxu1 %v23102_v55  ;;  %v25807_v51 = vld [vmem:[%s25764_s18] sm:$0xff] }
 0x431   : > { %v25810_v55 = vld [vmem:[%s25764_s18 + $0x20] sm:$0xff] }
 0x433   : > { %8037 = vmatpush1.bf16.msra.mxu0 %v23097_v43  ;;  %8209 = vmatpush1.bf16.msra.mxu1 %v23100_v63  ;;  %v23189_v43 = vld [vmem:[#allocation2 + $0x1fa4] ss:$16 sps:$4 sm:$0xff]   ;;  %v23192_v63 = vld [vmem:[#allocation2 + $0x1fac] ss:$16 sps:$4 sm:$0xff]  }
 0x434   : > { %8038 = vmatprep.subr.bf16.mxu0 %v23105_v4  ;;  %8210 = vmatprep.subr.bf16.mxu1 %v23108_v6  ;;  %v23187_v4 = vld [vmem:[#allocation2 + $0x1fa0] ss:$16 sps:$4 sm:$0xff]   ;;  %v19876_v6 = vcombine.high %v25807_v51, %v25810_v55 }
 0x437   : > { %8039 = vmatpush1.bf16.msra.mxu0 %v23103_v10  ;;  %8211 = vmatpush1.bf16.msra.mxu1 %v23106_v7  ;;  %v23190_v10 = vld [vmem:[#allocation2 + $0x1fa8] ss:$16 sps:$4 sm:$0xff]   ;;  %v25815_v7 = vld [vmem:[%s25764_s18 + $0x40] sm:$0x11] }
 0x438   : > { %8051 = vmatprep.subr.bf16.mxu0 %v23111_v40  ;;  %8223 = vmatprep.subr.bf16.mxu1 %v23114_v50  ;;  %v23195_v40 = vld [vmem:[#allocation2 + $0x1fc4] ss:$16 sps:$4 sm:$0xff]   ;;  %v23198_v50 = vld [vmem:[#allocation2 + $0x1fcc] ss:$16 sps:$4 sm:$0xff]  }
 0x43a   : > { %8041 = vmatmul.mubr.bf16.vlgmr.msra.gmra.mrb[0].mxu0 %v19615_v14  ;;  %8213 = vmatmul.mubr.bf16.vlgmr.msra.gmra.mrb[0].mxu1 %v19615_v14  ;;  %v25819_v14 = vcombine.high %v25815_v7, %v25815_v7 }
 0x43b   : > { %8052 = vmatpush1.bf16.msra.mxu0 %v23109_v15  ;;  %8224 = vmatpush1.bf16.msra.mxu1 %v23112_v56  ;;  %v8610_v15 = vshll.u32 %v19876_v6, 16  ;;  %v23193_v56 = vld [vmem:[#allocation2 + $0x1fc0] ss:$16 sps:$4 sm:$0xff]  }
 0x43c   : > { %8053 = vmatprep.subr.bf16.mxu0 %v23117_v61  ;;  %8225 = vmatprep.subr.bf16.mxu1 %v23120_v16  ;;  %v23196_v61 = vld [vmem:[#allocation2 + $0x1fc8] ss:$16 sps:$4 sm:$0xff]   ;;  %v23201_v16 = vld [vmem:[#allocation2 + $0x1fe4] ss:$16 sps:$4 sm:$0xff]  }
 0x43d   : > { %8083 = vmatprep.mubr.bf16.mxu0 %v19618_v17  ;;  %8255 = vmatprep.mubr.bf16.mxu1 %v19618_v17  ;;  %v23204_v17 = vld [vmem:[#allocation2 + $0x1fec] ss:$16 sps:$4 sm:$0xff]  }
 0x43f   : > { %8054 = vmatpush1.bf16.msra.mxu0 %v23115_v38  ;;  %8226 = vmatpush1.bf16.msra.mxu1 %v23118_v18  ;;  %v8608_v38 = vshrl.u32 %v19876_v6, 16  ;;  %v8612_v18 = vrot.slane %v8610_v15, 1  ;;  %v23265_v6 = vld [vmem:[#allocation2 + $0x2140] ss:$16 sps:$4 sm:$0xff]  }
 0x440   : > { %8055 = vmatprep.subr.bf16.mxu0 %v23123_v8  ;;  %8227 = vmatprep.subr.bf16.mxu1 %v23126_v58  ;;  %v8615_v8 = vshll.u32 %v25819_v14, 16  ;;  %v23199_v58 = vld [vmem:[#allocation2 + $0x1fe0] ss:$16 sps:$4 sm:$0xff]  }
 0x441   : > { %v23271_v15 = vld [vmem:[#allocation2 + $0x2160] ss:$16 sps:$4 sm:$0xff]  }
 0x443   : > { %8056 = vmatpush1.bf16.msra.mxu0 %v23121_v49  ;;  %8228 = vmatpush1.bf16.msra.mxu1 %v23124_v0  ;;  %v23202_v49 = vld [vmem:[#allocation2 + $0x1fe8] ss:$16 sps:$4 sm:$0xff]   ;;  %v23207_v0 = vld [vmem:[#allocation2 + $0x2004] ss:$16 sps:$4 sm:$0xff]  }
 0x444   : > { %8057 = vmatprep.subr.bf16.mxu0 %v23129_v19  ;;  %8229 = vmatprep.subr.bf16.mxu1 %v23132_v20  ;;  %v23210_v19 = vld [vmem:[#allocation2 + $0x200c] ss:$16 sps:$4 sm:$0xff]   ;;  %v19617_v20 = vcombine.low %v25797_v11, %v25802_v53  ;;  %v23219_v11 = vld [vmem:[#allocation2 + $0x2044] ss:$16 sps:$4 sm:$0xff]  }
 0x445   : > { %v23222_v53 = vld [vmem:[#allocation2 + $0x204c] ss:$16 sps:$4 sm:$0xff]  }
 0x447   : > { %8058 = vmatpush1.bf16.msra.mxu0 %v23127_v21  ;;  %8230 = vmatpush1.bf16.msra.mxu1 %v23130_v22  ;;  %v8613_v21 = vor.u32 %v8612_v18, %v8608_v38  ;;  %v8617_v22 = vrot.slane %v8615_v8, 1  ;;  %v23280_v38 = vld [vmem:[#allocation2 + $0x2188] ss:$16 sps:$4 sm:$0xff]   ;;  %v19875_v18 = vcombine.low %v25807_v51, %v25810_v55 }
 0x448   : > { %8059 = vmatprep.subr.bf16.mxu0 %v23135_v23  ;;  %8231 = vmatprep.subr.bf16.mxu1 %v23138_v24  ;;  %v23205_v23 = vld [vmem:[#allocation2 + $0x2000] ss:$16 sps:$4 sm:$0xff]   ;;  %v23208_v24 = vld [vmem:[#allocation2 + $0x2008] ss:$16 sps:$4 sm:$0xff]  }
 0x449   : > { %v25828_v8 = vld [vmem:[%s25764_s18 + $0x8] sm:$0xff]  ;;  %v8598_v51 = vshll.u32 %v19875_v18, 16 }
 0x44a   : > { %v25840_v55 = vld [vmem:[%s25764_s18 + $0x48] sm:$0x11] }
 0x44b   : > { %8060 = vmatpush1.bf16.msra.mxu0 %v23133_v5  ;;  %8232 = vmatpush1.bf16.msra.mxu1 %v23136_v52  ;;  %v23213_v5 = vld [vmem:[#allocation2 + $0x2024] ss:$16 sps:$4 sm:$0xff]   ;;  %v23216_v52 = vld [vmem:[#allocation2 + $0x202c] ss:$16 sps:$4 sm:$0xff]  }
 0x44c   : > { %8061 = vmatprep.subr.bf16.mxu0 %v23141_v27  ;;  %8233 = vmatprep.subr.bf16.mxu1 %v23144_v28  ;;  %v8618_v27 = vsel %vm1030_vm0, %v8613_v21, %v8617_v22  ;;  %v23211_v28 = vld [vmem:[#allocation2 + $0x2020] ss:$16 sps:$4 sm:$0xff]   ;;  %v23286_v21 = vld [vmem:[#allocation2 + $0x21a8] ss:$16 sps:$4 sm:$0xff]   ;;  %v25837_v22 = vcombine.low %v25815_v7, %v25815_v7 }
 0x44e   : > { %v8603_v7 = vshll.u32 %v25837_v22, 16 }
 0x44f   : > { %8062 = vmatpush1.bf16.msra.mxu0 %v23139_v29  ;;  %8234 = vmatpush1.bf16.msra.mxu1 %v23142_v30  ;;  %v23214_v29 = vld [vmem:[#allocation2 + $0x2028] ss:$16 sps:$4 sm:$0xff]   ;;  %v23217_v30 = vld [vmem:[#allocation2 + $0x2040] ss:$16 sps:$4 sm:$0xff]  }
 0x450   : > { %8063 = vmatprep.subr.bf16.mxu0 %v23147_v32  ;;  %8235 = vmatprep.subr.bf16.mxu1 %v23150_v12  ;;  %v23220_v32 = vld [vmem:[#allocation2 + $0x2048] ss:$16 sps:$4 sm:$0xff]   ;;  %v23225_v12 = vld [vmem:[#allocation2 + $0x2064] ss:$16 sps:$4 sm:$0xff]  }
 0x453   : > { %8064 = vmatpush1.bf16.msra.mxu0 %v23145_v60  ;;  %8236 = vmatpush1.bf16.msra.mxu1 %v23148_v33  ;;  %v23228_v60 = vld [vmem:[#allocation2 + $0x206c] ss:$16 sps:$4 sm:$0xff]   ;;  %v23223_v33 = vld [vmem:[#allocation2 + $0x2060] ss:$16 sps:$4 sm:$0xff]  }
 0x454   : > { %8065 = vmatprep.subr.bf16.mxu0 %v23153_v34  ;;  %8237 = vmatprep.subr.bf16.mxu1 %v23156_v35  ;;  %v23226_v34 = vld [vmem:[#allocation2 + $0x2068] ss:$16 sps:$4 sm:$0xff]   ;;  %v23231_v35 = vld [vmem:[#allocation2 + $0x2084] ss:$16 sps:$4 sm:$0xff]  }
 0x457   : > { %8066 = vmatpush1.bf16.msra.mxu0 %v23151_v62  ;;  %8238 = vmatpush1.bf16.msra.mxu1 %v23154_v37  ;;  %v23234_v62 = vld [vmem:[#allocation2 + $0x208c] ss:$16 sps:$4 sm:$0xff]   ;;  %v23229_v37 = vld [vmem:[#allocation2 + $0x2080] ss:$16 sps:$4 sm:$0xff]  }
 0x458   : > { %8067 = vmatprep.subr.bf16.mxu0 %v23159_v39  ;;  %8239 = vmatprep.subr.bf16.mxu1 %v23162_v31  ;;  %v23232_v39 = vld [vmem:[#allocation2 + $0x2088] ss:$16 sps:$4 sm:$0xff]   ;;  %v23237_v31 = vld [vmem:[#allocation2 + $0x20a4] ss:$16 sps:$4 sm:$0xff]  }
 0x45b   : > { %8068 = vmatpush1.bf16.msra.mxu0 %v23157_v41  ;;  %8240 = vmatpush1.bf16.msra.mxu1 %v23160_v1  ;;  %v23240_v41 = vld [vmem:[#allocation2 + $0x20ac] ss:$16 sps:$4 sm:$0xff]   ;;  %v23235_v1 = vld [vmem:[#allocation2 + $0x20a0] ss:$16 sps:$4 sm:$0xff]  }
 0x45c   : > { %8069 = vmatprep.subr.bf16.mxu0 %v23165_v54  ;;  %8241 = vmatprep.subr.bf16.mxu1 %v23168_v42  ;;  %v23238_v54 = vld [vmem:[#allocation2 + $0x20a8] ss:$16 sps:$4 sm:$0xff]   ;;  %v23243_v42 = vld [vmem:[#allocation2 + $0x20c4] ss:$16 sps:$4 sm:$0xff]  }
 0x45f   : > { %8070 = vmatpush1.bf16.msra.mxu0 %v23163_v25  ;;  %8242 = vmatpush1.bf16.msra.mxu1 %v23166_v57  ;;  %v23246_v25 = vld [vmem:[#allocation2 + $0x20cc] ss:$16 sps:$4 sm:$0xff]   ;;  %v23241_v57 = vld [vmem:[#allocation2 + $0x20c0] ss:$16 sps:$4 sm:$0xff]  }
 0x460   : > { %8071 = vmatprep.subr.bf16.mxu0 %v23171_v44  ;;  %8243 = vmatprep.subr.bf16.mxu1 %v23174_v45  ;;  %v23244_v44 = vld [vmem:[#allocation2 + $0x20c8] ss:$16 sps:$4 sm:$0xff]   ;;  %v23249_v45 = vld [vmem:[#allocation2 + $0x20e4] ss:$16 sps:$4 sm:$0xff]  }
 0x463   : > { %8072 = vmatpush1.bf16.msra.mxu0 %v23169_v46  ;;  %8244 = vmatpush1.bf16.msra.mxu1 %v23172_v2  ;;  %v23252_v46 = vld [vmem:[#allocation2 + $0x20ec] ss:$16 sps:$4 sm:$0xff]   ;;  %v23247_v2 = vld [vmem:[#allocation2 + $0x20e0] ss:$16 sps:$4 sm:$0xff]  }
 0x464   : > { %8073 = vmatprep.subr.bf16.mxu0 %v23177_v3  ;;  %8245 = vmatprep.subr.bf16.mxu1 %v23180_v26  ;;  %v23250_v3 = vld [vmem:[#allocation2 + $0x20e8] ss:$16 sps:$4 sm:$0xff]   ;;  %v23255_v26 = vld [vmem:[#allocation2 + $0x2104] ss:$16 sps:$4 sm:$0xff]  }
 0x467   : > { %8074 = vmatpush1.bf16.msra.mxu0 %v23175_v47  ;;  %8246 = vmatpush1.bf16.msra.mxu1 %v23178_v9  ;;  %v23258_v47 = vld [vmem:[#allocation2 + $0x210c] ss:$16 sps:$4 sm:$0xff]   ;;  %v23253_v9 = vld [vmem:[#allocation2 + $0x2100] ss:$16 sps:$4 sm:$0xff]  }
 0x468   : > { %8075 = vmatprep.subr.bf16.mxu0 %v23183_v48  ;;  %8247 = vmatprep.subr.bf16.mxu1 %v23186_v36  ;;  %v23256_v48 = vld [vmem:[#allocation2 + $0x2108] ss:$16 sps:$4 sm:$0xff]   ;;  %v23261_v36 = vld [vmem:[#allocation2 + $0x2124] ss:$16 sps:$4 sm:$0xff]  }
 0x46b   : > { %8076 = vmatpush1.bf16.msra.mxu0 %v23181_v13  ;;  %8248 = vmatpush1.bf16.msra.mxu1 %v23184_v59  ;;  %v23264_v13 = vld [vmem:[#allocation2 + $0x212c] ss:$16 sps:$4 sm:$0xff]   ;;  %v23259_v59 = vld [vmem:[#allocation2 + $0x2120] ss:$16 sps:$4 sm:$0xff]  }
 0x46c   : > { %8077 = vmatprep.subr.bf16.mxu0 %v23189_v43  ;;  %8249 = vmatprep.subr.bf16.mxu1 %v23192_v63  ;;  %v23262_v43 = vld [vmem:[#allocation2 + $0x2128] ss:$16 sps:$4 sm:$0xff]   ;;  %v23267_v63 = vld [vmem:[#allocation2 + $0x2144] ss:$16 sps:$4 sm:$0xff]  }
 0x46f   : > { %8078 = vmatpush1.bf16.msra.mxu0 %v23187_v4  ;;  %8250 = vmatpush1.bf16.msra.mxu1 %v23190_v10  ;;  %v23270_v4 = vld [vmem:[#allocation2 + $0x214c] ss:$16 sps:$4 sm:$0xff]   ;;  %v23268_v10 = vld [vmem:[#allocation2 + $0x2148] ss:$16 sps:$4 sm:$0xff]  }
 0x470   : > { %8079 = vmatprep.subr.bf16.mxu0 %v23195_v40  ;;  %8251 = vmatprep.subr.bf16.mxu1 %v23198_v50  ;;  %v23273_v40 = vld [vmem:[#allocation2 + $0x2164] ss:$16 sps:$4 sm:$0xff]   ;;  %v23276_v50 = vld [vmem:[#allocation2 + $0x216c] ss:$16 sps:$4 sm:$0xff]  }
 0x473   : > { %8080 = vmatpush1.bf16.msra.mxu0 %v23193_v56  ;;  %8252 = vmatpush1.bf16.msra.mxu1 %v23196_v61  ;;  %v23274_v56 = vld [vmem:[#allocation2 + $0x2168] ss:$16 sps:$4 sm:$0xff]   ;;  %v23279_v61 = vld [vmem:[#allocation2 + $0x2184] ss:$16 sps:$4 sm:$0xff]  }
 0x474   : > { %8081 = vmatprep.subr.bf16.mxu0 %v23201_v16  ;;  %8253 = vmatprep.subr.bf16.mxu1 %v23204_v17  ;;  %v23282_v16 = vld [vmem:[#allocation2 + $0x218c] ss:$16 sps:$4 sm:$0xff]   ;;  %v23277_v17 = vld [vmem:[#allocation2 + $0x2180] ss:$16 sps:$4 sm:$0xff]  }
 0x477   : > { %8082 = vmatpush1.bf16.msra.mxu0 %v23199_v58  ;;  %8254 = vmatpush1.bf16.msra.mxu1 %v23202_v49  ;;  %v25831_v58 = vld [vmem:[%s25764_s18 + $0x28] sm:$0xff]  ;;  %v23285_v49 = vld [vmem:[#allocation2 + $0x21a4] ss:$16 sps:$4 sm:$0xff]  }
 0x478   : > { %9979 = vmatprep.subr.bf16.mxu0 %v23207_v0  ;;  %10151 = vmatprep.subr.bf16.mxu1 %v23210_v19  ;;  %v23288_v0 = vld [vmem:[#allocation2 + $0x21ac] ss:$16 sps:$4 sm:$0xff]   ;;  %v23283_v19 = vld [vmem:[#allocation2 + $0x21a0] ss:$16 sps:$4 sm:$0xff]  }
 0x47a   : > { %8084 = vmatmul.mubr.bf16.vlgmr.msra.gmra.mrb[0].mxu0 %v19617_v20  ;;  %8256 = vmatmul.mubr.bf16.vlgmr.msra.gmra.mrb[0].mxu1 %v19617_v20  ;;  %v19878_v20 = vcombine.high %v25828_v8, %v25831_v58 }
 0x47b   : > { %9980 = vmatpush1.bf16.msra.mxu0 %v23205_v23  ;;  %10152 = vmatpush1.bf16.msra.mxu1 %v23208_v24  ;;  %v23291_v23 = vld [vmem:[#allocation2 + $0x21c4] ss:$16 sps:$4 sm:$0xff]   ;;  %v23294_v24 = vld [vmem:[#allocation2 + $0x21cc] ss:$16 sps:$4 sm:$0xff]  }
 0x47c   : > { %9981 = vmatprep.subr.bf16.mxu0 %v23213_v5  ;;  %10153 = vmatprep.subr.bf16.mxu1 %v23216_v52  ;;  %v23289_v5 = vld [vmem:[#allocation2 + $0x21c0] ss:$16 sps:$4 sm:$0xff]   ;;  %v25844_v52 = vcombine.high %v25840_v55, %v25840_v55 }
 0x47d   : > { %10011 = vmatprep.mubr.bf16.mxu0 %v8618_v27  ;;  %10183 = vmatprep.mubr.bf16.mxu1 %v8618_v27  ;;  %v8634_v27 = vshll.u32 %v19878_v20, 16 }
 0x47f   : > { %9982 = vmatpush1.bf16.msra.mxu0 %v23211_v28  ;;  %10154 = vmatpush1.bf16.msra.mxu1 %v23214_v29  ;;  %v23292_v28 = vld [vmem:[#allocation2 + $0x21c8] ss:$16 sps:$4 sm:$0xff]   ;;  %v8596_v29 = vshrl.u32 %v19875_v18, 16  ;;  %v23345_v18 = vld [vmem:[#allocation2 + $0x22e0] ss:$16 sps:$4 sm:$0xff]  }
 0x480   : > { %9983 = vmatprep.subr.bf16.mxu0 %v23219_v11  ;;  %10155 = vmatprep.subr.bf16.mxu1 %v23222_v53  ;;  %v8600_v11 = vrot.slane %v8598_v51, 1  ;;  %v23297_v53 = vld [vmem:[#allocation2 + $0x21e4] ss:$16 sps:$4 sm:$0xff]  }
 0x481   : > { %v23359_v51 = vld [vmem:[#allocation2 + $0x2324] ss:$16 sps:$4 sm:$0xff]  }
 0x483   : > { %9984 = vmatpush1.bf16.msra.mxu0 %v23217_v30  ;;  %10156 = vmatpush1.bf16.msra.mxu1 %v23220_v32  ;;  %v23300_v30 = vld [vmem:[#allocation2 + $0x21ec] ss:$16 sps:$4 sm:$0xff]   ;;  %v8632_v32 = vshrl.u32 %v19878_v20, 16  ;;  %v23351_v20 = vld [vmem:[#allocation2 + $0x2300] ss:$16 sps:$4 sm:$0xff]  }
 0x484   : > { %9985 = vmatprep.subr.bf16.mxu0 %v23225_v12  ;;  %10157 = vmatprep.subr.bf16.mxu1 %v23228_v60  ;;  %v8636_v12 = vrot.slane %v8634_v27, 1  ;;  %v8639_v60 = vshll.u32 %v25844_v52, 16  ;;  %v23365_v27 = vld [vmem:[#allocation2 + $0x2344] ss:$16 sps:$4 sm:$0xff]  }
 0x487   : > { %9986 = vmatpush1.bf16.msra.mxu0 %v23223_v33  ;;  %10158 = vmatpush1.bf16.msra.mxu1 %v23226_v34  ;;  %v23295_v33 = vld [vmem:[#allocation2 + $0x21e0] ss:$16 sps:$4 sm:$0xff]   ;;  %v23298_v34 = vld [vmem:[#allocation2 + $0x21e8] ss:$16 sps:$4 sm:$0xff]  }
 0x488   : > { %9987 = vmatprep.subr.bf16.mxu0 %v23231_v35  ;;  %10159 = vmatprep.subr.bf16.mxu1 %v23234_v62  ;;  %v8601_v35 = vor.u32 %v8600_v11, %v8596_v29  ;;  %v8605_v62 = vrot.slane %v8603_v7, 1  ;;  %v23363_v29 = vld [vmem:[#allocation2 + $0x2340] ss:$16 sps:$4 sm:$0xff]   ;;  %v23366_v11 = vld [vmem:[#allocation2 + $0x2348] ss:$16 sps:$4 sm:$0xff]  }
 0x489   : > { %v23371_v7 = vld [vmem:[#allocation2 + $0x2364] ss:$16 sps:$4 sm:$0xff]  }
 0x48b   : > { %9988 = vmatpush1.bf16.msra.mxu0 %v23229_v37  ;;  %10160 = vmatpush1.bf16.msra.mxu1 %v23232_v39  ;;  %v23304_v37 = vld [vmem:[#allocation2 + $0x2204] ss:$16 sps:$4 sm:$0xff]   ;;  %v23307_v39 = vld [vmem:[#allocation2 + $0x220c] ss:$16 sps:$4 sm:$0xff]  }
 0x48c   : > { %9989 = vmatprep.subr.bf16.mxu0 %v23237_v31  ;;  %10161 = vmatprep.subr.bf16.mxu1 %v23240_v41  ;;  %v8637_v31 = vor.u32 %v8636_v12, %v8632_v32  ;;  %v8641_v41 = vrot.slane %v8639_v60, 1  ;;  %v23372_v32 = vld [vmem:[#allocation2 + $0x2368] ss:$16 sps:$4 sm:$0xff]   ;;  %v23377_v12 = vld [vmem:[#allocation2 + $0x2384] ss:$16 sps:$4 sm:$0xff]  }
 0x48d   : > { %v23380_v60 = vld [vmem:[#allocation2 + $0x238c] ss:$16 sps:$4 sm:$0xff]  }
 0x48f   : > { %9990 = vmatpush1.bf16.msra.mxu0 %v23235_v1  ;;  %10162 = vmatpush1.bf16.msra.mxu1 %v23238_v54  ;;  %v23302_v1 = vld [vmem:[#allocation2 + $0x2200] ss:$16 sps:$4 sm:$0xff]   ;;  %v23305_v54 = vld [vmem:[#allocation2 + $0x2208] ss:$16 sps:$4 sm:$0xff]  }
 0x490   : > { %9991 = vmatprep.subr.bf16.mxu0 %v23243_v42  ;;  %10163 = vmatprep.subr.bf16.mxu1 %v23246_v25  ;;  %v8606_v42 = vsel %vm1030_vm0, %v8601_v35, %v8605_v62  ;;  %v23311_v25 = vld [vmem:[#allocation2 + $0x2224] ss:$16 sps:$4 sm:$0xff]   ;;  %v19877_v35 = vcombine.low %v25828_v8, %v25831_v58 }
 0x491   : > { %v25853_v62 = vld [vmem:[%s25764_s18 + $0x10] sm:$0xff] }
 0x492   : > { %v8622_v8 = vshll.u32 %v19877_v35, 16  ;;  %v25865_v58 = vld [vmem:[%s25764_s18 + $0x50] sm:$0x11] }
 0x493   : > { %9992 = vmatpush1.bf16.msra.mxu0 %v23241_v57  ;;  %10164 = vmatpush1.bf16.msra.mxu1 %v23244_v44  ;;  %v23314_v57 = vld [vmem:[#allocation2 + $0x222c] ss:$16 sps:$4 sm:$0xff]   ;;  %v8642_v44 = vsel %vm1030_vm0, %v8637_v31, %v8641_v41  ;;  %v23381_v41 = vld [vmem:[#allocation2 + $0x23a0] ss:$16 sps:$4 sm:$0xff]  }
 0x494   : > { %9993 = vmatprep.subr.bf16.mxu0 %v23249_v45  ;;  %10165 = vmatprep.subr.bf16.mxu1 %v23252_v46  ;;  %v23309_v45 = vld [vmem:[#allocation2 + $0x2220] ss:$16 sps:$4 sm:$0xff]   ;;  %v23312_v46 = vld [vmem:[#allocation2 + $0x2228] ss:$16 sps:$4 sm:$0xff]   ;;  %v23386_v31 = vld [vmem:[#allocation2 + $0x23ac] ss:$16 sps:$4 sm:$0xff]  }
 0x497   : > { %9994 = vmatpush1.bf16.msra.mxu0 %v23247_v2  ;;  %10166 = vmatpush1.bf16.msra.mxu1 %v23250_v3  ;;  %v23317_v2 = vld [vmem:[#allocation2 + $0x2244] ss:$16 sps:$4 sm:$0xff]   ;;  %v23320_v3 = vld [vmem:[#allocation2 + $0x224c] ss:$16 sps:$4 sm:$0xff]  }
 0x498   : > { %9995 = vmatprep.subr.bf16.mxu0 %v23255_v26  ;;  %10167 = vmatprep.subr.bf16.mxu1 %v23258_v47  ;;  %v23315_v26 = vld [vmem:[#allocation2 + $0x2240] ss:$16 sps:$4 sm:$0xff]   ;;  %v23318_v47 = vld [vmem:[#allocation2 + $0x2248] ss:$16 sps:$4 sm:$0xff]  }
 0x49b   : > { %9996 = vmatpush1.bf16.msra.mxu0 %v23253_v9  ;;  %10168 = vmatpush1.bf16.msra.mxu1 %v23256_v48  ;;  %v23323_v9 = vld [vmem:[#allocation2 + $0x2264] ss:$16 sps:$4 sm:$0xff]   ;;  %v23326_v48 = vld [vmem:[#allocation2 + $0x226c] ss:$16 sps:$4 sm:$0xff]  }
 0x49c   : > { %9997 = vmatprep.subr.bf16.mxu0 %v23261_v36  ;;  %10169 = vmatprep.subr.bf16.mxu1 %v23264_v13  ;;  %v23321_v36 = vld [vmem:[#allocation2 + $0x2260] ss:$16 sps:$4 sm:$0xff]   ;;  %v23324_v13 = vld [vmem:[#allocation2 + $0x2268] ss:$16 sps:$4 sm:$0xff]  }
 0x49f   : > { %9998 = vmatpush1.bf16.msra.mxu0 %v23259_v59  ;;  %10170 = vmatpush1.bf16.msra.mxu1 %v23262_v43  ;;  %v23329_v59 = vld [vmem:[#allocation2 + $0x2284] ss:$16 sps:$4 sm:$0xff]   ;;  %v23332_v43 = vld [vmem:[#allocation2 + $0x228c] ss:$16 sps:$4 sm:$0xff]  }
 0x4a0   : > { %9999 = vmatprep.subr.bf16.mxu0 %v23267_v63  ;;  %10171 = vmatprep.subr.bf16.mxu1 %v23270_v4  ;;  %v23327_v63 = vld [vmem:[#allocation2 + $0x2280] ss:$16 sps:$4 sm:$0xff]   ;;  %v23330_v4 = vld [vmem:[#allocation2 + $0x2288] ss:$16 sps:$4 sm:$0xff]  }
 0x4a3   : > { %10000 = vmatpush1.bf16.msra.mxu0 %v23265_v6  ;;  %10172 = vmatpush1.bf16.msra.mxu1 %v23268_v10  ;;  %v23335_v6 = vld [vmem:[#allocation2 + $0x22a4] ss:$16 sps:$4 sm:$0xff]   ;;  %v23338_v10 = vld [vmem:[#allocation2 + $0x22ac] ss:$16 sps:$4 sm:$0xff]  }
 0x4a4   : > { %10001 = vmatprep.subr.bf16.mxu0 %v23273_v40  ;;  %10173 = vmatprep.subr.bf16.mxu1 %v23276_v50  ;;  %v23333_v40 = vld [vmem:[#allocation2 + $0x22a0] ss:$16 sps:$4 sm:$0xff]   ;;  %v23336_v50 = vld [vmem:[#allocation2 + $0x22a8] ss:$16 sps:$4 sm:$0xff]  }
 0x4a7   : > { %10002 = vmatpush1.bf16.msra.mxu0 %v23271_v15  ;;  %10174 = vmatpush1.bf16.msra.mxu1 %v23274_v56  ;;  %v23341_v15 = vld [vmem:[#allocation2 + $0x22c4] ss:$16 sps:$4 sm:$0xff]   ;;  %v23344_v56 = vld [vmem:[#allocation2 + $0x22cc] ss:$16 sps:$4 sm:$0xff]  }
 0x4a8   : > { %10003 = vmatprep.subr.bf16.mxu0 %v23279_v61  ;;  %10175 = vmatprep.subr.bf16.mxu1 %v23282_v16  ;;  %v23339_v61 = vld [vmem:[#allocation2 + $0x22c0] ss:$16 sps:$4 sm:$0xff]   ;;  %v23342_v16 = vld [vmem:[#allocation2 + $0x22c8] ss:$16 sps:$4 sm:$0xff]  }
 0x4ab   : > { %10004 = vmatpush1.bf16.msra.mxu0 %v23277_v17  ;;  %10176 = vmatpush1.bf16.msra.mxu1 %v23280_v38  ;;  %v23347_v17 = vld [vmem:[#allocation2 + $0x22e4] ss:$16 sps:$4 sm:$0xff]   ;;  %v23350_v38 = vld [vmem:[#allocation2 + $0x22ec] ss:$16 sps:$4 sm:$0xff]  }
 0x4ac   : > { %10005 = vmatprep.subr.bf16.mxu0 %v23285_v49  ;;  %10177 = vmatprep.subr.bf16.mxu1 %v23288_v0  ;;  %v23348_v49 = vld [vmem:[#allocation2 + $0x22e8] ss:$16 sps:$4 sm:$0xff]   ;;  %v23353_v0 = vld [vmem:[#allocation2 + $0x2304] ss:$16 sps:$4 sm:$0xff]  }
 0x4af   : > { %10006 = vmatpush1.bf16.msra.mxu0 %v23283_v19  ;;  %10178 = vmatpush1.bf16.msra.mxu1 %v23286_v21  ;;  %v23356_v19 = vld [vmem:[#allocation2 + $0x230c] ss:$16 sps:$4 sm:$0xff]   ;;  %v23354_v21 = vld [vmem:[#allocation2 + $0x2308] ss:$16 sps:$4 sm:$0xff]  }
 0x4b0   : > { %10007 = vmatprep.subr.bf16.mxu0 %v23291_v23  ;;  %10179 = vmatprep.subr.bf16.mxu1 %v23294_v24  ;;  %v23362_v23 = vld [vmem:[#allocation2 + $0x232c] ss:$16 sps:$4 sm:$0xff]   ;;  %v23357_v24 = vld [vmem:[#allocation2 + $0x2320] ss:$16 sps:$4 sm:$0xff]  }
 0x4b3   : > { %10008 = vmatpush1.bf16.msra.mxu0 %v23289_v5  ;;  %10180 = vmatpush1.bf16.msra.mxu1 %v23292_v28  ;;  %v23360_v5 = vld [vmem:[#allocation2 + $0x2328] ss:$16 sps:$4 sm:$0xff]   ;;  %v23368_v28 = vld [vmem:[#allocation2 + $0x234c] ss:$16 sps:$4 sm:$0xff]  }
 0x4b4   : > { %10009 = vmatprep.subr.bf16.mxu0 %v23297_v53  ;;  %10181 = vmatprep.subr.bf16.mxu1 %v23300_v30  ;;  %v23374_v53 = vld [vmem:[#allocation2 + $0x236c] ss:$16 sps:$4 sm:$0xff]   ;;  %v23369_v30 = vld [vmem:[#allocation2 + $0x2360] ss:$16 sps:$4 sm:$0xff]  }
 0x4b7   : > { %10010 = vmatpush1.bf16.msra.mxu0 %v23295_v33  ;;  %10182 = vmatpush1.bf16.msra.mxu1 %v23298_v34  ;;  %v23375_v33 = vld [vmem:[#allocation2 + $0x2380] ss:$16 sps:$4 sm:$0xff]   ;;  %v23378_v34 = vld [vmem:[#allocation2 + $0x2388] ss:$16 sps:$4 sm:$0xff]  }
 0x4b8   : > { %10022 = vmatprep.subr.bf16.mxu0 %v23304_v37  ;;  %10194 = vmatprep.subr.bf16.mxu1 %v23307_v39  ;;  %v25856_v37 = vld [vmem:[%s25764_s18 + $0x30] sm:$0xff] }
 0x4b9   : > { %v23383_v39 = vld [vmem:[#allocation2 + $0x23a4] ss:$16 sps:$4 sm:$0xff]  }
 0x4ba   : > { %10012 = vmatmul.mubr.bf16.vlgmr.msra.gmra.mrb[0].mxu0 %v8606_v42  ;;  %10184 = vmatmul.mubr.bf16.vlgmr.msra.gmra.mrb[0].mxu1 %v8606_v42  ;;  %v25862_v42 = vcombine.low %v25840_v55, %v25840_v55 }
 0x4bb   : > { %10023 = vmatpush1.bf16.msra.mxu0 %v23302_v1  ;;  %10195 = vmatpush1.bf16.msra.mxu1 %v23305_v54  ;;  %v19880_v1 = vcombine.high %v25853_v62, %v25856_v37  ;;  %v23384_v54 = vld [vmem:[#allocation2 + $0x23a8] ss:$16 sps:$4 sm:$0xff]  }
 0x4bc   : > { %10024 = vmatprep.subr.bf16.mxu0 %v23311_v25  ;;  %10196 = vmatprep.subr.bf16.mxu1 %v23314_v57  ;;  %v23389_v25 = vld [vmem:[#allocation2 + $0x23c4] ss:$16 sps:$4 sm:$0xff]   ;;  %v23392_v57 = vld [vmem:[#allocation2 + $0x23cc] ss:$16 sps:$4 sm:$0xff]   ;;  %v8627_v55 = vshll.u32 %v25862_v42, 16 }
 0x4bd   : > { %10054 = vmatprep.mubr.bf16.mxu0 %v8642_v44  ;;  %10226 = vmatprep.mubr.bf16.mxu1 %v8642_v44  ;;  %v23387_v44 = vld [vmem:[#allocation2 + $0x23c0] ss:$16 sps:$4 sm:$0xff]  }
 0x4bf   : > { %10025 = vmatpush1.bf16.msra.mxu0 %v23309_v45  ;;  %10197 = vmatpush1.bf16.msra.mxu1 %v23312_v46  ;;  %v25869_v45 = vcombine.high %v25865_v58, %v25865_v58  ;;  %v8658_v46 = vshll.u32 %v19880_v1, 16 }
 0x4c0   : > { %10026 = vmatprep.subr.bf16.mxu0 %v23317_v2  ;;  %10198 = vmatprep.subr.bf16.mxu1 %v23320_v3  ;;  %v23390_v2 = vld [vmem:[#allocation2 + $0x23c8] ss:$16 sps:$4 sm:$0xff]   ;;  %v8620_v3 = vshrl.u32 %v19877_v35, 16  ;;  %v23445_v35 = vld [vmem:[#allocation2 + $0x24e4] ss:$16 sps:$4 sm:$0xff]  }
 0x4c3   : > { %10027 = vmatpush1.bf16.msra.mxu0 %v23315_v26  ;;  %10199 = vmatpush1.bf16.msra.mxu1 %v23318_v47  ;;  %v8624_v26 = vrot.slane %v8622_v8, 1  ;;  %v23395_v47 = vld [vmem:[#allocation2 + $0x23e4] ss:$16 sps:$4 sm:$0xff]   ;;  %v23449_v8 = vld [vmem:[#allocation2 + $0x2500] ss:$16 sps:$4 sm:$0xff]  }
 0x4c4   : > { %10028 = vmatprep.subr.bf16.mxu0 %v23323_v9  ;;  %10200 = vmatprep.subr.bf16.mxu1 %v23326_v48  ;;  %v23398_v9 = vld [vmem:[#allocation2 + $0x23ec] ss:$16 sps:$4 sm:$0xff]   ;;  %v8656_v48 = vshrl.u32 %v19880_v1, 16  ;;  %v23451_v1 = vld [vmem:[#allocation2 + $0x2504] ss:$16 sps:$4 sm:$0xff]  }
 0x4c7   : > { %10029 = vmatpush1.bf16.msra.mxu0 %v23321_v36  ;;  %10201 = vmatpush1.bf16.msra.mxu1 %v23324_v13  ;;  %v8660_v36 = vrot.slane %v8658_v46, 1  ;;  %v8663_v13 = vshll.u32 %v25869_v45, 16  ;;  %v23455_v46 = vld [vmem:[#allocation2 + $0x2520] ss:$16 sps:$4 sm:$0xff]  }
 0x4c8   : > { %10030 = vmatprep.subr.bf16.mxu0 %v23329_v59  ;;  %10202 = vmatprep.subr.bf16.mxu1 %v23332_v43  ;;  %v23393_v59 = vld [vmem:[#allocation2 + $0x23e0] ss:$16 sps:$4 sm:$0xff]   ;;  %v23396_v43 = vld [vmem:[#allocation2 + $0x23e8] ss:$16 sps:$4 sm:$0xff]  }
 0x4cb   : > { %10031 = vmatpush1.bf16.msra.mxu0 %v23327_v63  ;;  %10203 = vmatpush1.bf16.msra.mxu1 %v23330_v4  ;;  %v8625_v63 = vor.u32 %v8624_v26, %v8620_v3  ;;  %v8629_v4 = vrot.slane %v8627_v55, 1  ;;  %v23463_v3 = vld [vmem:[#allocation2 + $0x2544] ss:$16 sps:$4 sm:$0xff]   ;;  %v23466_v26 = vld [vmem:[#allocation2 + $0x254c] ss:$16 sps:$4 sm:$0xff]  }
 0x4cc   : > { %10032 = vmatprep.subr.bf16.mxu0 %v23335_v6  ;;  %10204 = vmatprep.subr.bf16.mxu1 %v23338_v10  ;;  %v23402_v6 = vld [vmem:[#allocation2 + $0x2404] ss:$16 sps:$4 sm:$0xff]   ;;  %v23405_v10 = vld [vmem:[#allocation2 + $0x240c] ss:$16 sps:$4 sm:$0xff]   ;;  %v23461_v55 = vld [vmem:[#allocation2 + $0x2540] ss:$16 sps:$4 sm:$0xff]  }
 0x4cf   : > { %10033 = vmatpush1.bf16.msra.mxu0 %v23333_v40  ;;  %10205 = vmatpush1.bf16.msra.mxu1 %v23336_v50  ;;  %v8661_v40 = vor.u32 %v8660_v36, %v8656_v48  ;;  %v8665_v50 = vrot.slane %v8663_v13, 1  ;;  %v23472_v48 = vld [vmem:[#allocation2 + $0x256c] ss:$16 sps:$4 sm:$0xff]   ;;  %v23467_v36 = vld [vmem:[#allocation2 + $0x2560] ss:$16 sps:$4 sm:$0xff]  }
 0x4d0   : > { %10034 = vmatprep.subr.bf16.mxu0 %v23341_v15  ;;  %10206 = vmatprep.subr.bf16.mxu1 %v23344_v56  ;;  %v23400_v15 = vld [vmem:[#allocation2 + $0x2400] ss:$16 sps:$4 sm:$0xff]   ;;  %v23403_v56 = vld [vmem:[#allocation2 + $0x2408] ss:$16 sps:$4 sm:$0xff]  }
 0x4d1   : > { %v23470_v13 = vld [vmem:[#allocation2 + $0x2568] ss:$16 sps:$4 sm:$0xff]  }
 0x4d3   : > { %10035 = vmatpush1.bf16.msra.mxu0 %v23339_v61  ;;  %10207 = vmatpush1.bf16.msra.mxu1 %v23342_v16  ;;  %v8630_v61 = vsel %vm1030_vm0, %v8625_v63, %v8629_v4  ;;  %v23409_v16 = vld [vmem:[#allocation2 + $0x2424] ss:$16 sps:$4 sm:$0xff]   ;;  %v23473_v63 = vld [vmem:[#allocation2 + $0x2580] ss:$16 sps:$4 sm:$0xff]   ;;  %v23476_v4 = vld [vmem:[#allocation2 + $0x2588] ss:$16 sps:$4 sm:$0xff]  }
 0x4d4   : > { %10036 = vmatprep.subr.bf16.mxu0 %v23347_v17  ;;  %10208 = vmatprep.subr.bf16.mxu1 %v23350_v38  ;;  %v23412_v17 = vld [vmem:[#allocation2 + $0x242c] ss:$16 sps:$4 sm:$0xff]   ;;  %v8666_v38 = vsel %vm1030_vm0, %v8661_v40, %v8665_v50  ;;  %v23481_v50 = vld [vmem:[#allocation2 + $0x25a4] ss:$16 sps:$4 sm:$0xff]  }
 0x4d5   : > { %v25881_v40 = vld [vmem:[%s25764_s18 + $0x38] sm:$0xff] }
 0x4d7   : > { %10037 = vmatpush1.bf16.msra.mxu0 %v23345_v18  ;;  %10209 = vmatpush1.bf16.msra.mxu1 %v23348_v49  ;;  %v23407_v18 = vld [vmem:[#allocation2 + $0x2420] ss:$16 sps:$4 sm:$0xff]   ;;  %v23410_v49 = vld [vmem:[#allocation2 + $0x2428] ss:$16 sps:$4 sm:$0xff]  }
 0x4d8   : > { %10038 = vmatprep.subr.bf16.mxu0 %v23353_v0  ;;  %10210 = vmatprep.subr.bf16.mxu1 %v23356_v19  ;;  %v23415_v0 = vld [vmem:[#allocation2 + $0x2444] ss:$16 sps:$4 sm:$0xff]   ;;  %v23418_v19 = vld [vmem:[#allocation2 + $0x244c] ss:$16 sps:$4 sm:$0xff]  }
 0x4db   : > { %10039 = vmatpush1.bf16.msra.mxu0 %v23351_v20  ;;  %10211 = vmatpush1.bf16.msra.mxu1 %v23354_v21  ;;  %v23413_v20 = vld [vmem:[#allocation2 + $0x2440] ss:$16 sps:$4 sm:$0xff]   ;;  %v23416_v21 = vld [vmem:[#allocation2 + $0x2448] ss:$16 sps:$4 sm:$0xff]  }
 0x4dc   : > { %10040 = vmatprep.subr.bf16.mxu0 %v23359_v51  ;;  %10212 = vmatprep.subr.bf16.mxu1 %v23362_v23  ;;  %v23421_v51 = vld [vmem:[#allocation2 + $0x2464] ss:$16 sps:$4 sm:$0xff]   ;;  %v23424_v23 = vld [vmem:[#allocation2 + $0x246c] ss:$16 sps:$4 sm:$0xff]  }
 0x4df   : > { %10041 = vmatpush1.bf16.msra.mxu0 %v23357_v24  ;;  %10213 = vmatpush1.bf16.msra.mxu1 %v23360_v5  ;;  %v23419_v24 = vld [vmem:[#allocation2 + $0x2460] ss:$16 sps:$4 sm:$0xff]   ;;  %v23422_v5 = vld [vmem:[#allocation2 + $0x2468] ss:$16 sps:$4 sm:$0xff]  }
 0x4e0   : > { %10042 = vmatprep.subr.bf16.mxu0 %v23365_v27  ;;  %10214 = vmatprep.subr.bf16.mxu1 %v23368_v28  ;;  %v23427_v27 = vld [vmem:[#allocation2 + $0x2484] ss:$16 sps:$4 sm:$0xff]   ;;  %v23430_v28 = vld [vmem:[#allocation2 + $0x248c] ss:$16 sps:$4 sm:$0xff]  }
 0x4e3   : > { %10043 = vmatpush1.bf16.msra.mxu0 %v23363_v29  ;;  %10215 = vmatpush1.bf16.msra.mxu1 %v23366_v11  ;;  %v23425_v29 = vld [vmem:[#allocation2 + $0x2480] ss:$16 sps:$4 sm:$0xff]   ;;  %v23428_v11 = vld [vmem:[#allocation2 + $0x2488] ss:$16 sps:$4 sm:$0xff]  }
 0x4e4   : > { %10044 = vmatprep.subr.bf16.mxu0 %v23371_v7  ;;  %10216 = vmatprep.subr.bf16.mxu1 %v23374_v53  ;;  %v23433_v7 = vld [vmem:[#allocation2 + $0x24a4] ss:$16 sps:$4 sm:$0xff]   ;;  %v23436_v53 = vld [vmem:[#allocation2 + $0x24ac] ss:$16 sps:$4 sm:$0xff]  }
 0x4e7   : > { %10045 = vmatpush1.bf16.msra.mxu0 %v23369_v30  ;;  %10217 = vmatpush1.bf16.msra.mxu1 %v23372_v32  ;;  %v23431_v30 = vld [vmem:[#allocation2 + $0x24a0] ss:$16 sps:$4 sm:$0xff]   ;;  %v23434_v32 = vld [vmem:[#allocation2 + $0x24a8] ss:$16 sps:$4 sm:$0xff]  }
 0x4e8   : > { %10046 = vmatprep.subr.bf16.mxu0 %v23377_v12  ;;  %10218 = vmatprep.subr.bf16.mxu1 %v23380_v60  ;;  %v23439_v12 = vld [vmem:[#allocation2 + $0x24c4] ss:$16 sps:$4 sm:$0xff]   ;;  %v23442_v60 = vld [vmem:[#allocation2 + $0x24cc] ss:$16 sps:$4 sm:$0xff]  }
 0x4eb   : > { %10047 = vmatpush1.bf16.msra.mxu0 %v23375_v33  ;;  %10219 = vmatpush1.bf16.msra.mxu1 %v23378_v34  ;;  %v23437_v33 = vld [vmem:[#allocation2 + $0x24c0] ss:$16 sps:$4 sm:$0xff]   ;;  %v23440_v34 = vld [vmem:[#allocation2 + $0x24c8] ss:$16 sps:$4 sm:$0xff]  }
 0x4ec   : > { %10048 = vmatprep.subr.bf16.mxu0 %v23383_v39  ;;  %10220 = vmatprep.subr.bf16.mxu1 %v23386_v31  ;;  %v23448_v39 = vld [vmem:[#allocation2 + $0x24ec] ss:$16 sps:$4 sm:$0xff]   ;;  %v23443_v31 = vld [vmem:[#allocation2 + $0x24e0] ss:$16 sps:$4 sm:$0xff]  }
 0x4ef   : > { %10049 = vmatpush1.bf16.msra.mxu0 %v23381_v41  ;;  %10221 = vmatpush1.bf16.msra.mxu1 %v23384_v54  ;;  %v23446_v41 = vld [vmem:[#allocation2 + $0x24e8] ss:$16 sps:$4 sm:$0xff]   ;;  %v23454_v54 = vld [vmem:[#allocation2 + $0x250c] ss:$16 sps:$4 sm:$0xff]  }
 0x4f0   : > { %10050 = vmatprep.subr.bf16.mxu0 %v23389_v25  ;;  %10222 = vmatprep.subr.bf16.mxu1 %v23392_v57  ;;  %v23452_v25 = vld [vmem:[#allocation2 + $0x2508] ss:$16 sps:$4 sm:$0xff]   ;;  %v23457_v57 = vld [vmem:[#allocation2 + $0x2524] ss:$16 sps:$4 sm:$0xff]  }
 0x4f3   : > { %10051 = vmatpush1.bf16.msra.mxu0 %v23387_v44  ;;  %10223 = vmatpush1.bf16.msra.mxu1 %v23390_v2  ;;  %v23460_v44 = vld [vmem:[#allocation2 + $0x252c] ss:$16 sps:$4 sm:$0xff]   ;;  %v23458_v2 = vld [vmem:[#allocation2 + $0x2528] ss:$16 sps:$4 sm:$0xff]  }
 0x4f4   : > { %10052 = vmatprep.subr.bf16.mxu0 %v23395_v47  ;;  %10224 = vmatprep.subr.bf16.mxu1 %v23398_v9  ;;  %v23464_v47 = vld [vmem:[#allocation2 + $0x2548] ss:$16 sps:$4 sm:$0xff]   ;;  %v23469_v9 = vld [vmem:[#allocation2 + $0x2564] ss:$16 sps:$4 sm:$0xff]  }
 0x4f7   : > { %10053 = vmatpush1.bf16.msra.mxu0 %v23393_v59  ;;  %10225 = vmatpush1.bf16.msra.mxu1 %v23396_v43  ;;  %v23475_v59 = vld [vmem:[#allocation2 + $0x2584] ss:$16 sps:$4 sm:$0xff]   ;;  %v23478_v43 = vld [vmem:[#allocation2 + $0x258c] ss:$16 sps:$4 sm:$0xff]  }
 0x4f8   : > { %10065 = vmatprep.subr.bf16.mxu0 %v23402_v6  ;;  %10237 = vmatprep.subr.bf16.mxu1 %v23405_v10  ;;  %v19879_v6 = vcombine.low %v25853_v62, %v25856_v37  ;;  %v25878_v10 = vld [vmem:[%s25764_s18 + $0x18] sm:$0xff] }
 0x4f9   : > { %v25890_v37 = vld [vmem:[%s25764_s18 + $0x58] sm:$0x11] }
 0x4fa   : > { %10055 = vmatmul.mubr.bf16.vlgmr.msra.gmra.mrb[0].mxu0 %v8630_v61  ;;  %10227 = vmatmul.mubr.bf16.vlgmr.msra.gmra.mrb[0].mxu1 %v8630_v61  ;;  %v19882_v61 = vcombine.high %v25878_v10, %v25881_v40  ;;  %v8646_v62 = vshll.u32 %v19879_v6, 16 }
 0x4fb   : > { %10066 = vmatpush1.bf16.msra.mxu0 %v23400_v15  ;;  %10238 = vmatpush1.bf16.msra.mxu1 %v23403_v56  ;;  %v23484_v15 = vld [vmem:[#allocation2 + $0x25ac] ss:$16 sps:$4 sm:$0xff]   ;;  %v23479_v56 = vld [vmem:[#allocation2 + $0x25a0] ss:$16 sps:$4 sm:$0xff]  }
 0x4fc   : > { %10067 = vmatprep.subr.bf16.mxu0 %v23409_v16  ;;  %10239 = vmatprep.subr.bf16.mxu1 %v23412_v17  ;;  %v23482_v16 = vld [vmem:[#allocation2 + $0x25a8] ss:$16 sps:$4 sm:$0xff]   ;;  %v25887_v17 = vcombine.low %v25865_v58, %v25865_v58 }
 0x4fd   : > { %10097 = vmatprep.mubr.bf16.mxu0 %v8666_v38  ;;  %10269 = vmatprep.mubr.bf16.mxu1 %v8666_v38  ;;  %v23487_v38 = vld [vmem:[#allocation2 + $0x25c4] ss:$16 sps:$4 sm:$0xff]  }
 0x4fe   : > { %v8651_v58 = vshll.u32 %v25887_v17, 16 }
 0x4ff   : > { %10068 = vmatpush1.bf16.msra.mxu0 %v23407_v18  ;;  %10240 = vmatpush1.bf16.msra.mxu1 %v23410_v49  ;;  %v23490_v18 = vld [vmem:[#allocation2 + $0x25cc] ss:$16 sps:$4 sm:$0xff]   ;;  %v23485_v49 = vld [vmem:[#allocation2 + $0x25c0] ss:$16 sps:$4 sm:$0xff]  }
 0x500   : > { %10069 = vmatprep.subr.bf16.mxu0 %v23415_v0  ;;  %10241 = vmatprep.subr.bf16.mxu1 %v23418_v19  ;;  %v25894_v0 = vcombine.high %v25890_v37, %v25890_v37  ;;  %v8682_v19 = vshll.u32 %v19882_v61, 16 }
 0x503   : > { %10070 = vmatpush1.bf16.msra.mxu0 %v23413_v20  ;;  %10242 = vmatpush1.bf16.msra.mxu1 %v23416_v21  ;;  %v23488_v20 = vld [vmem:[#allocation2 + $0x25c8] ss:$16 sps:$4 sm:$0xff]   ;;  %v8644_v21 = vshrl.u32 %v19879_v6, 16  ;;  %v23535_v6 = vld [vmem:[#allocation2 + $0x26c0] ss:$16 sps:$4 sm:$0xff]  }
 0x504   : > { %10071 = vmatprep.subr.bf16.mxu0 %v23421_v51  ;;  %10243 = vmatprep.subr.bf16.mxu1 %v23424_v23  ;;  %v8648_v51 = vrot.slane %v8646_v62, 1  ;;  %v23493_v23 = vld [vmem:[#allocation2 + $0x25e4] ss:$16 sps:$4 sm:$0xff]  }
 0x505   : > { %v23549_v62 = vld [vmem:[#allocation2 + $0x2704] ss:$16 sps:$4 sm:$0xff]  }
 0x507   : > { %10072 = vmatpush1.bf16.msra.mxu0 %v23419_v24  ;;  %10244 = vmatpush1.bf16.msra.mxu1 %v23422_v5  ;;  %v23496_v24 = vld [vmem:[#allocation2 + $0x25ec] ss:$16 sps:$4 sm:$0xff]   ;;  %v8680_v5 = vshrl.u32 %v19882_v61, 16  ;;  %v23541_v61 = vld [vmem:[#allocation2 + $0x26e0] ss:$16 sps:$4 sm:$0xff]  }
 0x508   : > { %10073 = vmatprep.subr.bf16.mxu0 %v23427_v27  ;;  %10245 = vmatprep.subr.bf16.mxu1 %v23430_v28  ;;  %v8684_v27 = vrot.slane %v8682_v19, 1  ;;  %v8687_v28 = vshll.u32 %v25894_v0, 16  ;;  %v23555_v19 = vld [vmem:[#allocation2 + $0x2724] ss:$16 sps:$4 sm:$0xff]  }
 0x50b   : > { %10074 = vmatpush1.bf16.msra.mxu0 %v23425_v29  ;;  %10246 = vmatpush1.bf16.msra.mxu1 %v23428_v11  ;;  %v23491_v29 = vld [vmem:[#allocation2 + $0x25e0] ss:$16 sps:$4 sm:$0xff]   ;;  %v23494_v11 = vld [vmem:[#allocation2 + $0x25e8] ss:$16 sps:$4 sm:$0xff]  }
 0x50c   : > { %10075 = vmatprep.subr.bf16.mxu0 %v23433_v7  ;;  %10247 = vmatprep.subr.bf16.mxu1 %v23436_v53  ;;  %v8649_v7 = vor.u32 %v8648_v51, %v8644_v21  ;;  %v8653_v53 = vrot.slane %v8651_v58, 1  ;;  %v23553_v21 = vld [vmem:[#allocation2 + $0x2720] ss:$16 sps:$4 sm:$0xff]   ;;  %v23556_v51 = vld [vmem:[#allocation2 + $0x2728] ss:$16 sps:$4 sm:$0xff]  }
 0x50d   : > { %v23561_v58 = vld [vmem:[#allocation2 + $0x2744] ss:$16 sps:$4 sm:$0xff]  }
 0x50f   : > { %10076 = vmatpush1.bf16.msra.mxu0 %v23431_v30  ;;  %10248 = vmatpush1.bf16.msra.mxu1 %v23434_v32  ;;  %v23500_v30 = vld [vmem:[#allocation2 + $0x2604] ss:$16 sps:$4 sm:$0xff]   ;;  %v23503_v32 = vld [vmem:[#allocation2 + $0x260c] ss:$16 sps:$4 sm:$0xff]  }
 0x510   : > { %10077 = vmatprep.subr.bf16.mxu0 %v23439_v12  ;;  %10249 = vmatprep.subr.bf16.mxu1 %v23442_v60  ;;  %v8685_v12 = vor.u32 %v8684_v27, %v8680_v5  ;;  %v8689_v60 = vrot.slane %v8687_v28, 1  ;;  %v23562_v5 = vld [vmem:[#allocation2 + $0x2748] ss:$16 sps:$4 sm:$0xff]   ;;  %v23567_v27 = vld [vmem:[#allocation2 + $0x2764] ss:$16 sps:$4 sm:$0xff]  }
 0x511   : > { %v23570_v28 = vld [vmem:[#allocation2 + $0x276c] ss:$16 sps:$4 sm:$0xff]  }
 0x513   : > { %10078 = vmatpush1.bf16.msra.mxu0 %v23437_v33  ;;  %10250 = vmatpush1.bf16.msra.mxu1 %v23440_v34  ;;  %v23498_v33 = vld [vmem:[#allocation2 + $0x2600] ss:$16 sps:$4 sm:$0xff]   ;;  %v23501_v34 = vld [vmem:[#allocation2 + $0x2608] ss:$16 sps:$4 sm:$0xff]  }
 0x514   : > { %10079 = vmatprep.subr.bf16.mxu0 %v23445_v35  ;;  %10251 = vmatprep.subr.bf16.mxu1 %v23448_v39  ;;  %v8654_v35 = vsel %vm1030_vm0, %v8649_v7, %v8653_v53  ;;  %v23507_v39 = vld [vmem:[#allocation2 + $0x2624] ss:$16 sps:$4 sm:$0xff]   ;;  %v23576_v53 = vld [vmem:[#allocation2 + $0x278c] ss:$16 sps:$4 sm:$0xff]  }
 0x515   : > { %v23573_v7 = vld [vmem:[#allocation2 + $0x2784] ss:$16 sps:$4 sm:$0xff]  }
 0x517   : > { %10080 = vmatpush1.bf16.msra.mxu0 %v23443_v31  ;;  %10252 = vmatpush1.bf16.msra.mxu1 %v23446_v41  ;;  %v23510_v31 = vld [vmem:[#allocation2 + $0x262c] ss:$16 sps:$4 sm:$0xff]   ;;  %v8690_v41 = vsel %vm1030_vm0, %v8685_v12, %v8689_v60  ;;  %v19881_v12 = vcombine.low %v25878_v10, %v25881_v40  ;;  %v23579_v60 = vld [vmem:[#allocation2 + $0x27a4] ss:$16 sps:$4 sm:$0xff]   ;;  %v23583_v10 = vld [vmem:[#allocation2 + $0x27c0] ss:$16 sps:$4 sm:$0xff]  }
 0x518   : > { %10081 = vmatprep.subr.bf16.mxu0 %v23451_v1  ;;  %10253 = vmatprep.subr.bf16.mxu1 %v23454_v54  ;;  %v23505_v1 = vld [vmem:[#allocation2 + $0x2620] ss:$16 sps:$4 sm:$0xff]   ;;  %v23508_v54 = vld [vmem:[#allocation2 + $0x2628] ss:$16 sps:$4 sm:$0xff]  }
 0x519   : > { %v23586_v40 = vld [vmem:[#allocation2 + $0x27c8] ss:$16 sps:$4 sm:$0xff]  }
 0x51b   : > { %10082 = vmatpush1.bf16.msra.mxu0 %v23449_v8  ;;  %10254 = vmatpush1.bf16.msra.mxu1 %v23452_v25  ;;  %v23513_v8 = vld [vmem:[#allocation2 + $0x2644] ss:$16 sps:$4 sm:$0xff]   ;;  %v23516_v25 = vld [vmem:[#allocation2 + $0x264c] ss:$16 sps:$4 sm:$0xff]  }
 0x51c   : > { %10083 = vmatprep.subr.bf16.mxu0 %v23457_v57  ;;  %10255 = vmatprep.subr.bf16.mxu1 %v23460_v44  ;;  %v23511_v57 = vld [vmem:[#allocation2 + $0x2640] ss:$16 sps:$4 sm:$0xff]   ;;  %v23514_v44 = vld [vmem:[#allocation2 + $0x2648] ss:$16 sps:$4 sm:$0xff]  }
 0x51f   : > { %10084 = vmatpush1.bf16.msra.mxu0 %v23455_v46  ;;  %10256 = vmatpush1.bf16.msra.mxu1 %v23458_v2  ;;  %v23519_v46 = vld [vmem:[#allocation2 + $0x2664] ss:$16 sps:$4 sm:$0xff]   ;;  %v23522_v2 = vld [vmem:[#allocation2 + $0x266c] ss:$16 sps:$4 sm:$0xff]  }
 0x520   : > { %10085 = vmatprep.subr.bf16.mxu0 %v23463_v3  ;;  %10257 = vmatprep.subr.bf16.mxu1 %v23466_v26  ;;  %v23517_v3 = vld [vmem:[#allocation2 + $0x2660] ss:$16 sps:$4 sm:$0xff]   ;;  %v23520_v26 = vld [vmem:[#allocation2 + $0x2668] ss:$16 sps:$4 sm:$0xff]  }
 0x523   : > { %10086 = vmatpush1.bf16.msra.mxu0 %v23461_v55  ;;  %10258 = vmatpush1.bf16.msra.mxu1 %v23464_v47  ;;  %v23525_v55 = vld [vmem:[#allocation2 + $0x2684] ss:$16 sps:$4 sm:$0xff]   ;;  %v23528_v47 = vld [vmem:[#allocation2 + $0x268c] ss:$16 sps:$4 sm:$0xff]  }
 0x524   : > { %10087 = vmatprep.subr.bf16.mxu0 %v23469_v9  ;;  %10259 = vmatprep.subr.bf16.mxu1 %v23472_v48  ;;  %v23523_v9 = vld [vmem:[#allocation2 + $0x2680] ss:$16 sps:$4 sm:$0xff]   ;;  %v23526_v48 = vld [vmem:[#allocation2 + $0x2688] ss:$16 sps:$4 sm:$0xff]  }
 0x527   : > { %10088 = vmatpush1.bf16.msra.mxu0 %v23467_v36  ;;  %10260 = vmatpush1.bf16.msra.mxu1 %v23470_v13  ;;  %v23531_v36 = vld [vmem:[#allocation2 + $0x26a4] ss:$16 sps:$4 sm:$0xff]   ;;  %v23534_v13 = vld [vmem:[#allocation2 + $0x26ac] ss:$16 sps:$4 sm:$0xff]  }
 0x528   : > { %10089 = vmatprep.subr.bf16.mxu0 %v23475_v59  ;;  %10261 = vmatprep.subr.bf16.mxu1 %v23478_v43  ;;  %v23529_v59 = vld [vmem:[#allocation2 + $0x26a0] ss:$16 sps:$4 sm:$0xff]   ;;  %v23532_v43 = vld [vmem:[#allocation2 + $0x26a8] ss:$16 sps:$4 sm:$0xff]  }
 0x52b   : > { %10090 = vmatpush1.bf16.msra.mxu0 %v23473_v63  ;;  %10262 = vmatpush1.bf16.msra.mxu1 %v23476_v4  ;;  %v23537_v63 = vld [vmem:[#allocation2 + $0x26c4] ss:$16 sps:$4 sm:$0xff]   ;;  %v23540_v4 = vld [vmem:[#allocation2 + $0x26cc] ss:$16 sps:$4 sm:$0xff]  }
 0x52c   : > { %10091 = vmatprep.subr.bf16.mxu0 %v23481_v50  ;;  %10263 = vmatprep.subr.bf16.mxu1 %v23484_v15  ;;  %v23538_v50 = vld [vmem:[#allocation2 + $0x26c8] ss:$16 sps:$4 sm:$0xff]   ;;  %v23543_v15 = vld [vmem:[#allocation2 + $0x26e4] ss:$16 sps:$4 sm:$0xff]  }
 0x52f   : > { %10092 = vmatpush1.bf16.msra.mxu0 %v23479_v56  ;;  %10264 = vmatpush1.bf16.msra.mxu1 %v23482_v16  ;;  %v23546_v56 = vld [vmem:[#allocation2 + $0x26ec] ss:$16 sps:$4 sm:$0xff]   ;;  %v23544_v16 = vld [vmem:[#allocation2 + $0x26e8] ss:$16 sps:$4 sm:$0xff]  }
 0x530   : > { %10093 = vmatprep.subr.bf16.mxu0 %v23487_v38  ;;  %10265 = vmatprep.subr.bf16.mxu1 %v23490_v18  ;;  %v23552_v38 = vld [vmem:[#allocation2 + $0x270c] ss:$16 sps:$4 sm:$0xff]   ;;  %v23547_v18 = vld [vmem:[#allocation2 + $0x2700] ss:$16 sps:$4 sm:$0xff]  }
 0x533   : > { %10094 = vmatpush1.bf16.msra.mxu0 %v23485_v49  ;;  %10266 = vmatpush1.bf16.msra.mxu1 %v23488_v20  ;;  %v23550_v49 = vld [vmem:[#allocation2 + $0x2708] ss:$16 sps:$4 sm:$0xff]   ;;  %v23558_v20 = vld [vmem:[#allocation2 + $0x272c] ss:$16 sps:$4 sm:$0xff]  }
 0x534   : > { %10095 = vmatprep.subr.bf16.mxu0 %v23493_v23  ;;  %10267 = vmatprep.subr.bf16.mxu1 %v23496_v24  ;;  %v23564_v23 = vld [vmem:[#allocation2 + $0x274c] ss:$16 sps:$4 sm:$0xff]   ;;  %v23559_v24 = vld [vmem:[#allocation2 + $0x2740] ss:$16 sps:$4 sm:$0xff]  }
 0x537   : > { %10096 = vmatpush1.bf16.msra.mxu0 %v23491_v29  ;;  %10268 = vmatpush1.bf16.msra.mxu1 %v23494_v11  ;;  %v23565_v29 = vld [vmem:[#allocation2 + $0x2760] ss:$16 sps:$4 sm:$0xff]   ;;  %v23568_v11 = vld [vmem:[#allocation2 + $0x2768] ss:$16 sps:$4 sm:$0xff]  }
 0x538   : > { %10108 = vmatprep.subr.bf16.mxu0 %v23500_v30  ;;  %10280 = vmatprep.subr.bf16.mxu1 %v23503_v32  ;;  %v23571_v30 = vld [vmem:[#allocation2 + $0x2780] ss:$16 sps:$4 sm:$0xff]   ;;  %v23574_v32 = vld [vmem:[#allocation2 + $0x2788] ss:$16 sps:$4 sm:$0xff]  }
 0x53a   : > { %10098 = vmatmul.mubr.bf16.vlgmr.msra.gmra.mrb[0].mxu0 %v8654_v35  ;;  %10270 = vmatmul.mubr.bf16.vlgmr.msra.gmra.mrb[0].mxu1 %v8654_v35  ;;  %v23580_v35 = vld [vmem:[#allocation2 + $0x27a8] ss:$16 sps:$4 sm:$0xff]  }
 0x53b   : > { %10109 = vmatpush1.bf16.msra.mxu0 %v23498_v33  ;;  %10281 = vmatpush1.bf16.msra.mxu1 %v23501_v34  ;;  %v23582_v33 = vld [vmem:[#allocation2 + $0x27ac] ss:$16 sps:$4 sm:$0xff]   ;;  %v23577_v34 = vld [vmem:[#allocation2 + $0x27a0] ss:$16 sps:$4 sm:$0xff]  }
 0x53c   : > { %10110 = vmatprep.subr.bf16.mxu0 %v23507_v39  ;;  %10282 = vmatprep.subr.bf16.mxu1 %v23510_v31  ;;  %v23585_v39 = vld [vmem:[#allocation2 + $0x27c4] ss:$16 sps:$4 sm:$0xff]   ;;  %v25904_v31 = vcombine.low %v25890_v37, %v25890_v37  ;;  %v23594_v37 = vld [vmem:[#allocation2 + $0x27ec] ss:$16 sps:$4 sm:$0xff]  }
 0x53d   : > { %10140 = vmatprep.mubr.bf16.mxu0 %v8690_v41  ;;  %10312 = vmatprep.mubr.bf16.mxu1 %v8690_v41  ;;  %v8670_v41 = vshll.u32 %v19881_v12, 16 }
 0x53f   : > { %10111 = vmatpush1.bf16.msra.mxu0 %v23505_v1  ;;  %10283 = vmatpush1.bf16.msra.mxu1 %v23508_v54  ;;  %v23588_v1 = vld [vmem:[#allocation2 + $0x27cc] ss:$16 sps:$4 sm:$0xff]   ;;  %v25907_v54 = vld [vmem:[%s25764_s18] sm:$0xee] }
 0x540   : > { %10112 = vmatprep.subr.bf16.mxu0 %v23513_v8  ;;  %10284 = vmatprep.subr.bf16.mxu1 %v23516_v25  ;;  %v8668_v8 = vshrl.u32 %v19881_v12, 16  ;;  %v8672_v25 = vrot.slane %v8670_v41, 1  ;;  %v23642_v12 = vld [vmem:[#allocation2 + $0x28e8] ss:$16 sps:$4 sm:$0xff]   ;;  %v23656_v41 = vld [vmem:[#allocation2 + $0x292c] ss:$16 sps:$4 sm:$0xff]  }
 0x543   : > { %10113 = vmatpush1.bf16.msra.mxu0 %v23511_v57  ;;  %10285 = vmatpush1.bf16.msra.mxu1 %v23514_v44  ;;  %v8675_v57 = vshll.u32 %v25904_v31, 16  ;;  %v23591_v44 = vld [vmem:[#allocation2 + $0x27e4] ss:$16 sps:$4 sm:$0xff]  }
 0x544   : > { %10114 = vmatprep.subr.bf16.mxu0 %v23519_v46  ;;  %10286 = vmatprep.subr.bf16.mxu1 %v23522_v2  ;;  %v25911_v46 = vld [vmem:[%s25764_s18 + $0x20] sm:$0xff] }
 0x545   : > { %v20148_v2 = vcombine.high %v25907_v54, %v25911_v46 }
 0x547   : > { %10115 = vmatpush1.bf16.msra.mxu0 %v23517_v3  ;;  %10287 = vmatpush1.bf16.msra.mxu1 %v23520_v26  ;;  %v23589_v3 = vld [vmem:[#allocation2 + $0x27e0] ss:$16 sps:$4 sm:$0xff]   ;;  %v23592_v26 = vld [vmem:[#allocation2 + $0x27e8] ss:$16 sps:$4 sm:$0xff]  }
 0x548   : > { %10116 = vmatprep.subr.bf16.mxu0 %v23525_v55  ;;  %10288 = vmatprep.subr.bf16.mxu1 %v23528_v47  ;;  %v8673_v55 = vor.u32 %v8672_v25, %v8668_v8  ;;  %v8677_v47 = vrot.slane %v8675_v57, 1  ;;  %v23662_v8 = vld [vmem:[#allocation2 + $0x294c] ss:$16 sps:$4 sm:$0xff]   ;;  %v23657_v25 = vld [vmem:[#allocation2 + $0x2940] ss:$16 sps:$4 sm:$0xff]  }
 0x549   : > { %v23660_v57 = vld [vmem:[#allocation2 + $0x2948] ss:$16 sps:$4 sm:$0xff]  }
 0x54b   : > { %10117 = vmatpush1.bf16.msra.mxu0 %v23523_v9  ;;  %10289 = vmatpush1.bf16.msra.mxu1 %v23526_v48  ;;  %v23598_v9 = vld [vmem:[#allocation2 + $0x2804] ss:$16 sps:$4 sm:$0xff]   ;;  %v23601_v48 = vld [vmem:[#allocation2 + $0x280c] ss:$16 sps:$4 sm:$0xff]  }
 0x54c   : > { %10118 = vmatprep.subr.bf16.mxu0 %v23531_v36  ;;  %10290 = vmatprep.subr.bf16.mxu1 %v23534_v13  ;;  %v10615_v36 = vrot.slane %v20148_v2, 1  ;;  %v10616_v13 = vrot.slane %v25819_v14, 1  ;;  %v23611_v14 = vld [vmem:[#allocation2 + $0x2844] ss:$16 sps:$4 sm:$0xff]   ;;  %v23663_v2 = vld [vmem:[#allocation2 + $0x2960] ss:$16 sps:$4 sm:$0xff]  }
 0x54f   : > { %10119 = vmatpush1.bf16.msra.mxu0 %v23529_v59  ;;  %10291 = vmatpush1.bf16.msra.mxu1 %v23532_v43  ;;  %v23596_v59 = vld [vmem:[#allocation2 + $0x2800] ss:$16 sps:$4 sm:$0xff]   ;;  %v23599_v43 = vld [vmem:[#allocation2 + $0x2808] ss:$16 sps:$4 sm:$0xff]  }
 0x550   : > { %10120 = vmatprep.subr.bf16.mxu0 %v23537_v63  ;;  %10292 = vmatprep.subr.bf16.mxu1 %v23540_v4  ;;  %v8678_v63 = vsel %vm1030_vm0, %v8673_v55, %v8677_v47  ;;  %v23605_v4 = vld [vmem:[#allocation2 + $0x2824] ss:$16 sps:$4 sm:$0xff]   ;;  %v23674_v55 = vld [vmem:[#allocation2 + $0x298c] ss:$16 sps:$4 sm:$0xff]   ;;  %v23669_v47 = vld [vmem:[#allocation2 + $0x2980] ss:$16 sps:$4 sm:$0xff]  }
 0x553   : > { %10121 = vmatpush1.bf16.msra.mxu0 %v23535_v6  ;;  %10293 = vmatpush1.bf16.msra.mxu1 %v23538_v50  ;;  %v23608_v6 = vld [vmem:[#allocation2 + $0x282c] ss:$16 sps:$4 sm:$0xff]   ;;  %v10617_v50 = vsel %vm4672_vm1, %v10615_v36, %v10616_v13  ;;  %v23675_v13 = vld [vmem:[#allocation2 + $0x29a0] ss:$16 sps:$4 sm:$0xff]  }
 0x554   : > { %10122 = vmatprep.subr.bf16.mxu0 %v23543_v15  ;;  %10294 = vmatprep.subr.bf16.mxu1 %v23546_v56  ;;  %v23603_v15 = vld [vmem:[#allocation2 + $0x2820] ss:$16 sps:$4 sm:$0xff]   ;;  %v23606_v56 = vld [vmem:[#allocation2 + $0x2828] ss:$16 sps:$4 sm:$0xff]   ;;  %v23680_v36 = vld [vmem:[#allocation2 + $0x29ac] ss:$16 sps:$4 sm:$0xff]  }
 0x557   : > { %10123 = vmatpush1.bf16.msra.mxu0 %v23541_v61  ;;  %10295 = vmatpush1.bf16.msra.mxu1 %v23544_v16  ;;  %v23614_v61 = vld [vmem:[#allocation2 + $0x284c] ss:$16 sps:$4 sm:$0xff]   ;;  %v23609_v16 = vld [vmem:[#allocation2 + $0x2840] ss:$16 sps:$4 sm:$0xff]  }
 0x558   : > { %10124 = vmatprep.subr.bf16.mxu0 %v23549_v62  ;;  %10296 = vmatprep.subr.bf16.mxu1 %v23552_v38  ;;  %v23612_v62 = vld [vmem:[#allocation2 + $0x2848] ss:$16 sps:$4 sm:$0xff]   ;;  %v23617_v38 = vld [vmem:[#allocation2 + $0x2864] ss:$16 sps:$4 sm:$0xff]  }
 0x55b   : > { %10125 = vmatpush1.bf16.msra.mxu0 %v23547_v18  ;;  %10297 = vmatpush1.bf16.msra.mxu1 %v23550_v49  ;;  %v23620_v18 = vld [vmem:[#allocation2 + $0x286c] ss:$16 sps:$4 sm:$0xff]   ;;  %v23615_v49 = vld [vmem:[#allocation2 + $0x2860] ss:$16 sps:$4 sm:$0xff]  }
 0x55c   : > { %10126 = vmatprep.subr.bf16.mxu0 %v23555_v19  ;;  %10298 = vmatprep.subr.bf16.mxu1 %v23558_v20  ;;  %v23618_v19 = vld [vmem:[#allocation2 + $0x2868] ss:$16 sps:$4 sm:$0xff]   ;;  %v23623_v20 = vld [vmem:[#allocation2 + $0x2884] ss:$16 sps:$4 sm:$0xff]  }
 0x55f   : > { %10127 = vmatpush1.bf16.msra.mxu0 %v23553_v21  ;;  %10299 = vmatpush1.bf16.msra.mxu1 %v23556_v51  ;;  %v23626_v21 = vld [vmem:[#allocation2 + $0x288c] ss:$16 sps:$4 sm:$0xff]   ;;  %v23621_v51 = vld [vmem:[#allocation2 + $0x2880] ss:$16 sps:$4 sm:$0xff]  }
 0x560   : > { %10128 = vmatprep.subr.bf16.mxu0 %v23561_v58  ;;  %10300 = vmatprep.subr.bf16.mxu1 %v23564_v23  ;;  %v23624_v58 = vld [vmem:[#allocation2 + $0x2888] ss:$16 sps:$4 sm:$0xff]   ;;  %v23629_v23 = vld [vmem:[#allocation2 + $0x28a4] ss:$16 sps:$4 sm:$0xff]  }
 0x563   : > { %10129 = vmatpush1.bf16.msra.mxu0 %v23559_v24  ;;  %10301 = vmatpush1.bf16.msra.mxu1 %v23562_v5  ;;  %v23632_v24 = vld [vmem:[#allocation2 + $0x28ac] ss:$16 sps:$4 sm:$0xff]   ;;  %v23627_v5 = vld [vmem:[#allocation2 + $0x28a0] ss:$16 sps:$4 sm:$0xff]  }
 0x564   : > { %10130 = vmatprep.subr.bf16.mxu0 %v23567_v27  ;;  %10302 = vmatprep.subr.bf16.mxu1 %v23570_v28  ;;  %v23630_v27 = vld [vmem:[#allocation2 + $0x28a8] ss:$16 sps:$4 sm:$0xff]   ;;  %v23635_v28 = vld [vmem:[#allocation2 + $0x28c4] ss:$16 sps:$4 sm:$0xff]  }
 0x567   : > { %10131 = vmatpush1.bf16.msra.mxu0 %v23565_v29  ;;  %10303 = vmatpush1.bf16.msra.mxu1 %v23568_v11  ;;  %v23638_v29 = vld [vmem:[#allocation2 + $0x28cc] ss:$16 sps:$4 sm:$0xff]   ;;  %v23633_v11 = vld [vmem:[#allocation2 + $0x28c0] ss:$16 sps:$4 sm:$0xff]  }
 0x568   : > { %10132 = vmatprep.subr.bf16.mxu0 %v23573_v7  ;;  %10304 = vmatprep.subr.bf16.mxu1 %v23576_v53  ;;  %v23636_v7 = vld [vmem:[#allocation2 + $0x28c8] ss:$16 sps:$4 sm:$0xff]   ;;  %v23641_v53 = vld [vmem:[#allocation2 + $0x28e4] ss:$16 sps:$4 sm:$0xff]  }
 0x56b   : > { %10133 = vmatpush1.bf16.msra.mxu0 %v23571_v30  ;;  %10305 = vmatpush1.bf16.msra.mxu1 %v23574_v32  ;;  %v23644_v30 = vld [vmem:[#allocation2 + $0x28ec] ss:$16 sps:$4 sm:$0xff]   ;;  %v23639_v32 = vld [vmem:[#allocation2 + $0x28e0] ss:$16 sps:$4 sm:$0xff]  }
 0x56c   : > { %10134 = vmatprep.subr.bf16.mxu0 %v23579_v60  ;;  %10306 = vmatprep.subr.bf16.mxu1 %v23582_v33  ;;  %v23647_v60 = vld [vmem:[#allocation2 + $0x2904] ss:$16 sps:$4 sm:$0xff]   ;;  %v23650_v33 = vld [vmem:[#allocation2 + $0x290c] ss:$16 sps:$4 sm:$0xff]  }
 0x56f   : > { %10135 = vmatpush1.bf16.msra.mxu0 %v23577_v34  ;;  %10307 = vmatpush1.bf16.msra.mxu1 %v23580_v35  ;;  %v23645_v34 = vld [vmem:[#allocation2 + $0x2900] ss:$16 sps:$4 sm:$0xff]   ;;  %v23648_v35 = vld [vmem:[#allocation2 + $0x2908] ss:$16 sps:$4 sm:$0xff]  }
 0x570   : > { %10136 = vmatprep.subr.bf16.mxu0 %v23585_v39  ;;  %10308 = vmatprep.subr.bf16.mxu1 %v23588_v1  ;;  %v23653_v39 = vld [vmem:[#allocation2 + $0x2924] ss:$16 sps:$4 sm:$0xff]   ;;  %v23651_v1 = vld [vmem:[#allocation2 + $0x2920] ss:$16 sps:$4 sm:$0xff]  }
 0x573   : > { %10137 = vmatpush1.bf16.msra.mxu0 %v23583_v10  ;;  %10309 = vmatpush1.bf16.msra.mxu1 %v23586_v40  ;;  %v23654_v10 = vld [vmem:[#allocation2 + $0x2928] ss:$16 sps:$4 sm:$0xff]   ;;  %v23659_v40 = vld [vmem:[#allocation2 + $0x2944] ss:$16 sps:$4 sm:$0xff]  }
 0x574   : > { %10138 = vmatprep.subr.bf16.mxu0 %v23591_v44  ;;  %10310 = vmatprep.subr.bf16.mxu1 %v23594_v37  ;;  %v23665_v44 = vld [vmem:[#allocation2 + $0x2964] ss:$16 sps:$4 sm:$0xff]   ;;  %v23668_v37 = vld [vmem:[#allocation2 + $0x296c] ss:$16 sps:$4 sm:$0xff]  }
 0x577   : > { %10139 = vmatpush1.bf16.msra.mxu0 %v23589_v3  ;;  %10311 = vmatpush1.bf16.msra.mxu1 %v23592_v26  ;;  %v23666_v3 = vld [vmem:[#allocation2 + $0x2968] ss:$16 sps:$4 sm:$0xff]   ;;  %v23671_v26 = vld [vmem:[#allocation2 + $0x2984] ss:$16 sps:$4 sm:$0xff]  }
 0x578   : > { %11924 = vmatprep.subr.bf16.mxu0 %v23598_v9  ;;  %12096 = vmatprep.subr.bf16.mxu1 %v23601_v48  ;;  %v23672_v9 = vld [vmem:[#allocation2 + $0x2988] ss:$16 sps:$4 sm:$0xff]   ;;  %v23677_v48 = vld [vmem:[#allocation2 + $0x29a4] ss:$16 sps:$4 sm:$0xff]  }
 0x57a   : > { %10141 = vmatmul.mubr.bf16.vlgmr.msra.gmra.mrb[0].mxu0 %v8678_v63  ;;  %10313 = vmatmul.mubr.bf16.vlgmr.msra.gmra.mrb[0].mxu1 %v8678_v63  ;;  %v23686_v63 = vld [vmem:[#allocation2 + $0x29cc] ss:$16 sps:$4 sm:$0xff]  }
 0x57b   : > { %11925 = vmatpush1.bf16.msra.mxu0 %v23596_v59  ;;  %12097 = vmatpush1.bf16.msra.mxu1 %v23599_v43  ;;  %v23678_v59 = vld [vmem:[#allocation2 + $0x29a8] ss:$16 sps:$4 sm:$0xff]   ;;  %v23683_v43 = vld [vmem:[#allocation2 + $0x29c4] ss:$16 sps:$4 sm:$0xff]  }
 0x57c   : > { %11926 = vmatprep.subr.bf16.mxu0 %v23605_v4  ;;  %12098 = vmatprep.subr.bf16.mxu1 %v23608_v6  ;;  %v23681_v4 = vld [vmem:[#allocation2 + $0x29c0] ss:$16 sps:$4 sm:$0xff]   ;;  %v23684_v6 = vld [vmem:[#allocation2 + $0x29c8] ss:$16 sps:$4 sm:$0xff]  }
 0x57d   : > { %11956 = vmatprep.mubr.bf16.mxu0 %v10617_v50  ;;  %12128 = vmatprep.mubr.bf16.mxu1 %v10617_v50  ;;  %v20147_v50 = vcombine.low %v25907_v54, %v25911_v46  ;;  %v23695_v54 = vld [vmem:[#allocation2 + $0x2a04] ss:$16 sps:$4 sm:$0xff]   ;;  %v23698_v46 = vld [vmem:[#allocation2 + $0x2a0c] ss:$16 sps:$4 sm:$0xff]  }
 0x57f   : > { %11927 = vmatpush1.bf16.msra.mxu0 %v23603_v15  ;;  %12099 = vmatpush1.bf16.msra.mxu1 %v23606_v56  ;;  %v25921_v15 = vld [vmem:[%s25764_s18 + $0x8] sm:$0xee]  ;;  %v23689_v56 = vld [vmem:[#allocation2 + $0x29e4] ss:$16 sps:$4 sm:$0xff]  }
 0x580   : > { %11928 = vmatprep.subr.bf16.mxu0 %v23611_v14  ;;  %12100 = vmatprep.subr.bf16.mxu1 %v23614_v61  ;;  %v23692_v14 = vld [vmem:[#allocation2 + $0x29ec] ss:$16 sps:$4 sm:$0xff]  }
 0x581   : > { %v25924_v61 = vld [vmem:[%s25764_s18 + $0x28] sm:$0xff] }
 0x583   : > { %11929 = vmatpush1.bf16.msra.mxu0 %v23609_v16  ;;  %12101 = vmatpush1.bf16.msra.mxu1 %v23612_v62  ;;  %v20150_v16 = vcombine.high %v25921_v15, %v25924_v61  ;;  %v23687_v62 = vld [vmem:[#allocation2 + $0x29e0] ss:$16 sps:$4 sm:$0xff]  }
 0x584   : > { %11930 = vmatprep.subr.bf16.mxu0 %v23617_v38  ;;  %12102 = vmatprep.subr.bf16.mxu1 %v23620_v18  ;;  %v23690_v38 = vld [vmem:[#allocation2 + $0x29e8] ss:$16 sps:$4 sm:$0xff]   ;;  %v10612_v18 = vrot.slane %v20147_v50, 1  ;;  %v23764_v50 = vld [vmem:[#allocation2 + $0x2b6c] ss:$16 sps:$4 sm:$0xff]  }
 0x587   : > { %11931 = vmatpush1.bf16.msra.mxu0 %v23615_v49  ;;  %12103 = vmatpush1.bf16.msra.mxu1 %v23618_v19  ;;  %v10613_v49 = vrot.slane %v25837_v22, 1  ;;  %v10621_v19 = vrot.slane %v20150_v16, 1  ;;  %v23767_v16 = vld [vmem:[#allocation2 + $0x2b84] ss:$16 sps:$4 sm:$0xff]  }
 0x588   : > { %11932 = vmatprep.subr.bf16.mxu0 %v23623_v20  ;;  %12104 = vmatprep.subr.bf16.mxu1 %v23626_v21  ;;  %v10622_v20 = vrot.slane %v25844_v52, 1  ;;  %v23693_v21 = vld [vmem:[#allocation2 + $0x2a00] ss:$16 sps:$4 sm:$0xff]   ;;  %v23707_v52 = vld [vmem:[#allocation2 + $0x2a44] ss:$16 sps:$4 sm:$0xff]  }
 0x58a   : > { %v10623_v22 = vsel %vm4672_vm1, %v10621_v19, %v10622_v20  ;;  %v23774_v19 = vld [vmem:[#allocation2 + $0x2ba8] ss:$16 sps:$4 sm:$0xff]   ;;  %v23779_v20 = vld [vmem:[#allocation2 + $0x2bc4] ss:$16 sps:$4 sm:$0xff]  }
 0x58b   : > { %11933 = vmatpush1.bf16.msra.mxu0 %v23621_v51  ;;  %12105 = vmatpush1.bf16.msra.mxu1 %v23624_v58  ;;  %v23696_v51 = vld [vmem:[#allocation2 + $0x2a08] ss:$16 sps:$4 sm:$0xff]   ;;  %v10614_v58 = vsel %vm4672_vm1, %v10612_v18, %v10613_v49  ;;  %v23773_v49 = vld [vmem:[#allocation2 + $0x2ba4] ss:$16 sps:$4 sm:$0xff]  }
 0x58c   : > { %11934 = vmatprep.subr.bf16.mxu0 %v23629_v23  ;;  %12106 = vmatprep.subr.bf16.mxu1 %v23632_v24  ;;  %v23701_v23 = vld [vmem:[#allocation2 + $0x2a24] ss:$16 sps:$4 sm:$0xff]   ;;  %v23704_v24 = vld [vmem:[#allocation2 + $0x2a2c] ss:$16 sps:$4 sm:$0xff]   ;;  %v23768_v18 = vld [vmem:[#allocation2 + $0x2b88] ss:$16 sps:$4 sm:$0xff]  }
 0x58f   : > { %11935 = vmatpush1.bf16.msra.mxu0 %v23627_v5  ;;  %12107 = vmatpush1.bf16.msra.mxu1 %v23630_v27  ;;  %v23699_v5 = vld [vmem:[#allocation2 + $0x2a20] ss:$16 sps:$4 sm:$0xff]   ;;  %v23702_v27 = vld [vmem:[#allocation2 + $0x2a28] ss:$16 sps:$4 sm:$0xff]  }
 0x590   : > { %11936 = vmatprep.subr.bf16.mxu0 %v23635_v28  ;;  %12108 = vmatprep.subr.bf16.mxu1 %v23638_v29  ;;  %v23710_v28 = vld [vmem:[#allocation2 + $0x2a4c] ss:$16 sps:$4 sm:$0xff]   ;;  %v23705_v29 = vld [vmem:[#allocation2 + $0x2a40] ss:$16 sps:$4 sm:$0xff]  }
 0x593   : > { %11937 = vmatpush1.bf16.msra.mxu0 %v23633_v11  ;;  %12109 = vmatpush1.bf16.msra.mxu1 %v23636_v7  ;;  %v23708_v11 = vld [vmem:[#allocation2 + $0x2a48] ss:$16 sps:$4 sm:$0xff]   ;;  %v23713_v7 = vld [vmem:[#allocation2 + $0x2a64] ss:$16 sps:$4 sm:$0xff]  }
 0x594   : > { %11938 = vmatprep.subr.bf16.mxu0 %v23641_v53  ;;  %12110 = vmatprep.subr.bf16.mxu1 %v23644_v30  ;;  %v23716_v53 = vld [vmem:[#allocation2 + $0x2a6c] ss:$16 sps:$4 sm:$0xff]   ;;  %v23711_v30 = vld [vmem:[#allocation2 + $0x2a60] ss:$16 sps:$4 sm:$0xff]  }
 0x597   : > { %11939 = vmatpush1.bf16.msra.mxu0 %v23639_v32  ;;  %12111 = vmatpush1.bf16.msra.mxu1 %v23642_v12  ;;  %v23714_v32 = vld [vmem:[#allocation2 + $0x2a68] ss:$16 sps:$4 sm:$0xff]   ;;  %v23719_v12 = vld [vmem:[#allocation2 + $0x2a84] ss:$16 sps:$4 sm:$0xff]  }
 0x598   : > { %11940 = vmatprep.subr.bf16.mxu0 %v23647_v60  ;;  %12112 = vmatprep.subr.bf16.mxu1 %v23650_v33  ;;  %v23722_v60 = vld [vmem:[#allocation2 + $0x2a8c] ss:$16 sps:$4 sm:$0xff]   ;;  %v23717_v33 = vld [vmem:[#allocation2 + $0x2a80] ss:$16 sps:$4 sm:$0xff]  }
 0x59b   : > { %11941 = vmatpush1.bf16.msra.mxu0 %v23645_v34  ;;  %12113 = vmatpush1.bf16.msra.mxu1 %v23648_v35  ;;  %v23720_v34 = vld [vmem:[#allocation2 + $0x2a88] ss:$16 sps:$4 sm:$0xff]   ;;  %v23725_v35 = vld [vmem:[#allocation2 + $0x2aa4] ss:$16 sps:$4 sm:$0xff]  }
 0x59c   : > { %11942 = vmatprep.subr.bf16.mxu0 %v23653_v39  ;;  %12114 = vmatprep.subr.bf16.mxu1 %v23656_v41  ;;  %v23728_v39 = vld [vmem:[#allocation2 + $0x2aac] ss:$16 sps:$4 sm:$0xff]   ;;  %v23723_v41 = vld [vmem:[#allocation2 + $0x2aa0] ss:$16 sps:$4 sm:$0xff]  }
 0x59f   : > { %11943 = vmatpush1.bf16.msra.mxu0 %v23651_v1  ;;  %12115 = vmatpush1.bf16.msra.mxu1 %v23654_v10  ;;  %v23726_v1 = vld [vmem:[#allocation2 + $0x2aa8] ss:$16 sps:$4 sm:$0xff]   ;;  %v23731_v10 = vld [vmem:[#allocation2 + $0x2ac4] ss:$16 sps:$4 sm:$0xff]  }
 0x5a0   : > { %11944 = vmatprep.subr.bf16.mxu0 %v23659_v40  ;;  %12116 = vmatprep.subr.bf16.mxu1 %v23662_v8  ;;  %v23734_v40 = vld [vmem:[#allocation2 + $0x2acc] ss:$16 sps:$4 sm:$0xff]   ;;  %v23729_v8 = vld [vmem:[#allocation2 + $0x2ac0] ss:$16 sps:$4 sm:$0xff]  }
 0x5a3   : > { %11945 = vmatpush1.bf16.msra.mxu0 %v23657_v25  ;;  %12117 = vmatpush1.bf16.msra.mxu1 %v23660_v57  ;;  %v23732_v25 = vld [vmem:[#allocation2 + $0x2ac8] ss:$16 sps:$4 sm:$0xff]   ;;  %v23737_v57 = vld [vmem:[#allocation2 + $0x2ae4] ss:$16 sps:$4 sm:$0xff]  }
 0x5a4   : > { %11946 = vmatprep.subr.bf16.mxu0 %v23665_v44  ;;  %12118 = vmatprep.subr.bf16.mxu1 %v23668_v37  ;;  %v23740_v44 = vld [vmem:[#allocation2 + $0x2aec] ss:$16 sps:$4 sm:$0xff]   ;;  %v23735_v37 = vld [vmem:[#allocation2 + $0x2ae0] ss:$16 sps:$4 sm:$0xff]  }
 0x5a7   : > { %11947 = vmatpush1.bf16.msra.mxu0 %v23663_v2  ;;  %12119 = vmatpush1.bf16.msra.mxu1 %v23666_v3  ;;  %v23738_v2 = vld [vmem:[#allocation2 + $0x2ae8] ss:$16 sps:$4 sm:$0xff]   ;;  %v23743_v3 = vld [vmem:[#allocation2 + $0x2b04] ss:$16 sps:$4 sm:$0xff]  }
 0x5a8   : > { %11948 = vmatprep.subr.bf16.mxu0 %v23671_v26  ;;  %12120 = vmatprep.subr.bf16.mxu1 %v23674_v55  ;;  %v23746_v26 = vld [vmem:[#allocation2 + $0x2b0c] ss:$16 sps:$4 sm:$0xff]   ;;  %v23741_v55 = vld [vmem:[#allocation2 + $0x2b00] ss:$16 sps:$4 sm:$0xff]  }
 0x5ab   : > { %11949 = vmatpush1.bf16.msra.mxu0 %v23669_v47  ;;  %12121 = vmatpush1.bf16.msra.mxu1 %v23672_v9  ;;  %v23744_v47 = vld [vmem:[#allocation2 + $0x2b08] ss:$16 sps:$4 sm:$0xff]   ;;  %v23749_v9 = vld [vmem:[#allocation2 + $0x2b24] ss:$16 sps:$4 sm:$0xff]  }
 0x5ac   : > { %11950 = vmatprep.subr.bf16.mxu0 %v23677_v48  ;;  %12122 = vmatprep.subr.bf16.mxu1 %v23680_v36  ;;  %v23752_v48 = vld [vmem:[#allocation2 + $0x2b2c] ss:$16 sps:$4 sm:$0xff]   ;;  %v23747_v36 = vld [vmem:[#allocation2 + $0x2b20] ss:$16 sps:$4 sm:$0xff]  }
 0x5af   : > { %11951 = vmatpush1.bf16.msra.mxu0 %v23675_v13  ;;  %12123 = vmatpush1.bf16.msra.mxu1 %v23678_v59  ;;  %v23750_v13 = vld [vmem:[#allocation2 + $0x2b28] ss:$16 sps:$4 sm:$0xff]   ;;  %v23755_v59 = vld [vmem:[#allocation2 + $0x2b44] ss:$16 sps:$4 sm:$0xff]  }
 0x5b0   : > { %11952 = vmatprep.subr.bf16.mxu0 %v23683_v43  ;;  %12124 = vmatprep.subr.bf16.mxu1 %v23686_v63  ;;  %v23758_v43 = vld [vmem:[#allocation2 + $0x2b4c] ss:$16 sps:$4 sm:$0xff]   ;;  %v23753_v63 = vld [vmem:[#allocation2 + $0x2b40] ss:$16 sps:$4 sm:$0xff]  }
 0x5b3   : > { %11953 = vmatpush1.bf16.msra.mxu0 %v23681_v4  ;;  %12125 = vmatpush1.bf16.msra.mxu1 %v23684_v6  ;;  %v23756_v4 = vld [vmem:[#allocation2 + $0x2b48] ss:$16 sps:$4 sm:$0xff]   ;;  %v23761_v6 = vld [vmem:[#allocation2 + $0x2b64] ss:$16 sps:$4 sm:$0xff]  }
 0x5b4   : > { %11954 = vmatprep.subr.bf16.mxu0 %v23689_v56  ;;  %12126 = vmatprep.subr.bf16.mxu1 %v23692_v14  ;;  %v23759_v56 = vld [vmem:[#allocation2 + $0x2b60] ss:$16 sps:$4 sm:$0xff]   ;;  %v23762_v14 = vld [vmem:[#allocation2 + $0x2b68] ss:$16 sps:$4 sm:$0xff]  }
 0x5b7   : > { %11955 = vmatpush1.bf16.msra.mxu0 %v23687_v62  ;;  %12127 = vmatpush1.bf16.msra.mxu1 %v23690_v38  ;;  %v23770_v62 = vld [vmem:[#allocation2 + $0x2b8c] ss:$16 sps:$4 sm:$0xff]   ;;  %v23765_v38 = vld [vmem:[#allocation2 + $0x2b80] ss:$16 sps:$4 sm:$0xff]  }
 0x5b8   : > { %11967 = vmatprep.subr.bf16.mxu0 %v23695_v54  ;;  %12139 = vmatprep.subr.bf16.mxu1 %v23698_v46  ;;  %v23776_v54 = vld [vmem:[#allocation2 + $0x2bac] ss:$16 sps:$4 sm:$0xff]   ;;  %v23771_v46 = vld [vmem:[#allocation2 + $0x2ba0] ss:$16 sps:$4 sm:$0xff]  }
 0x5ba   : > { %11957 = vmatmul.mubr.bf16.vlgmr.msra.gmra.mrb[0].mxu0 %v10614_v58  ;;  %12129 = vmatmul.mubr.bf16.vlgmr.msra.gmra.mrb[0].mxu1 %v10614_v58  ;;  %v23780_v58 = vld [vmem:[#allocation2 + $0x2bc8] ss:$16 sps:$4 sm:$0xff]  }
 0x5bb   : > { %11968 = vmatpush1.bf16.msra.mxu0 %v23693_v21  ;;  %12140 = vmatpush1.bf16.msra.mxu1 %v23696_v51  ;;  %v23782_v21 = vld [vmem:[#allocation2 + $0x2bcc] ss:$16 sps:$4 sm:$0xff]   ;;  %v23777_v51 = vld [vmem:[#allocation2 + $0x2bc0] ss:$16 sps:$4 sm:$0xff]  }
 0x5bc   : > { %11969 = vmatprep.subr.bf16.mxu0 %v23701_v23  ;;  %12141 = vmatprep.subr.bf16.mxu1 %v23704_v24  ;;  %v20149_v23 = vcombine.low %v25921_v15, %v25924_v61  ;;  %v25935_v24 = vld [vmem:[%s25764_s18 + $0x10] sm:$0xee]  ;;  %v23794_v61 = vld [vmem:[#allocation2 + $0x2c0c] ss:$16 sps:$4 sm:$0xff]  }
 0x5bd   : > { %11999 = vmatprep.mubr.bf16.mxu0 %v10623_v22  ;;  %12171 = vmatprep.mubr.bf16.mxu1 %v10623_v22  ;;  %v23785_v22 = vld [vmem:[#allocation2 + $0x2be4] ss:$16 sps:$4 sm:$0xff]  }
 0x5be   : > { %v23791_v15 = vld [vmem:[#allocation2 + $0x2c04] ss:$16 sps:$4 sm:$0xff]  }
 0x5bf   : > { %11970 = vmatpush1.bf16.msra.mxu0 %v23699_v5  ;;  %12142 = vmatpush1.bf16.msra.mxu1 %v23702_v27  ;;  %v23788_v5 = vld [vmem:[#allocation2 + $0x2bec] ss:$16 sps:$4 sm:$0xff]   ;;  %v25938_v27 = vld [vmem:[%s25764_s18 + $0x30] sm:$0xff] }
 0x5c0   : > { %11971 = vmatprep.subr.bf16.mxu0 %v23707_v52  ;;  %12143 = vmatprep.subr.bf16.mxu1 %v23710_v28  ;;  %v20152_v52 = vcombine.high %v25935_v24, %v25938_v27  ;;  %v23783_v28 = vld [vmem:[#allocation2 + $0x2be0] ss:$16 sps:$4 sm:$0xff]  }
 0x5c3   : > { %11972 = vmatpush1.bf16.msra.mxu0 %v23705_v29  ;;  %12144 = vmatpush1.bf16.msra.mxu1 %v23708_v11  ;;  %v23786_v29 = vld [vmem:[#allocation2 + $0x2be8] ss:$16 sps:$4 sm:$0xff]   ;;  %v10618_v11 = vrot.slane %v20149_v23, 1 }
 0x5c4   : > { %11973 = vmatprep.subr.bf16.mxu0 %v23713_v7  ;;  %12145 = vmatprep.subr.bf16.mxu1 %v23716_v53  ;;  %v10619_v7 = vrot.slane %v25862_v42, 1  ;;  %v10627_v53 = vrot.slane %v20152_v52, 1  ;;  %v23858_v23 = vld [vmem:[#allocation2 + $0x2d68] ss:$16 sps:$4 sm:$0xff]   ;;  %v23861_v52 = vld [vmem:[#allocation2 + $0x2d80] ss:$16 sps:$4 sm:$0xff]  }
 0x5c7   : > { %11974 = vmatpush1.bf16.msra.mxu0 %v23711_v30  ;;  %12146 = vmatpush1.bf16.msra.mxu1 %v23714_v32  ;;  %v10628_v30 = vrot.slane %v25869_v45, 1  ;;  %v23789_v32 = vld [vmem:[#allocation2 + $0x2c00] ss:$16 sps:$4 sm:$0xff]   ;;  %v23803_v45 = vld [vmem:[#allocation2 + $0x2c44] ss:$16 sps:$4 sm:$0xff]  }
 0x5c8   : > { %11975 = vmatprep.subr.bf16.mxu0 %v23719_v12  ;;  %12147 = vmatprep.subr.bf16.mxu1 %v23722_v60  ;;  %v23792_v12 = vld [vmem:[#allocation2 + $0x2c08] ss:$16 sps:$4 sm:$0xff]   ;;  %v10620_v60 = vsel %vm4672_vm1, %v10618_v11, %v10619_v7  ;;  %v23872_v11 = vld [vmem:[#allocation2 + $0x2dac] ss:$16 sps:$4 sm:$0xff]   ;;  %v23867_v7 = vld [vmem:[#allocation2 + $0x2da0] ss:$16 sps:$4 sm:$0xff]  }
 0x5c9   : > { %v10629_v42 = vsel %vm4672_vm1, %v10627_v53, %v10628_v30  ;;  %v23878_v53 = vld [vmem:[#allocation2 + $0x2dcc] ss:$16 sps:$4 sm:$0xff]   ;;  %v23873_v30 = vld [vmem:[#allocation2 + $0x2dc0] ss:$16 sps:$4 sm:$0xff]  }
 0x5cb   : > { %11976 = vmatpush1.bf16.msra.mxu0 %v23717_v33  ;;  %12148 = vmatpush1.bf16.msra.mxu1 %v23720_v34  ;;  %v23797_v33 = vld [vmem:[#allocation2 + $0x2c24] ss:$16 sps:$4 sm:$0xff]   ;;  %v23800_v34 = vld [vmem:[#allocation2 + $0x2c2c] ss:$16 sps:$4 sm:$0xff]  }
 0x5cc   : > { %11977 = vmatprep.subr.bf16.mxu0 %v23725_v35  ;;  %12149 = vmatprep.subr.bf16.mxu1 %v23728_v39  ;;  %v23795_v35 = vld [vmem:[#allocation2 + $0x2c20] ss:$16 sps:$4 sm:$0xff]   ;;  %v23798_v39 = vld [vmem:[#allocation2 + $0x2c28] ss:$16 sps:$4 sm:$0xff]  }
 0x5cf   : > { %11978 = vmatpush1.bf16.msra.mxu0 %v23723_v41  ;;  %12150 = vmatpush1.bf16.msra.mxu1 %v23726_v1  ;;  %v23806_v41 = vld [vmem:[#allocation2 + $0x2c4c] ss:$16 sps:$4 sm:$0xff]   ;;  %v23801_v1 = vld [vmem:[#allocation2 + $0x2c40] ss:$16 sps:$4 sm:$0xff]  }
 0x5d0   : > { %11979 = vmatprep.subr.bf16.mxu0 %v23731_v10  ;;  %12151 = vmatprep.subr.bf16.mxu1 %v23734_v40  ;;  %v23804_v10 = vld [vmem:[#allocation2 + $0x2c48] ss:$16 sps:$4 sm:$0xff]   ;;  %v23809_v40 = vld [vmem:[#allocation2 + $0x2c64] ss:$16 sps:$4 sm:$0xff]  }
 0x5d3   : > { %11980 = vmatpush1.bf16.msra.mxu0 %v23729_v8  ;;  %12152 = vmatpush1.bf16.msra.mxu1 %v23732_v25  ;;  %v23812_v8 = vld [vmem:[#allocation2 + $0x2c6c] ss:$16 sps:$4 sm:$0xff]   ;;  %v23807_v25 = vld [vmem:[#allocation2 + $0x2c60] ss:$16 sps:$4 sm:$0xff]  }
 0x5d4   : > { %11981 = vmatprep.subr.bf16.mxu0 %v23737_v57  ;;  %12153 = vmatprep.subr.bf16.mxu1 %v23740_v44  ;;  %v23810_v57 = vld [vmem:[#allocation2 + $0x2c68] ss:$16 sps:$4 sm:$0xff]   ;;  %v23815_v44 = vld [vmem:[#allocation2 + $0x2c84] ss:$16 sps:$4 sm:$0xff]  }
 0x5d7   : > { %11982 = vmatpush1.bf16.msra.mxu0 %v23735_v37  ;;  %12154 = vmatpush1.bf16.msra.mxu1 %v23738_v2  ;;  %v23818_v37 = vld [vmem:[#allocation2 + $0x2c8c] ss:$16 sps:$4 sm:$0xff]   ;;  %v23813_v2 = vld [vmem:[#allocation2 + $0x2c80] ss:$16 sps:$4 sm:$0xff]  }
 0x5d8   : > { %11983 = vmatprep.subr.bf16.mxu0 %v23743_v3  ;;  %12155 = vmatprep.subr.bf16.mxu1 %v23746_v26  ;;  %v23816_v3 = vld [vmem:[#allocation2 + $0x2c88] ss:$16 sps:$4 sm:$0xff]   ;;  %v23821_v26 = vld [vmem:[#allocation2 + $0x2ca4] ss:$16 sps:$4 sm:$0xff]  }
 0x5db   : > { %11984 = vmatpush1.bf16.msra.mxu0 %v23741_v55  ;;  %12156 = vmatpush1.bf16.msra.mxu1 %v23744_v47  ;;  %v23824_v55 = vld [vmem:[#allocation2 + $0x2cac] ss:$16 sps:$4 sm:$0xff]   ;;  %v23819_v47 = vld [vmem:[#allocation2 + $0x2ca0] ss:$16 sps:$4 sm:$0xff]  }
 0x5dc   : > { %11985 = vmatprep.subr.bf16.mxu0 %v23749_v9  ;;  %12157 = vmatprep.subr.bf16.mxu1 %v23752_v48  ;;  %v23822_v9 = vld [vmem:[#allocation2 + $0x2ca8] ss:$16 sps:$4 sm:$0xff]   ;;  %v23827_v48 = vld [vmem:[#allocation2 + $0x2cc4] ss:$16 sps:$4 sm:$0xff]  }
 0x5df   : > { %11986 = vmatpush1.bf16.msra.mxu0 %v23747_v36  ;;  %12158 = vmatpush1.bf16.msra.mxu1 %v23750_v13  ;;  %v23830_v36 = vld [vmem:[#allocation2 + $0x2ccc] ss:$16 sps:$4 sm:$0xff]   ;;  %v23825_v13 = vld [vmem:[#allocation2 + $0x2cc0] ss:$16 sps:$4 sm:$0xff]  }
 0x5e0   : > { %11987 = vmatprep.subr.bf16.mxu0 %v23755_v59  ;;  %12159 = vmatprep.subr.bf16.mxu1 %v23758_v43  ;;  %v23828_v59 = vld [vmem:[#allocation2 + $0x2cc8] ss:$16 sps:$4 sm:$0xff]   ;;  %v23833_v43 = vld [vmem:[#allocation2 + $0x2ce4] ss:$16 sps:$4 sm:$0xff]  }
 0x5e3   : > { %11988 = vmatpush1.bf16.msra.mxu0 %v23753_v63  ;;  %12160 = vmatpush1.bf16.msra.mxu1 %v23756_v4  ;;  %v23836_v63 = vld [vmem:[#allocation2 + $0x2cec] ss:$16 sps:$4 sm:$0xff]   ;;  %v23831_v4 = vld [vmem:[#allocation2 + $0x2ce0] ss:$16 sps:$4 sm:$0xff]  }
 0x5e4   : > { %11989 = vmatprep.subr.bf16.mxu0 %v23761_v6  ;;  %12161 = vmatprep.subr.bf16.mxu1 %v23764_v50  ;;  %v23834_v6 = vld [vmem:[#allocation2 + $0x2ce8] ss:$16 sps:$4 sm:$0xff]   ;;  %v23839_v50 = vld [vmem:[#allocation2 + $0x2d04] ss:$16 sps:$4 sm:$0xff]  }
 0x5e7   : > { %11990 = vmatpush1.bf16.msra.mxu0 %v23759_v56  ;;  %12162 = vmatpush1.bf16.msra.mxu1 %v23762_v14  ;;  %v23842_v56 = vld [vmem:[#allocation2 + $0x2d0c] ss:$16 sps:$4 sm:$0xff]   ;;  %v23837_v14 = vld [vmem:[#allocation2 + $0x2d00] ss:$16 sps:$4 sm:$0xff]  }
 0x5e8   : > { %11991 = vmatprep.subr.bf16.mxu0 %v23767_v16  ;;  %12163 = vmatprep.subr.bf16.mxu1 %v23770_v62  ;;  %v23840_v16 = vld [vmem:[#allocation2 + $0x2d08] ss:$16 sps:$4 sm:$0xff]   ;;  %v23845_v62 = vld [vmem:[#allocation2 + $0x2d24] ss:$16 sps:$4 sm:$0xff]  }
 0x5eb   : > { %11992 = vmatpush1.bf16.msra.mxu0 %v23765_v38  ;;  %12164 = vmatpush1.bf16.msra.mxu1 %v23768_v18  ;;  %v23848_v38 = vld [vmem:[#allocation2 + $0x2d2c] ss:$16 sps:$4 sm:$0xff]   ;;  %v23843_v18 = vld [vmem:[#allocation2 + $0x2d20] ss:$16 sps:$4 sm:$0xff]  }
 0x5ec   : > { %11993 = vmatprep.subr.bf16.mxu0 %v23773_v49  ;;  %12165 = vmatprep.subr.bf16.mxu1 %v23776_v54  ;;  %v23846_v49 = vld [vmem:[#allocation2 + $0x2d28] ss:$16 sps:$4 sm:$0xff]   ;;  %v23851_v54 = vld [vmem:[#allocation2 + $0x2d44] ss:$16 sps:$4 sm:$0xff]  }
 0x5ef   : > { %11994 = vmatpush1.bf16.msra.mxu0 %v23771_v46  ;;  %12166 = vmatpush1.bf16.msra.mxu1 %v23774_v19  ;;  %v23854_v46 = vld [vmem:[#allocation2 + $0x2d4c] ss:$16 sps:$4 sm:$0xff]   ;;  %v23849_v19 = vld [vmem:[#allocation2 + $0x2d40] ss:$16 sps:$4 sm:$0xff]  }
 0x5f0   : > { %11995 = vmatprep.subr.bf16.mxu0 %v23779_v20  ;;  %12167 = vmatprep.subr.bf16.mxu1 %v23782_v21  ;;  %v23852_v20 = vld [vmem:[#allocation2 + $0x2d48] ss:$16 sps:$4 sm:$0xff]   ;;  %v23857_v21 = vld [vmem:[#allocation2 + $0x2d64] ss:$16 sps:$4 sm:$0xff]  }
 0x5f3   : > { %11996 = vmatpush1.bf16.msra.mxu0 %v23777_v51  ;;  %12168 = vmatpush1.bf16.msra.mxu1 %v23780_v58  ;;  %v23860_v51 = vld [vmem:[#allocation2 + $0x2d6c] ss:$16 sps:$4 sm:$0xff]   ;;  %v23855_v58 = vld [vmem:[#allocation2 + $0x2d60] ss:$16 sps:$4 sm:$0xff]  }
 0x5f4   : > { %11997 = vmatprep.subr.bf16.mxu0 %v23785_v22  ;;  %12169 = vmatprep.subr.bf16.mxu1 %v23788_v5  ;;  %v23863_v22 = vld [vmem:[#allocation2 + $0x2d84] ss:$16 sps:$4 sm:$0xff]   ;;  %v23866_v5 = vld [vmem:[#allocation2 + $0x2d8c] ss:$16 sps:$4 sm:$0xff]  }
 0x5f7   : > { %11998 = vmatpush1.bf16.msra.mxu0 %v23783_v28  ;;  %12170 = vmatpush1.bf16.msra.mxu1 %v23786_v29  ;;  %v23864_v28 = vld [vmem:[#allocation2 + $0x2d88] ss:$16 sps:$4 sm:$0xff]   ;;  %v23869_v29 = vld [vmem:[#allocation2 + $0x2da4] ss:$16 sps:$4 sm:$0xff]  }
 0x5f8   : > { %12010 = vmatprep.subr.bf16.mxu0 %v23791_v15  ;;  %12182 = vmatprep.subr.bf16.mxu1 %v23794_v61  ;;  %v23870_v15 = vld [vmem:[#allocation2 + $0x2da8] ss:$16 sps:$4 sm:$0xff]   ;;  %v23875_v61 = vld [vmem:[#allocation2 + $0x2dc4] ss:$16 sps:$4 sm:$0xff]  }
 0x5fa   : > { %12000 = vmatmul.mubr.bf16.vlgmr.msra.gmra.mrb[0].mxu0 %v10620_v60  ;;  %12172 = vmatmul.mubr.bf16.vlgmr.msra.gmra.mrb[0].mxu1 %v10620_v60  ;;  %v25949_v60 = vld [vmem:[%s25764_s18 + $0x18] sm:$0xee] }
 0x5fb   : > { %12011 = vmatpush1.bf16.msra.mxu0 %v23789_v32  ;;  %12183 = vmatpush1.bf16.msra.mxu1 %v23792_v12  ;;  %v23876_v32 = vld [vmem:[#allocation2 + $0x2dc8] ss:$16 sps:$4 sm:$0xff]   ;;  %v20151_v12 = vcombine.low %v25935_v24, %v25938_v27  ;;  %v23887_v24 = vld [vmem:[#allocation2 + $0x2e04] ss:$16 sps:$4 sm:$0xff]   ;;  %v23890_v27 = vld [vmem:[#allocation2 + $0x2e0c] ss:$16 sps:$4 sm:$0xff]  }
 0x5fc   : > { %12012 = vmatprep.subr.bf16.mxu0 %v23797_v33  ;;  %12184 = vmatprep.subr.bf16.mxu1 %v23800_v34  ;;  %v23881_v33 = vld [vmem:[#allocation2 + $0x2de4] ss:$16 sps:$4 sm:$0xff]   ;;  %v23884_v34 = vld [vmem:[#allocation2 + $0x2dec] ss:$16 sps:$4 sm:$0xff]  }
 0x5fd   : > { %12042 = vmatprep.mubr.bf16.mxu0 %v10629_v42  ;;  %12214 = vmatprep.mubr.bf16.mxu1 %v10629_v42  ;;  %v25952_v42 = vld [vmem:[%s25764_s18 + $0x38] sm:$0xff] }
 0x5ff   : > { %12013 = vmatpush1.bf16.msra.mxu0 %v23795_v35  ;;  %12185 = vmatpush1.bf16.msra.mxu1 %v23798_v39  ;;  %v20154_v35 = vcombine.high %v25949_v60, %v25952_v42  ;;  %v23879_v39 = vld [vmem:[#allocation2 + $0x2de0] ss:$16 sps:$4 sm:$0xff]  }
 0x600   : > { %12014 = vmatprep.subr.bf16.mxu0 %v23803_v45  ;;  %12186 = vmatprep.subr.bf16.mxu1 %v23806_v41  ;;  %v23882_v45 = vld [vmem:[#allocation2 + $0x2de8] ss:$16 sps:$4 sm:$0xff]   ;;  %v10624_v41 = vrot.slane %v20151_v12, 1  ;;  %v23962_v12 = vld [vmem:[#allocation2 + $0x2f8c] ss:$16 sps:$4 sm:$0xff]  }
 0x603   : > { %12015 = vmatpush1.bf16.msra.mxu0 %v23801_v1  ;;  %12187 = vmatpush1.bf16.msra.mxu1 %v23804_v10  ;;  %v10625_v1 = vrot.slane %v25887_v17, 1  ;;  %v10633_v10 = vrot.slane %v20154_v35, 1  ;;  %v23965_v35 = vld [vmem:[#allocation2 + $0x2fa4] ss:$16 sps:$4 sm:$0xff]  }
 0x604   : > { %12016 = vmatprep.subr.bf16.mxu0 %v23809_v40  ;;  %12188 = vmatprep.subr.bf16.mxu1 %v23812_v8  ;;  %v10634_v40 = vrot.slane %v25894_v0, 1  ;;  %v23885_v8 = vld [vmem:[#allocation2 + $0x2e00] ss:$16 sps:$4 sm:$0xff]   ;;  %v23899_v0 = vld [vmem:[#allocation2 + $0x2e44] ss:$16 sps:$4 sm:$0xff]  }
 0x606   : > { %v10635_v17 = vsel %vm4672_vm1, %v10633_v10, %v10634_v40  ;;  %v23972_v10 = vld [vmem:[#allocation2 + $0x2fc8] ss:$16 sps:$4 sm:$0xff]   ;;  %v20153_v40 = vcombine.low %v25949_v60, %v25952_v42  ;;  %v23983_v60 = vld [vmem:[#allocation2 + $0x3004] ss:$16 sps:$4 sm:$0xff]   ;;  %v23986_v42 = vld [vmem:[#allocation2 + $0x300c] ss:$16 sps:$4 sm:$0xff]  }
 0x607   : > { %12017 = vmatpush1.bf16.msra.mxu0 %v23807_v25  ;;  %12189 = vmatpush1.bf16.msra.mxu1 %v23810_v57  ;;  %v23888_v25 = vld [vmem:[#allocation2 + $0x2e08] ss:$16 sps:$4 sm:$0xff]   ;;  %v10626_v57 = vsel %vm4672_vm1, %v10624_v41, %v10625_v1  ;;  %v23971_v1 = vld [vmem:[#allocation2 + $0x2fc4] ss:$16 sps:$4 sm:$0xff]  }
 0x608   : > { %12018 = vmatprep.subr.bf16.mxu0 %v23815_v44  ;;  %12190 = vmatprep.subr.bf16.mxu1 %v23818_v37  ;;  %v23893_v44 = vld [vmem:[#allocation2 + $0x2e24] ss:$16 sps:$4 sm:$0xff]   ;;  %v23896_v37 = vld [vmem:[#allocation2 + $0x2e2c] ss:$16 sps:$4 sm:$0xff]   ;;  %v23966_v41 = vld [vmem:[#allocation2 + $0x2fa8] ss:$16 sps:$4 sm:$0xff]  }
 0x60b   : > { %12019 = vmatpush1.bf16.msra.mxu0 %v23813_v2  ;;  %12191 = vmatpush1.bf16.msra.mxu1 %v23816_v3  ;;  %v23891_v2 = vld [vmem:[#allocation2 + $0x2e20] ss:$16 sps:$4 sm:$0xff]   ;;  %v23894_v3 = vld [vmem:[#allocation2 + $0x2e28] ss:$16 sps:$4 sm:$0xff]  }
 0x60c   : > { %12020 = vmatprep.subr.bf16.mxu0 %v23821_v26  ;;  %12192 = vmatprep.subr.bf16.mxu1 %v23824_v55  ;;  %v23902_v26 = vld [vmem:[#allocation2 + $0x2e4c] ss:$16 sps:$4 sm:$0xff]   ;;  %v23897_v55 = vld [vmem:[#allocation2 + $0x2e40] ss:$16 sps:$4 sm:$0xff]  }
 0x60f   : > { %12021 = vmatpush1.bf16.msra.mxu0 %v23819_v47  ;;  %12193 = vmatpush1.bf16.msra.mxu1 %v23822_v9  ;;  %v23900_v47 = vld [vmem:[#allocation2 + $0x2e48] ss:$16 sps:$4 sm:$0xff]   ;;  %v23905_v9 = vld [vmem:[#allocation2 + $0x2e64] ss:$16 sps:$4 sm:$0xff]  }
 0x610   : > { %12022 = vmatprep.subr.bf16.mxu0 %v23827_v48  ;;  %12194 = vmatprep.subr.bf16.mxu1 %v23830_v36  ;;  %v23908_v48 = vld [vmem:[#allocation2 + $0x2e6c] ss:$16 sps:$4 sm:$0xff]   ;;  %v23903_v36 = vld [vmem:[#allocation2 + $0x2e60] ss:$16 sps:$4 sm:$0xff]  }
 0x613   : > { %12023 = vmatpush1.bf16.msra.mxu0 %v23825_v13  ;;  %12195 = vmatpush1.bf16.msra.mxu1 %v23828_v59  ;;  %v23906_v13 = vld [vmem:[#allocation2 + $0x2e68] ss:$16 sps:$4 sm:$0xff]   ;;  %v23911_v59 = vld [vmem:[#allocation2 + $0x2e84] ss:$16 sps:$4 sm:$0xff]  }
 0x614   : > { %12024 = vmatprep.subr.bf16.mxu0 %v23833_v43  ;;  %12196 = vmatprep.subr.bf16.mxu1 %v23836_v63  ;;  %v23914_v43 = vld [vmem:[#allocation2 + $0x2e8c] ss:$16 sps:$4 sm:$0xff]   ;;  %v23909_v63 = vld [vmem:[#allocation2 + $0x2e80] ss:$16 sps:$4 sm:$0xff]  }
 0x617   : > { %12025 = vmatpush1.bf16.msra.mxu0 %v23831_v4  ;;  %12197 = vmatpush1.bf16.msra.mxu1 %v23834_v6  ;;  %v23912_v4 = vld [vmem:[#allocation2 + $0x2e88] ss:$16 sps:$4 sm:$0xff]   ;;  %v23917_v6 = vld [vmem:[#allocation2 + $0x2ea4] ss:$16 sps:$4 sm:$0xff]  }
 0x618   : > { %12026 = vmatprep.subr.bf16.mxu0 %v23839_v50  ;;  %12198 = vmatprep.subr.bf16.mxu1 %v23842_v56  ;;  %v23920_v50 = vld [vmem:[#allocation2 + $0x2eac] ss:$16 sps:$4 sm:$0xff]   ;;  %v23915_v56 = vld [vmem:[#allocation2 + $0x2ea0] ss:$16 sps:$4 sm:$0xff]  }
 0x61b   : > { %12027 = vmatpush1.bf16.msra.mxu0 %v23837_v14  ;;  %12199 = vmatpush1.bf16.msra.mxu1 %v23840_v16  ;;  %v23918_v14 = vld [vmem:[#allocation2 + $0x2ea8] ss:$16 sps:$4 sm:$0xff]   ;;  %v23923_v16 = vld [vmem:[#allocation2 + $0x2ec4] ss:$16 sps:$4 sm:$0xff]  }
 0x61c   : > { %12028 = vmatprep.subr.bf16.mxu0 %v23845_v62  ;;  %12200 = vmatprep.subr.bf16.mxu1 %v23848_v38  ;;  %v23926_v62 = vld [vmem:[#allocation2 + $0x2ecc] ss:$16 sps:$4 sm:$0xff]   ;;  %v23921_v38 = vld [vmem:[#allocation2 + $0x2ec0] ss:$16 sps:$4 sm:$0xff]  }
 0x61f   : > { %12029 = vmatpush1.bf16.msra.mxu0 %v23843_v18  ;;  %12201 = vmatpush1.bf16.msra.mxu1 %v23846_v49  ;;  %v23924_v18 = vld [vmem:[#allocation2 + $0x2ec8] ss:$16 sps:$4 sm:$0xff]   ;;  %v23929_v49 = vld [vmem:[#allocation2 + $0x2ee4] ss:$16 sps:$4 sm:$0xff]  }
 0x620   : > { %12030 = vmatprep.subr.bf16.mxu0 %v23851_v54  ;;  %12202 = vmatprep.subr.bf16.mxu1 %v23854_v46  ;;  %v23932_v54 = vld [vmem:[#allocation2 + $0x2eec] ss:$16 sps:$4 sm:$0xff]   ;;  %v23927_v46 = vld [vmem:[#allocation2 + $0x2ee0] ss:$16 sps:$4 sm:$0xff]  }
 0x623   : > { %12031 = vmatpush1.bf16.msra.mxu0 %v23849_v19  ;;  %12203 = vmatpush1.bf16.msra.mxu1 %v23852_v20  ;;  %v23930_v19 = vld [vmem:[#allocation2 + $0x2ee8] ss:$16 sps:$4 sm:$0xff]   ;;  %v23935_v20 = vld [vmem:[#allocation2 + $0x2f04] ss:$16 sps:$4 sm:$0xff]  }
 0x624   : > { %12032 = vmatprep.subr.bf16.mxu0 %v23857_v21  ;;  %12204 = vmatprep.subr.bf16.mxu1 %v23860_v51  ;;  %v23938_v21 = vld [vmem:[#allocation2 + $0x2f0c] ss:$16 sps:$4 sm:$0xff]   ;;  %v23933_v51 = vld [vmem:[#allocation2 + $0x2f00] ss:$16 sps:$4 sm:$0xff]  }
 0x627   : > { %12033 = vmatpush1.bf16.msra.mxu0 %v23855_v58  ;;  %12205 = vmatpush1.bf16.msra.mxu1 %v23858_v23  ;;  %v23936_v58 = vld [vmem:[#allocation2 + $0x2f08] ss:$16 sps:$4 sm:$0xff]   ;;  %v23941_v23 = vld [vmem:[#allocation2 + $0x2f24] ss:$16 sps:$4 sm:$0xff]  }
 0x628   : > { %12034 = vmatprep.subr.bf16.mxu0 %v23863_v22  ;;  %12206 = vmatprep.subr.bf16.mxu1 %v23866_v5  ;;  %v23944_v22 = vld [vmem:[#allocation2 + $0x2f2c] ss:$16 sps:$4 sm:$0xff]   ;;  %v23939_v5 = vld [vmem:[#allocation2 + $0x2f20] ss:$16 sps:$4 sm:$0xff]  }
 0x62b   : > { %12035 = vmatpush1.bf16.msra.mxu0 %v23861_v52  ;;  %12207 = vmatpush1.bf16.msra.mxu1 %v23864_v28  ;;  %v23942_v52 = vld [vmem:[#allocation2 + $0x2f28] ss:$16 sps:$4 sm:$0xff]   ;;  %v23947_v28 = vld [vmem:[#allocation2 + $0x2f44] ss:$16 sps:$4 sm:$0xff]  }
 0x62c   : > { %12036 = vmatprep.subr.bf16.mxu0 %v23869_v29  ;;  %12208 = vmatprep.subr.bf16.mxu1 %v23872_v11  ;;  %v23950_v29 = vld [vmem:[#allocation2 + $0x2f4c] ss:$16 sps:$4 sm:$0xff]   ;;  %v23945_v11 = vld [vmem:[#allocation2 + $0x2f40] ss:$16 sps:$4 sm:$0xff]  }
 0x62f   : > { %12037 = vmatpush1.bf16.msra.mxu0 %v23867_v7  ;;  %12209 = vmatpush1.bf16.msra.mxu1 %v23870_v15  ;;  %v23948_v7 = vld [vmem:[#allocation2 + $0x2f48] ss:$16 sps:$4 sm:$0xff]   ;;  %v23953_v15 = vld [vmem:[#allocation2 + $0x2f64] ss:$16 sps:$4 sm:$0xff]  }
 0x630   : > { %12038 = vmatprep.subr.bf16.mxu0 %v23875_v61  ;;  %12210 = vmatprep.subr.bf16.mxu1 %v23878_v53  ;;  %v23956_v61 = vld [vmem:[#allocation2 + $0x2f6c] ss:$16 sps:$4 sm:$0xff]   ;;  %v23951_v53 = vld [vmem:[#allocation2 + $0x2f60] ss:$16 sps:$4 sm:$0xff]  }
 0x633   : > { %12039 = vmatpush1.bf16.msra.mxu0 %v23873_v30  ;;  %12211 = vmatpush1.bf16.msra.mxu1 %v23876_v32  ;;  %v23954_v30 = vld [vmem:[#allocation2 + $0x2f68] ss:$16 sps:$4 sm:$0xff]   ;;  %v23959_v32 = vld [vmem:[#allocation2 + $0x2f84] ss:$16 sps:$4 sm:$0xff]  }
 0x634   : > { %12040 = vmatprep.subr.bf16.mxu0 %v23881_v33  ;;  %12212 = vmatprep.subr.bf16.mxu1 %v23884_v34  ;;  %v23957_v33 = vld [vmem:[#allocation2 + $0x2f80] ss:$16 sps:$4 sm:$0xff]   ;;  %v23960_v34 = vld [vmem:[#allocation2 + $0x2f88] ss:$16 sps:$4 sm:$0xff]  }
 0x637   : > { %12041 = vmatpush1.bf16.msra.mxu0 %v23879_v39  ;;  %12213 = vmatpush1.bf16.msra.mxu1 %v23882_v45  ;;  %v23968_v39 = vld [vmem:[#allocation2 + $0x2fac] ss:$16 sps:$4 sm:$0xff]   ;;  %v23963_v45 = vld [vmem:[#allocation2 + $0x2fa0] ss:$16 sps:$4 sm:$0xff]  }
 0x638   : > { %12053 = vmatprep.subr.bf16.mxu0 %v23887_v24  ;;  %12225 = vmatprep.subr.bf16.mxu1 %v23890_v27  ;;  %v23974_v24 = vld [vmem:[#allocation2 + $0x2fcc] ss:$16 sps:$4 sm:$0xff]   ;;  %v23969_v27 = vld [vmem:[#allocation2 + $0x2fc0] ss:$16 sps:$4 sm:$0xff]  }
 0x63a   : > { %12043 = vmatmul.mubr.bf16.vlgmr.msra.gmra.mrb[0].mxu0 %v10626_v57  ;;  %12215 = vmatmul.mubr.bf16.vlgmr.msra.gmra.mrb[0].mxu1 %v10626_v57  ;;  %v23975_v57 = vld [vmem:[#allocation2 + $0x2fe0] ss:$16 sps:$4 sm:$0xff]  }
 0x63b   : > { %12054 = vmatpush1.bf16.msra.mxu0 %v23885_v8  ;;  %12226 = vmatpush1.bf16.msra.mxu1 %v23888_v25  ;;  %v23977_v8 = vld [vmem:[#allocation2 + $0x2fe4] ss:$16 sps:$4 sm:$0xff]   ;;  %v23980_v25 = vld [vmem:[#allocation2 + $0x2fec] ss:$16 sps:$4 sm:$0xff]  }
 0x63c   : > { %12055 = vmatprep.subr.bf16.mxu0 %v23893_v44  ;;  %12227 = vmatprep.subr.bf16.mxu1 %v23896_v37  ;;  %v23978_v44 = vld [vmem:[#allocation2 + $0x2fe8] ss:$16 sps:$4 sm:$0xff]   ;;  %v10630_v37 = vrot.slane %v20153_v40, 1  ;;  %v24064_v40 = vld [vmem:[#allocation2 + $0x31ac] ss:$16 sps:$4 sm:$0xff]  }
 0x63d   : > { %12085 = vmatprep.mubr.bf16.mxu0 %v10635_v17  ;;  %12257 = vmatprep.mubr.bf16.mxu1 %v10635_v17  ;;  %v10631_v17 = vrot.slane %v25904_v31, 1 }
 0x63f   : > { %12056 = vmatpush1.bf16.msra.mxu0 %v23891_v2  ;;  %12228 = vmatpush1.bf16.msra.mxu1 %v23894_v3  ;;  %v25971_v2 = vld [vmem:[%s25967_s8] sm:$0xff] }
 0x640   : > { %12057 = vmatprep.subr.bf16.mxu0 %v23899_v0  ;;  %12229 = vmatprep.subr.bf16.mxu1 %v23902_v26  ;;  %v25974_v3 = vld [vmem:[%s25967_s8 + $0x20] sm:$0xff]  ;;  %v23984_v26 = vld [vmem:[#allocation2 + $0x3008] ss:$16 sps:$4 sm:$0xff]  }
 0x641   : > { %v23981_v0 = vld [vmem:[#allocation2 + $0x3000] ss:$16 sps:$4 sm:$0xff]   ;;  %v20412_v31 = vcombine.high %v25971_v2, %v25974_v3 }
 0x643   : > { %12058 = vmatpush1.bf16.msra.mxu0 %v23897_v55  ;;  %12230 = vmatpush1.bf16.msra.mxu1 %v23900_v47  ;;  %v10632_v55 = vsel %vm4672_vm1, %v10630_v37, %v10631_v17  ;;  %v23989_v47 = vld [vmem:[#allocation2 + $0x3024] ss:$16 sps:$4 sm:$0xff]   ;;  %v24065_v37 = vld [vmem:[#allocation2 + $0x31c0] ss:$16 sps:$4 sm:$0xff]   ;;  %v24068_v17 = vld [vmem:[#allocation2 + $0x31c8] ss:$16 sps:$4 sm:$0xff]  }
 0x644   : > { %12059 = vmatprep.subr.bf16.mxu0 %v23905_v9  ;;  %12231 = vmatprep.subr.bf16.mxu1 %v23908_v48  ;;  %v23992_v9 = vld [vmem:[#allocation2 + $0x302c] ss:$16 sps:$4 sm:$0xff]   ;;  %v23987_v48 = vld [vmem:[#allocation2 + $0x3020] ss:$16 sps:$4 sm:$0xff]  }
 0x647   : > { %12060 = vmatpush1.bf16.msra.mxu0 %v23903_v36  ;;  %12232 = vmatpush1.bf16.msra.mxu1 %v23906_v13  ;;  %v23990_v36 = vld [vmem:[#allocation2 + $0x3028] ss:$16 sps:$4 sm:$0xff]   ;;  %v23995_v13 = vld [vmem:[#allocation2 + $0x3044] ss:$16 sps:$4 sm:$0xff]  }
 0x648   : > { %12061 = vmatprep.subr.bf16.mxu0 %v23911_v59  ;;  %12233 = vmatprep.subr.bf16.mxu1 %v23914_v43  ;;  %v23998_v59 = vld [vmem:[#allocation2 + $0x304c] ss:$16 sps:$4 sm:$0xff]   ;;  %v23993_v43 = vld [vmem:[#allocation2 + $0x3040] ss:$16 sps:$4 sm:$0xff]  }
 0x64b   : > { %12062 = vmatpush1.bf16.msra.mxu0 %v23909_v63  ;;  %12234 = vmatpush1.bf16.msra.mxu1 %v23912_v4  ;;  %v23996_v63 = vld [vmem:[#allocation2 + $0x3048] ss:$16 sps:$4 sm:$0xff]   ;;  %v24001_v4 = vld [vmem:[#allocation2 + $0x3064] ss:$16 sps:$4 sm:$0xff]  }
 0x64c   : > { %12063 = vmatprep.subr.bf16.mxu0 %v23917_v6  ;;  %12235 = vmatprep.subr.bf16.mxu1 %v23920_v50  ;;  %v24004_v6 = vld [vmem:[#allocation2 + $0x306c] ss:$16 sps:$4 sm:$0xff]   ;;  %v23999_v50 = vld [vmem:[#allocation2 + $0x3060] ss:$16 sps:$4 sm:$0xff]  }
 0x64f   : > { %12064 = vmatpush1.bf16.msra.mxu0 %v23915_v56  ;;  %12236 = vmatpush1.bf16.msra.mxu1 %v23918_v14  ;;  %v24002_v56 = vld [vmem:[#allocation2 + $0x3068] ss:$16 sps:$4 sm:$0xff]   ;;  %v24007_v14 = vld [vmem:[#allocation2 + $0x3084] ss:$16 sps:$4 sm:$0xff]  }
 0x650   : > { %12065 = vmatprep.subr.bf16.mxu0 %v23923_v16  ;;  %12237 = vmatprep.subr.bf16.mxu1 %v23926_v62  ;;  %v24010_v16 = vld [vmem:[#allocation2 + $0x308c] ss:$16 sps:$4 sm:$0xff]   ;;  %v24005_v62 = vld [vmem:[#allocation2 + $0x3080] ss:$16 sps:$4 sm:$0xff]  }
 0x653   : > { %12066 = vmatpush1.bf16.msra.mxu0 %v23921_v38  ;;  %12238 = vmatpush1.bf16.msra.mxu1 %v23924_v18  ;;  %v24008_v38 = vld [vmem:[#allocation2 + $0x3088] ss:$16 sps:$4 sm:$0xff]   ;;  %v24013_v18 = vld [vmem:[#allocation2 + $0x30a4] ss:$16 sps:$4 sm:$0xff]  }
 0x654   : > { %12067 = vmatprep.subr.bf16.mxu0 %v23929_v49  ;;  %12239 = vmatprep.subr.bf16.mxu1 %v23932_v54  ;;  %v24016_v49 = vld [vmem:[#allocation2 + $0x30ac] ss:$16 sps:$4 sm:$0xff]   ;;  %v24011_v54 = vld [vmem:[#allocation2 + $0x30a0] ss:$16 sps:$4 sm:$0xff]  }
 0x657   : > { %12068 = vmatpush1.bf16.msra.mxu0 %v23927_v46  ;;  %12240 = vmatpush1.bf16.msra.mxu1 %v23930_v19  ;;  %v24014_v46 = vld [vmem:[#allocation2 + $0x30a8] ss:$16 sps:$4 sm:$0xff]   ;;  %v24019_v19 = vld [vmem:[#allocation2 + $0x30c4] ss:$16 sps:$4 sm:$0xff]  }
 0x658   : > { %12069 = vmatprep.subr.bf16.mxu0 %v23935_v20  ;;  %12241 = vmatprep.subr.bf16.mxu1 %v23938_v21  ;;  %v24022_v20 = vld [vmem:[#allocation2 + $0x30cc] ss:$16 sps:$4 sm:$0xff]   ;;  %v24017_v21 = vld [vmem:[#allocation2 + $0x30c0] ss:$16 sps:$4 sm:$0xff]  }
 0x65b   : > { %12070 = vmatpush1.bf16.msra.mxu0 %v23933_v51  ;;  %12242 = vmatpush1.bf16.msra.mxu1 %v23936_v58  ;;  %v24020_v51 = vld [vmem:[#allocation2 + $0x30c8] ss:$16 sps:$4 sm:$0xff]   ;;  %v24025_v58 = vld [vmem:[#allocation2 + $0x30e4] ss:$16 sps:$4 sm:$0xff]  }
 0x65c   : > { %12071 = vmatprep.subr.bf16.mxu0 %v23941_v23  ;;  %12243 = vmatprep.subr.bf16.mxu1 %v23944_v22  ;;  %v24028_v23 = vld [vmem:[#allocation2 + $0x30ec] ss:$16 sps:$4 sm:$0xff]   ;;  %v24023_v22 = vld [vmem:[#allocation2 + $0x30e0] ss:$16 sps:$4 sm:$0xff]  }
 0x65f   : > { %12072 = vmatpush1.bf16.msra.mxu0 %v23939_v5  ;;  %12244 = vmatpush1.bf16.msra.mxu1 %v23942_v52  ;;  %v24026_v5 = vld [vmem:[#allocation2 + $0x30e8] ss:$16 sps:$4 sm:$0xff]   ;;  %v24031_v52 = vld [vmem:[#allocation2 + $0x3104] ss:$16 sps:$4 sm:$0xff]  }
 0x660   : > { %12073 = vmatprep.subr.bf16.mxu0 %v23947_v28  ;;  %12245 = vmatprep.subr.bf16.mxu1 %v23950_v29  ;;  %v24034_v28 = vld [vmem:[#allocation2 + $0x310c] ss:$16 sps:$4 sm:$0xff]   ;;  %v24029_v29 = vld [vmem:[#allocation2 + $0x3100] ss:$16 sps:$4 sm:$0xff]  }
 0x663   : > { %12074 = vmatpush1.bf16.msra.mxu0 %v23945_v11  ;;  %12246 = vmatpush1.bf16.msra.mxu1 %v23948_v7  ;;  %v24032_v11 = vld [vmem:[#allocation2 + $0x3108] ss:$16 sps:$4 sm:$0xff]   ;;  %v24037_v7 = vld [vmem:[#allocation2 + $0x3124] ss:$16 sps:$4 sm:$0xff]  }
 0x664   : > { %12075 = vmatprep.subr.bf16.mxu0 %v23953_v15  ;;  %12247 = vmatprep.subr.bf16.mxu1 %v23956_v61  ;;  %v24040_v15 = vld [vmem:[#allocation2 + $0x312c] ss:$16 sps:$4 sm:$0xff]   ;;  %v24035_v61 = vld [vmem:[#allocation2 + $0x3120] ss:$16 sps:$4 sm:$0xff]  }
 0x667   : > { %12076 = vmatpush1.bf16.msra.mxu0 %v23951_v53  ;;  %12248 = vmatpush1.bf16.msra.mxu1 %v23954_v30  ;;  %v24038_v53 = vld [vmem:[#allocation2 + $0x3128] ss:$16 sps:$4 sm:$0xff]   ;;  %v24043_v30 = vld [vmem:[#allocation2 + $0x3144] ss:$16 sps:$4 sm:$0xff]  }
 0x668   : > { %12077 = vmatprep.subr.bf16.mxu0 %v23959_v32  ;;  %12249 = vmatprep.subr.bf16.mxu1 %v23962_v12  ;;  %v24046_v32 = vld [vmem:[#allocation2 + $0x314c] ss:$16 sps:$4 sm:$0xff]   ;;  %v24041_v12 = vld [vmem:[#allocation2 + $0x3140] ss:$16 sps:$4 sm:$0xff]  }
 0x66b   : > { %12078 = vmatpush1.bf16.msra.mxu0 %v23957_v33  ;;  %12250 = vmatpush1.bf16.msra.mxu1 %v23960_v34  ;;  %v24044_v33 = vld [vmem:[#allocation2 + $0x3148] ss:$16 sps:$4 sm:$0xff]   ;;  %v24049_v34 = vld [vmem:[#allocation2 + $0x3164] ss:$16 sps:$4 sm:$0xff]  }
 0x66c   : > { %12079 = vmatprep.subr.bf16.mxu0 %v23965_v35  ;;  %12251 = vmatprep.subr.bf16.mxu1 %v23968_v39  ;;  %v24052_v35 = vld [vmem:[#allocation2 + $0x316c] ss:$16 sps:$4 sm:$0xff]   ;;  %v24047_v39 = vld [vmem:[#allocation2 + $0x3160] ss:$16 sps:$4 sm:$0xff]  }
 0x66f   : > { %12080 = vmatpush1.bf16.msra.mxu0 %v23963_v45  ;;  %12252 = vmatpush1.bf16.msra.mxu1 %v23966_v41  ;;  %v24050_v45 = vld [vmem:[#allocation2 + $0x3168] ss:$16 sps:$4 sm:$0xff]   ;;  %v24055_v41 = vld [vmem:[#allocation2 + $0x3184] ss:$16 sps:$4 sm:$0xff]  }
 0x670   : > { %12081 = vmatprep.subr.bf16.mxu0 %v23971_v1  ;;  %12253 = vmatprep.subr.bf16.mxu1 %v23974_v24  ;;  %v24058_v1 = vld [vmem:[#allocation2 + $0x318c] ss:$16 sps:$4 sm:$0xff]   ;;  %v24053_v24 = vld [vmem:[#allocation2 + $0x3180] ss:$16 sps:$4 sm:$0xff]  }
 0x673   : > { %12082 = vmatpush1.bf16.msra.mxu0 %v23969_v27  ;;  %12254 = vmatpush1.bf16.msra.mxu1 %v23972_v10  ;;  %v24056_v27 = vld [vmem:[#allocation2 + $0x3188] ss:$16 sps:$4 sm:$0xff]   ;;  %v24061_v10 = vld [vmem:[#allocation2 + $0x31a4] ss:$16 sps:$4 sm:$0xff]  }
 0x674   : > { %12083 = vmatprep.subr.bf16.mxu0 %v23977_v8  ;;  %12255 = vmatprep.subr.bf16.mxu1 %v23980_v25  ;;  %v24059_v8 = vld [vmem:[#allocation2 + $0x31a0] ss:$16 sps:$4 sm:$0xff]   ;;  %v24062_v25 = vld [vmem:[#allocation2 + $0x31a8] ss:$16 sps:$4 sm:$0xff]  }
 0x677   : > { %12084 = vmatpush1.bf16.msra.mxu0 %v23975_v57  ;;  %12256 = vmatpush1.bf16.msra.mxu1 %v23978_v44  ;;  %v24067_v57 = vld [vmem:[#allocation2 + $0x31c4] ss:$16 sps:$4 sm:$0xff]   ;;  %v24070_v44 = vld [vmem:[#allocation2 + $0x31cc] ss:$16 sps:$4 sm:$0xff]  }
 0x678   : > { %13861 = vmatprep.subr.bf16.mxu0 %v23983_v60  ;;  %14033 = vmatprep.subr.bf16.mxu1 %v23986_v42  ;;  %v24073_v60 = vld [vmem:[#allocation2 + $0x31e4] ss:$16 sps:$4 sm:$0xff]   ;;  %v24076_v42 = vld [vmem:[#allocation2 + $0x31ec] ss:$16 sps:$4 sm:$0xff]  }
 0x67a   : > { %12086 = vmatmul.mubr.bf16.vlgmr.msra.gmra.mrb[0].mxu0 %v10632_v55  ;;  %12258 = vmatmul.mubr.bf16.vlgmr.msra.gmra.mrb[0].mxu1 %v10632_v55  ;;  %v24079_v55 = vld [vmem:[#allocation2 + $0x3204] ss:$16 sps:$4 sm:$0xff]  }
 0x67b   : > { %13862 = vmatpush1.bf16.msra.mxu0 %v23981_v0  ;;  %14034 = vmatpush1.bf16.msra.mxu1 %v23984_v26  ;;  %v24071_v0 = vld [vmem:[#allocation2 + $0x31e0] ss:$16 sps:$4 sm:$0xff]   ;;  %v24074_v26 = vld [vmem:[#allocation2 + $0x31e8] ss:$16 sps:$4 sm:$0xff]  }
 0x67c   : > { %13863 = vmatprep.subr.bf16.mxu0 %v23989_v47  ;;  %14035 = vmatprep.subr.bf16.mxu1 %v23992_v9  ;;  %v24082_v47 = vld [vmem:[#allocation2 + $0x320c] ss:$16 sps:$4 sm:$0xff]   ;;  %v20411_v9 = vcombine.low %v25971_v2, %v25974_v3  ;;  %v24083_v2 = vld [vmem:[#allocation2 + $0x3220] ss:$16 sps:$4 sm:$0xff]   ;;  %v24086_v3 = vld [vmem:[#allocation2 + $0x3228] ss:$16 sps:$4 sm:$0xff]  }
 0x67d   : > { %13893 = vmatprep.mubr.bf16.mxu0 %v20412_v31  ;;  %14065 = vmatprep.mubr.bf16.mxu1 %v20412_v31  ;;  %v25982_v31 = vld [vmem:[%s25967_s8 + $0x8] sm:$0xff] }
 0x67f   : > { %13864 = vmatpush1.bf16.msra.mxu0 %v23987_v48  ;;  %14036 = vmatpush1.bf16.msra.mxu1 %v23990_v36  ;;  %v25985_v48 = vld [vmem:[%s25967_s8 + $0x28] sm:$0xff]  ;;  %v24077_v36 = vld [vmem:[#allocation2 + $0x3200] ss:$16 sps:$4 sm:$0xff]  }
 0x680   : > { %13865 = vmatprep.subr.bf16.mxu0 %v23995_v13  ;;  %14037 = vmatprep.subr.bf16.mxu1 %v23998_v59  ;;  %v24080_v13 = vld [vmem:[#allocation2 + $0x3208] ss:$16 sps:$4 sm:$0xff]   ;;  %v24085_v59 = vld [vmem:[#allocation2 + $0x3224] ss:$16 sps:$4 sm:$0xff]  }
 0x683   : > { %13866 = vmatpush1.bf16.msra.mxu0 %v23993_v43  ;;  %14038 = vmatpush1.bf16.msra.mxu1 %v23996_v63  ;;  %v24088_v43 = vld [vmem:[#allocation2 + $0x322c] ss:$16 sps:$4 sm:$0xff]   ;;  %v20414_v63 = vcombine.high %v25982_v31, %v25985_v48 }
 0x684   : > { %13867 = vmatprep.subr.bf16.mxu0 %v24001_v4  ;;  %14039 = vmatprep.subr.bf16.mxu1 %v24004_v6  ;;  %v24091_v4 = vld [vmem:[#allocation2 + $0x3244] ss:$16 sps:$4 sm:$0xff]   ;;  %v24094_v6 = vld [vmem:[#allocation2 + $0x324c] ss:$16 sps:$4 sm:$0xff]  }
 0x687   : > { %13868 = vmatpush1.bf16.msra.mxu0 %v23999_v50  ;;  %14040 = vmatpush1.bf16.msra.mxu1 %v24002_v56  ;;  %v24089_v50 = vld [vmem:[#allocation2 + $0x3240] ss:$16 sps:$4 sm:$0xff]   ;;  %v24092_v56 = vld [vmem:[#allocation2 + $0x3248] ss:$16 sps:$4 sm:$0xff]  }
 0x688   : > { %13869 = vmatprep.subr.bf16.mxu0 %v24007_v14  ;;  %14041 = vmatprep.subr.bf16.mxu1 %v24010_v16  ;;  %v24097_v14 = vld [vmem:[#allocation2 + $0x3264] ss:$16 sps:$4 sm:$0xff]   ;;  %v24100_v16 = vld [vmem:[#allocation2 + $0x326c] ss:$16 sps:$4 sm:$0xff]  }
 0x68b   : > { %13870 = vmatpush1.bf16.msra.mxu0 %v24005_v62  ;;  %14042 = vmatpush1.bf16.msra.mxu1 %v24008_v38  ;;  %v24095_v62 = vld [vmem:[#allocation2 + $0x3260] ss:$16 sps:$4 sm:$0xff]   ;;  %v24098_v38 = vld [vmem:[#allocation2 + $0x3268] ss:$16 sps:$4 sm:$0xff]  }
 0x68c   : > { %13871 = vmatprep.subr.bf16.mxu0 %v24013_v18  ;;  %14043 = vmatprep.subr.bf16.mxu1 %v24016_v49  ;;  %v24103_v18 = vld [vmem:[#allocation2 + $0x3284] ss:$16 sps:$4 sm:$0xff]   ;;  %v24106_v49 = vld [vmem:[#allocation2 + $0x328c] ss:$16 sps:$4 sm:$0xff]  }
 0x68f   : > { %13872 = vmatpush1.bf16.msra.mxu0 %v24011_v54  ;;  %14044 = vmatpush1.bf16.msra.mxu1 %v24014_v46  ;;  %v24101_v54 = vld [vmem:[#allocation2 + $0x3280] ss:$16 sps:$4 sm:$0xff]   ;;  %v24104_v46 = vld [vmem:[#allocation2 + $0x3288] ss:$16 sps:$4 sm:$0xff]  }
 0x690   : > { %13873 = vmatprep.subr.bf16.mxu0 %v24019_v19  ;;  %14045 = vmatprep.subr.bf16.mxu1 %v24022_v20  ;;  %v24109_v19 = vld [vmem:[#allocation2 + $0x32a4] ss:$16 sps:$4 sm:$0xff]   ;;  %v24112_v20 = vld [vmem:[#allocation2 + $0x32ac] ss:$16 sps:$4 sm:$0xff]  }
 0x693   : > { %13874 = vmatpush1.bf16.msra.mxu0 %v24017_v21  ;;  %14046 = vmatpush1.bf16.msra.mxu1 %v24020_v51  ;;  %v24107_v21 = vld [vmem:[#allocation2 + $0x32a0] ss:$16 sps:$4 sm:$0xff]   ;;  %v24110_v51 = vld [vmem:[#allocation2 + $0x32a8] ss:$16 sps:$4 sm:$0xff]  }
 0x694   : > { %13875 = vmatprep.subr.bf16.mxu0 %v24025_v58  ;;  %14047 = vmatprep.subr.bf16.mxu1 %v24028_v23  ;;  %v24115_v58 = vld [vmem:[#allocation2 + $0x32c4] ss:$16 sps:$4 sm:$0xff]   ;;  %v24118_v23 = vld [vmem:[#allocation2 + $0x32cc] ss:$16 sps:$4 sm:$0xff]  }
 0x697   : > { %13876 = vmatpush1.bf16.msra.mxu0 %v24023_v22  ;;  %14048 = vmatpush1.bf16.msra.mxu1 %v24026_v5  ;;  %v24113_v22 = vld [vmem:[#allocation2 + $0x32c0] ss:$16 sps:$4 sm:$0xff]   ;;  %v24116_v5 = vld [vmem:[#allocation2 + $0x32c8] ss:$16 sps:$4 sm:$0xff]  }
 0x698   : > { %13877 = vmatprep.subr.bf16.mxu0 %v24031_v52  ;;  %14049 = vmatprep.subr.bf16.mxu1 %v24034_v28  ;;  %v24121_v52 = vld [vmem:[#allocation2 + $0x32e4] ss:$16 sps:$4 sm:$0xff]   ;;  %v24124_v28 = vld [vmem:[#allocation2 + $0x32ec] ss:$16 sps:$4 sm:$0xff]  }
 0x69b   : > { %13878 = vmatpush1.bf16.msra.mxu0 %v24029_v29  ;;  %14050 = vmatpush1.bf16.msra.mxu1 %v24032_v11  ;;  %v24119_v29 = vld [vmem:[#allocation2 + $0x32e0] ss:$16 sps:$4 sm:$0xff]   ;;  %v24122_v11 = vld [vmem:[#allocation2 + $0x32e8] ss:$16 sps:$4 sm:$0xff]  }
 0x69c   : > { %13879 = vmatprep.subr.bf16.mxu0 %v24037_v7  ;;  %14051 = vmatprep.subr.bf16.mxu1 %v24040_v15  ;;  %v24127_v7 = vld [vmem:[#allocation2 + $0x3304] ss:$16 sps:$4 sm:$0xff]   ;;  %v24130_v15 = vld [vmem:[#allocation2 + $0x330c] ss:$16 sps:$4 sm:$0xff]  }
 0x69f   : > { %13880 = vmatpush1.bf16.msra.mxu0 %v24035_v61  ;;  %14052 = vmatpush1.bf16.msra.mxu1 %v24038_v53  ;;  %v24125_v61 = vld [vmem:[#allocation2 + $0x3300] ss:$16 sps:$4 sm:$0xff]   ;;  %v24128_v53 = vld [vmem:[#allocation2 + $0x3308] ss:$16 sps:$4 sm:$0xff]  }
 0x6a0   : > { %13881 = vmatprep.subr.bf16.mxu0 %v24043_v30  ;;  %14053 = vmatprep.subr.bf16.mxu1 %v24046_v32  ;;  %v24133_v30 = vld [vmem:[#allocation2 + $0x3324] ss:$16 sps:$4 sm:$0xff]   ;;  %v24136_v32 = vld [vmem:[#allocation2 + $0x332c] ss:$16 sps:$4 sm:$0xff]  }
 0x6a3   : > { %13882 = vmatpush1.bf16.msra.mxu0 %v24041_v12  ;;  %14054 = vmatpush1.bf16.msra.mxu1 %v24044_v33  ;;  %v24131_v12 = vld [vmem:[#allocation2 + $0x3320] ss:$16 sps:$4 sm:$0xff]   ;;  %v24134_v33 = vld [vmem:[#allocation2 + $0x3328] ss:$16 sps:$4 sm:$0xff]  }
 0x6a4   : > { %13883 = vmatprep.subr.bf16.mxu0 %v24049_v34  ;;  %14055 = vmatprep.subr.bf16.mxu1 %v24052_v35  ;;  %v24139_v34 = vld [vmem:[#allocation2 + $0x3344] ss:$16 sps:$4 sm:$0xff]   ;;  %v24142_v35 = vld [vmem:[#allocation2 + $0x334c] ss:$16 sps:$4 sm:$0xff]  }
 0x6a7   : > { %13884 = vmatpush1.bf16.msra.mxu0 %v24047_v39  ;;  %14056 = vmatpush1.bf16.msra.mxu1 %v24050_v45  ;;  %v24137_v39 = vld [vmem:[#allocation2 + $0x3340] ss:$16 sps:$4 sm:$0xff]   ;;  %v24140_v45 = vld [vmem:[#allocation2 + $0x3348] ss:$16 sps:$4 sm:$0xff]  }
 0x6a8   : > { %13885 = vmatprep.subr.bf16.mxu0 %v24055_v41  ;;  %14057 = vmatprep.subr.bf16.mxu1 %v24058_v1  ;;  %v24145_v41 = vld [vmem:[#allocation2 + $0x3364] ss:$16 sps:$4 sm:$0xff]   ;;  %v24148_v1 = vld [vmem:[#allocation2 + $0x336c] ss:$16 sps:$4 sm:$0xff]  }
 0x6ab   : > { %13886 = vmatpush1.bf16.msra.mxu0 %v24053_v24  ;;  %14058 = vmatpush1.bf16.msra.mxu1 %v24056_v27  ;;  %v24143_v24 = vld [vmem:[#allocation2 + $0x3360] ss:$16 sps:$4 sm:$0xff]   ;;  %v24146_v27 = vld [vmem:[#allocation2 + $0x3368] ss:$16 sps:$4 sm:$0xff]  }
 0x6ac   : > { %13887 = vmatprep.subr.bf16.mxu0 %v24061_v10  ;;  %14059 = vmatprep.subr.bf16.mxu1 %v24064_v40  ;;  %v24151_v10 = vld [vmem:[#allocation2 + $0x3384] ss:$16 sps:$4 sm:$0xff]   ;;  %v24154_v40 = vld [vmem:[#allocation2 + $0x338c] ss:$16 sps:$4 sm:$0xff]  }
 0x6af   : > { %13888 = vmatpush1.bf16.msra.mxu0 %v24059_v8  ;;  %14060 = vmatpush1.bf16.msra.mxu1 %v24062_v25  ;;  %v24149_v8 = vld [vmem:[#allocation2 + $0x3380] ss:$16 sps:$4 sm:$0xff]   ;;  %v24152_v25 = vld [vmem:[#allocation2 + $0x3388] ss:$16 sps:$4 sm:$0xff]  }
 0x6b0   : > { %13889 = vmatprep.subr.bf16.mxu0 %v24067_v57  ;;  %14061 = vmatprep.subr.bf16.mxu1 %v24070_v44  ;;  %v24157_v57 = vld [vmem:[#allocation2 + $0x33a4] ss:$16 sps:$4 sm:$0xff]   ;;  %v24160_v44 = vld [vmem:[#allocation2 + $0x33ac] ss:$16 sps:$4 sm:$0xff]  }
 0x6b3   : > { %13890 = vmatpush1.bf16.msra.mxu0 %v24065_v37  ;;  %14062 = vmatpush1.bf16.msra.mxu1 %v24068_v17  ;;  %v24155_v37 = vld [vmem:[#allocation2 + $0x33a0] ss:$16 sps:$4 sm:$0xff]   ;;  %v24158_v17 = vld [vmem:[#allocation2 + $0x33a8] ss:$16 sps:$4 sm:$0xff]  }
 0x6b4   : > { %13891 = vmatprep.subr.bf16.mxu0 %v24073_v60  ;;  %14063 = vmatprep.subr.bf16.mxu1 %v24076_v42  ;;  %v24163_v60 = vld [vmem:[#allocation2 + $0x33c4] ss:$16 sps:$4 sm:$0xff]   ;;  %v24166_v42 = vld [vmem:[#allocation2 + $0x33cc] ss:$16 sps:$4 sm:$0xff]  }
 0x6b7   : > { %13892 = vmatpush1.bf16.msra.mxu0 %v24071_v0  ;;  %14064 = vmatpush1.bf16.msra.mxu1 %v24074_v26  ;;  %v24161_v0 = vld [vmem:[#allocation2 + $0x33c0] ss:$16 sps:$4 sm:$0xff]   ;;  %v24164_v26 = vld [vmem:[#allocation2 + $0x33c8] ss:$16 sps:$4 sm:$0xff]  }
 0x6b8   : > { %13904 = vmatprep.subr.bf16.mxu0 %v24079_v55  ;;  %14076 = vmatprep.subr.bf16.mxu1 %v24082_v47  ;;  %v24169_v55 = vld [vmem:[#allocation2 + $0x33e4] ss:$16 sps:$4 sm:$0xff]   ;;  %v24172_v47 = vld [vmem:[#allocation2 + $0x33ec] ss:$16 sps:$4 sm:$0xff]  }
 0x6ba   : > { %13894 = vmatmul.mubr.bf16.vlgmr.msra.gmra.mrb[0].mxu0 %v20411_v9  ;;  %14066 = vmatmul.mubr.bf16.vlgmr.msra.gmra.mrb[0].mxu1 %v20411_v9  ;;  %v24167_v9 = vld [vmem:[#allocation2 + $0x33e0] ss:$16 sps:$4 sm:$0xff]  }
 0x6bb   : > { %13905 = vmatpush1.bf16.msra.mxu0 %v24077_v36  ;;  %14077 = vmatpush1.bf16.msra.mxu1 %v24080_v13  ;;  %v24170_v36 = vld [vmem:[#allocation2 + $0x33e8] ss:$16 sps:$4 sm:$0xff]   ;;  %v24175_v13 = vld [vmem:[#allocation2 + $0x3404] ss:$16 sps:$4 sm:$0xff]  }
 0x6bc   : > { %13906 = vmatprep.subr.bf16.mxu0 %v24085_v59  ;;  %14078 = vmatprep.subr.bf16.mxu1 %v24088_v43  ;;  %v24178_v59 = vld [vmem:[#allocation2 + $0x340c] ss:$16 sps:$4 sm:$0xff]   ;;  %v20413_v43 = vcombine.low %v25982_v31, %v25985_v48  ;;  %v24179_v31 = vld [vmem:[#allocation2 + $0x3420] ss:$16 sps:$4 sm:$0xff]   ;;  %v24182_v48 = vld [vmem:[#allocation2 + $0x3428] ss:$16 sps:$4 sm:$0xff]  }
 0x6bd   : > { %13936 = vmatprep.mubr.bf16.mxu0 %v20414_v63  ;;  %14108 = vmatprep.mubr.bf16.mxu1 %v20414_v63  ;;  %v25992_v63 = vld [vmem:[%s25967_s8 + $0x10] sm:$0xff] }
 0x6bf   : > { %13907 = vmatpush1.bf16.msra.mxu0 %v24083_v2  ;;  %14079 = vmatpush1.bf16.msra.mxu1 %v24086_v3  ;;  %v25995_v2 = vld [vmem:[%s25967_s8 + $0x30] sm:$0xff] }
 0x6c0   : > { %13908 = vmatprep.subr.bf16.mxu0 %v24091_v4  ;;  %14080 = vmatprep.subr.bf16.mxu1 %v24094_v6  ;;  %v24173_v3 = vld [vmem:[#allocation2 + $0x3400] ss:$16 sps:$4 sm:$0xff]   ;;  %v24176_v4 = vld [vmem:[#allocation2 + $0x3408] ss:$16 sps:$4 sm:$0xff]   ;;  %v24181_v6 = vld [vmem:[#allocation2 + $0x3424] ss:$16 sps:$4 sm:$0xff]  }
 0x6c3   : > { %13909 = vmatpush1.bf16.msra.mxu0 %v24089_v50  ;;  %14081 = vmatpush1.bf16.msra.mxu1 %v24092_v56  ;;  %v24184_v50 = vld [vmem:[#allocation2 + $0x342c] ss:$16 sps:$4 sm:$0xff]   ;;  %v20416_v56 = vcombine.high %v25992_v63, %v25995_v2 }
 0x6c4   : > { %13910 = vmatprep.subr.bf16.mxu0 %v24097_v14  ;;  %14082 = vmatprep.subr.bf16.mxu1 %v24100_v16  ;;  %v24187_v14 = vld [vmem:[#allocation2 + $0x3444] ss:$16 sps:$4 sm:$0xff]   ;;  %v24190_v16 = vld [vmem:[#allocation2 + $0x344c] ss:$16 sps:$4 sm:$0xff]  }
 0x6c7   : > { %13911 = vmatpush1.bf16.msra.mxu0 %v24095_v62  ;;  %14083 = vmatpush1.bf16.msra.mxu1 %v24098_v38  ;;  %v24185_v62 = vld [vmem:[#allocation2 + $0x3440] ss:$16 sps:$4 sm:$0xff]   ;;  %v24188_v38 = vld [vmem:[#allocation2 + $0x3448] ss:$16 sps:$4 sm:$0xff]  }
 0x6c8   : > { %13912 = vmatprep.subr.bf16.mxu0 %v24103_v18  ;;  %14084 = vmatprep.subr.bf16.mxu1 %v24106_v49  ;;  %v24193_v18 = vld [vmem:[#allocation2 + $0x3464] ss:$16 sps:$4 sm:$0xff]   ;;  %v24196_v49 = vld [vmem:[#allocation2 + $0x346c] ss:$16 sps:$4 sm:$0xff]  }
 0x6cb   : > { %13913 = vmatpush1.bf16.msra.mxu0 %v24101_v54  ;;  %14085 = vmatpush1.bf16.msra.mxu1 %v24104_v46  ;;  %v24191_v54 = vld [vmem:[#allocation2 + $0x3460] ss:$16 sps:$4 sm:$0xff]   ;;  %v24194_v46 = vld [vmem:[#allocation2 + $0x3468] ss:$16 sps:$4 sm:$0xff]  }
 0x6cc   : > { %13914 = vmatprep.subr.bf16.mxu0 %v24109_v19  ;;  %14086 = vmatprep.subr.bf16.mxu1 %v24112_v20  ;;  %v24199_v19 = vld [vmem:[#allocation2 + $0x3484] ss:$16 sps:$4 sm:$0xff]   ;;  %v24202_v20 = vld [vmem:[#allocation2 + $0x348c] ss:$16 sps:$4 sm:$0xff]  }
 0x6cf   : > { %13915 = vmatpush1.bf16.msra.mxu0 %v24107_v21  ;;  %14087 = vmatpush1.bf16.msra.mxu1 %v24110_v51  ;;  %v24197_v21 = vld [vmem:[#allocation2 + $0x3480] ss:$16 sps:$4 sm:$0xff]   ;;  %v24200_v51 = vld [vmem:[#allocation2 + $0x3488] ss:$16 sps:$4 sm:$0xff]  }
 0x6d0   : > { %13916 = vmatprep.subr.bf16.mxu0 %v24115_v58  ;;  %14088 = vmatprep.subr.bf16.mxu1 %v24118_v23  ;;  %v24205_v58 = vld [vmem:[#allocation2 + $0x34a4] ss:$16 sps:$4 sm:$0xff]   ;;  %v24208_v23 = vld [vmem:[#allocation2 + $0x34ac] ss:$16 sps:$4 sm:$0xff]  }
 0x6d3   : > { %13917 = vmatpush1.bf16.msra.mxu0 %v24113_v22  ;;  %14089 = vmatpush1.bf16.msra.mxu1 %v24116_v5  ;;  %v24203_v22 = vld [vmem:[#allocation2 + $0x34a0] ss:$16 sps:$4 sm:$0xff]   ;;  %v24206_v5 = vld [vmem:[#allocation2 + $0x34a8] ss:$16 sps:$4 sm:$0xff]  }
 0x6d4   : > { %13918 = vmatprep.subr.bf16.mxu0 %v24121_v52  ;;  %14090 = vmatprep.subr.bf16.mxu1 %v24124_v28  ;;  %v24211_v52 = vld [vmem:[#allocation2 + $0x34c4] ss:$16 sps:$4 sm:$0xff]   ;;  %v24214_v28 = vld [vmem:[#allocation2 + $0x34cc] ss:$16 sps:$4 sm:$0xff]  }
 0x6d7   : > { %13919 = vmatpush1.bf16.msra.mxu0 %v24119_v29  ;;  %14091 = vmatpush1.bf16.msra.mxu1 %v24122_v11  ;;  %v24209_v29 = vld [vmem:[#allocation2 + $0x34c0] ss:$16 sps:$4 sm:$0xff]   ;;  %v24212_v11 = vld [vmem:[#allocation2 + $0x34c8] ss:$16 sps:$4 sm:$0xff]  }
 0x6d8   : > { %13920 = vmatprep.subr.bf16.mxu0 %v24127_v7  ;;  %14092 = vmatprep.subr.bf16.mxu1 %v24130_v15  ;;  %v24217_v7 = vld [vmem:[#allocation2 + $0x34e4] ss:$16 sps:$4 sm:$0xff]   ;;  %v24220_v15 = vld [vmem:[#allocation2 + $0x34ec] ss:$16 sps:$4 sm:$0xff]  }
 0x6db   : > { %13921 = vmatpush1.bf16.msra.mxu0 %v24125_v61  ;;  %14093 = vmatpush1.bf16.msra.mxu1 %v24128_v53  ;;  %v24215_v61 = vld [vmem:[#allocation2 + $0x34e0] ss:$16 sps:$4 sm:$0xff]   ;;  %v24218_v53 = vld [vmem:[#allocation2 + $0x34e8] ss:$16 sps:$4 sm:$0xff]  }
 0x6dc   : > { %13922 = vmatprep.subr.bf16.mxu0 %v24133_v30  ;;  %14094 = vmatprep.subr.bf16.mxu1 %v24136_v32  ;;  %v24223_v30 = vld [vmem:[#allocation2 + $0x3504] ss:$16 sps:$4 sm:$0xff]   ;;  %v24226_v32 = vld [vmem:[#allocation2 + $0x350c] ss:$16 sps:$4 sm:$0xff]  }
 0x6df   : > { %13923 = vmatpush1.bf16.msra.mxu0 %v24131_v12  ;;  %14095 = vmatpush1.bf16.msra.mxu1 %v24134_v33  ;;  %v24221_v12 = vld [vmem:[#allocation2 + $0x3500] ss:$16 sps:$4 sm:$0xff]   ;;  %v24224_v33 = vld [vmem:[#allocation2 + $0x3508] ss:$16 sps:$4 sm:$0xff]  }
 0x6e0   : > { %13924 = vmatprep.subr.bf16.mxu0 %v24139_v34  ;;  %14096 = vmatprep.subr.bf16.mxu1 %v24142_v35  ;;  %v24229_v34 = vld [vmem:[#allocation2 + $0x3524] ss:$16 sps:$4 sm:$0xff]   ;;  %v24232_v35 = vld [vmem:[#allocation2 + $0x352c] ss:$16 sps:$4 sm:$0xff]  }
 0x6e3   : > { %13925 = vmatpush1.bf16.msra.mxu0 %v24137_v39  ;;  %14097 = vmatpush1.bf16.msra.mxu1 %v24140_v45  ;;  %v24227_v39 = vld [vmem:[#allocation2 + $0x3520] ss:$16 sps:$4 sm:$0xff]   ;;  %v24230_v45 = vld [vmem:[#allocation2 + $0x3528] ss:$16 sps:$4 sm:$0xff]  }
 0x6e4   : > { %13926 = vmatprep.subr.bf16.mxu0 %v24145_v41  ;;  %14098 = vmatprep.subr.bf16.mxu1 %v24148_v1  ;;  %v24235_v41 = vld [vmem:[#allocation2 + $0x3544] ss:$16 sps:$4 sm:$0xff]   ;;  %v24238_v1 = vld [vmem:[#allocation2 + $0x354c] ss:$16 sps:$4 sm:$0xff]  }
 0x6e7   : > { %13927 = vmatpush1.bf16.msra.mxu0 %v24143_v24  ;;  %14099 = vmatpush1.bf16.msra.mxu1 %v24146_v27  ;;  %v24233_v24 = vld [vmem:[#allocation2 + $0x3540] ss:$16 sps:$4 sm:$0xff]   ;;  %v24236_v27 = vld [vmem:[#allocation2 + $0x3548] ss:$16 sps:$4 sm:$0xff]  }
 0x6e8   : > { %13928 = vmatprep.subr.bf16.mxu0 %v24151_v10  ;;  %14100 = vmatprep.subr.bf16.mxu1 %v24154_v40  ;;  %v24241_v10 = vld [vmem:[#allocation2 + $0x3564] ss:$16 sps:$4 sm:$0xff]   ;;  %v24244_v40 = vld [vmem:[#allocation2 + $0x356c] ss:$16 sps:$4 sm:$0xff]  }
 0x6eb   : > { %13929 = vmatpush1.bf16.msra.mxu0 %v24149_v8  ;;  %14101 = vmatpush1.bf16.msra.mxu1 %v24152_v25  ;;  %v24239_v8 = vld [vmem:[#allocation2 + $0x3560] ss:$16 sps:$4 sm:$0xff]   ;;  %v24242_v25 = vld [vmem:[#allocation2 + $0x3568] ss:$16 sps:$4 sm:$0xff]  }
 0x6ec   : > { %13930 = vmatprep.subr.bf16.mxu0 %v24157_v57  ;;  %14102 = vmatprep.subr.bf16.mxu1 %v24160_v44  ;;  %v24247_v57 = vld [vmem:[#allocation2 + $0x3584] ss:$16 sps:$4 sm:$0xff]   ;;  %v24250_v44 = vld [vmem:[#allocation2 + $0x358c] ss:$16 sps:$4 sm:$0xff]  }
 0x6ef   : > { %13931 = vmatpush1.bf16.msra.mxu0 %v24155_v37  ;;  %14103 = vmatpush1.bf16.msra.mxu1 %v24158_v17  ;;  %v24245_v37 = vld [vmem:[#allocation2 + $0x3580] ss:$16 sps:$4 sm:$0xff]   ;;  %v24248_v17 = vld [vmem:[#allocation2 + $0x3588] ss:$16 sps:$4 sm:$0xff]  }
 0x6f0   : > { %13932 = vmatprep.subr.bf16.mxu0 %v24163_v60  ;;  %14104 = vmatprep.subr.bf16.mxu1 %v24166_v42  ;;  %v24253_v60 = vld [vmem:[#allocation2 + $0x35a4] ss:$16 sps:$4 sm:$0xff]   ;;  %v24256_v42 = vld [vmem:[#allocation2 + $0x35ac] ss:$16 sps:$4 sm:$0xff]  }
 0x6f3   : > { %13933 = vmatpush1.bf16.msra.mxu0 %v24161_v0  ;;  %14105 = vmatpush1.bf16.msra.mxu1 %v24164_v26  ;;  %v24251_v0 = vld [vmem:[#allocation2 + $0x35a0] ss:$16 sps:$4 sm:$0xff]   ;;  %v24254_v26 = vld [vmem:[#allocation2 + $0x35a8] ss:$16 sps:$4 sm:$0xff]  }
 0x6f4   : > { %13934 = vmatprep.subr.bf16.mxu0 %v24169_v55  ;;  %14106 = vmatprep.subr.bf16.mxu1 %v24172_v47  ;;  %v24259_v55 = vld [vmem:[#allocation2 + $0x35c4] ss:$16 sps:$4 sm:$0xff]   ;;  %v24262_v47 = vld [vmem:[#allocation2 + $0x35cc] ss:$16 sps:$4 sm:$0xff]  }
 0x6f7   : > { %13935 = vmatpush1.bf16.msra.mxu0 %v24167_v9  ;;  %14107 = vmatpush1.bf16.msra.mxu1 %v24170_v36  ;;  %v24257_v9 = vld [vmem:[#allocation2 + $0x35c0] ss:$16 sps:$4 sm:$0xff]   ;;  %v24260_v36 = vld [vmem:[#allocation2 + $0x35c8] ss:$16 sps:$4 sm:$0xff]  }
 0x6f8   : > { %13947 = vmatprep.subr.bf16.mxu0 %v24175_v13  ;;  %14119 = vmatprep.subr.bf16.mxu1 %v24178_v59  ;;  %v24265_v13 = vld [vmem:[#allocation2 + $0x35e4] ss:$16 sps:$4 sm:$0xff]   ;;  %v24268_v59 = vld [vmem:[#allocation2 + $0x35ec] ss:$16 sps:$4 sm:$0xff]  }
 0x6fa   : > { %13937 = vmatmul.mubr.bf16.vlgmr.msra.gmra.mrb[0].mxu0 %v20413_v43  ;;  %14109 = vmatmul.mubr.bf16.vlgmr.msra.gmra.mrb[0].mxu1 %v20413_v43  ;;  %v24263_v43 = vld [vmem:[#allocation2 + $0x35e0] ss:$16 sps:$4 sm:$0xff]  }
 0x6fb   : > { %13948 = vmatpush1.bf16.msra.mxu0 %v24173_v3  ;;  %14120 = vmatpush1.bf16.msra.mxu1 %v24176_v4  ;;  %v24266_v3 = vld [vmem:[#allocation2 + $0x35e8] ss:$16 sps:$4 sm:$0xff]   ;;  %v24271_v4 = vld [vmem:[#allocation2 + $0x3604] ss:$16 sps:$4 sm:$0xff]  }
 0x6fc   : > { %13949 = vmatprep.subr.bf16.mxu0 %v24181_v6  ;;  %14121 = vmatprep.subr.bf16.mxu1 %v24184_v50  ;;  %v24274_v6 = vld [vmem:[#allocation2 + $0x360c] ss:$16 sps:$4 sm:$0xff]   ;;  %v20415_v50 = vcombine.low %v25992_v63, %v25995_v2  ;;  %v24275_v63 = vld [vmem:[#allocation2 + $0x3620] ss:$16 sps:$4 sm:$0xff]   ;;  %v24278_v2 = vld [vmem:[#allocation2 + $0x3628] ss:$16 sps:$4 sm:$0xff]  }
 0x6fd   : > { %13979 = vmatprep.mubr.bf16.mxu0 %v20416_v56  ;;  %14151 = vmatprep.mubr.bf16.mxu1 %v20416_v56  ;;  %v26002_v56 = vld [vmem:[%s25967_s8 + $0x18] sm:$0xff] }
 0x6ff   : > { %13950 = vmatpush1.bf16.msra.mxu0 %v24179_v31  ;;  %14122 = vmatpush1.bf16.msra.mxu1 %v24182_v48  ;;  %v26005_v31 = vld [vmem:[%s25967_s8 + $0x38] sm:$0xff]  ;;  %v24269_v48 = vld [vmem:[#allocation2 + $0x3600] ss:$16 sps:$4 sm:$0xff]  }
 0x700   : > { %13951 = vmatprep.subr.bf16.mxu0 %v24187_v14  ;;  %14123 = vmatprep.subr.bf16.mxu1 %v24190_v16  ;;  %v24272_v14 = vld [vmem:[#allocation2 + $0x3608] ss:$16 sps:$4 sm:$0xff]   ;;  %v24277_v16 = vld [vmem:[#allocation2 + $0x3624] ss:$16 sps:$4 sm:$0xff]  }
 0x703   : > { %13952 = vmatpush1.bf16.msra.mxu0 %v24185_v62  ;;  %14124 = vmatpush1.bf16.msra.mxu1 %v24188_v38  ;;  %v24280_v62 = vld [vmem:[#allocation2 + $0x362c] ss:$16 sps:$4 sm:$0xff]   ;;  %v20418_v38 = vcombine.high %v26002_v56, %v26005_v31 }
 0x704   : > { %13953 = vmatprep.subr.bf16.mxu0 %v24193_v18  ;;  %14125 = vmatprep.subr.bf16.mxu1 %v24196_v49  ;;  %v24283_v18 = vld [vmem:[#allocation2 + $0x3644] ss:$16 sps:$4 sm:$0xff]   ;;  %v24286_v49 = vld [vmem:[#allocation2 + $0x364c] ss:$16 sps:$4 sm:$0xff]  }
 0x707   : > { %13954 = vmatpush1.bf16.msra.mxu0 %v24191_v54  ;;  %14126 = vmatpush1.bf16.msra.mxu1 %v24194_v46  ;;  %v24281_v54 = vld [vmem:[#allocation2 + $0x3640] ss:$16 sps:$4 sm:$0xff]   ;;  %v24284_v46 = vld [vmem:[#allocation2 + $0x3648] ss:$16 sps:$4 sm:$0xff]  }
 0x708   : > { %13955 = vmatprep.subr.bf16.mxu0 %v24199_v19  ;;  %14127 = vmatprep.subr.bf16.mxu1 %v24202_v20  ;;  %v24289_v19 = vld [vmem:[#allocation2 + $0x3664] ss:$16 sps:$4 sm:$0xff]   ;;  %v24292_v20 = vld [vmem:[#allocation2 + $0x366c] ss:$16 sps:$4 sm:$0xff]  }
 0x70b   : > { %13956 = vmatpush1.bf16.msra.mxu0 %v24197_v21  ;;  %14128 = vmatpush1.bf16.msra.mxu1 %v24200_v51  ;;  %v24287_v21 = vld [vmem:[#allocation2 + $0x3660] ss:$16 sps:$4 sm:$0xff]   ;;  %v24290_v51 = vld [vmem:[#allocation2 + $0x3668] ss:$16 sps:$4 sm:$0xff]  }
 0x70c   : > { %13957 = vmatprep.subr.bf16.mxu0 %v24205_v58  ;;  %14129 = vmatprep.subr.bf16.mxu1 %v24208_v23  ;;  %v24295_v58 = vld [vmem:[#allocation2 + $0x3684] ss:$16 sps:$4 sm:$0xff]   ;;  %v24298_v23 = vld [vmem:[#allocation2 + $0x368c] ss:$16 sps:$4 sm:$0xff]  }
 0x70f   : > { %13958 = vmatpush1.bf16.msra.mxu0 %v24203_v22  ;;  %14130 = vmatpush1.bf16.msra.mxu1 %v24206_v5  ;;  %v24293_v22 = vld [vmem:[#allocation2 + $0x3680] ss:$16 sps:$4 sm:$0xff]   ;;  %v24296_v5 = vld [vmem:[#allocation2 + $0x3688] ss:$16 sps:$4 sm:$0xff]  }
 0x710   : > { %13959 = vmatprep.subr.bf16.mxu0 %v24211_v52  ;;  %14131 = vmatprep.subr.bf16.mxu1 %v24214_v28  ;;  %v24301_v52 = vld [vmem:[#allocation2 + $0x36a4] ss:$16 sps:$4 sm:$0xff]   ;;  %v24304_v28 = vld [vmem:[#allocation2 + $0x36ac] ss:$16 sps:$4 sm:$0xff]  }
 0x713   : > { %13960 = vmatpush1.bf16.msra.mxu0 %v24209_v29  ;;  %14132 = vmatpush1.bf16.msra.mxu1 %v24212_v11  ;;  %v24299_v29 = vld [vmem:[#allocation2 + $0x36a0] ss:$16 sps:$4 sm:$0xff]   ;;  %v24302_v11 = vld [vmem:[#allocation2 + $0x36a8] ss:$16 sps:$4 sm:$0xff]  }
 0x714   : > { %13961 = vmatprep.subr.bf16.mxu0 %v24217_v7  ;;  %14133 = vmatprep.subr.bf16.mxu1 %v24220_v15  ;;  %v24307_v7 = vld [vmem:[#allocation2 + $0x36c4] ss:$16 sps:$4 sm:$0xff]   ;;  %v24310_v15 = vld [vmem:[#allocation2 + $0x36cc] ss:$16 sps:$4 sm:$0xff]  }
 0x717   : > { %13962 = vmatpush1.bf16.msra.mxu0 %v24215_v61  ;;  %14134 = vmatpush1.bf16.msra.mxu1 %v24218_v53  ;;  %v24305_v61 = vld [vmem:[#allocation2 + $0x36c0] ss:$16 sps:$4 sm:$0xff]   ;;  %v24308_v53 = vld [vmem:[#allocation2 + $0x36c8] ss:$16 sps:$4 sm:$0xff]  }
 0x718   : > { %13963 = vmatprep.subr.bf16.mxu0 %v24223_v30  ;;  %14135 = vmatprep.subr.bf16.mxu1 %v24226_v32  ;;  %v24313_v30 = vld [vmem:[#allocation2 + $0x36e4] ss:$16 sps:$4 sm:$0xff]   ;;  %v24316_v32 = vld [vmem:[#allocation2 + $0x36ec] ss:$16 sps:$4 sm:$0xff]  }
 0x71b   : > { %13964 = vmatpush1.bf16.msra.mxu0 %v24221_v12  ;;  %14136 = vmatpush1.bf16.msra.mxu1 %v24224_v33  ;;  %v24311_v12 = vld [vmem:[#allocation2 + $0x36e0] ss:$16 sps:$4 sm:$0xff]   ;;  %v24314_v33 = vld [vmem:[#allocation2 + $0x36e8] ss:$16 sps:$4 sm:$0xff]  }
 0x71c   : > { %13965 = vmatprep.subr.bf16.mxu0 %v24229_v34  ;;  %14137 = vmatprep.subr.bf16.mxu1 %v24232_v35  ;;  %v24319_v34 = vld [vmem:[#allocation2 + $0x3704] ss:$16 sps:$4 sm:$0xff]   ;;  %v24322_v35 = vld [vmem:[#allocation2 + $0x370c] ss:$16 sps:$4 sm:$0xff]  }
 0x71f   : > { %13966 = vmatpush1.bf16.msra.mxu0 %v24227_v39  ;;  %14138 = vmatpush1.bf16.msra.mxu1 %v24230_v45  ;;  %v24317_v39 = vld [vmem:[#allocation2 + $0x3700] ss:$16 sps:$4 sm:$0xff]   ;;  %v24320_v45 = vld [vmem:[#allocation2 + $0x3708] ss:$16 sps:$4 sm:$0xff]  }
 0x720   : > { %13967 = vmatprep.subr.bf16.mxu0 %v24235_v41  ;;  %14139 = vmatprep.subr.bf16.mxu1 %v24238_v1  ;;  %v24325_v41 = vld [vmem:[#allocation2 + $0x3724] ss:$16 sps:$4 sm:$0xff]   ;;  %v24328_v1 = vld [vmem:[#allocation2 + $0x372c] ss:$16 sps:$4 sm:$0xff]  }
 0x723   : > { %13968 = vmatpush1.bf16.msra.mxu0 %v24233_v24  ;;  %14140 = vmatpush1.bf16.msra.mxu1 %v24236_v27  ;;  %v24323_v24 = vld [vmem:[#allocation2 + $0x3720] ss:$16 sps:$4 sm:$0xff]   ;;  %v24326_v27 = vld [vmem:[#allocation2 + $0x3728] ss:$16 sps:$4 sm:$0xff]  }
 0x724   : > { %13969 = vmatprep.subr.bf16.mxu0 %v24241_v10  ;;  %14141 = vmatprep.subr.bf16.mxu1 %v24244_v40  ;;  %v24331_v10 = vld [vmem:[#allocation2 + $0x3744] ss:$16 sps:$4 sm:$0xff]   ;;  %v24334_v40 = vld [vmem:[#allocation2 + $0x374c] ss:$16 sps:$4 sm:$0xff]  }
 0x727   : > { %13970 = vmatpush1.bf16.msra.mxu0 %v24239_v8  ;;  %14142 = vmatpush1.bf16.msra.mxu1 %v24242_v25  ;;  %v24329_v8 = vld [vmem:[#allocation2 + $0x3740] ss:$16 sps:$4 sm:$0xff]   ;;  %v24332_v25 = vld [vmem:[#allocation2 + $0x3748] ss:$16 sps:$4 sm:$0xff]  }
 0x728   : > { %13971 = vmatprep.subr.bf16.mxu0 %v24247_v57  ;;  %14143 = vmatprep.subr.bf16.mxu1 %v24250_v44  ;;  %v24337_v57 = vld [vmem:[#allocation2 + $0x3764] ss:$16 sps:$4 sm:$0xff]   ;;  %v24340_v44 = vld [vmem:[#allocation2 + $0x376c] ss:$16 sps:$4 sm:$0xff]  }
 0x72b   : > { %13972 = vmatpush1.bf16.msra.mxu0 %v24245_v37  ;;  %14144 = vmatpush1.bf16.msra.mxu1 %v24248_v17  ;;  %v24335_v37 = vld [vmem:[#allocation2 + $0x3760] ss:$16 sps:$4 sm:$0xff]   ;;  %v24338_v17 = vld [vmem:[#allocation2 + $0x3768] ss:$16 sps:$4 sm:$0xff]  }
 0x72c   : > { %13973 = vmatprep.subr.bf16.mxu0 %v24253_v60  ;;  %14145 = vmatprep.subr.bf16.mxu1 %v24256_v42  ;;  %v24343_v60 = vld [vmem:[#allocation2 + $0x3784] ss:$16 sps:$4 sm:$0xff]   ;;  %v24346_v42 = vld [vmem:[#allocation2 + $0x378c] ss:$16 sps:$4 sm:$0xff]  }
 0x72f   : > { %13974 = vmatpush1.bf16.msra.mxu0 %v24251_v0  ;;  %14146 = vmatpush1.bf16.msra.mxu1 %v24254_v26  ;;  %v24341_v0 = vld [vmem:[#allocation2 + $0x3780] ss:$16 sps:$4 sm:$0xff]   ;;  %v24344_v26 = vld [vmem:[#allocation2 + $0x3788] ss:$16 sps:$4 sm:$0xff]  }
 0x730   : > { %13975 = vmatprep.subr.bf16.mxu0 %v24259_v55  ;;  %14147 = vmatprep.subr.bf16.mxu1 %v24262_v47  ;;  %v26010_v55 = vld [vmem:[%s25967_s8] sm:$0xff] }
 0x731   : > { %v26013_v47 = vld [vmem:[%s25967_s8 + $0x20] sm:$0xff] }
 0x733   : > { %13976 = vmatpush1.bf16.msra.mxu0 %v24257_v9  ;;  %14148 = vmatpush1.bf16.msra.mxu1 %v24260_v36  ;;  %v24349_v9 = vld [vmem:[#allocation2 + $0x37a4] ss:$16 sps:$4 sm:$0xff]   ;;  %v24352_v36 = vld [vmem:[#allocation2 + $0x37ac] ss:$16 sps:$4 sm:$0xff]  }
 0x734   : > { %13977 = vmatprep.subr.bf16.mxu0 %v24265_v13  ;;  %14149 = vmatprep.subr.bf16.mxu1 %v24268_v59  ;;  %v20676_v13 = vcombine.high %v26010_v55, %v26013_v47  ;;  %v24347_v59 = vld [vmem:[#allocation2 + $0x37a0] ss:$16 sps:$4 sm:$0xff]  }
 0x737   : > { %13978 = vmatpush1.bf16.msra.mxu0 %v24263_v43  ;;  %14150 = vmatpush1.bf16.msra.mxu1 %v24266_v3  ;;  %v24350_v43 = vld [vmem:[#allocation2 + $0x37a8] ss:$16 sps:$4 sm:$0xff]   ;;  %v26018_v3 = vld [vmem:[%s25967_s8 + $0x40] sm:$0x11] }
 0x738   : > { %13990 = vmatprep.subr.bf16.mxu0 %v24271_v4  ;;  %14162 = vmatprep.subr.bf16.mxu1 %v24274_v6  ;;  %v24355_v4 = vld [vmem:[#allocation2 + $0x37c4] ss:$16 sps:$4 sm:$0xff]   ;;  %v24358_v6 = vld [vmem:[#allocation2 + $0x37cc] ss:$16 sps:$4 sm:$0xff]  }
 0x73a   : > { %13980 = vmatmul.mubr.bf16.vlgmr.msra.gmra.mrb[0].mxu0 %v20415_v50  ;;  %14152 = vmatmul.mubr.bf16.vlgmr.msra.gmra.mrb[0].mxu1 %v20415_v50  ;;  %v26022_v50 = vcombine.high %v26018_v3, %v26018_v3 }
 0x73b   : > { %13991 = vmatpush1.bf16.msra.mxu0 %v24269_v48  ;;  %14163 = vmatpush1.bf16.msra.mxu1 %v24272_v14  ;;  %v14549_v48 = vshll.u32 %v20676_v13, 16  ;;  %v24353_v14 = vld [vmem:[#allocation2 + $0x37c0] ss:$16 sps:$4 sm:$0xff]  }
 0x73c   : > { %13992 = vmatprep.subr.bf16.mxu0 %v24277_v16  ;;  %14164 = vmatprep.subr.bf16.mxu1 %v24280_v62  ;;  %v24356_v16 = vld [vmem:[#allocation2 + $0x37c8] ss:$16 sps:$4 sm:$0xff]   ;;  %v24361_v62 = vld [vmem:[#allocation2 + $0x37e4] ss:$16 sps:$4 sm:$0xff]  }
 0x73d   : > { %14022 = vmatprep.mubr.bf16.mxu0 %v20418_v38  ;;  %14194 = vmatprep.mubr.bf16.mxu1 %v20418_v38  ;;  %v24364_v38 = vld [vmem:[#allocation2 + $0x37ec] ss:$16 sps:$4 sm:$0xff]  }
 0x73f   : > { %13993 = vmatpush1.bf16.msra.mxu0 %v24275_v63  ;;  %14165 = vmatpush1.bf16.msra.mxu1 %v24278_v2  ;;  %v14547_v63 = vshrl.u32 %v20676_v13, 16  ;;  %v14551_v2 = vrot.slane %v14549_v48, 1  ;;  %v24430_v13 = vld [vmem:[#allocation2 + $0x394c] ss:$16 sps:$4 sm:$0xff]   ;;  %v24431_v48 = vld [vmem:[#allocation2 + $0x3960] ss:$16 sps:$4 sm:$0xff]  }
 0x740   : > { %13994 = vmatprep.subr.bf16.mxu0 %v24283_v18  ;;  %14166 = vmatprep.subr.bf16.mxu1 %v24286_v49  ;;  %v14554_v18 = vshll.u32 %v26022_v50, 16  ;;  %v24359_v49 = vld [vmem:[#allocation2 + $0x37e0] ss:$16 sps:$4 sm:$0xff]  }
 0x743   : > { %13995 = vmatpush1.bf16.msra.mxu0 %v24281_v54  ;;  %14167 = vmatpush1.bf16.msra.mxu1 %v24284_v46  ;;  %v24362_v54 = vld [vmem:[#allocation2 + $0x37e8] ss:$16 sps:$4 sm:$0xff]   ;;  %v24367_v46 = vld [vmem:[#allocation2 + $0x3804] ss:$16 sps:$4 sm:$0xff]  }
 0x744   : > { %13996 = vmatprep.subr.bf16.mxu0 %v24289_v19  ;;  %14168 = vmatprep.subr.bf16.mxu1 %v24292_v20  ;;  %v24370_v19 = vld [vmem:[#allocation2 + $0x380c] ss:$16 sps:$4 sm:$0xff]   ;;  %v20417_v20 = vcombine.low %v26002_v56, %v26005_v31  ;;  %v24379_v56 = vld [vmem:[#allocation2 + $0x3844] ss:$16 sps:$4 sm:$0xff]  }
 0x745   : > { %v24382_v31 = vld [vmem:[#allocation2 + $0x384c] ss:$16 sps:$4 sm:$0xff]  }
 0x747   : > { %13997 = vmatpush1.bf16.msra.mxu0 %v24287_v21  ;;  %14169 = vmatpush1.bf16.msra.mxu1 %v24290_v51  ;;  %v14552_v21 = vor.u32 %v14551_v2, %v14547_v63  ;;  %v14556_v51 = vrot.slane %v14554_v18, 1  ;;  %v24440_v63 = vld [vmem:[#allocation2 + $0x3988] ss:$16 sps:$4 sm:$0xff]   ;;  %v20675_v2 = vcombine.low %v26010_v55, %v26013_v47 }
 0x748   : > { %13998 = vmatprep.subr.bf16.mxu0 %v24295_v58  ;;  %14170 = vmatprep.subr.bf16.mxu1 %v24298_v23  ;;  %v24365_v58 = vld [vmem:[#allocation2 + $0x3800] ss:$16 sps:$4 sm:$0xff]   ;;  %v24368_v23 = vld [vmem:[#allocation2 + $0x3808] ss:$16 sps:$4 sm:$0xff]  }
 0x749   : > { %v26031_v18 = vld [vmem:[%s25967_s8 + $0x8] sm:$0xff]  ;;  %v14537_v55 = vshll.u32 %v20675_v2, 16 }
 0x74a   : > { %v26043_v47 = vld [vmem:[%s25967_s8 + $0x48] sm:$0x11] }
 0x74b   : > { %13999 = vmatpush1.bf16.msra.mxu0 %v24293_v22  ;;  %14171 = vmatpush1.bf16.msra.mxu1 %v24296_v5  ;;  %v24373_v22 = vld [vmem:[#allocation2 + $0x3824] ss:$16 sps:$4 sm:$0xff]   ;;  %v24376_v5 = vld [vmem:[#allocation2 + $0x382c] ss:$16 sps:$4 sm:$0xff]  }
 0x74c   : > { %14000 = vmatprep.subr.bf16.mxu0 %v24301_v52  ;;  %14172 = vmatprep.subr.bf16.mxu1 %v24304_v28  ;;  %v14557_v52 = vsel %vm1030_vm0, %v14552_v21, %v14556_v51  ;;  %v24371_v28 = vld [vmem:[#allocation2 + $0x3820] ss:$16 sps:$4 sm:$0xff]   ;;  %v24446_v21 = vld [vmem:[#allocation2 + $0x39a8] ss:$16 sps:$4 sm:$0xff]   ;;  %v26040_v51 = vcombine.low %v26018_v3, %v26018_v3 }
 0x74e   : > { %v14542_v3 = vshll.u32 %v26040_v51, 16 }
 0x74f   : > { %14001 = vmatpush1.bf16.msra.mxu0 %v24299_v29  ;;  %14173 = vmatpush1.bf16.msra.mxu1 %v24302_v11  ;;  %v24374_v29 = vld [vmem:[#allocation2 + $0x3828] ss:$16 sps:$4 sm:$0xff]   ;;  %v24377_v11 = vld [vmem:[#allocation2 + $0x3840] ss:$16 sps:$4 sm:$0xff]  }
 0x750   : > { %14002 = vmatprep.subr.bf16.mxu0 %v24307_v7  ;;  %14174 = vmatprep.subr.bf16.mxu1 %v24310_v15  ;;  %v24380_v7 = vld [vmem:[#allocation2 + $0x3848] ss:$16 sps:$4 sm:$0xff]   ;;  %v24385_v15 = vld [vmem:[#allocation2 + $0x3864] ss:$16 sps:$4 sm:$0xff]  }
 0x753   : > { %14003 = vmatpush1.bf16.msra.mxu0 %v24305_v61  ;;  %14175 = vmatpush1.bf16.msra.mxu1 %v24308_v53  ;;  %v24388_v61 = vld [vmem:[#allocation2 + $0x386c] ss:$16 sps:$4 sm:$0xff]   ;;  %v24383_v53 = vld [vmem:[#allocation2 + $0x3860] ss:$16 sps:$4 sm:$0xff]  }
 0x754   : > { %14004 = vmatprep.subr.bf16.mxu0 %v24313_v30  ;;  %14176 = vmatprep.subr.bf16.mxu1 %v24316_v32  ;;  %v24386_v30 = vld [vmem:[#allocation2 + $0x3868] ss:$16 sps:$4 sm:$0xff]   ;;  %v24391_v32 = vld [vmem:[#allocation2 + $0x3884] ss:$16 sps:$4 sm:$0xff]  }
 0x757   : > { %14005 = vmatpush1.bf16.msra.mxu0 %v24311_v12  ;;  %14177 = vmatpush1.bf16.msra.mxu1 %v24314_v33  ;;  %v24394_v12 = vld [vmem:[#allocation2 + $0x388c] ss:$16 sps:$4 sm:$0xff]   ;;  %v24389_v33 = vld [vmem:[#allocation2 + $0x3880] ss:$16 sps:$4 sm:$0xff]  }
 0x758   : > { %14006 = vmatprep.subr.bf16.mxu0 %v24319_v34  ;;  %14178 = vmatprep.subr.bf16.mxu1 %v24322_v35  ;;  %v24392_v34 = vld [vmem:[#allocation2 + $0x3888] ss:$16 sps:$4 sm:$0xff]   ;;  %v24397_v35 = vld [vmem:[#allocation2 + $0x38a4] ss:$16 sps:$4 sm:$0xff]  }
 0x75b   : > { %14007 = vmatpush1.bf16.msra.mxu0 %v24317_v39  ;;  %14179 = vmatpush1.bf16.msra.mxu1 %v24320_v45  ;;  %v24400_v39 = vld [vmem:[#allocation2 + $0x38ac] ss:$16 sps:$4 sm:$0xff]   ;;  %v24395_v45 = vld [vmem:[#allocation2 + $0x38a0] ss:$16 sps:$4 sm:$0xff]  }
 0x75c   : > { %14008 = vmatprep.subr.bf16.mxu0 %v24325_v41  ;;  %14180 = vmatprep.subr.bf16.mxu1 %v24328_v1  ;;  %v24398_v41 = vld [vmem:[#allocation2 + $0x38a8] ss:$16 sps:$4 sm:$0xff]   ;;  %v24403_v1 = vld [vmem:[#allocation2 + $0x38c4] ss:$16 sps:$4 sm:$0xff]  }
 0x75f   : > { %14009 = vmatpush1.bf16.msra.mxu0 %v24323_v24  ;;  %14181 = vmatpush1.bf16.msra.mxu1 %v24326_v27  ;;  %v24406_v24 = vld [vmem:[#allocation2 + $0x38cc] ss:$16 sps:$4 sm:$0xff]   ;;  %v24401_v27 = vld [vmem:[#allocation2 + $0x38c0] ss:$16 sps:$4 sm:$0xff]  }
 0x760   : > { %14010 = vmatprep.subr.bf16.mxu0 %v24331_v10  ;;  %14182 = vmatprep.subr.bf16.mxu1 %v24334_v40  ;;  %v24404_v10 = vld [vmem:[#allocation2 + $0x38c8] ss:$16 sps:$4 sm:$0xff]   ;;  %v24409_v40 = vld [vmem:[#allocation2 + $0x38e4] ss:$16 sps:$4 sm:$0xff]  }
 0x763   : > { %14011 = vmatpush1.bf16.msra.mxu0 %v24329_v8  ;;  %14183 = vmatpush1.bf16.msra.mxu1 %v24332_v25  ;;  %v24412_v8 = vld [vmem:[#allocation2 + $0x38ec] ss:$16 sps:$4 sm:$0xff]   ;;  %v24407_v25 = vld [vmem:[#allocation2 + $0x38e0] ss:$16 sps:$4 sm:$0xff]  }
 0x764   : > { %14012 = vmatprep.subr.bf16.mxu0 %v24337_v57  ;;  %14184 = vmatprep.subr.bf16.mxu1 %v24340_v44  ;;  %v24410_v57 = vld [vmem:[#allocation2 + $0x38e8] ss:$16 sps:$4 sm:$0xff]   ;;  %v24415_v44 = vld [vmem:[#allocation2 + $0x3904] ss:$16 sps:$4 sm:$0xff]  }
 0x767   : > { %14013 = vmatpush1.bf16.msra.mxu0 %v24335_v37  ;;  %14185 = vmatpush1.bf16.msra.mxu1 %v24338_v17  ;;  %v24418_v37 = vld [vmem:[#allocation2 + $0x390c] ss:$16 sps:$4 sm:$0xff]   ;;  %v24413_v17 = vld [vmem:[#allocation2 + $0x3900] ss:$16 sps:$4 sm:$0xff]  }
 0x768   : > { %14014 = vmatprep.subr.bf16.mxu0 %v24343_v60  ;;  %14186 = vmatprep.subr.bf16.mxu1 %v24346_v42  ;;  %v24416_v60 = vld [vmem:[#allocation2 + $0x3908] ss:$16 sps:$4 sm:$0xff]   ;;  %v24421_v42 = vld [vmem:[#allocation2 + $0x3924] ss:$16 sps:$4 sm:$0xff]  }
 0x76b   : > { %14015 = vmatpush1.bf16.msra.mxu0 %v24341_v0  ;;  %14187 = vmatpush1.bf16.msra.mxu1 %v24344_v26  ;;  %v24424_v0 = vld [vmem:[#allocation2 + $0x392c] ss:$16 sps:$4 sm:$0xff]   ;;  %v24419_v26 = vld [vmem:[#allocation2 + $0x3920] ss:$16 sps:$4 sm:$0xff]  }
 0x76c   : > { %14016 = vmatprep.subr.bf16.mxu0 %v24349_v9  ;;  %14188 = vmatprep.subr.bf16.mxu1 %v24352_v36  ;;  %v24422_v9 = vld [vmem:[#allocation2 + $0x3928] ss:$16 sps:$4 sm:$0xff]   ;;  %v24427_v36 = vld [vmem:[#allocation2 + $0x3944] ss:$16 sps:$4 sm:$0xff]  }
 0x76f   : > { %14017 = vmatpush1.bf16.msra.mxu0 %v24347_v59  ;;  %14189 = vmatpush1.bf16.msra.mxu1 %v24350_v43  ;;  %v24425_v59 = vld [vmem:[#allocation2 + $0x3940] ss:$16 sps:$4 sm:$0xff]   ;;  %v24428_v43 = vld [vmem:[#allocation2 + $0x3948] ss:$16 sps:$4 sm:$0xff]  }
 0x770   : > { %14018 = vmatprep.subr.bf16.mxu0 %v24355_v4  ;;  %14190 = vmatprep.subr.bf16.mxu1 %v24358_v6  ;;  %v24433_v4 = vld [vmem:[#allocation2 + $0x3964] ss:$16 sps:$4 sm:$0xff]   ;;  %v24436_v6 = vld [vmem:[#allocation2 + $0x396c] ss:$16 sps:$4 sm:$0xff]  }
 0x773   : > { %14019 = vmatpush1.bf16.msra.mxu0 %v24353_v14  ;;  %14191 = vmatpush1.bf16.msra.mxu1 %v24356_v16  ;;  %v24434_v14 = vld [vmem:[#allocation2 + $0x3968] ss:$16 sps:$4 sm:$0xff]   ;;  %v24439_v16 = vld [vmem:[#allocation2 + $0x3984] ss:$16 sps:$4 sm:$0xff]  }
 0x774   : > { %14020 = vmatprep.subr.bf16.mxu0 %v24361_v62  ;;  %14192 = vmatprep.subr.bf16.mxu1 %v24364_v38  ;;  %v24442_v62 = vld [vmem:[#allocation2 + $0x398c] ss:$16 sps:$4 sm:$0xff]   ;;  %v24437_v38 = vld [vmem:[#allocation2 + $0x3980] ss:$16 sps:$4 sm:$0xff]  }
 0x777   : > { %14021 = vmatpush1.bf16.msra.mxu0 %v24359_v49  ;;  %14193 = vmatpush1.bf16.msra.mxu1 %v24362_v54  ;;  %v26034_v49 = vld [vmem:[%s25967_s8 + $0x28] sm:$0xff]  ;;  %v24445_v54 = vld [vmem:[#allocation2 + $0x39a4] ss:$16 sps:$4 sm:$0xff]  }
 0x778   : > { %15918 = vmatprep.subr.bf16.mxu0 %v24367_v46  ;;  %16090 = vmatprep.subr.bf16.mxu1 %v24370_v19  ;;  %v24448_v46 = vld [vmem:[#allocation2 + $0x39ac] ss:$16 sps:$4 sm:$0xff]   ;;  %v24443_v19 = vld [vmem:[#allocation2 + $0x39a0] ss:$16 sps:$4 sm:$0xff]  }
 0x77a   : > { %14023 = vmatmul.mubr.bf16.vlgmr.msra.gmra.mrb[0].mxu0 %v20417_v20  ;;  %14195 = vmatmul.mubr.bf16.vlgmr.msra.gmra.mrb[0].mxu1 %v20417_v20  ;;  %v20678_v20 = vcombine.high %v26031_v18, %v26034_v49 }
 0x77b   : > { %15919 = vmatpush1.bf16.msra.mxu0 %v24365_v58  ;;  %16091 = vmatpush1.bf16.msra.mxu1 %v24368_v23  ;;  %v24451_v58 = vld [vmem:[#allocation2 + $0x39c4] ss:$16 sps:$4 sm:$0xff]   ;;  %v24454_v23 = vld [vmem:[#allocation2 + $0x39cc] ss:$16 sps:$4 sm:$0xff]  }
 0x77c   : > { %15920 = vmatprep.subr.bf16.mxu0 %v24373_v22  ;;  %16092 = vmatprep.subr.bf16.mxu1 %v24376_v5  ;;  %v24449_v22 = vld [vmem:[#allocation2 + $0x39c0] ss:$16 sps:$4 sm:$0xff]   ;;  %v26047_v5 = vcombine.high %v26043_v47, %v26043_v47 }
 0x77d   : > { %15950 = vmatprep.mubr.bf16.mxu0 %v14557_v52  ;;  %16122 = vmatprep.mubr.bf16.mxu1 %v14557_v52  ;;  %v14573_v52 = vshll.u32 %v20678_v20, 16 }
 0x77f   : > { %15921 = vmatpush1.bf16.msra.mxu0 %v24371_v28  ;;  %16093 = vmatpush1.bf16.msra.mxu1 %v24374_v29  ;;  %v24452_v28 = vld [vmem:[#allocation2 + $0x39c8] ss:$16 sps:$4 sm:$0xff]   ;;  %v14535_v29 = vshrl.u32 %v20675_v2, 16  ;;  %v24505_v2 = vld [vmem:[#allocation2 + $0x3ae0] ss:$16 sps:$4 sm:$0xff]  }
 0x780   : > { %15922 = vmatprep.subr.bf16.mxu0 %v24379_v56  ;;  %16094 = vmatprep.subr.bf16.mxu1 %v24382_v31  ;;  %v14539_v56 = vrot.slane %v14537_v55, 1  ;;  %v24457_v31 = vld [vmem:[#allocation2 + $0x39e4] ss:$16 sps:$4 sm:$0xff]  }
 0x781   : > { %v24519_v55 = vld [vmem:[#allocation2 + $0x3b24] ss:$16 sps:$4 sm:$0xff]  }
 0x783   : > { %15923 = vmatpush1.bf16.msra.mxu0 %v24377_v11  ;;  %16095 = vmatpush1.bf16.msra.mxu1 %v24380_v7  ;;  %v24460_v11 = vld [vmem:[#allocation2 + $0x39ec] ss:$16 sps:$4 sm:$0xff]   ;;  %v14571_v7 = vshrl.u32 %v20678_v20, 16  ;;  %v24511_v20 = vld [vmem:[#allocation2 + $0x3b00] ss:$16 sps:$4 sm:$0xff]  }
 0x784   : > { %15924 = vmatprep.subr.bf16.mxu0 %v24385_v15  ;;  %16096 = vmatprep.subr.bf16.mxu1 %v24388_v61  ;;  %v14575_v15 = vrot.slane %v14573_v52, 1  ;;  %v14578_v61 = vshll.u32 %v26047_v5, 16  ;;  %v24525_v52 = vld [vmem:[#allocation2 + $0x3b44] ss:$16 sps:$4 sm:$0xff]  }
 0x787   : > { %15925 = vmatpush1.bf16.msra.mxu0 %v24383_v53  ;;  %16097 = vmatpush1.bf16.msra.mxu1 %v24386_v30  ;;  %v24455_v53 = vld [vmem:[#allocation2 + $0x39e0] ss:$16 sps:$4 sm:$0xff]   ;;  %v24458_v30 = vld [vmem:[#allocation2 + $0x39e8] ss:$16 sps:$4 sm:$0xff]  }
 0x788   : > { %15926 = vmatprep.subr.bf16.mxu0 %v24391_v32  ;;  %16098 = vmatprep.subr.bf16.mxu1 %v24394_v12  ;;  %v14540_v32 = vor.u32 %v14539_v56, %v14535_v29  ;;  %v14544_v12 = vrot.slane %v14542_v3, 1  ;;  %v24523_v29 = vld [vmem:[#allocation2 + $0x3b40] ss:$16 sps:$4 sm:$0xff]   ;;  %v24526_v56 = vld [vmem:[#allocation2 + $0x3b48] ss:$16 sps:$4 sm:$0xff]  }
 0x789   : > { %v24531_v3 = vld [vmem:[#allocation2 + $0x3b64] ss:$16 sps:$4 sm:$0xff]  }
 0x78b   : > { %15927 = vmatpush1.bf16.msra.mxu0 %v24389_v33  ;;  %16099 = vmatpush1.bf16.msra.mxu1 %v24392_v34  ;;  %v24464_v33 = vld [vmem:[#allocation2 + $0x3a04] ss:$16 sps:$4 sm:$0xff]   ;;  %v24467_v34 = vld [vmem:[#allocation2 + $0x3a0c] ss:$16 sps:$4 sm:$0xff]  }
 0x78c   : > { %15928 = vmatprep.subr.bf16.mxu0 %v24397_v35  ;;  %16100 = vmatprep.subr.bf16.mxu1 %v24400_v39  ;;  %v14576_v35 = vor.u32 %v14575_v15, %v14571_v7  ;;  %v14580_v39 = vrot.slane %v14578_v61, 1  ;;  %v24532_v7 = vld [vmem:[#allocation2 + $0x3b68] ss:$16 sps:$4 sm:$0xff]   ;;  %v24537_v15 = vld [vmem:[#allocation2 + $0x3b84] ss:$16 sps:$4 sm:$0xff]  }
 0x78d   : > { %v24540_v61 = vld [vmem:[#allocation2 + $0x3b8c] ss:$16 sps:$4 sm:$0xff]  }
 0x78f   : > { %15929 = vmatpush1.bf16.msra.mxu0 %v24395_v45  ;;  %16101 = vmatpush1.bf16.msra.mxu1 %v24398_v41  ;;  %v24462_v45 = vld [vmem:[#allocation2 + $0x3a00] ss:$16 sps:$4 sm:$0xff]   ;;  %v24465_v41 = vld [vmem:[#allocation2 + $0x3a08] ss:$16 sps:$4 sm:$0xff]  }
 0x790   : > { %15930 = vmatprep.subr.bf16.mxu0 %v24403_v1  ;;  %16102 = vmatprep.subr.bf16.mxu1 %v24406_v24  ;;  %v14545_v1 = vsel %vm1030_vm0, %v14540_v32, %v14544_v12  ;;  %v24471_v24 = vld [vmem:[#allocation2 + $0x3a24] ss:$16 sps:$4 sm:$0xff]   ;;  %v20677_v32 = vcombine.low %v26031_v18, %v26034_v49 }
 0x791   : > { %v26056_v12 = vld [vmem:[%s25967_s8 + $0x10] sm:$0xff] }
 0x792   : > { %v14561_v18 = vshll.u32 %v20677_v32, 16  ;;  %v26068_v49 = vld [vmem:[%s25967_s8 + $0x50] sm:$0x11] }
 0x793   : > { %15931 = vmatpush1.bf16.msra.mxu0 %v24401_v27  ;;  %16103 = vmatpush1.bf16.msra.mxu1 %v24404_v10  ;;  %v24474_v27 = vld [vmem:[#allocation2 + $0x3a2c] ss:$16 sps:$4 sm:$0xff]   ;;  %v14581_v10 = vsel %vm1030_vm0, %v14576_v35, %v14580_v39  ;;  %v24541_v39 = vld [vmem:[#allocation2 + $0x3ba0] ss:$16 sps:$4 sm:$0xff]  }
 0x794   : > { %15932 = vmatprep.subr.bf16.mxu0 %v24409_v40  ;;  %16104 = vmatprep.subr.bf16.mxu1 %v24412_v8  ;;  %v24469_v40 = vld [vmem:[#allocation2 + $0x3a20] ss:$16 sps:$4 sm:$0xff]   ;;  %v24472_v8 = vld [vmem:[#allocation2 + $0x3a28] ss:$16 sps:$4 sm:$0xff]   ;;  %v24546_v35 = vld [vmem:[#allocation2 + $0x3bac] ss:$16 sps:$4 sm:$0xff]  }
 0x797   : > { %15933 = vmatpush1.bf16.msra.mxu0 %v24407_v25  ;;  %16105 = vmatpush1.bf16.msra.mxu1 %v24410_v57  ;;  %v24477_v25 = vld [vmem:[#allocation2 + $0x3a44] ss:$16 sps:$4 sm:$0xff]   ;;  %v24480_v57 = vld [vmem:[#allocation2 + $0x3a4c] ss:$16 sps:$4 sm:$0xff]  }
 0x798   : > { %15934 = vmatprep.subr.bf16.mxu0 %v24415_v44  ;;  %16106 = vmatprep.subr.bf16.mxu1 %v24418_v37  ;;  %v24475_v44 = vld [vmem:[#allocation2 + $0x3a40] ss:$16 sps:$4 sm:$0xff]   ;;  %v24478_v37 = vld [vmem:[#allocation2 + $0x3a48] ss:$16 sps:$4 sm:$0xff]  }
 0x79b   : > { %15935 = vmatpush1.bf16.msra.mxu0 %v24413_v17  ;;  %16107 = vmatpush1.bf16.msra.mxu1 %v24416_v60  ;;  %v24483_v17 = vld [vmem:[#allocation2 + $0x3a64] ss:$16 sps:$4 sm:$0xff]   ;;  %v24486_v60 = vld [vmem:[#allocation2 + $0x3a6c] ss:$16 sps:$4 sm:$0xff]  }
 0x79c   : > { %15936 = vmatprep.subr.bf16.mxu0 %v24421_v42  ;;  %16108 = vmatprep.subr.bf16.mxu1 %v24424_v0  ;;  %v24481_v42 = vld [vmem:[#allocation2 + $0x3a60] ss:$16 sps:$4 sm:$0xff]   ;;  %v24484_v0 = vld [vmem:[#allocation2 + $0x3a68] ss:$16 sps:$4 sm:$0xff]  }
 0x79f   : > { %15937 = vmatpush1.bf16.msra.mxu0 %v24419_v26  ;;  %16109 = vmatpush1.bf16.msra.mxu1 %v24422_v9  ;;  %v24489_v26 = vld [vmem:[#allocation2 + $0x3a84] ss:$16 sps:$4 sm:$0xff]   ;;  %v24492_v9 = vld [vmem:[#allocation2 + $0x3a8c] ss:$16 sps:$4 sm:$0xff]  }
 0x7a0   : > { %15938 = vmatprep.subr.bf16.mxu0 %v24427_v36  ;;  %16110 = vmatprep.subr.bf16.mxu1 %v24430_v13  ;;  %v24487_v36 = vld [vmem:[#allocation2 + $0x3a80] ss:$16 sps:$4 sm:$0xff]   ;;  %v24490_v13 = vld [vmem:[#allocation2 + $0x3a88] ss:$16 sps:$4 sm:$0xff]  }
 0x7a3   : > { %15939 = vmatpush1.bf16.msra.mxu0 %v24425_v59  ;;  %16111 = vmatpush1.bf16.msra.mxu1 %v24428_v43  ;;  %v24495_v59 = vld [vmem:[#allocation2 + $0x3aa4] ss:$16 sps:$4 sm:$0xff]   ;;  %v24498_v43 = vld [vmem:[#allocation2 + $0x3aac] ss:$16 sps:$4 sm:$0xff]  }
 0x7a4   : > { %15940 = vmatprep.subr.bf16.mxu0 %v24433_v4  ;;  %16112 = vmatprep.subr.bf16.mxu1 %v24436_v6  ;;  %v24493_v4 = vld [vmem:[#allocation2 + $0x3aa0] ss:$16 sps:$4 sm:$0xff]   ;;  %v24496_v6 = vld [vmem:[#allocation2 + $0x3aa8] ss:$16 sps:$4 sm:$0xff]  }
 0x7a7   : > { %15941 = vmatpush1.bf16.msra.mxu0 %v24431_v48  ;;  %16113 = vmatpush1.bf16.msra.mxu1 %v24434_v14  ;;  %v24501_v48 = vld [vmem:[#allocation2 + $0x3ac4] ss:$16 sps:$4 sm:$0xff]   ;;  %v24504_v14 = vld [vmem:[#allocation2 + $0x3acc] ss:$16 sps:$4 sm:$0xff]  }
 0x7a8   : > { %15942 = vmatprep.subr.bf16.mxu0 %v24439_v16  ;;  %16114 = vmatprep.subr.bf16.mxu1 %v24442_v62  ;;  %v24499_v16 = vld [vmem:[#allocation2 + $0x3ac0] ss:$16 sps:$4 sm:$0xff]   ;;  %v24502_v62 = vld [vmem:[#allocation2 + $0x3ac8] ss:$16 sps:$4 sm:$0xff]  }
 0x7ab   : > { %15943 = vmatpush1.bf16.msra.mxu0 %v24437_v38  ;;  %16115 = vmatpush1.bf16.msra.mxu1 %v24440_v63  ;;  %v24507_v38 = vld [vmem:[#allocation2 + $0x3ae4] ss:$16 sps:$4 sm:$0xff]   ;;  %v24510_v63 = vld [vmem:[#allocation2 + $0x3aec] ss:$16 sps:$4 sm:$0xff]  }
 0x7ac   : > { %15944 = vmatprep.subr.bf16.mxu0 %v24445_v54  ;;  %16116 = vmatprep.subr.bf16.mxu1 %v24448_v46  ;;  %v24508_v54 = vld [vmem:[#allocation2 + $0x3ae8] ss:$16 sps:$4 sm:$0xff]   ;;  %v24513_v46 = vld [vmem:[#allocation2 + $0x3b04] ss:$16 sps:$4 sm:$0xff]  }
 0x7af   : > { %15945 = vmatpush1.bf16.msra.mxu0 %v24443_v19  ;;  %16117 = vmatpush1.bf16.msra.mxu1 %v24446_v21  ;;  %v24516_v19 = vld [vmem:[#allocation2 + $0x3b0c] ss:$16 sps:$4 sm:$0xff]   ;;  %v24514_v21 = vld [vmem:[#allocation2 + $0x3b08] ss:$16 sps:$4 sm:$0xff]  }
 0x7b0   : > { %15946 = vmatprep.subr.bf16.mxu0 %v24451_v58  ;;  %16118 = vmatprep.subr.bf16.mxu1 %v24454_v23  ;;  %v24522_v58 = vld [vmem:[#allocation2 + $0x3b2c] ss:$16 sps:$4 sm:$0xff]   ;;  %v24517_v23 = vld [vmem:[#allocation2 + $0x3b20] ss:$16 sps:$4 sm:$0xff]  }
 0x7b3   : > { %15947 = vmatpush1.bf16.msra.mxu0 %v24449_v22  ;;  %16119 = vmatpush1.bf16.msra.mxu1 %v24452_v28  ;;  %v24520_v22 = vld [vmem:[#allocation2 + $0x3b28] ss:$16 sps:$4 sm:$0xff]   ;;  %v24528_v28 = vld [vmem:[#allocation2 + $0x3b4c] ss:$16 sps:$4 sm:$0xff]  }
 0x7b4   : > { %15948 = vmatprep.subr.bf16.mxu0 %v24457_v31  ;;  %16120 = vmatprep.subr.bf16.mxu1 %v24460_v11  ;;  %v24534_v31 = vld [vmem:[#allocation2 + $0x3b6c] ss:$16 sps:$4 sm:$0xff]   ;;  %v24529_v11 = vld [vmem:[#allocation2 + $0x3b60] ss:$16 sps:$4 sm:$0xff]  }
 0x7b7   : > { %15949 = vmatpush1.bf16.msra.mxu0 %v24455_v53  ;;  %16121 = vmatpush1.bf16.msra.mxu1 %v24458_v30  ;;  %v24535_v53 = vld [vmem:[#allocation2 + $0x3b80] ss:$16 sps:$4 sm:$0xff]   ;;  %v24538_v30 = vld [vmem:[#allocation2 + $0x3b88] ss:$16 sps:$4 sm:$0xff]  }
 0x7b8   : > { %15961 = vmatprep.subr.bf16.mxu0 %v24464_v33  ;;  %16133 = vmatprep.subr.bf16.mxu1 %v24467_v34  ;;  %v26059_v33 = vld [vmem:[%s25967_s8 + $0x30] sm:$0xff] }
 0x7b9   : > { %v24543_v34 = vld [vmem:[#allocation2 + $0x3ba4] ss:$16 sps:$4 sm:$0xff]  }
 0x7ba   : > { %15951 = vmatmul.mubr.bf16.vlgmr.msra.gmra.mrb[0].mxu0 %v14545_v1  ;;  %16123 = vmatmul.mubr.bf16.vlgmr.msra.gmra.mrb[0].mxu1 %v14545_v1  ;;  %v26065_v1 = vcombine.low %v26043_v47, %v26043_v47 }
 0x7bb   : > { %15962 = vmatpush1.bf16.msra.mxu0 %v24462_v45  ;;  %16134 = vmatpush1.bf16.msra.mxu1 %v24465_v41  ;;  %v20680_v45 = vcombine.high %v26056_v12, %v26059_v33  ;;  %v24544_v41 = vld [vmem:[#allocation2 + $0x3ba8] ss:$16 sps:$4 sm:$0xff]  }
 0x7bc   : > { %15963 = vmatprep.subr.bf16.mxu0 %v24471_v24  ;;  %16135 = vmatprep.subr.bf16.mxu1 %v24474_v27  ;;  %v24549_v24 = vld [vmem:[#allocation2 + $0x3bc4] ss:$16 sps:$4 sm:$0xff]   ;;  %v24552_v27 = vld [vmem:[#allocation2 + $0x3bcc] ss:$16 sps:$4 sm:$0xff]   ;;  %v14566_v47 = vshll.u32 %v26065_v1, 16 }
 0x7bd   : > { %15993 = vmatprep.mubr.bf16.mxu0 %v14581_v10  ;;  %16165 = vmatprep.mubr.bf16.mxu1 %v14581_v10  ;;  %v24547_v10 = vld [vmem:[#allocation2 + $0x3bc0] ss:$16 sps:$4 sm:$0xff]  }
 0x7bf   : > { %15964 = vmatpush1.bf16.msra.mxu0 %v24469_v40  ;;  %16136 = vmatpush1.bf16.msra.mxu1 %v24472_v8  ;;  %v26072_v40 = vcombine.high %v26068_v49, %v26068_v49  ;;  %v14597_v8 = vshll.u32 %v20680_v45, 16 }
 0x7c0   : > { %15965 = vmatprep.subr.bf16.mxu0 %v24477_v25  ;;  %16137 = vmatprep.subr.bf16.mxu1 %v24480_v57  ;;  %v24550_v25 = vld [vmem:[#allocation2 + $0x3bc8] ss:$16 sps:$4 sm:$0xff]   ;;  %v14559_v57 = vshrl.u32 %v20677_v32, 16  ;;  %v24605_v32 = vld [vmem:[#allocation2 + $0x3ce4] ss:$16 sps:$4 sm:$0xff]  }
 0x7c3   : > { %15966 = vmatpush1.bf16.msra.mxu0 %v24475_v44  ;;  %16138 = vmatpush1.bf16.msra.mxu1 %v24478_v37  ;;  %v14563_v44 = vrot.slane %v14561_v18, 1  ;;  %v24555_v37 = vld [vmem:[#allocation2 + $0x3be4] ss:$16 sps:$4 sm:$0xff]   ;;  %v24609_v18 = vld [vmem:[#allocation2 + $0x3d00] ss:$16 sps:$4 sm:$0xff]  }
 0x7c4   : > { %15967 = vmatprep.subr.bf16.mxu0 %v24483_v17  ;;  %16139 = vmatprep.subr.bf16.mxu1 %v24486_v60  ;;  %v24558_v17 = vld [vmem:[#allocation2 + $0x3bec] ss:$16 sps:$4 sm:$0xff]   ;;  %v14595_v60 = vshrl.u32 %v20680_v45, 16  ;;  %v24611_v45 = vld [vmem:[#allocation2 + $0x3d04] ss:$16 sps:$4 sm:$0xff]  }
 0x7c7   : > { %15968 = vmatpush1.bf16.msra.mxu0 %v24481_v42  ;;  %16140 = vmatpush1.bf16.msra.mxu1 %v24484_v0  ;;  %v14599_v42 = vrot.slane %v14597_v8, 1  ;;  %v14602_v0 = vshll.u32 %v26072_v40, 16  ;;  %v24615_v8 = vld [vmem:[#allocation2 + $0x3d20] ss:$16 sps:$4 sm:$0xff]  }
 0x7c8   : > { %15969 = vmatprep.subr.bf16.mxu0 %v24489_v26  ;;  %16141 = vmatprep.subr.bf16.mxu1 %v24492_v9  ;;  %v24553_v26 = vld [vmem:[#allocation2 + $0x3be0] ss:$16 sps:$4 sm:$0xff]   ;;  %v24556_v9 = vld [vmem:[#allocation2 + $0x3be8] ss:$16 sps:$4 sm:$0xff]  }
 0x7cb   : > { %15970 = vmatpush1.bf16.msra.mxu0 %v24487_v36  ;;  %16142 = vmatpush1.bf16.msra.mxu1 %v24490_v13  ;;  %v14564_v36 = vor.u32 %v14563_v44, %v14559_v57  ;;  %v14568_v13 = vrot.slane %v14566_v47, 1  ;;  %v24623_v57 = vld [vmem:[#allocation2 + $0x3d44] ss:$16 sps:$4 sm:$0xff]   ;;  %v24626_v44 = vld [vmem:[#allocation2 + $0x3d4c] ss:$16 sps:$4 sm:$0xff]  }
 0x7cc   : > { %15971 = vmatprep.subr.bf16.mxu0 %v24495_v59  ;;  %16143 = vmatprep.subr.bf16.mxu1 %v24498_v43  ;;  %v24562_v59 = vld [vmem:[#allocation2 + $0x3c04] ss:$16 sps:$4 sm:$0xff]   ;;  %v24565_v43 = vld [vmem:[#allocation2 + $0x3c0c] ss:$16 sps:$4 sm:$0xff]   ;;  %v24621_v47 = vld [vmem:[#allocation2 + $0x3d40] ss:$16 sps:$4 sm:$0xff]  }
 0x7cf   : > { %15972 = vmatpush1.bf16.msra.mxu0 %v24493_v4  ;;  %16144 = vmatpush1.bf16.msra.mxu1 %v24496_v6  ;;  %v14600_v4 = vor.u32 %v14599_v42, %v14595_v60  ;;  %v14604_v6 = vrot.slane %v14602_v0, 1  ;;  %v24632_v60 = vld [vmem:[#allocation2 + $0x3d6c] ss:$16 sps:$4 sm:$0xff]   ;;  %v24627_v42 = vld [vmem:[#allocation2 + $0x3d60] ss:$16 sps:$4 sm:$0xff]  }
 0x7d0   : > { %15973 = vmatprep.subr.bf16.mxu0 %v24501_v48  ;;  %16145 = vmatprep.subr.bf16.mxu1 %v24504_v14  ;;  %v24560_v48 = vld [vmem:[#allocation2 + $0x3c00] ss:$16 sps:$4 sm:$0xff]   ;;  %v24563_v14 = vld [vmem:[#allocation2 + $0x3c08] ss:$16 sps:$4 sm:$0xff]  }
 0x7d1   : > { %v24630_v0 = vld [vmem:[#allocation2 + $0x3d68] ss:$16 sps:$4 sm:$0xff]  }
 0x7d3   : > { %15974 = vmatpush1.bf16.msra.mxu0 %v24499_v16  ;;  %16146 = vmatpush1.bf16.msra.mxu1 %v24502_v62  ;;  %v14569_v16 = vsel %vm1030_vm0, %v14564_v36, %v14568_v13  ;;  %v24569_v62 = vld [vmem:[#allocation2 + $0x3c24] ss:$16 sps:$4 sm:$0xff]   ;;  %v24633_v36 = vld [vmem:[#allocation2 + $0x3d80] ss:$16 sps:$4 sm:$0xff]   ;;  %v24636_v13 = vld [vmem:[#allocation2 + $0x3d88] ss:$16 sps:$4 sm:$0xff]  }
 0x7d4   : > { %15975 = vmatprep.subr.bf16.mxu0 %v24507_v38  ;;  %16147 = vmatprep.subr.bf16.mxu1 %v24510_v63  ;;  %v24572_v38 = vld [vmem:[#allocation2 + $0x3c2c] ss:$16 sps:$4 sm:$0xff]   ;;  %v14605_v63 = vsel %vm1030_vm0, %v14600_v4, %v14604_v6  ;;  %v24641_v6 = vld [vmem:[#allocation2 + $0x3da4] ss:$16 sps:$4 sm:$0xff]  }
 0x7d5   : > { %v26084_v4 = vld [vmem:[%s25967_s8 + $0x38] sm:$0xff] }
 0x7d7   : > { %15976 = vmatpush1.bf16.msra.mxu0 %v24505_v2  ;;  %16148 = vmatpush1.bf16.msra.mxu1 %v24508_v54  ;;  %v24567_v2 = vld [vmem:[#allocation2 + $0x3c20] ss:$16 sps:$4 sm:$0xff]   ;;  %v24570_v54 = vld [vmem:[#allocation2 + $0x3c28] ss:$16 sps:$4 sm:$0xff]  }
 0x7d8   : > { %15977 = vmatprep.subr.bf16.mxu0 %v24513_v46  ;;  %16149 = vmatprep.subr.bf16.mxu1 %v24516_v19  ;;  %v24575_v46 = vld [vmem:[#allocation2 + $0x3c44] ss:$16 sps:$4 sm:$0xff]   ;;  %v24578_v19 = vld [vmem:[#allocation2 + $0x3c4c] ss:$16 sps:$4 sm:$0xff]  }
 0x7db   : > { %15978 = vmatpush1.bf16.msra.mxu0 %v24511_v20  ;;  %16150 = vmatpush1.bf16.msra.mxu1 %v24514_v21  ;;  %v24573_v20 = vld [vmem:[#allocation2 + $0x3c40] ss:$16 sps:$4 sm:$0xff]   ;;  %v24576_v21 = vld [vmem:[#allocation2 + $0x3c48] ss:$16 sps:$4 sm:$0xff]  }
 0x7dc   : > { %15979 = vmatprep.subr.bf16.mxu0 %v24519_v55  ;;  %16151 = vmatprep.subr.bf16.mxu1 %v24522_v58  ;;  %v24581_v55 = vld [vmem:[#allocation2 + $0x3c64] ss:$16 sps:$4 sm:$0xff]   ;;  %v24584_v58 = vld [vmem:[#allocation2 + $0x3c6c] ss:$16 sps:$4 sm:$0xff]  }
 0x7df   : > { %15980 = vmatpush1.bf16.msra.mxu0 %v24517_v23  ;;  %16152 = vmatpush1.bf16.msra.mxu1 %v24520_v22  ;;  %v24579_v23 = vld [vmem:[#allocation2 + $0x3c60] ss:$16 sps:$4 sm:$0xff]   ;;  %v24582_v22 = vld [vmem:[#allocation2 + $0x3c68] ss:$16 sps:$4 sm:$0xff]  }
 0x7e0   : > { %15981 = vmatprep.subr.bf16.mxu0 %v24525_v52  ;;  %16153 = vmatprep.subr.bf16.mxu1 %v24528_v28  ;;  %v24587_v52 = vld [vmem:[#allocation2 + $0x3c84] ss:$16 sps:$4 sm:$0xff]   ;;  %v24590_v28 = vld [vmem:[#allocation2 + $0x3c8c] ss:$16 sps:$4 sm:$0xff]  }
 0x7e3   : > { %15982 = vmatpush1.bf16.msra.mxu0 %v24523_v29  ;;  %16154 = vmatpush1.bf16.msra.mxu1 %v24526_v56  ;;  %v24585_v29 = vld [vmem:[#allocation2 + $0x3c80] ss:$16 sps:$4 sm:$0xff]   ;;  %v24588_v56 = vld [vmem:[#allocation2 + $0x3c88] ss:$16 sps:$4 sm:$0xff]  }
 0x7e4   : > { %15983 = vmatprep.subr.bf16.mxu0 %v24531_v3  ;;  %16155 = vmatprep.subr.bf16.mxu1 %v24534_v31  ;;  %v24593_v3 = vld [vmem:[#allocation2 + $0x3ca4] ss:$16 sps:$4 sm:$0xff]   ;;  %v24596_v31 = vld [vmem:[#allocation2 + $0x3cac] ss:$16 sps:$4 sm:$0xff]  }
 0x7e7   : > { %15984 = vmatpush1.bf16.msra.mxu0 %v24529_v11  ;;  %16156 = vmatpush1.bf16.msra.mxu1 %v24532_v7  ;;  %v24591_v11 = vld [vmem:[#allocation2 + $0x3ca0] ss:$16 sps:$4 sm:$0xff]   ;;  %v24594_v7 = vld [vmem:[#allocation2 + $0x3ca8] ss:$16 sps:$4 sm:$0xff]  }
 0x7e8   : > { %15985 = vmatprep.subr.bf16.mxu0 %v24537_v15  ;;  %16157 = vmatprep.subr.bf16.mxu1 %v24540_v61  ;;  %v24599_v15 = vld [vmem:[#allocation2 + $0x3cc4] ss:$16 sps:$4 sm:$0xff]   ;;  %v24602_v61 = vld [vmem:[#allocation2 + $0x3ccc] ss:$16 sps:$4 sm:$0xff]  }
 0x7eb   : > { %15986 = vmatpush1.bf16.msra.mxu0 %v24535_v53  ;;  %16158 = vmatpush1.bf16.msra.mxu1 %v24538_v30  ;;  %v24597_v53 = vld [vmem:[#allocation2 + $0x3cc0] ss:$16 sps:$4 sm:$0xff]   ;;  %v24600_v30 = vld [vmem:[#allocation2 + $0x3cc8] ss:$16 sps:$4 sm:$0xff]  }
 0x7ec   : > { %15987 = vmatprep.subr.bf16.mxu0 %v24543_v34  ;;  %16159 = vmatprep.subr.bf16.mxu1 %v24546_v35  ;;  %v24608_v34 = vld [vmem:[#allocation2 + $0x3cec] ss:$16 sps:$4 sm:$0xff]   ;;  %v24603_v35 = vld [vmem:[#allocation2 + $0x3ce0] ss:$16 sps:$4 sm:$0xff]  }
 0x7ef   : > { %15988 = vmatpush1.bf16.msra.mxu0 %v24541_v39  ;;  %16160 = vmatpush1.bf16.msra.mxu1 %v24544_v41  ;;  %v24606_v39 = vld [vmem:[#allocation2 + $0x3ce8] ss:$16 sps:$4 sm:$0xff]   ;;  %v24614_v41 = vld [vmem:[#allocation2 + $0x3d0c] ss:$16 sps:$4 sm:$0xff]  }
 0x7f0   : > { %15989 = vmatprep.subr.bf16.mxu0 %v24549_v24  ;;  %16161 = vmatprep.subr.bf16.mxu1 %v24552_v27  ;;  %v24612_v24 = vld [vmem:[#allocation2 + $0x3d08] ss:$16 sps:$4 sm:$0xff]   ;;  %v24617_v27 = vld [vmem:[#allocation2 + $0x3d24] ss:$16 sps:$4 sm:$0xff]  }
 0x7f3   : > { %15990 = vmatpush1.bf16.msra.mxu0 %v24547_v10  ;;  %16162 = vmatpush1.bf16.msra.mxu1 %v24550_v25  ;;  %v24620_v10 = vld [vmem:[#allocation2 + $0x3d2c] ss:$16 sps:$4 sm:$0xff]   ;;  %v24618_v25 = vld [vmem:[#allocation2 + $0x3d28] ss:$16 sps:$4 sm:$0xff]  }
 0x7f4   : > { %15991 = vmatprep.subr.bf16.mxu0 %v24555_v37  ;;  %16163 = vmatprep.subr.bf16.mxu1 %v24558_v17  ;;  %v24624_v37 = vld [vmem:[#allocation2 + $0x3d48] ss:$16 sps:$4 sm:$0xff]   ;;  %v24629_v17 = vld [vmem:[#allocation2 + $0x3d64] ss:$16 sps:$4 sm:$0xff]  }
 0x7f7   : > { %15992 = vmatpush1.bf16.msra.mxu0 %v24553_v26  ;;  %16164 = vmatpush1.bf16.msra.mxu1 %v24556_v9  ;;  %v24635_v26 = vld [vmem:[#allocation2 + $0x3d84] ss:$16 sps:$4 sm:$0xff]   ;;  %v24638_v9 = vld [vmem:[#allocation2 + $0x3d8c] ss:$16 sps:$4 sm:$0xff]  }
 0x7f8   : > { %16004 = vmatprep.subr.bf16.mxu0 %v24562_v59  ;;  %16176 = vmatprep.subr.bf16.mxu1 %v24565_v43  ;;  %v20679_v59 = vcombine.low %v26056_v12, %v26059_v33  ;;  %v26081_v43 = vld [vmem:[%s25967_s8 + $0x18] sm:$0xff] }
 0x7f9   : > { %v26093_v33 = vld [vmem:[%s25967_s8 + $0x58] sm:$0x11] }
 0x7fa   : > { %15994 = vmatmul.mubr.bf16.vlgmr.msra.gmra.mrb[0].mxu0 %v14569_v16  ;;  %16166 = vmatmul.mubr.bf16.vlgmr.msra.gmra.mrb[0].mxu1 %v14569_v16  ;;  %v20682_v16 = vcombine.high %v26081_v43, %v26084_v4  ;;  %v14585_v12 = vshll.u32 %v20679_v59, 16 }
 0x7fb   : > { %16005 = vmatpush1.bf16.msra.mxu0 %v24560_v48  ;;  %16177 = vmatpush1.bf16.msra.mxu1 %v24563_v14  ;;  %v24644_v48 = vld [vmem:[#allocation2 + $0x3dac] ss:$16 sps:$4 sm:$0xff]   ;;  %v24639_v14 = vld [vmem:[#allocation2 + $0x3da0] ss:$16 sps:$4 sm:$0xff]  }
 0x7fc   : > { %16006 = vmatprep.subr.bf16.mxu0 %v24569_v62  ;;  %16178 = vmatprep.subr.bf16.mxu1 %v24572_v38  ;;  %v24642_v62 = vld [vmem:[#allocation2 + $0x3da8] ss:$16 sps:$4 sm:$0xff]   ;;  %v26090_v38 = vcombine.low %v26068_v49, %v26068_v49 }
 0x7fd   : > { %16036 = vmatprep.mubr.bf16.mxu0 %v14605_v63  ;;  %16208 = vmatprep.mubr.bf16.mxu1 %v14605_v63  ;;  %v24647_v63 = vld [vmem:[#allocation2 + $0x3dc4] ss:$16 sps:$4 sm:$0xff]  }
 0x7fe   : > { %v14590_v49 = vshll.u32 %v26090_v38, 16 }
 0x7ff   : > { %16007 = vmatpush1.bf16.msra.mxu0 %v24567_v2  ;;  %16179 = vmatpush1.bf16.msra.mxu1 %v24570_v54  ;;  %v24650_v2 = vld [vmem:[#allocation2 + $0x3dcc] ss:$16 sps:$4 sm:$0xff]   ;;  %v24645_v54 = vld [vmem:[#allocation2 + $0x3dc0] ss:$16 sps:$4 sm:$0xff]  }
 0x800   : > { %16008 = vmatprep.subr.bf16.mxu0 %v24575_v46  ;;  %16180 = vmatprep.subr.bf16.mxu1 %v24578_v19  ;;  %v26097_v46 = vcombine.high %v26093_v33, %v26093_v33  ;;  %v14621_v19 = vshll.u32 %v20682_v16, 16 }
 0x803   : > { %16009 = vmatpush1.bf16.msra.mxu0 %v24573_v20  ;;  %16181 = vmatpush1.bf16.msra.mxu1 %v24576_v21  ;;  %v24648_v20 = vld [vmem:[#allocation2 + $0x3dc8] ss:$16 sps:$4 sm:$0xff]   ;;  %v14583_v21 = vshrl.u32 %v20679_v59, 16  ;;  %v24695_v59 = vld [vmem:[#allocation2 + $0x3ec0] ss:$16 sps:$4 sm:$0xff]  }
 0x804   : > { %16010 = vmatprep.subr.bf16.mxu0 %v24581_v55  ;;  %16182 = vmatprep.subr.bf16.mxu1 %v24584_v58  ;;  %v14587_v55 = vrot.slane %v14585_v12, 1  ;;  %v24653_v58 = vld [vmem:[#allocation2 + $0x3de4] ss:$16 sps:$4 sm:$0xff]  }
 0x805   : > { %v24709_v12 = vld [vmem:[#allocation2 + $0x3f04] ss:$16 sps:$4 sm:$0xff]  }
 0x807   : > { %16011 = vmatpush1.bf16.msra.mxu0 %v24579_v23  ;;  %16183 = vmatpush1.bf16.msra.mxu1 %v24582_v22  ;;  %v24656_v23 = vld [vmem:[#allocation2 + $0x3dec] ss:$16 sps:$4 sm:$0xff]   ;;  %v14619_v22 = vshrl.u32 %v20682_v16, 16  ;;  %v24701_v16 = vld [vmem:[#allocation2 + $0x3ee0] ss:$16 sps:$4 sm:$0xff]  }
 0x808   : > { %16012 = vmatprep.subr.bf16.mxu0 %v24587_v52  ;;  %16184 = vmatprep.subr.bf16.mxu1 %v24590_v28  ;;  %v14623_v52 = vrot.slane %v14621_v19, 1  ;;  %v14626_v28 = vshll.u32 %v26097_v46, 16  ;;  %v24715_v19 = vld [vmem:[#allocation2 + $0x3f24] ss:$16 sps:$4 sm:$0xff]  }
 0x80b   : > { %16013 = vmatpush1.bf16.msra.mxu0 %v24585_v29  ;;  %16185 = vmatpush1.bf16.msra.mxu1 %v24588_v56  ;;  %v24651_v29 = vld [vmem:[#allocation2 + $0x3de0] ss:$16 sps:$4 sm:$0xff]   ;;  %v24654_v56 = vld [vmem:[#allocation2 + $0x3de8] ss:$16 sps:$4 sm:$0xff]  }
 0x80c   : > { %16014 = vmatprep.subr.bf16.mxu0 %v24593_v3  ;;  %16186 = vmatprep.subr.bf16.mxu1 %v24596_v31  ;;  %v14588_v3 = vor.u32 %v14587_v55, %v14583_v21  ;;  %v14592_v31 = vrot.slane %v14590_v49, 1  ;;  %v24713_v21 = vld [vmem:[#allocation2 + $0x3f20] ss:$16 sps:$4 sm:$0xff]   ;;  %v24716_v55 = vld [vmem:[#allocation2 + $0x3f28] ss:$16 sps:$4 sm:$0xff]  }
 0x80d   : > { %v24721_v49 = vld [vmem:[#allocation2 + $0x3f44] ss:$16 sps:$4 sm:$0xff]  }
 0x80f   : > { %16015 = vmatpush1.bf16.msra.mxu0 %v24591_v11  ;;  %16187 = vmatpush1.bf16.msra.mxu1 %v24594_v7  ;;  %v24660_v11 = vld [vmem:[#allocation2 + $0x3e04] ss:$16 sps:$4 sm:$0xff]   ;;  %v24663_v7 = vld [vmem:[#allocation2 + $0x3e0c] ss:$16 sps:$4 sm:$0xff]  }
 0x810   : > { %16016 = vmatprep.subr.bf16.mxu0 %v24599_v15  ;;  %16188 = vmatprep.subr.bf16.mxu1 %v24602_v61  ;;  %v14624_v15 = vor.u32 %v14623_v52, %v14619_v22  ;;  %v14628_v61 = vrot.slane %v14626_v28, 1  ;;  %v24722_v22 = vld [vmem:[#allocation2 + $0x3f48] ss:$16 sps:$4 sm:$0xff]   ;;  %v24727_v52 = vld [vmem:[#allocation2 + $0x3f64] ss:$16 sps:$4 sm:$0xff]  }
 0x811   : > { %v24730_v28 = vld [vmem:[#allocation2 + $0x3f6c] ss:$16 sps:$4 sm:$0xff]  }
 0x813   : > { %16017 = vmatpush1.bf16.msra.mxu0 %v24597_v53  ;;  %16189 = vmatpush1.bf16.msra.mxu1 %v24600_v30  ;;  %v24658_v53 = vld [vmem:[#allocation2 + $0x3e00] ss:$16 sps:$4 sm:$0xff]   ;;  %v24661_v30 = vld [vmem:[#allocation2 + $0x3e08] ss:$16 sps:$4 sm:$0xff]  }
 0x814   : > { %16018 = vmatprep.subr.bf16.mxu0 %v24605_v32  ;;  %16190 = vmatprep.subr.bf16.mxu1 %v24608_v34  ;;  %v14593_v32 = vsel %vm1030_vm0, %v14588_v3, %v14592_v31  ;;  %v24667_v34 = vld [vmem:[#allocation2 + $0x3e24] ss:$16 sps:$4 sm:$0xff]   ;;  %v24736_v31 = vld [vmem:[#allocation2 + $0x3f8c] ss:$16 sps:$4 sm:$0xff]  }
 0x815   : > { %v24733_v3 = vld [vmem:[#allocation2 + $0x3f84] ss:$16 sps:$4 sm:$0xff]  }
 0x817   : > { %16019 = vmatpush1.bf16.msra.mxu0 %v24603_v35  ;;  %16191 = vmatpush1.bf16.msra.mxu1 %v24606_v39  ;;  %v24670_v35 = vld [vmem:[#allocation2 + $0x3e2c] ss:$16 sps:$4 sm:$0xff]   ;;  %v14629_v39 = vsel %vm1030_vm0, %v14624_v15, %v14628_v61  ;;  %v20681_v15 = vcombine.low %v26081_v43, %v26084_v4  ;;  %v24739_v61 = vld [vmem:[#allocation2 + $0x3fa4] ss:$16 sps:$4 sm:$0xff]   ;;  %v24743_v43 = vld [vmem:[#allocation2 + $0x3fc0] ss:$16 sps:$4 sm:$0xff]  }
 0x818   : > { %16020 = vmatprep.subr.bf16.mxu0 %v24611_v45  ;;  %16192 = vmatprep.subr.bf16.mxu1 %v24614_v41  ;;  %v24665_v45 = vld [vmem:[#allocation2 + $0x3e20] ss:$16 sps:$4 sm:$0xff]   ;;  %v24668_v41 = vld [vmem:[#allocation2 + $0x3e28] ss:$16 sps:$4 sm:$0xff]  }
 0x819   : > { %v24746_v4 = vld [vmem:[#allocation2 + $0x3fc8] ss:$16 sps:$4 sm:$0xff]  }
 0x81b   : > { %16021 = vmatpush1.bf16.msra.mxu0 %v24609_v18  ;;  %16193 = vmatpush1.bf16.msra.mxu1 %v24612_v24  ;;  %v24673_v18 = vld [vmem:[#allocation2 + $0x3e44] ss:$16 sps:$4 sm:$0xff]   ;;  %v24676_v24 = vld [vmem:[#allocation2 + $0x3e4c] ss:$16 sps:$4 sm:$0xff]  }
 0x81c   : > { %16022 = vmatprep.subr.bf16.mxu0 %v24617_v27  ;;  %16194 = vmatprep.subr.bf16.mxu1 %v24620_v10  ;;  %v24671_v27 = vld [vmem:[#allocation2 + $0x3e40] ss:$16 sps:$4 sm:$0xff]   ;;  %v24674_v10 = vld [vmem:[#allocation2 + $0x3e48] ss:$16 sps:$4 sm:$0xff]  }
 0x81f   : > { %16023 = vmatpush1.bf16.msra.mxu0 %v24615_v8  ;;  %16195 = vmatpush1.bf16.msra.mxu1 %v24618_v25  ;;  %v24679_v8 = vld [vmem:[#allocation2 + $0x3e64] ss:$16 sps:$4 sm:$0xff]   ;;  %v24682_v25 = vld [vmem:[#allocation2 + $0x3e6c] ss:$16 sps:$4 sm:$0xff]  }
 0x820   : > { %16024 = vmatprep.subr.bf16.mxu0 %v24623_v57  ;;  %16196 = vmatprep.subr.bf16.mxu1 %v24626_v44  ;;  %v24677_v57 = vld [vmem:[#allocation2 + $0x3e60] ss:$16 sps:$4 sm:$0xff]   ;;  %v24680_v44 = vld [vmem:[#allocation2 + $0x3e68] ss:$16 sps:$4 sm:$0xff]  }
 0x823   : > { %16025 = vmatpush1.bf16.msra.mxu0 %v24621_v47  ;;  %16197 = vmatpush1.bf16.msra.mxu1 %v24624_v37  ;;  %v24685_v47 = vld [vmem:[#allocation2 + $0x3e84] ss:$16 sps:$4 sm:$0xff]   ;;  %v24688_v37 = vld [vmem:[#allocation2 + $0x3e8c] ss:$16 sps:$4 sm:$0xff]  }
 0x824   : > { %16026 = vmatprep.subr.bf16.mxu0 %v24629_v17  ;;  %16198 = vmatprep.subr.bf16.mxu1 %v24632_v60  ;;  %v24683_v17 = vld [vmem:[#allocation2 + $0x3e80] ss:$16 sps:$4 sm:$0xff]   ;;  %v24686_v60 = vld [vmem:[#allocation2 + $0x3e88] ss:$16 sps:$4 sm:$0xff]  }
 0x827   : > { %16027 = vmatpush1.bf16.msra.mxu0 %v24627_v42  ;;  %16199 = vmatpush1.bf16.msra.mxu1 %v24630_v0  ;;  %v24691_v42 = vld [vmem:[#allocation2 + $0x3ea4] ss:$16 sps:$4 sm:$0xff]   ;;  %v24694_v0 = vld [vmem:[#allocation2 + $0x3eac] ss:$16 sps:$4 sm:$0xff]  }
 0x828   : > { %16028 = vmatprep.subr.bf16.mxu0 %v24635_v26  ;;  %16200 = vmatprep.subr.bf16.mxu1 %v24638_v9  ;;  %v24689_v26 = vld [vmem:[#allocation2 + $0x3ea0] ss:$16 sps:$4 sm:$0xff]   ;;  %v24692_v9 = vld [vmem:[#allocation2 + $0x3ea8] ss:$16 sps:$4 sm:$0xff]  }
 0x82b   : > { %16029 = vmatpush1.bf16.msra.mxu0 %v24633_v36  ;;  %16201 = vmatpush1.bf16.msra.mxu1 %v24636_v13  ;;  %v24697_v36 = vld [vmem:[#allocation2 + $0x3ec4] ss:$16 sps:$4 sm:$0xff]   ;;  %v24700_v13 = vld [vmem:[#allocation2 + $0x3ecc] ss:$16 sps:$4 sm:$0xff]  }
 0x82c   : > { %16030 = vmatprep.subr.bf16.mxu0 %v24641_v6  ;;  %16202 = vmatprep.subr.bf16.mxu1 %v24644_v48  ;;  %v24698_v6 = vld [vmem:[#allocation2 + $0x3ec8] ss:$16 sps:$4 sm:$0xff]   ;;  %v24703_v48 = vld [vmem:[#allocation2 + $0x3ee4] ss:$16 sps:$4 sm:$0xff]  }
 0x82f   : > { %16031 = vmatpush1.bf16.msra.mxu0 %v24639_v14  ;;  %16203 = vmatpush1.bf16.msra.mxu1 %v24642_v62  ;;  %v24706_v14 = vld [vmem:[#allocation2 + $0x3eec] ss:$16 sps:$4 sm:$0xff]   ;;  %v24704_v62 = vld [vmem:[#allocation2 + $0x3ee8] ss:$16 sps:$4 sm:$0xff]  }
 0x830   : > { %16032 = vmatprep.subr.bf16.mxu0 %v24647_v63  ;;  %16204 = vmatprep.subr.bf16.mxu1 %v24650_v2  ;;  %v24712_v63 = vld [vmem:[#allocation2 + $0x3f0c] ss:$16 sps:$4 sm:$0xff]   ;;  %v24707_v2 = vld [vmem:[#allocation2 + $0x3f00] ss:$16 sps:$4 sm:$0xff]  }
 0x833   : > { %16033 = vmatpush1.bf16.msra.mxu0 %v24645_v54  ;;  %16205 = vmatpush1.bf16.msra.mxu1 %v24648_v20  ;;  %v24710_v54 = vld [vmem:[#allocation2 + $0x3f08] ss:$16 sps:$4 sm:$0xff]   ;;  %v24718_v20 = vld [vmem:[#allocation2 + $0x3f2c] ss:$16 sps:$4 sm:$0xff]  }
 0x834   : > { %16034 = vmatprep.subr.bf16.mxu0 %v24653_v58  ;;  %16206 = vmatprep.subr.bf16.mxu1 %v24656_v23  ;;  %v24724_v58 = vld [vmem:[#allocation2 + $0x3f4c] ss:$16 sps:$4 sm:$0xff]   ;;  %v24719_v23 = vld [vmem:[#allocation2 + $0x3f40] ss:$16 sps:$4 sm:$0xff]  }
 0x837   : > { %16035 = vmatpush1.bf16.msra.mxu0 %v24651_v29  ;;  %16207 = vmatpush1.bf16.msra.mxu1 %v24654_v56  ;;  %v24725_v29 = vld [vmem:[#allocation2 + $0x3f60] ss:$16 sps:$4 sm:$0xff]   ;;  %v24728_v56 = vld [vmem:[#allocation2 + $0x3f68] ss:$16 sps:$4 sm:$0xff]  }
 0x838   : > { %16047 = vmatprep.subr.bf16.mxu0 %v24660_v11  ;;  %16219 = vmatprep.subr.bf16.mxu1 %v24663_v7  ;;  %v24731_v11 = vld [vmem:[#allocation2 + $0x3f80] ss:$16 sps:$4 sm:$0xff]   ;;  %v24734_v7 = vld [vmem:[#allocation2 + $0x3f88] ss:$16 sps:$4 sm:$0xff]  }
 0x83a   : > { %16037 = vmatmul.mubr.bf16.vlgmr.msra.gmra.mrb[0].mxu0 %v14593_v32  ;;  %16209 = vmatmul.mubr.bf16.vlgmr.msra.gmra.mrb[0].mxu1 %v14593_v32  ;;  %v24740_v32 = vld [vmem:[#allocation2 + $0x3fa8] ss:$16 sps:$4 sm:$0xff]  }
 0x83b   : > { %16048 = vmatpush1.bf16.msra.mxu0 %v24658_v53  ;;  %16220 = vmatpush1.bf16.msra.mxu1 %v24661_v30  ;;  %v24742_v53 = vld [vmem:[#allocation2 + $0x3fac] ss:$16 sps:$4 sm:$0xff]   ;;  %v24737_v30 = vld [vmem:[#allocation2 + $0x3fa0] ss:$16 sps:$4 sm:$0xff]  }
 0x83c   : > { %16049 = vmatprep.subr.bf16.mxu0 %v24667_v34  ;;  %16221 = vmatprep.subr.bf16.mxu1 %v24670_v35  ;;  %v26107_v34 = vcombine.low %v26093_v33, %v26093_v33  ;;  %v14609_v35 = vshll.u32 %v20681_v15, 16  ;;  %v24751_v33 = vld [vmem:[#allocation2 + $0x3fe4] ss:$16 sps:$4 sm:$0xff]  }
 0x83d   : > { %16079 = vmatprep.mubr.bf16.mxu0 %v14629_v39  ;;  %16251 = vmatprep.mubr.bf16.mxu1 %v14629_v39  ;;  %v24745_v39 = vld [vmem:[#allocation2 + $0x3fc4] ss:$16 sps:$4 sm:$0xff]  }
 0x83f   : > { %16050 = vmatpush1.bf16.msra.mxu0 %v24665_v45  ;;  %16222 = vmatpush1.bf16.msra.mxu1 %v24668_v41  ;;  %v24748_v45 = vld [vmem:[#allocation2 + $0x3fcc] ss:$16 sps:$4 sm:$0xff]   ;;  %v14607_v41 = vshrl.u32 %v20681_v15, 16  ;;  %v24802_v15 = vld [vmem:[#allocation2 + $0x40e8] ss:$16 sps:$4 sm:$0xff]  }
 0x840   : > { %16051 = vmatprep.subr.bf16.mxu0 %v24673_v18  ;;  %16223 = vmatprep.subr.bf16.mxu1 %v24676_v24  ;;  %v14611_v18 = vrot.slane %v14609_v35, 1  ;;  %v14614_v24 = vshll.u32 %v26107_v34, 16  ;;  %v24813_v35 = vld [vmem:[#allocation2 + $0x4124] ss:$16 sps:$4 sm:$0xff]  }
 0x843   : > { %16052 = vmatpush1.bf16.msra.mxu0 %v24671_v27  ;;  %16224 = vmatpush1.bf16.msra.mxu1 %v24674_v10  ;;  %v26111_v27 = vld [vmem:[%s25967_s8] sm:$0xee]  ;;  %v24754_v10 = vld [vmem:[#allocation2 + $0x3fec] ss:$16 sps:$4 sm:$0xff]  }
 0x844   : > { %16053 = vmatprep.subr.bf16.mxu0 %v24679_v8  ;;  %16225 = vmatprep.subr.bf16.mxu1 %v24682_v25  ;;  %v26114_v8 = vld [vmem:[%s25967_s8 + $0x20] sm:$0xff] }
 0x845   : > { %v20948_v25 = vcombine.high %v26111_v27, %v26114_v8 }
 0x847   : > { %16054 = vmatpush1.bf16.msra.mxu0 %v24677_v57  ;;  %16226 = vmatpush1.bf16.msra.mxu1 %v24680_v44  ;;  %v24749_v57 = vld [vmem:[#allocation2 + $0x3fe0] ss:$16 sps:$4 sm:$0xff]   ;;  %v24752_v44 = vld [vmem:[#allocation2 + $0x3fe8] ss:$16 sps:$4 sm:$0xff]  }
 0x848   : > { %16055 = vmatprep.subr.bf16.mxu0 %v24685_v47  ;;  %16227 = vmatprep.subr.bf16.mxu1 %v24688_v37  ;;  %v14612_v47 = vor.u32 %v14611_v18, %v14607_v41  ;;  %v14616_v37 = vrot.slane %v14614_v24, 1  ;;  %v24822_v41 = vld [vmem:[#allocation2 + $0x414c] ss:$16 sps:$4 sm:$0xff]   ;;  %v24817_v18 = vld [vmem:[#allocation2 + $0x4140] ss:$16 sps:$4 sm:$0xff]  }
 0x849   : > { %v24820_v24 = vld [vmem:[#allocation2 + $0x4148] ss:$16 sps:$4 sm:$0xff]  }
 0x84b   : > { %16056 = vmatpush1.bf16.msra.mxu0 %v24683_v17  ;;  %16228 = vmatpush1.bf16.msra.mxu1 %v24686_v60  ;;  %v24758_v17 = vld [vmem:[#allocation2 + $0x4004] ss:$16 sps:$4 sm:$0xff]   ;;  %v24761_v60 = vld [vmem:[#allocation2 + $0x400c] ss:$16 sps:$4 sm:$0xff]  }
 0x84c   : > { %16057 = vmatprep.subr.bf16.mxu0 %v24691_v42  ;;  %16229 = vmatprep.subr.bf16.mxu1 %v24694_v0  ;;  %v16554_v42 = vrot.slane %v20948_v25, 1  ;;  %v16555_v0 = vrot.slane %v26022_v50, 1  ;;  %v24771_v50 = vld [vmem:[#allocation2 + $0x4044] ss:$16 sps:$4 sm:$0xff]   ;;  %v24823_v25 = vld [vmem:[#allocation2 + $0x4160] ss:$16 sps:$4 sm:$0xff]  }
 0x84f   : > { %16058 = vmatpush1.bf16.msra.mxu0 %v24689_v26  ;;  %16230 = vmatpush1.bf16.msra.mxu1 %v24692_v9  ;;  %v24756_v26 = vld [vmem:[#allocation2 + $0x4000] ss:$16 sps:$4 sm:$0xff]   ;;  %v24759_v9 = vld [vmem:[#allocation2 + $0x4008] ss:$16 sps:$4 sm:$0xff]  }
 0x850   : > { %16059 = vmatprep.subr.bf16.mxu0 %v24697_v36  ;;  %16231 = vmatprep.subr.bf16.mxu1 %v24700_v13  ;;  %v14617_v36 = vsel %vm1030_vm0, %v14612_v47, %v14616_v37  ;;  %v24765_v13 = vld [vmem:[#allocation2 + $0x4024] ss:$16 sps:$4 sm:$0xff]   ;;  %v24834_v47 = vld [vmem:[#allocation2 + $0x418c] ss:$16 sps:$4 sm:$0xff]   ;;  %v24829_v37 = vld [vmem:[#allocation2 + $0x4180] ss:$16 sps:$4 sm:$0xff]  }
 0x853   : > { %16060 = vmatpush1.bf16.msra.mxu0 %v24695_v59  ;;  %16232 = vmatpush1.bf16.msra.mxu1 %v24698_v6  ;;  %v24768_v59 = vld [vmem:[#allocation2 + $0x402c] ss:$16 sps:$4 sm:$0xff]   ;;  %v16556_v6 = vsel %vm4672_vm1, %v16554_v42, %v16555_v0  ;;  %v24835_v0 = vld [vmem:[#allocation2 + $0x41a0] ss:$16 sps:$4 sm:$0xff]  }
 0x854   : > { %16061 = vmatprep.subr.bf16.mxu0 %v24703_v48  ;;  %16233 = vmatprep.subr.bf16.mxu1 %v24706_v14  ;;  %v24763_v48 = vld [vmem:[#allocation2 + $0x4020] ss:$16 sps:$4 sm:$0xff]   ;;  %v24766_v14 = vld [vmem:[#allocation2 + $0x4028] ss:$16 sps:$4 sm:$0xff]   ;;  %v24840_v42 = vld [vmem:[#allocation2 + $0x41ac] ss:$16 sps:$4 sm:$0xff]  }
 0x857   : > { %16062 = vmatpush1.bf16.msra.mxu0 %v24701_v16  ;;  %16234 = vmatpush1.bf16.msra.mxu1 %v24704_v62  ;;  %v24774_v16 = vld [vmem:[#allocation2 + $0x404c] ss:$16 sps:$4 sm:$0xff]   ;;  %v24769_v62 = vld [vmem:[#allocation2 + $0x4040] ss:$16 sps:$4 sm:$0xff]  }
 0x858   : > { %16063 = vmatprep.subr.bf16.mxu0 %v24709_v12  ;;  %16235 = vmatprep.subr.bf16.mxu1 %v24712_v63  ;;  %v24772_v12 = vld [vmem:[#allocation2 + $0x4048] ss:$16 sps:$4 sm:$0xff]   ;;  %v24777_v63 = vld [vmem:[#allocation2 + $0x4064] ss:$16 sps:$4 sm:$0xff]  }
 0x85b   : > { %16064 = vmatpush1.bf16.msra.mxu0 %v24707_v2  ;;  %16236 = vmatpush1.bf16.msra.mxu1 %v24710_v54  ;;  %v24780_v2 = vld [vmem:[#allocation2 + $0x406c] ss:$16 sps:$4 sm:$0xff]   ;;  %v24775_v54 = vld [vmem:[#allocation2 + $0x4060] ss:$16 sps:$4 sm:$0xff]  }
 0x85c   : > { %16065 = vmatprep.subr.bf16.mxu0 %v24715_v19  ;;  %16237 = vmatprep.subr.bf16.mxu1 %v24718_v20  ;;  %v24778_v19 = vld [vmem:[#allocation2 + $0x4068] ss:$16 sps:$4 sm:$0xff]   ;;  %v24783_v20 = vld [vmem:[#allocation2 + $0x4084] ss:$16 sps:$4 sm:$0xff]  }
 0x85f   : > { %16066 = vmatpush1.bf16.msra.mxu0 %v24713_v21  ;;  %16238 = vmatpush1.bf16.msra.mxu1 %v24716_v55  ;;  %v24786_v21 = vld [vmem:[#allocation2 + $0x408c] ss:$16 sps:$4 sm:$0xff]   ;;  %v24781_v55 = vld [vmem:[#allocation2 + $0x4080] ss:$16 sps:$4 sm:$0xff]  }
 0x860   : > { %16067 = vmatprep.subr.bf16.mxu0 %v24721_v49  ;;  %16239 = vmatprep.subr.bf16.mxu1 %v24724_v58  ;;  %v24784_v49 = vld [vmem:[#allocation2 + $0x4088] ss:$16 sps:$4 sm:$0xff]   ;;  %v24789_v58 = vld [vmem:[#allocation2 + $0x40a4] ss:$16 sps:$4 sm:$0xff]  }
 0x863   : > { %16068 = vmatpush1.bf16.msra.mxu0 %v24719_v23  ;;  %16240 = vmatpush1.bf16.msra.mxu1 %v24722_v22  ;;  %v24792_v23 = vld [vmem:[#allocation2 + $0x40ac] ss:$16 sps:$4 sm:$0xff]   ;;  %v24787_v22 = vld [vmem:[#allocation2 + $0x40a0] ss:$16 sps:$4 sm:$0xff]  }
 0x864   : > { %16069 = vmatprep.subr.bf16.mxu0 %v24727_v52  ;;  %16241 = vmatprep.subr.bf16.mxu1 %v24730_v28  ;;  %v24790_v52 = vld [vmem:[#allocation2 + $0x40a8] ss:$16 sps:$4 sm:$0xff]   ;;  %v24795_v28 = vld [vmem:[#allocation2 + $0x40c4] ss:$16 sps:$4 sm:$0xff]  }
 0x867   : > { %16070 = vmatpush1.bf16.msra.mxu0 %v24725_v29  ;;  %16242 = vmatpush1.bf16.msra.mxu1 %v24728_v56  ;;  %v24798_v29 = vld [vmem:[#allocation2 + $0x40cc] ss:$16 sps:$4 sm:$0xff]   ;;  %v24793_v56 = vld [vmem:[#allocation2 + $0x40c0] ss:$16 sps:$4 sm:$0xff]  }
 0x868   : > { %16071 = vmatprep.subr.bf16.mxu0 %v24733_v3  ;;  %16243 = vmatprep.subr.bf16.mxu1 %v24736_v31  ;;  %v24796_v3 = vld [vmem:[#allocation2 + $0x40c8] ss:$16 sps:$4 sm:$0xff]   ;;  %v24801_v31 = vld [vmem:[#allocation2 + $0x40e4] ss:$16 sps:$4 sm:$0xff]  }
 0x86b   : > { %16072 = vmatpush1.bf16.msra.mxu0 %v24731_v11  ;;  %16244 = vmatpush1.bf16.msra.mxu1 %v24734_v7  ;;  %v24804_v11 = vld [vmem:[#allocation2 + $0x40ec] ss:$16 sps:$4 sm:$0xff]   ;;  %v24799_v7 = vld [vmem:[#allocation2 + $0x40e0] ss:$16 sps:$4 sm:$0xff]  }
 0x86c   : > { %16073 = vmatprep.subr.bf16.mxu0 %v24739_v61  ;;  %16245 = vmatprep.subr.bf16.mxu1 %v24742_v53  ;;  %v24807_v61 = vld [vmem:[#allocation2 + $0x4104] ss:$16 sps:$4 sm:$0xff]   ;;  %v24810_v53 = vld [vmem:[#allocation2 + $0x410c] ss:$16 sps:$4 sm:$0xff]  }
 0x86f   : > { %16074 = vmatpush1.bf16.msra.mxu0 %v24737_v30  ;;  %16246 = vmatpush1.bf16.msra.mxu1 %v24740_v32  ;;  %v24805_v30 = vld [vmem:[#allocation2 + $0x4100] ss:$16 sps:$4 sm:$0xff]   ;;  %v24808_v32 = vld [vmem:[#allocation2 + $0x4108] ss:$16 sps:$4 sm:$0xff]  }
 0x870   : > { %16075 = vmatprep.subr.bf16.mxu0 %v24745_v39  ;;  %16247 = vmatprep.subr.bf16.mxu1 %v24748_v45  ;;  %v24816_v39 = vld [vmem:[#allocation2 + $0x412c] ss:$16 sps:$4 sm:$0xff]   ;;  %v24811_v45 = vld [vmem:[#allocation2 + $0x4120] ss:$16 sps:$4 sm:$0xff]  }
 0x873   : > { %16076 = vmatpush1.bf16.msra.mxu0 %v24743_v43  ;;  %16248 = vmatpush1.bf16.msra.mxu1 %v24746_v4  ;;  %v24814_v43 = vld [vmem:[#allocation2 + $0x4128] ss:$16 sps:$4 sm:$0xff]   ;;  %v24819_v4 = vld [vmem:[#allocation2 + $0x4144] ss:$16 sps:$4 sm:$0xff]  }
 0x874   : > { %16077 = vmatprep.subr.bf16.mxu0 %v24751_v33  ;;  %16249 = vmatprep.subr.bf16.mxu1 %v24754_v10  ;;  %v24825_v33 = vld [vmem:[#allocation2 + $0x4164] ss:$16 sps:$4 sm:$0xff]   ;;  %v24828_v10 = vld [vmem:[#allocation2 + $0x416c] ss:$16 sps:$4 sm:$0xff]  }
 0x877   : > { %16078 = vmatpush1.bf16.msra.mxu0 %v24749_v57  ;;  %16250 = vmatpush1.bf16.msra.mxu1 %v24752_v44  ;;  %v24826_v57 = vld [vmem:[#allocation2 + $0x4168] ss:$16 sps:$4 sm:$0xff]   ;;  %v24831_v44 = vld [vmem:[#allocation2 + $0x4184] ss:$16 sps:$4 sm:$0xff]  }
 0x878   : > { %17863 = vmatprep.subr.bf16.mxu0 %v24758_v17  ;;  %18035 = vmatprep.subr.bf16.mxu1 %v24761_v60  ;;  %v24832_v17 = vld [vmem:[#allocation2 + $0x4188] ss:$16 sps:$4 sm:$0xff]   ;;  %v24837_v60 = vld [vmem:[#allocation2 + $0x41a4] ss:$16 sps:$4 sm:$0xff]  }
 0x87a   : > { %16080 = vmatmul.mubr.bf16.vlgmr.msra.gmra.mrb[0].mxu0 %v14617_v36  ;;  %16252 = vmatmul.mubr.bf16.vlgmr.msra.gmra.mrb[0].mxu1 %v14617_v36  ;;  %v24846_v36 = vld [vmem:[#allocation2 + $0x41cc] ss:$16 sps:$4 sm:$0xff]  }
 0x87b   : > { %17864 = vmatpush1.bf16.msra.mxu0 %v24756_v26  ;;  %18036 = vmatpush1.bf16.msra.mxu1 %v24759_v9  ;;  %v24838_v26 = vld [vmem:[#allocation2 + $0x41a8] ss:$16 sps:$4 sm:$0xff]   ;;  %v24843_v9 = vld [vmem:[#allocation2 + $0x41c4] ss:$16 sps:$4 sm:$0xff]  }
 0x87c   : > { %17865 = vmatprep.subr.bf16.mxu0 %v24765_v13  ;;  %18037 = vmatprep.subr.bf16.mxu1 %v24768_v59  ;;  %v24841_v13 = vld [vmem:[#allocation2 + $0x41c0] ss:$16 sps:$4 sm:$0xff]   ;;  %v24844_v59 = vld [vmem:[#allocation2 + $0x41c8] ss:$16 sps:$4 sm:$0xff]  }
 0x87d   : > { %17895 = vmatprep.mubr.bf16.mxu0 %v16556_v6  ;;  %18067 = vmatprep.mubr.bf16.mxu1 %v16556_v6  ;;  %v20947_v6 = vcombine.low %v26111_v27, %v26114_v8  ;;  %v24855_v27 = vld [vmem:[#allocation2 + $0x4204] ss:$16 sps:$4 sm:$0xff]   ;;  %v24858_v8 = vld [vmem:[#allocation2 + $0x420c] ss:$16 sps:$4 sm:$0xff]  }
 0x87f   : > { %17866 = vmatpush1.bf16.msra.mxu0 %v24763_v48  ;;  %18038 = vmatpush1.bf16.msra.mxu1 %v24766_v14  ;;  %v26124_v48 = vld [vmem:[%s25967_s8 + $0x8] sm:$0xee]  ;;  %v24849_v14 = vld [vmem:[#allocation2 + $0x41e4] ss:$16 sps:$4 sm:$0xff]  }
 0x880   : > { %17867 = vmatprep.subr.bf16.mxu0 %v24771_v50  ;;  %18039 = vmatprep.subr.bf16.mxu1 %v24774_v16  ;;  %v24852_v50 = vld [vmem:[#allocation2 + $0x41ec] ss:$16 sps:$4 sm:$0xff]  }
 0x881   : > { %v26127_v16 = vld [vmem:[%s25967_s8 + $0x28] sm:$0xff] }
 0x883   : > { %17868 = vmatpush1.bf16.msra.mxu0 %v24769_v62  ;;  %18040 = vmatpush1.bf16.msra.mxu1 %v24772_v12  ;;  %v20950_v62 = vcombine.high %v26124_v48, %v26127_v16  ;;  %v24847_v12 = vld [vmem:[#allocation2 + $0x41e0] ss:$16 sps:$4 sm:$0xff]  }
 0x884   : > { %17869 = vmatprep.subr.bf16.mxu0 %v24777_v63  ;;  %18041 = vmatprep.subr.bf16.mxu1 %v24780_v2  ;;  %v24850_v63 = vld [vmem:[#allocation2 + $0x41e8] ss:$16 sps:$4 sm:$0xff]   ;;  %v16551_v2 = vrot.slane %v20947_v6, 1  ;;  %v24924_v6 = vld [vmem:[#allocation2 + $0x436c] ss:$16 sps:$4 sm:$0xff]  }
 0x887   : > { %17870 = vmatpush1.bf16.msra.mxu0 %v24775_v54  ;;  %18042 = vmatpush1.bf16.msra.mxu1 %v24778_v19  ;;  %v16552_v54 = vrot.slane %v26040_v51, 1  ;;  %v16560_v19 = vrot.slane %v20950_v62, 1  ;;  %v24927_v62 = vld [vmem:[#allocation2 + $0x4384] ss:$16 sps:$4 sm:$0xff]  }
 0x888   : > { %17871 = vmatprep.subr.bf16.mxu0 %v24783_v20  ;;  %18043 = vmatprep.subr.bf16.mxu1 %v24786_v21  ;;  %v16561_v20 = vrot.slane %v26047_v5, 1  ;;  %v24853_v21 = vld [vmem:[#allocation2 + $0x4200] ss:$16 sps:$4 sm:$0xff]   ;;  %v24867_v5 = vld [vmem:[#allocation2 + $0x4244] ss:$16 sps:$4 sm:$0xff]  }
 0x88a   : > { %v16562_v51 = vsel %vm4672_vm1, %v16560_v19, %v16561_v20  ;;  %v24934_v19 = vld [vmem:[#allocation2 + $0x43a8] ss:$16 sps:$4 sm:$0xff]   ;;  %v24939_v20 = vld [vmem:[#allocation2 + $0x43c4] ss:$16 sps:$4 sm:$0xff]  }
 0x88b   : > { %17872 = vmatpush1.bf16.msra.mxu0 %v24781_v55  ;;  %18044 = vmatpush1.bf16.msra.mxu1 %v24784_v49  ;;  %v24856_v55 = vld [vmem:[#allocation2 + $0x4208] ss:$16 sps:$4 sm:$0xff]   ;;  %v16553_v49 = vsel %vm4672_vm1, %v16551_v2, %v16552_v54  ;;  %v24933_v54 = vld [vmem:[#allocation2 + $0x43a4] ss:$16 sps:$4 sm:$0xff]  }
 0x88c   : > { %17873 = vmatprep.subr.bf16.mxu0 %v24789_v58  ;;  %18045 = vmatprep.subr.bf16.mxu1 %v24792_v23  ;;  %v24861_v58 = vld [vmem:[#allocation2 + $0x4224] ss:$16 sps:$4 sm:$0xff]   ;;  %v24864_v23 = vld [vmem:[#allocation2 + $0x422c] ss:$16 sps:$4 sm:$0xff]   ;;  %v24928_v2 = vld [vmem:[#allocation2 + $0x4388] ss:$16 sps:$4 sm:$0xff]  }
 0x88f   : > { %17874 = vmatpush1.bf16.msra.mxu0 %v24787_v22  ;;  %18046 = vmatpush1.bf16.msra.mxu1 %v24790_v52  ;;  %v24859_v22 = vld [vmem:[#allocation2 + $0x4220] ss:$16 sps:$4 sm:$0xff]   ;;  %v24862_v52 = vld [vmem:[#allocation2 + $0x4228] ss:$16 sps:$4 sm:$0xff]  }
 0x890   : > { %17875 = vmatprep.subr.bf16.mxu0 %v24795_v28  ;;  %18047 = vmatprep.subr.bf16.mxu1 %v24798_v29  ;;  %v24870_v28 = vld [vmem:[#allocation2 + $0x424c] ss:$16 sps:$4 sm:$0xff]   ;;  %v24865_v29 = vld [vmem:[#allocation2 + $0x4240] ss:$16 sps:$4 sm:$0xff]  }
 0x893   : > { %17876 = vmatpush1.bf16.msra.mxu0 %v24793_v56  ;;  %18048 = vmatpush1.bf16.msra.mxu1 %v24796_v3  ;;  %v24868_v56 = vld [vmem:[#allocation2 + $0x4248] ss:$16 sps:$4 sm:$0xff]   ;;  %v24873_v3 = vld [vmem:[#allocation2 + $0x4264] ss:$16 sps:$4 sm:$0xff]  }
 0x894   : > { %17877 = vmatprep.subr.bf16.mxu0 %v24801_v31  ;;  %18049 = vmatprep.subr.bf16.mxu1 %v24804_v11  ;;  %v24876_v31 = vld [vmem:[#allocation2 + $0x426c] ss:$16 sps:$4 sm:$0xff]   ;;  %v24871_v11 = vld [vmem:[#allocation2 + $0x4260] ss:$16 sps:$4 sm:$0xff]  }
 0x897   : > { %17878 = vmatpush1.bf16.msra.mxu0 %v24799_v7  ;;  %18050 = vmatpush1.bf16.msra.mxu1 %v24802_v15  ;;  %v24874_v7 = vld [vmem:[#allocation2 + $0x4268] ss:$16 sps:$4 sm:$0xff]   ;;  %v24879_v15 = vld [vmem:[#allocation2 + $0x4284] ss:$16 sps:$4 sm:$0xff]  }
 0x898   : > { %17879 = vmatprep.subr.bf16.mxu0 %v24807_v61  ;;  %18051 = vmatprep.subr.bf16.mxu1 %v24810_v53  ;;  %v24882_v61 = vld [vmem:[#allocation2 + $0x428c] ss:$16 sps:$4 sm:$0xff]   ;;  %v24877_v53 = vld [vmem:[#allocation2 + $0x4280] ss:$16 sps:$4 sm:$0xff]  }
 0x89b   : > { %17880 = vmatpush1.bf16.msra.mxu0 %v24805_v30  ;;  %18052 = vmatpush1.bf16.msra.mxu1 %v24808_v32  ;;  %v24880_v30 = vld [vmem:[#allocation2 + $0x4288] ss:$16 sps:$4 sm:$0xff]   ;;  %v24885_v32 = vld [vmem:[#allocation2 + $0x42a4] ss:$16 sps:$4 sm:$0xff]  }
 0x89c   : > { %17881 = vmatprep.subr.bf16.mxu0 %v24813_v35  ;;  %18053 = vmatprep.subr.bf16.mxu1 %v24816_v39  ;;  %v24888_v35 = vld [vmem:[#allocation2 + $0x42ac] ss:$16 sps:$4 sm:$0xff]   ;;  %v24883_v39 = vld [vmem:[#allocation2 + $0x42a0] ss:$16 sps:$4 sm:$0xff]  }
 0x89f   : > { %17882 = vmatpush1.bf16.msra.mxu0 %v24811_v45  ;;  %18054 = vmatpush1.bf16.msra.mxu1 %v24814_v43  ;;  %v24886_v45 = vld [vmem:[#allocation2 + $0x42a8] ss:$16 sps:$4 sm:$0xff]   ;;  %v24891_v43 = vld [vmem:[#allocation2 + $0x42c4] ss:$16 sps:$4 sm:$0xff]  }
 0x8a0   : > { %17883 = vmatprep.subr.bf16.mxu0 %v24819_v4  ;;  %18055 = vmatprep.subr.bf16.mxu1 %v24822_v41  ;;  %v24894_v4 = vld [vmem:[#allocation2 + $0x42cc] ss:$16 sps:$4 sm:$0xff]   ;;  %v24889_v41 = vld [vmem:[#allocation2 + $0x42c0] ss:$16 sps:$4 sm:$0xff]  }
 0x8a3   : > { %17884 = vmatpush1.bf16.msra.mxu0 %v24817_v18  ;;  %18056 = vmatpush1.bf16.msra.mxu1 %v24820_v24  ;;  %v24892_v18 = vld [vmem:[#allocation2 + $0x42c8] ss:$16 sps:$4 sm:$0xff]   ;;  %v24897_v24 = vld [vmem:[#allocation2 + $0x42e4] ss:$16 sps:$4 sm:$0xff]  }
 0x8a4   : > { %17885 = vmatprep.subr.bf16.mxu0 %v24825_v33  ;;  %18057 = vmatprep.subr.bf16.mxu1 %v24828_v10  ;;  %v24900_v33 = vld [vmem:[#allocation2 + $0x42ec] ss:$16 sps:$4 sm:$0xff]   ;;  %v24895_v10 = vld [vmem:[#allocation2 + $0x42e0] ss:$16 sps:$4 sm:$0xff]  }
 0x8a7   : > { %17886 = vmatpush1.bf16.msra.mxu0 %v24823_v25  ;;  %18058 = vmatpush1.bf16.msra.mxu1 %v24826_v57  ;;  %v24898_v25 = vld [vmem:[#allocation2 + $0x42e8] ss:$16 sps:$4 sm:$0xff]   ;;  %v24903_v57 = vld [vmem:[#allocation2 + $0x4304] ss:$16 sps:$4 sm:$0xff]  }
 0x8a8   : > { %17887 = vmatprep.subr.bf16.mxu0 %v24831_v44  ;;  %18059 = vmatprep.subr.bf16.mxu1 %v24834_v47  ;;  %v24906_v44 = vld [vmem:[#allocation2 + $0x430c] ss:$16 sps:$4 sm:$0xff]   ;;  %v24901_v47 = vld [vmem:[#allocation2 + $0x4300] ss:$16 sps:$4 sm:$0xff]  }
 0x8ab   : > { %17888 = vmatpush1.bf16.msra.mxu0 %v24829_v37  ;;  %18060 = vmatpush1.bf16.msra.mxu1 %v24832_v17  ;;  %v24904_v37 = vld [vmem:[#allocation2 + $0x4308] ss:$16 sps:$4 sm:$0xff]   ;;  %v24909_v17 = vld [vmem:[#allocation2 + $0x4324] ss:$16 sps:$4 sm:$0xff]  }
 0x8ac   : > { %17889 = vmatprep.subr.bf16.mxu0 %v24837_v60  ;;  %18061 = vmatprep.subr.bf16.mxu1 %v24840_v42  ;;  %v24912_v60 = vld [vmem:[#allocation2 + $0x432c] ss:$16 sps:$4 sm:$0xff]   ;;  %v24907_v42 = vld [vmem:[#allocation2 + $0x4320] ss:$16 sps:$4 sm:$0xff]  }
 0x8af   : > { %17890 = vmatpush1.bf16.msra.mxu0 %v24835_v0  ;;  %18062 = vmatpush1.bf16.msra.mxu1 %v24838_v26  ;;  %v24910_v0 = vld [vmem:[#allocation2 + $0x4328] ss:$16 sps:$4 sm:$0xff]   ;;  %v24915_v26 = vld [vmem:[#allocation2 + $0x4344] ss:$16 sps:$4 sm:$0xff]  }
 0x8b0   : > { %17891 = vmatprep.subr.bf16.mxu0 %v24843_v9  ;;  %18063 = vmatprep.subr.bf16.mxu1 %v24846_v36  ;;  %v24918_v9 = vld [vmem:[#allocation2 + $0x434c] ss:$16 sps:$4 sm:$0xff]   ;;  %v24913_v36 = vld [vmem:[#allocation2 + $0x4340] ss:$16 sps:$4 sm:$0xff]  }
 0x8b3   : > { %17892 = vmatpush1.bf16.msra.mxu0 %v24841_v13  ;;  %18064 = vmatpush1.bf16.msra.mxu1 %v24844_v59  ;;  %v24916_v13 = vld [vmem:[#allocation2 + $0x4348] ss:$16 sps:$4 sm:$0xff]   ;;  %v24921_v59 = vld [vmem:[#allocation2 + $0x4364] ss:$16 sps:$4 sm:$0xff]  }
 0x8b4   : > { %17893 = vmatprep.subr.bf16.mxu0 %v24849_v14  ;;  %18065 = vmatprep.subr.bf16.mxu1 %v24852_v50  ;;  %v24919_v14 = vld [vmem:[#allocation2 + $0x4360] ss:$16 sps:$4 sm:$0xff]   ;;  %v24922_v50 = vld [vmem:[#allocation2 + $0x4368] ss:$16 sps:$4 sm:$0xff]  }
 0x8b7   : > { %17894 = vmatpush1.bf16.msra.mxu0 %v24847_v12  ;;  %18066 = vmatpush1.bf16.msra.mxu1 %v24850_v63  ;;  %v24930_v12 = vld [vmem:[#allocation2 + $0x438c] ss:$16 sps:$4 sm:$0xff]   ;;  %v24925_v63 = vld [vmem:[#allocation2 + $0x4380] ss:$16 sps:$4 sm:$0xff]  }
 0x8b8   : > { %17906 = vmatprep.subr.bf16.mxu0 %v24855_v27  ;;  %18078 = vmatprep.subr.bf16.mxu1 %v24858_v8  ;;  %v24936_v27 = vld [vmem:[#allocation2 + $0x43ac] ss:$16 sps:$4 sm:$0xff]   ;;  %v24931_v8 = vld [vmem:[#allocation2 + $0x43a0] ss:$16 sps:$4 sm:$0xff]  }
 0x8ba   : > { %17896 = vmatmul.mubr.bf16.vlgmr.msra.gmra.mrb[0].mxu0 %v16553_v49  ;;  %18068 = vmatmul.mubr.bf16.vlgmr.msra.gmra.mrb[0].mxu1 %v16553_v49  ;;  %v24940_v49 = vld [vmem:[#allocation2 + $0x43c8] ss:$16 sps:$4 sm:$0xff]  }
 0x8bb   : > { %17907 = vmatpush1.bf16.msra.mxu0 %v24853_v21  ;;  %18079 = vmatpush1.bf16.msra.mxu1 %v24856_v55  ;;  %v24942_v21 = vld [vmem:[#allocation2 + $0x43cc] ss:$16 sps:$4 sm:$0xff]   ;;  %v24937_v55 = vld [vmem:[#allocation2 + $0x43c0] ss:$16 sps:$4 sm:$0xff]  }
 0x8bc   : > { %17908 = vmatprep.subr.bf16.mxu0 %v24861_v58  ;;  %18080 = vmatprep.subr.bf16.mxu1 %v24864_v23  ;;  %v20949_v58 = vcombine.low %v26124_v48, %v26127_v16  ;;  %v26138_v23 = vld [vmem:[%s25967_s8 + $0x10] sm:$0xee]  ;;  %v24954_v16 = vld [vmem:[#allocation2 + $0x440c] ss:$16 sps:$4 sm:$0xff]  }
 0x8bd   : > { %17938 = vmatprep.mubr.bf16.mxu0 %v16562_v51  ;;  %18110 = vmatprep.mubr.bf16.mxu1 %v16562_v51  ;;  %v24945_v51 = vld [vmem:[#allocation2 + $0x43e4] ss:$16 sps:$4 sm:$0xff]  }
 0x8be   : > { %v24951_v48 = vld [vmem:[#allocation2 + $0x4404] ss:$16 sps:$4 sm:$0xff]  }
 0x8bf   : > { %17909 = vmatpush1.bf16.msra.mxu0 %v24859_v22  ;;  %18081 = vmatpush1.bf16.msra.mxu1 %v24862_v52  ;;  %v24948_v22 = vld [vmem:[#allocation2 + $0x43ec] ss:$16 sps:$4 sm:$0xff]   ;;  %v26141_v52 = vld [vmem:[%s25967_s8 + $0x30] sm:$0xff] }
 0x8c0   : > { %17910 = vmatprep.subr.bf16.mxu0 %v24867_v5  ;;  %18082 = vmatprep.subr.bf16.mxu1 %v24870_v28  ;;  %v20952_v5 = vcombine.high %v26138_v23, %v26141_v52  ;;  %v24943_v28 = vld [vmem:[#allocation2 + $0x43e0] ss:$16 sps:$4 sm:$0xff]  }
 0x8c3   : > { %17911 = vmatpush1.bf16.msra.mxu0 %v24865_v29  ;;  %18083 = vmatpush1.bf16.msra.mxu1 %v24868_v56  ;;  %v24946_v29 = vld [vmem:[#allocation2 + $0x43e8] ss:$16 sps:$4 sm:$0xff]   ;;  %v16557_v56 = vrot.slane %v20949_v58, 1 }
 0x8c4   : > { %17912 = vmatprep.subr.bf16.mxu0 %v24873_v3  ;;  %18084 = vmatprep.subr.bf16.mxu1 %v24876_v31  ;;  %v16558_v3 = vrot.slane %v26065_v1, 1  ;;  %v16566_v31 = vrot.slane %v20952_v5, 1  ;;  %v25018_v58 = vld [vmem:[#allocation2 + $0x4568] ss:$16 sps:$4 sm:$0xff]   ;;  %v25021_v5 = vld [vmem:[#allocation2 + $0x4580] ss:$16 sps:$4 sm:$0xff]  }
 0x8c7   : > { %17913 = vmatpush1.bf16.msra.mxu0 %v24871_v11  ;;  %18085 = vmatpush1.bf16.msra.mxu1 %v24874_v7  ;;  %v16567_v11 = vrot.slane %v26072_v40, 1  ;;  %v24949_v7 = vld [vmem:[#allocation2 + $0x4400] ss:$16 sps:$4 sm:$0xff]   ;;  %v24963_v40 = vld [vmem:[#allocation2 + $0x4444] ss:$16 sps:$4 sm:$0xff]  }
 0x8c8   : > { %17914 = vmatprep.subr.bf16.mxu0 %v24879_v15  ;;  %18086 = vmatprep.subr.bf16.mxu1 %v24882_v61  ;;  %v24952_v15 = vld [vmem:[#allocation2 + $0x4408] ss:$16 sps:$4 sm:$0xff]   ;;  %v16559_v61 = vsel %vm4672_vm1, %v16557_v56, %v16558_v3  ;;  %v25032_v56 = vld [vmem:[#allocation2 + $0x45ac] ss:$16 sps:$4 sm:$0xff]   ;;  %v25027_v3 = vld [vmem:[#allocation2 + $0x45a0] ss:$16 sps:$4 sm:$0xff]  }
 0x8c9   : > { %v16568_v1 = vsel %vm4672_vm1, %v16566_v31, %v16567_v11  ;;  %v25038_v31 = vld [vmem:[#allocation2 + $0x45cc] ss:$16 sps:$4 sm:$0xff]   ;;  %v25033_v11 = vld [vmem:[#allocation2 + $0x45c0] ss:$16 sps:$4 sm:$0xff]  }
 0x8cb   : > { %17915 = vmatpush1.bf16.msra.mxu0 %v24877_v53  ;;  %18087 = vmatpush1.bf16.msra.mxu1 %v24880_v30  ;;  %v24957_v53 = vld [vmem:[#allocation2 + $0x4424] ss:$16 sps:$4 sm:$0xff]   ;;  %v24960_v30 = vld [vmem:[#allocation2 + $0x442c] ss:$16 sps:$4 sm:$0xff]  }
 0x8cc   : > { %17916 = vmatprep.subr.bf16.mxu0 %v24885_v32  ;;  %18088 = vmatprep.subr.bf16.mxu1 %v24888_v35  ;;  %v24955_v32 = vld [vmem:[#allocation2 + $0x4420] ss:$16 sps:$4 sm:$0xff]   ;;  %v24958_v35 = vld [vmem:[#allocation2 + $0x4428] ss:$16 sps:$4 sm:$0xff]  }
 0x8cf   : > { %17917 = vmatpush1.bf16.msra.mxu0 %v24883_v39  ;;  %18089 = vmatpush1.bf16.msra.mxu1 %v24886_v45  ;;  %v24966_v39 = vld [vmem:[#allocation2 + $0x444c] ss:$16 sps:$4 sm:$0xff]   ;;  %v24961_v45 = vld [vmem:[#allocation2 + $0x4440] ss:$16 sps:$4 sm:$0xff]  }
 0x8d0   : > { %17918 = vmatprep.subr.bf16.mxu0 %v24891_v43  ;;  %18090 = vmatprep.subr.bf16.mxu1 %v24894_v4  ;;  %v24964_v43 = vld [vmem:[#allocation2 + $0x4448] ss:$16 sps:$4 sm:$0xff]   ;;  %v24969_v4 = vld [vmem:[#allocation2 + $0x4464] ss:$16 sps:$4 sm:$0xff]  }
 0x8d3   : > { %17919 = vmatpush1.bf16.msra.mxu0 %v24889_v41  ;;  %18091 = vmatpush1.bf16.msra.mxu1 %v24892_v18  ;;  %v24972_v41 = vld [vmem:[#allocation2 + $0x446c] ss:$16 sps:$4 sm:$0xff]   ;;  %v24967_v18 = vld [vmem:[#allocation2 + $0x4460] ss:$16 sps:$4 sm:$0xff]  }
 0x8d4   : > { %17920 = vmatprep.subr.bf16.mxu0 %v24897_v24  ;;  %18092 = vmatprep.subr.bf16.mxu1 %v24900_v33  ;;  %v24970_v24 = vld [vmem:[#allocation2 + $0x4468] ss:$16 sps:$4 sm:$0xff]   ;;  %v24975_v33 = vld [vmem:[#allocation2 + $0x4484] ss:$16 sps:$4 sm:$0xff]  }
 0x8d7   : > { %17921 = vmatpush1.bf16.msra.mxu0 %v24895_v10  ;;  %18093 = vmatpush1.bf16.msra.mxu1 %v24898_v25  ;;  %v24978_v10 = vld [vmem:[#allocation2 + $0x448c] ss:$16 sps:$4 sm:$0xff]   ;;  %v24973_v25 = vld [vmem:[#allocation2 + $0x4480] ss:$16 sps:$4 sm:$0xff]  }
 0x8d8   : > { %17922 = vmatprep.subr.bf16.mxu0 %v24903_v57  ;;  %18094 = vmatprep.subr.bf16.mxu1 %v24906_v44  ;;  %v24976_v57 = vld [vmem:[#allocation2 + $0x4488] ss:$16 sps:$4 sm:$0xff]   ;;  %v24981_v44 = vld [vmem:[#allocation2 + $0x44a4] ss:$16 sps:$4 sm:$0xff]  }
 0x8db   : > { %17923 = vmatpush1.bf16.msra.mxu0 %v24901_v47  ;;  %18095 = vmatpush1.bf16.msra.mxu1 %v24904_v37  ;;  %v24984_v47 = vld [vmem:[#allocation2 + $0x44ac] ss:$16 sps:$4 sm:$0xff]   ;;  %v24979_v37 = vld [vmem:[#allocation2 + $0x44a0] ss:$16 sps:$4 sm:$0xff]  }
 0x8dc   : > { %17924 = vmatprep.subr.bf16.mxu0 %v24909_v17  ;;  %18096 = vmatprep.subr.bf16.mxu1 %v24912_v60  ;;  %v24982_v17 = vld [vmem:[#allocation2 + $0x44a8] ss:$16 sps:$4 sm:$0xff]   ;;  %v24987_v60 = vld [vmem:[#allocation2 + $0x44c4] ss:$16 sps:$4 sm:$0xff]  }
 0x8df   : > { %17925 = vmatpush1.bf16.msra.mxu0 %v24907_v42  ;;  %18097 = vmatpush1.bf16.msra.mxu1 %v24910_v0  ;;  %v24990_v42 = vld [vmem:[#allocation2 + $0x44cc] ss:$16 sps:$4 sm:$0xff]   ;;  %v24985_v0 = vld [vmem:[#allocation2 + $0x44c0] ss:$16 sps:$4 sm:$0xff]  }
 0x8e0   : > { %17926 = vmatprep.subr.bf16.mxu0 %v24915_v26  ;;  %18098 = vmatprep.subr.bf16.mxu1 %v24918_v9  ;;  %v24988_v26 = vld [vmem:[#allocation2 + $0x44c8] ss:$16 sps:$4 sm:$0xff]   ;;  %v24993_v9 = vld [vmem:[#allocation2 + $0x44e4] ss:$16 sps:$4 sm:$0xff]  }
 0x8e3   : > { %17927 = vmatpush1.bf16.msra.mxu0 %v24913_v36  ;;  %18099 = vmatpush1.bf16.msra.mxu1 %v24916_v13  ;;  %v24996_v36 = vld [vmem:[#allocation2 + $0x44ec] ss:$16 sps:$4 sm:$0xff]   ;;  %v24991_v13 = vld [vmem:[#allocation2 + $0x44e0] ss:$16 sps:$4 sm:$0xff]  }
 0x8e4   : > { %17928 = vmatprep.subr.bf16.mxu0 %v24921_v59  ;;  %18100 = vmatprep.subr.bf16.mxu1 %v24924_v6  ;;  %v24994_v59 = vld [vmem:[#allocation2 + $0x44e8] ss:$16 sps:$4 sm:$0xff]   ;;  %v24999_v6 = vld [vmem:[#allocation2 + $0x4504] ss:$16 sps:$4 sm:$0xff]  }
 0x8e7   : > { %17929 = vmatpush1.bf16.msra.mxu0 %v24919_v14  ;;  %18101 = vmatpush1.bf16.msra.mxu1 %v24922_v50  ;;  %v25002_v14 = vld [vmem:[#allocation2 + $0x450c] ss:$16 sps:$4 sm:$0xff]   ;;  %v24997_v50 = vld [vmem:[#allocation2 + $0x4500] ss:$16 sps:$4 sm:$0xff]  }
 0x8e8   : > { %17930 = vmatprep.subr.bf16.mxu0 %v24927_v62  ;;  %18102 = vmatprep.subr.bf16.mxu1 %v24930_v12  ;;  %v25000_v62 = vld [vmem:[#allocation2 + $0x4508] ss:$16 sps:$4 sm:$0xff]   ;;  %v25005_v12 = vld [vmem:[#allocation2 + $0x4524] ss:$16 sps:$4 sm:$0xff]  }
 0x8eb   : > { %17931 = vmatpush1.bf16.msra.mxu0 %v24925_v63  ;;  %18103 = vmatpush1.bf16.msra.mxu1 %v24928_v2  ;;  %v25008_v63 = vld [vmem:[#allocation2 + $0x452c] ss:$16 sps:$4 sm:$0xff]   ;;  %v25003_v2 = vld [vmem:[#allocation2 + $0x4520] ss:$16 sps:$4 sm:$0xff]  }
 0x8ec   : > { %17932 = vmatprep.subr.bf16.mxu0 %v24933_v54  ;;  %18104 = vmatprep.subr.bf16.mxu1 %v24936_v27  ;;  %v25006_v54 = vld [vmem:[#allocation2 + $0x4528] ss:$16 sps:$4 sm:$0xff]   ;;  %v25011_v27 = vld [vmem:[#allocation2 + $0x4544] ss:$16 sps:$4 sm:$0xff]  }
 0x8ef   : > { %17933 = vmatpush1.bf16.msra.mxu0 %v24931_v8  ;;  %18105 = vmatpush1.bf16.msra.mxu1 %v24934_v19  ;;  %v25014_v8 = vld [vmem:[#allocation2 + $0x454c] ss:$16 sps:$4 sm:$0xff]   ;;  %v25009_v19 = vld [vmem:[#allocation2 + $0x4540] ss:$16 sps:$4 sm:$0xff]  }
 0x8f0   : > { %17934 = vmatprep.subr.bf16.mxu0 %v24939_v20  ;;  %18106 = vmatprep.subr.bf16.mxu1 %v24942_v21  ;;  %v25012_v20 = vld [vmem:[#allocation2 + $0x4548] ss:$16 sps:$4 sm:$0xff]   ;;  %v25017_v21 = vld [vmem:[#allocation2 + $0x4564] ss:$16 sps:$4 sm:$0xff]  }
 0x8f3   : > { %17935 = vmatpush1.bf16.msra.mxu0 %v24937_v55  ;;  %18107 = vmatpush1.bf16.msra.mxu1 %v24940_v49  ;;  %v25020_v55 = vld [vmem:[#allocation2 + $0x456c] ss:$16 sps:$4 sm:$0xff]   ;;  %v25015_v49 = vld [vmem:[#allocation2 + $0x4560] ss:$16 sps:$4 sm:$0xff]  }
 0x8f4   : > { %17936 = vmatprep.subr.bf16.mxu0 %v24945_v51  ;;  %18108 = vmatprep.subr.bf16.mxu1 %v24948_v22  ;;  %v25023_v51 = vld [vmem:[#allocation2 + $0x4584] ss:$16 sps:$4 sm:$0xff]   ;;  %v25026_v22 = vld [vmem:[#allocation2 + $0x458c] ss:$16 sps:$4 sm:$0xff]  }
 0x8f7   : > { %17937 = vmatpush1.bf16.msra.mxu0 %v24943_v28  ;;  %18109 = vmatpush1.bf16.msra.mxu1 %v24946_v29  ;;  %v25024_v28 = vld [vmem:[#allocation2 + $0x4588] ss:$16 sps:$4 sm:$0xff]   ;;  %v25029_v29 = vld [vmem:[#allocation2 + $0x45a4] ss:$16 sps:$4 sm:$0xff]  }
 0x8f8   : > { %17949 = vmatprep.subr.bf16.mxu0 %v24951_v48  ;;  %18121 = vmatprep.subr.bf16.mxu1 %v24954_v16  ;;  %v25030_v48 = vld [vmem:[#allocation2 + $0x45a8] ss:$16 sps:$4 sm:$0xff]   ;;  %v25035_v16 = vld [vmem:[#allocation2 + $0x45c4] ss:$16 sps:$4 sm:$0xff]  }
 0x8fa   : > { %17939 = vmatmul.mubr.bf16.vlgmr.msra.gmra.mrb[0].mxu0 %v16559_v61  ;;  %18111 = vmatmul.mubr.bf16.vlgmr.msra.gmra.mrb[0].mxu1 %v16559_v61  ;;  %v26152_v61 = vld [vmem:[%s25967_s8 + $0x18] sm:$0xee] }
 0x8fb   : > { %17950 = vmatpush1.bf16.msra.mxu0 %v24949_v7  ;;  %18122 = vmatpush1.bf16.msra.mxu1 %v24952_v15  ;;  %v25036_v7 = vld [vmem:[#allocation2 + $0x45c8] ss:$16 sps:$4 sm:$0xff]   ;;  %v20951_v15 = vcombine.low %v26138_v23, %v26141_v52  ;;  %v25047_v23 = vld [vmem:[#allocation2 + $0x4604] ss:$16 sps:$4 sm:$0xff]   ;;  %v25050_v52 = vld [vmem:[#allocation2 + $0x460c] ss:$16 sps:$4 sm:$0xff]  }
 0x8fc   : > { %17951 = vmatprep.subr.bf16.mxu0 %v24957_v53  ;;  %18123 = vmatprep.subr.bf16.mxu1 %v24960_v30  ;;  %v25041_v53 = vld [vmem:[#allocation2 + $0x45e4] ss:$16 sps:$4 sm:$0xff]   ;;  %v25044_v30 = vld [vmem:[#allocation2 + $0x45ec] ss:$16 sps:$4 sm:$0xff]  }
 0x8fd   : > { %17981 = vmatprep.mubr.bf16.mxu0 %v16568_v1  ;;  %18153 = vmatprep.mubr.bf16.mxu1 %v16568_v1  ;;  %v26155_v1 = vld [vmem:[%s25967_s8 + $0x38] sm:$0xff] }
 0x8ff   : > { %17952 = vmatpush1.bf16.msra.mxu0 %v24955_v32  ;;  %18124 = vmatpush1.bf16.msra.mxu1 %v24958_v35  ;;  %v20954_v32 = vcombine.high %v26152_v61, %v26155_v1  ;;  %v25039_v35 = vld [vmem:[#allocation2 + $0x45e0] ss:$16 sps:$4 sm:$0xff]  }
 0x900   : > { %17953 = vmatprep.subr.bf16.mxu0 %v24963_v40  ;;  %18125 = vmatprep.subr.bf16.mxu1 %v24966_v39  ;;  %v25042_v40 = vld [vmem:[#allocation2 + $0x45e8] ss:$16 sps:$4 sm:$0xff]   ;;  %v16563_v39 = vrot.slane %v20951_v15, 1  ;;  %v25122_v15 = vld [vmem:[#allocation2 + $0x478c] ss:$16 sps:$4 sm:$0xff]  }
 0x903   : > { %17954 = vmatpush1.bf16.msra.mxu0 %v24961_v45  ;;  %18126 = vmatpush1.bf16.msra.mxu1 %v24964_v43  ;;  %v16564_v45 = vrot.slane %v26090_v38, 1  ;;  %v16572_v43 = vrot.slane %v20954_v32, 1  ;;  %v25125_v32 = vld [vmem:[#allocation2 + $0x47a4] ss:$16 sps:$4 sm:$0xff]  }
 0x904   : > { %17955 = vmatprep.subr.bf16.mxu0 %v24969_v4  ;;  %18127 = vmatprep.subr.bf16.mxu1 %v24972_v41  ;;  %v16573_v4 = vrot.slane %v26097_v46, 1  ;;  %v25045_v41 = vld [vmem:[#allocation2 + $0x4600] ss:$16 sps:$4 sm:$0xff]   ;;  %v25059_v46 = vld [vmem:[#allocation2 + $0x4644] ss:$16 sps:$4 sm:$0xff]  }
 0x906   : > { %v16574_v38 = vsel %vm4672_vm1, %v16572_v43, %v16573_v4  ;;  %v25132_v43 = vld [vmem:[#allocation2 + $0x47c8] ss:$16 sps:$4 sm:$0xff]   ;;  %v20953_v4 = vcombine.low %v26152_v61, %v26155_v1 }
 0x907   : > { %17956 = vmatpush1.bf16.msra.mxu0 %v24967_v18  ;;  %18128 = vmatpush1.bf16.msra.mxu1 %v24970_v24  ;;  %v25048_v18 = vld [vmem:[#allocation2 + $0x4608] ss:$16 sps:$4 sm:$0xff]   ;;  %v16565_v24 = vsel %vm4672_vm1, %v16563_v39, %v16564_v45  ;;  %v25131_v45 = vld [vmem:[#allocation2 + $0x47c4] ss:$16 sps:$4 sm:$0xff]  }
 0x908   : > { %17957 = vmatprep.subr.bf16.mxu0 %v24975_v33  ;;  %18129 = vmatprep.subr.bf16.mxu1 %v24978_v10  ;;  %v25053_v33 = vld [vmem:[#allocation2 + $0x4624] ss:$16 sps:$4 sm:$0xff]   ;;  %v25056_v10 = vld [vmem:[#allocation2 + $0x462c] ss:$16 sps:$4 sm:$0xff]   ;;  %v25126_v39 = vld [vmem:[#allocation2 + $0x47a8] ss:$16 sps:$4 sm:$0xff]  }
 0x909   : > { %v25143_v61 = vld [vmem:[#allocation6] sm:$0xff]  }
 0x90a   : > { %v25144_v1 = vld [vmem:[#allocation6 + $0x80] sm:$0xff]  }
 0x90b   : > { %17958 = vmatpush1.bf16.msra.mxu0 %v24973_v25  ;;  %18130 = vmatpush1.bf16.msra.mxu1 %v24976_v57  ;;  %v25051_v25 = vld [vmem:[#allocation2 + $0x4620] ss:$16 sps:$4 sm:$0xff]   ;;  %v25054_v57 = vld [vmem:[#allocation2 + $0x4628] ss:$16 sps:$4 sm:$0xff]  }
 0x90c   : > { %17959 = vmatprep.subr.bf16.mxu0 %v24981_v44  ;;  %18131 = vmatprep.subr.bf16.mxu1 %v24984_v47  ;;  %v25062_v44 = vld [vmem:[#allocation2 + $0x464c] ss:$16 sps:$4 sm:$0xff]   ;;  %v25057_v47 = vld [vmem:[#allocation2 + $0x4640] ss:$16 sps:$4 sm:$0xff]  }
 0x90f   : > { %17960 = vmatpush1.bf16.msra.mxu0 %v24979_v37  ;;  %18132 = vmatpush1.bf16.msra.mxu1 %v24982_v17  ;;  %v25060_v37 = vld [vmem:[#allocation2 + $0x4648] ss:$16 sps:$4 sm:$0xff]   ;;  %v25065_v17 = vld [vmem:[#allocation2 + $0x4664] ss:$16 sps:$4 sm:$0xff]  }
 0x910   : > { %17961 = vmatprep.subr.bf16.mxu0 %v24987_v60  ;;  %18133 = vmatprep.subr.bf16.mxu1 %v24990_v42  ;;  %v25068_v60 = vld [vmem:[#allocation2 + $0x466c] ss:$16 sps:$4 sm:$0xff]   ;;  %v25063_v42 = vld [vmem:[#allocation2 + $0x4660] ss:$16 sps:$4 sm:$0xff]  }
 0x913   : > { %17962 = vmatpush1.bf16.msra.mxu0 %v24985_v0  ;;  %18134 = vmatpush1.bf16.msra.mxu1 %v24988_v26  ;;  %v25066_v0 = vld [vmem:[#allocation2 + $0x4668] ss:$16 sps:$4 sm:$0xff]   ;;  %v25071_v26 = vld [vmem:[#allocation2 + $0x4684] ss:$16 sps:$4 sm:$0xff]  }
 0x914   : > { %17963 = vmatprep.subr.bf16.mxu0 %v24993_v9  ;;  %18135 = vmatprep.subr.bf16.mxu1 %v24996_v36  ;;  %v25074_v9 = vld [vmem:[#allocation2 + $0x468c] ss:$16 sps:$4 sm:$0xff]   ;;  %v25069_v36 = vld [vmem:[#allocation2 + $0x4680] ss:$16 sps:$4 sm:$0xff]  }
 0x917   : > { %17964 = vmatpush1.bf16.msra.mxu0 %v24991_v13  ;;  %18136 = vmatpush1.bf16.msra.mxu1 %v24994_v59  ;;  %v25072_v13 = vld [vmem:[#allocation2 + $0x4688] ss:$16 sps:$4 sm:$0xff]   ;;  %v25077_v59 = vld [vmem:[#allocation2 + $0x46a4] ss:$16 sps:$4 sm:$0xff]  }
 0x918   : > { %17965 = vmatprep.subr.bf16.mxu0 %v24999_v6  ;;  %18137 = vmatprep.subr.bf16.mxu1 %v25002_v14  ;;  %v25080_v6 = vld [vmem:[#allocation2 + $0x46ac] ss:$16 sps:$4 sm:$0xff]   ;;  %v25075_v14 = vld [vmem:[#allocation2 + $0x46a0] ss:$16 sps:$4 sm:$0xff]  }
 0x91b   : > { %17966 = vmatpush1.bf16.msra.mxu0 %v24997_v50  ;;  %18138 = vmatpush1.bf16.msra.mxu1 %v25000_v62  ;;  %v25078_v50 = vld [vmem:[#allocation2 + $0x46a8] ss:$16 sps:$4 sm:$0xff]   ;;  %v25083_v62 = vld [vmem:[#allocation2 + $0x46c4] ss:$16 sps:$4 sm:$0xff]  }
 0x91c   : > { %17967 = vmatprep.subr.bf16.mxu0 %v25005_v12  ;;  %18139 = vmatprep.subr.bf16.mxu1 %v25008_v63  ;;  %v25086_v12 = vld [vmem:[#allocation2 + $0x46cc] ss:$16 sps:$4 sm:$0xff]   ;;  %v25081_v63 = vld [vmem:[#allocation2 + $0x46c0] ss:$16 sps:$4 sm:$0xff]  }
 0x91f   : > { %17968 = vmatpush1.bf16.msra.mxu0 %v25003_v2  ;;  %18140 = vmatpush1.bf16.msra.mxu1 %v25006_v54  ;;  %v25084_v2 = vld [vmem:[#allocation2 + $0x46c8] ss:$16 sps:$4 sm:$0xff]   ;;  %v25089_v54 = vld [vmem:[#allocation2 + $0x46e4] ss:$16 sps:$4 sm:$0xff]  }
 0x920   : > { %17969 = vmatprep.subr.bf16.mxu0 %v25011_v27  ;;  %18141 = vmatprep.subr.bf16.mxu1 %v25014_v8  ;;  %v25092_v27 = vld [vmem:[#allocation2 + $0x46ec] ss:$16 sps:$4 sm:$0xff]   ;;  %v25087_v8 = vld [vmem:[#allocation2 + $0x46e0] ss:$16 sps:$4 sm:$0xff]  }
 0x923   : > { %17970 = vmatpush1.bf16.msra.mxu0 %v25009_v19  ;;  %18142 = vmatpush1.bf16.msra.mxu1 %v25012_v20  ;;  %v25090_v19 = vld [vmem:[#allocation2 + $0x46e8] ss:$16 sps:$4 sm:$0xff]   ;;  %v25095_v20 = vld [vmem:[#allocation2 + $0x4704] ss:$16 sps:$4 sm:$0xff]  }
 0x924   : > { %17971 = vmatprep.subr.bf16.mxu0 %v25017_v21  ;;  %18143 = vmatprep.subr.bf16.mxu1 %v25020_v55  ;;  %v25098_v21 = vld [vmem:[#allocation2 + $0x470c] ss:$16 sps:$4 sm:$0xff]   ;;  %v25093_v55 = vld [vmem:[#allocation2 + $0x4700] ss:$16 sps:$4 sm:$0xff]  }
 0x927   : > { %17972 = vmatpush1.bf16.msra.mxu0 %v25015_v49  ;;  %18144 = vmatpush1.bf16.msra.mxu1 %v25018_v58  ;;  %v25096_v49 = vld [vmem:[#allocation2 + $0x4708] ss:$16 sps:$4 sm:$0xff]   ;;  %v25101_v58 = vld [vmem:[#allocation2 + $0x4724] ss:$16 sps:$4 sm:$0xff]  }
 0x928   : > { %17973 = vmatprep.subr.bf16.mxu0 %v25023_v51  ;;  %18145 = vmatprep.subr.bf16.mxu1 %v25026_v22  ;;  %v25104_v51 = vld [vmem:[#allocation2 + $0x472c] ss:$16 sps:$4 sm:$0xff]   ;;  %v25099_v22 = vld [vmem:[#allocation2 + $0x4720] ss:$16 sps:$4 sm:$0xff]  }
 0x92b   : > { %17974 = vmatpush1.bf16.msra.mxu0 %v25021_v5  ;;  %18146 = vmatpush1.bf16.msra.mxu1 %v25024_v28  ;;  %v25102_v5 = vld [vmem:[#allocation2 + $0x4728] ss:$16 sps:$4 sm:$0xff]   ;;  %v25107_v28 = vld [vmem:[#allocation2 + $0x4744] ss:$16 sps:$4 sm:$0xff]  }
 0x92c   : > { %17975 = vmatprep.subr.bf16.mxu0 %v25029_v29  ;;  %18147 = vmatprep.subr.bf16.mxu1 %v25032_v56  ;;  %v25110_v29 = vld [vmem:[#allocation2 + $0x474c] ss:$16 sps:$4 sm:$0xff]   ;;  %v25105_v56 = vld [vmem:[#allocation2 + $0x4740] ss:$16 sps:$4 sm:$0xff]  }
 0x92f   : > { %17976 = vmatpush1.bf16.msra.mxu0 %v25027_v3  ;;  %18148 = vmatpush1.bf16.msra.mxu1 %v25030_v48  ;;  %v25108_v3 = vld [vmem:[#allocation2 + $0x4748] ss:$16 sps:$4 sm:$0xff]   ;;  %v25113_v48 = vld [vmem:[#allocation2 + $0x4764] ss:$16 sps:$4 sm:$0xff]  }
 0x930   : > { %17977 = vmatprep.subr.bf16.mxu0 %v25035_v16  ;;  %18149 = vmatprep.subr.bf16.mxu1 %v25038_v31  ;;  %v25116_v16 = vld [vmem:[#allocation2 + $0x476c] ss:$16 sps:$4 sm:$0xff]   ;;  %v25111_v31 = vld [vmem:[#allocation2 + $0x4760] ss:$16 sps:$4 sm:$0xff]  }
 0x933   : > { %17978 = vmatpush1.bf16.msra.mxu0 %v25033_v11  ;;  %18150 = vmatpush1.bf16.msra.mxu1 %v25036_v7  ;;  %v25114_v11 = vld [vmem:[#allocation2 + $0x4768] ss:$16 sps:$4 sm:$0xff]   ;;  %v25119_v7 = vld [vmem:[#allocation2 + $0x4784] ss:$16 sps:$4 sm:$0xff]  }
 0x934   : > { %17979 = vmatprep.subr.bf16.mxu0 %v25041_v53  ;;  %18151 = vmatprep.subr.bf16.mxu1 %v25044_v30  ;;  %v25117_v53 = vld [vmem:[#allocation2 + $0x4780] ss:$16 sps:$4 sm:$0xff]   ;;  %v25120_v30 = vld [vmem:[#allocation2 + $0x4788] ss:$16 sps:$4 sm:$0xff]  }
 0x937   : > { %17980 = vmatpush1.bf16.msra.mxu0 %v25039_v35  ;;  %18152 = vmatpush1.bf16.msra.mxu1 %v25042_v40  ;;  %v25128_v35 = vld [vmem:[#allocation2 + $0x47ac] ss:$16 sps:$4 sm:$0xff]   ;;  %v25123_v40 = vld [vmem:[#allocation2 + $0x47a0] ss:$16 sps:$4 sm:$0xff]  }
 0x938   : > { %17992 = vmatprep.subr.bf16.mxu0 %v25047_v23  ;;  %18164 = vmatprep.subr.bf16.mxu1 %v25050_v52  ;;  %v25134_v23 = vld [vmem:[#allocation2 + $0x47cc] ss:$16 sps:$4 sm:$0xff]   ;;  %v25129_v52 = vld [vmem:[#allocation2 + $0x47c0] ss:$16 sps:$4 sm:$0xff]  }
 0x93a   : > { %17982 = vmatmul.mubr.bf16.vlgmr.msra.gmra.mrb[0].mxu0 %v16565_v24  ;;  %18154 = vmatmul.mubr.bf16.vlgmr.msra.gmra.mrb[0].mxu1 %v16565_v24  ;;  %v25135_v24 = vld [vmem:[#allocation2 + $0x47e0] ss:$16 sps:$4 sm:$0xff]  }
 0x93b   : > { %17993 = vmatpush1.bf16.msra.mxu0 %v25045_v41  ;;  %18165 = vmatpush1.bf16.msra.mxu1 %v25048_v18  ;;  %v25137_v41 = vld [vmem:[#allocation2 + $0x47e4] ss:$16 sps:$4 sm:$0xff]   ;;  %v25140_v18 = vld [vmem:[#allocation2 + $0x47ec] ss:$16 sps:$4 sm:$0xff]  }
 0x93c   : > { %17994 = vmatprep.subr.bf16.mxu0 %v25053_v33  ;;  %18166 = vmatprep.subr.bf16.mxu1 %v25056_v10  ;;  %v25138_v33 = vld [vmem:[#allocation2 + $0x47e8] ss:$16 sps:$4 sm:$0xff]   ;;  %v16569_v10 = vrot.slane %v20953_v4, 1 }
 0x93d   : > { %18024 = vmatprep.mubr.bf16.mxu0 %v16574_v38  ;;  %18196 = vmatprep.mubr.bf16.mxu1 %v16574_v38  ;;  %v16570_v38 = vrot.slane %v26107_v34, 1  ;;  %v25148_v34 = vld [vmem:[#allocation6 + $0x88] sm:$0xff]  }
 0x93f   : > { %17995 = vmatpush1.bf16.msra.mxu0 %v25051_v25  ;;  %18167 = vmatpush1.bf16.msra.mxu1 %v25054_v57  ;;  %v25141_v25 = vld [vmem:[#allocation6 + $0x40] sm:$0xff]  }
 0x940   : > { %17996 = vmatprep.subr.bf16.mxu0 %v25059_v46  ;;  %18168 = vmatprep.subr.bf16.mxu1 %v25062_v44  ;;  %v25142_v57 = vld [vmem:[#allocation6 + $0xc0] sm:$0xff]   ;;  %v16571_v46 = vsel %vm4672_vm1, %v16569_v10, %v16570_v38  ;;  %v25145_v44 = vld [vmem:[#allocation6 + $0x48] sm:$0xff]  }
 0x943   : > { %17997 = vmatpush1.bf16.msra.mxu0 %v25057_v47  ;;  %18169 = vmatpush1.bf16.msra.mxu1 %v25060_v37  ;;  %v25146_v47 = vld [vmem:[#allocation6 + $0xc8] sm:$0xff]  }
 0x944   : > { %17998 = vmatprep.subr.bf16.mxu0 %v25065_v17  ;;  %18170 = vmatprep.subr.bf16.mxu1 %v25068_v60  ;;  %v25147_v37 = vld [vmem:[#allocation6 + $0x8] sm:$0xff]   ;;  %v25149_v17 = vld [vmem:[#allocation6 + $0x50] sm:$0xff]  }
 0x945   : > { %v25150_v60 = vld [vmem:[#allocation6 + $0xd0] sm:$0xff]  }
 0x947   : > { %17999 = vmatpush1.bf16.msra.mxu0 %v25063_v42  ;;  %18171 = vmatpush1.bf16.msra.mxu1 %v25066_v0  ;;  %v25151_v42 = vld [vmem:[#allocation6 + $0x10] sm:$0xff]  }
 0x948   : > { %18000 = vmatprep.subr.bf16.mxu0 %v25071_v26  ;;  %18172 = vmatprep.subr.bf16.mxu1 %v25074_v9  ;;  %v25152_v0 = vld [vmem:[#allocation6 + $0x90] sm:$0xff]   ;;  %v25153_v26 = vld [vmem:[#allocation6 + $0x58] sm:$0xff]  }
 0x949   : > { %v25154_v9 = vld [vmem:[#allocation6 + $0xd8] sm:$0xff]  }
 0x94b   : > { %18001 = vmatpush1.bf16.msra.mxu0 %v25069_v36  ;;  %18173 = vmatpush1.bf16.msra.mxu1 %v25072_v13  ;;  %v25155_v36 = vld [vmem:[#allocation6 + $0x18] sm:$0xff]  }
 0x94c   : > { %18002 = vmatprep.subr.bf16.mxu0 %v25077_v59  ;;  %18174 = vmatprep.subr.bf16.mxu1 %v25080_v6  ;;  %v25156_v13 = vld [vmem:[#allocation6 + $0x98] sm:$0xff]   ;;  %v25157_v59 = vld [vmem:[#allocation6 + $0x60] sm:$0xff]  }
 0x94d   : > { %v25158_v6 = vld [vmem:[#allocation6 + $0xe0] sm:$0xff]  }
 0x94f   : > { %18003 = vmatpush1.bf16.msra.mxu0 %v25075_v14  ;;  %18175 = vmatpush1.bf16.msra.mxu1 %v25078_v50  ;;  %v25159_v14 = vld [vmem:[#allocation6 + $0x20] sm:$0xff]  }
 0x950   : > { %18004 = vmatprep.subr.bf16.mxu0 %v25083_v62  ;;  %18176 = vmatprep.subr.bf16.mxu1 %v25086_v12  ;;  %v25160_v50 = vld [vmem:[#allocation6 + $0xa0] sm:$0xff]   ;;  %v25161_v62 = vld [vmem:[#allocation6 + $0x68] sm:$0xff]  }
 0x951   : > { %v25162_v12 = vld [vmem:[#allocation6 + $0xe8] sm:$0xff]  }
 0x953   : > { %18005 = vmatpush1.bf16.msra.mxu0 %v25081_v63  ;;  %18177 = vmatpush1.bf16.msra.mxu1 %v25084_v2  ;;  %v25163_v63 = vld [vmem:[#allocation6 + $0x28] sm:$0xff]  }
 0x954   : > { %18006 = vmatprep.subr.bf16.mxu0 %v25089_v54  ;;  %18178 = vmatprep.subr.bf16.mxu1 %v25092_v27  ;;  %v25164_v2 = vld [vmem:[#allocation6 + $0xa8] sm:$0xff]   ;;  %v25165_v54 = vld [vmem:[#allocation6 + $0x70] sm:$0xff]  }
 0x955   : > { %v25166_v27 = vld [vmem:[#allocation6 + $0xf0] sm:$0xff]  }
 0x957   : > { %18007 = vmatpush1.bf16.msra.mxu0 %v25087_v8  ;;  %18179 = vmatpush1.bf16.msra.mxu1 %v25090_v19  ;;  %v25167_v8 = vld [vmem:[#allocation6 + $0x30] sm:$0xff]  }
 0x958   : > { %18008 = vmatprep.subr.bf16.mxu0 %v25095_v20  ;;  %18180 = vmatprep.subr.bf16.mxu1 %v25098_v21  ;;  %v25168_v19 = vld [vmem:[#allocation6 + $0xb0] sm:$0xff]   ;;  %v25169_v20 = vld [vmem:[#allocation6 + $0x78] sm:$0xff]  }
 0x959   : > { %v25170_v21 = vld [vmem:[#allocation6 + $0xf8] sm:$0xff]  }
 0x95b   : > { %18009 = vmatpush1.bf16.msra.mxu0 %v25093_v55  ;;  %18181 = vmatpush1.bf16.msra.mxu1 %v25096_v49  ;;  %v25171_v55 = vld [vmem:[#allocation6 + $0x38] sm:$0xff]  }
 0x95c   : > { %18010 = vmatprep.subr.bf16.mxu0 %v25101_v58  ;;  %18182 = vmatprep.subr.bf16.mxu1 %v25104_v51  ;;  %v25172_v49 = vld [vmem:[#allocation6 + $0xb8] sm:$0xff]   ;;  %v18217_v58 = vlaneseq }
 0x95e   : > { %v18218_v51 = vshrl.u32 %v18217_v58, 7 }
 0x95f   : > { %18011 = vmatpush1.bf16.msra.mxu0 %v25099_v22  ;;  %18183 = vmatpush1.bf16.msra.mxu1 %v25102_v5 }
 0x960   : > { %18012 = vmatprep.subr.bf16.mxu0 %v25107_v28  ;;  %18184 = vmatprep.subr.bf16.mxu1 %v25110_v29  ;;  %v18219_v22 = vsub.s32 0, %v18218_v51  ;;  %v18227_v5 = vsub.s32 2, %v18218_v51  ;;  %v18215_v28 = vld [vmem:[#allocation4] sm:$0xf]  ;;  %v18223_v29 = vsub.s32 1, %v18218_v51 }
 0x963   : > { %18013 = vmatpush1.bf16.msra.mxu0 %v25105_v56  ;;  %18185 = vmatpush1.bf16.msra.mxu1 %v25108_v3  ;;  %v18231_v56 = vsub.s32 3, %v18218_v51  ;;  %v18220_v3 = vrot.slane %v18215_v28, %v18219_v22 }
 0x964   : > { %18014 = vmatprep.subr.bf16.mxu0 %v25113_v48  ;;  %18186 = vmatprep.subr.bf16.mxu1 %v25116_v16  ;;  %v18228_v48 = vrot.slane %v18215_v28, %v18227_v5  ;;  %v18224_v16 = vrot.slane %v18215_v28, %v18223_v29 }
 0x967   : > { %18015 = vmatpush1.bf16.msra.mxu0 %v25111_v31  ;;  %18187 = vmatpush1.bf16.msra.mxu1 %v25114_v11  ;;  %v18232_v31 = vrot.slane %v18215_v28, %v18231_v56 }
 0x968   : > { %18016 = vmatprep.subr.bf16.mxu0 %v25119_v7  ;;  %18188 = vmatprep.subr.bf16.mxu1 %v25122_v15 }
 0x96b   : > { %18017 = vmatpush1.bf16.msra.mxu0 %v25117_v53  ;;  %18189 = vmatpush1.bf16.msra.mxu1 %v25120_v30 }
 0x96c   : > { %18018 = vmatprep.subr.bf16.mxu0 %v25125_v32  ;;  %18190 = vmatprep.subr.bf16.mxu1 %v25128_v35 }
 0x96f   : > { %18019 = vmatpush1.bf16.msra.mxu0 %v25123_v40  ;;  %18191 = vmatpush1.bf16.msra.mxu1 %v25126_v39 }
 0x970   : > { %18020 = vmatprep.subr.bf16.mxu0 %v25131_v45  ;;  %18192 = vmatprep.subr.bf16.mxu1 %v25134_v23 }
 0x973   : > { %18021 = vmatpush1.bf16.msra.mxu0 %v25129_v52  ;;  %18193 = vmatpush1.bf16.msra.mxu1 %v25132_v43 }
 0x974   : > { %18022 = vmatprep.subr.bf16.mxu0 %v25137_v41  ;;  %18194 = vmatprep.subr.bf16.mxu1 %v25140_v18 }
 0x977   : > { %18023 = vmatpush1.bf16.msra.mxu0 %v25135_v24  ;;  %18195 = vmatpush1.bf16.msra.mxu1 %v25138_v33 }
 0x978   : > { %21248 = vmatprep.subr.bf16.mxu0 %v25141_v25  ;;  %21270 = vmatprep.subr.bf16.mxu1 %v25142_v57 }
 0x97a   : > { %18025 = vmatmul.mubr.bf16.vlgmr.msra.gmra.mrb[0].mxu0 %v16571_v46  ;;  %18197 = vmatmul.mubr.bf16.vlgmr.msra.gmra.mrb[0].mxu1 %v16571_v46 }
 0x97b   : > { %21249 = vmatpush3.bf16.msra.mxu0 %v25143_v61  ;;  %21271 = vmatpush3.bf16.msra.mxu1 %v25144_v1 }
 0x97c   : > { %21250 = vmatprep.subr.bf16.mxu0 %v25145_v44  ;;  %21272 = vmatprep.subr.bf16.mxu1 %v25146_v47 }
 0x97f   : > { %21251 = vmatpush3.bf16.msra.mxu0 %v25147_v37  ;;  %21273 = vmatpush3.bf16.msra.mxu1 %v25148_v34 }
 0x980   : > { %21252 = vmatprep.subr.bf16.mxu0 %v25149_v17  ;;  %21274 = vmatprep.subr.bf16.mxu1 %v25150_v60  ;;  %v21211_v60 = vld [vmem:[#allocation7] ss:$0 sm:$0xff] }
 0x983   : > { %21253 = vmatpush3.bf16.msra.mxu0 %v25151_v42  ;;  %21275 = vmatpush3.bf16.msra.mxu1 %v25152_v0 }
 0x984   : > { %21254 = vmatprep.subr.bf16.mxu0 %v25153_v26  ;;  %21276 = vmatprep.subr.bf16.mxu1 %v25154_v9 }
 0x987   : > { %21255 = vmatpush3.bf16.msra.mxu0 %v25155_v36  ;;  %21277 = vmatpush3.bf16.msra.mxu1 %v25156_v13 }
 0x988   : > { %21256 = vmatprep.subr.bf16.mxu0 %v25157_v59  ;;  %21278 = vmatprep.subr.bf16.mxu1 %v25158_v6 }
 0x98b   : > { %21257 = vmatpush3.bf16.msra.mxu0 %v25159_v14  ;;  %21279 = vmatpush3.bf16.msra.mxu1 %v25160_v50 }
 0x98c   : > { %21258 = vmatprep.subr.bf16.mxu0 %v25161_v62  ;;  %21280 = vmatprep.subr.bf16.mxu1 %v25162_v12 }
 0x98f   : > { %21259 = vmatpush3.bf16.msra.mxu0 %v25163_v63  ;;  %21281 = vmatpush3.bf16.msra.mxu1 %v25164_v2 }
 0x990   : > { %21260 = vmatprep.subr.bf16.mxu0 %v25165_v54  ;;  %21282 = vmatprep.subr.bf16.mxu1 %v25166_v27 }
 0x993   : > { %21261 = vmatpush3.bf16.msra.mxu0 %v25167_v8  ;;  %21283 = vmatpush3.bf16.msra.mxu1 %v25168_v19 }
 0x994   : > { %21262 = vmatprep.subr.bf16.mxu0 %v25169_v20  ;;  %21284 = vmatprep.subr.bf16.mxu1 %v25170_v21 }
 0x997   : > { %21263 = vmatpush3.bf16.msra.mxu0 %v25171_v55  ;;  %21285 = vmatpush3.bf16.msra.mxu1 %v25172_v49  ;;  %v18603_v55 = vand.u32 127, %v18217_v58 }
 0x999   : > { %vm18604_vm2 = vcmp.lt.s32.totalorder %v18603_v55, 3 }
 0xa4d   : > { %v18026_v11 = vpop.f32.mrb[0].mxu0  ;;  %v18198_v7 = vpop.f32.mrb[0].mxu1 }
 0xa4e   : > { %v18237_v15 = vadd.f32 %v18220_v3, %v18026_v11  ;;  %v18239_v53 = vadd.f32 %v18228_v48, %v18198_v7  ;;  %v18028_v30 = vpop.f32.mrb[1].mxu0  ;;  %v18200_v32 = vpop.f32.mrb[1].mxu1 }
 0xa4f   : > { %v18238_v35 = vadd.f32 %v18224_v16, %v18028_v30  ;;  %v18240_v40 = vadd.f32 %v18232_v31, %v18200_v32  ;;  %v18030_v39 = vpop.f32.mrb[2].mxu0  ;;  %v18202_v45 = vpop.f32.mrb[2].mxu1 }
 0xa50   : > { %v18241_v23 = vadd.f32 %v18220_v3, %v18030_v39  ;;  %v18243_v52 = vadd.f32 %v18228_v48, %v18202_v45  ;;  %v18032_v43 = vpop.f32.mrb[3].mxu0  ;;  %v18204_v4 = vpop.f32.mrb[3].mxu1  ;;  %v18245_v24 = vmax.f32 %v18237_v15, 0.0  ;;  %v18247_v33 = vmax.f32 %v18239_v53, 0.0 }
 0xa51   : > { %v18242_v41 = vadd.f32 %v18224_v16, %v18032_v43  ;;  %v18244_v18 = vadd.f32 %v18232_v31, %v18204_v4  ;;  %v18246_v25 = vmax.f32 %v18238_v35, 0.0  ;;  %v18248_v57 = vmax.f32 %v18240_v40, 0.0 }
 0xa52   : > { %v18249_v10 = vmax.f32 %v18241_v23, 0.0  ;;  %v18251_v38 = vmax.f32 %v18243_v52, 0.0 }
 0xa53   : > { %v18250_v46 = vmax.f32 %v18242_v41, 0.0  ;;  %v18252_v61 = vmax.f32 %v18244_v18, 0.0 }
 0xa54   : > { %v18253_v1 = vpack.c.bf16 %v18249_v10, %v18245_v24  ;;  %v18255_v44 = vpack.c.bf16 %v18251_v38, %v18247_v33 }
 0xa55   : > { %v18254_v47 = vpack.c.bf16 %v18250_v46, %v18246_v25  ;;  %v18256_v37 = vpack.c.bf16 %v18252_v61, %v18248_v57 }
 0xa57   : > { %18552 = vmatprep.mubr.bf16.mxu0 %v18254_v47  ;;  %18593 = vmatprep.mubr.bf16.mxu1 %v18256_v37 }
 0xa58   : > { %18553 = vmatmul.mubr.bf16.vlgmr.msra.gmra.mrb[4].mxu0 %v18253_v1  ;;  %18594 = vmatmul.mubr.bf16.vlgmr.msra.gmra.mrb[4].mxu1 %v18255_v44 }
 0xb2b   : > { %v21264_v34 = vpop.f32.mrb[4].mxu0  ;;  %v21286_v17 = vpop.f32.mrb[4].mxu1 }
 0xb2c   : > { %v21265_v42 = vpop.f32.mrb[5].mxu0  ;;  %v21287_v0 = vpop.f32.mrb[5].mxu1 }
 0xb2d   : > { %v21266_v26 = vadd.f32 %v21265_v42, %v21264_v34  ;;  %v21288_v9 = vadd.f32 %v21287_v0, %v21286_v17  ;;  %v21267_v36 = vpop.f32.mrb[6].mxu0  ;;  %v21289_v13 = vpop.f32.mrb[6].mxu1 }
 0xb2e   : > { %v21268_v59 = vpop.f32.mrb[7].mxu0  ;;  %v21290_v6 = vpop.f32.mrb[7].mxu1 }
 0xb2f   : > { %v18555_v14 = vadd.f32 %v21266_v26, %v21211_v60  ;;  %v21269_v50 = vadd.f32 %v21268_v59, %v21267_v36  ;;  %v21291_v62 = vadd.f32 %v21290_v6, %v21289_v13 }
 0xb31   : > { %v18596_v12 = vadd.f32 %v21288_v9, %v18555_v14  ;;  %v18558_v63 = vadd.f32 %v21269_v50, %v21211_v60 }
 0xb33   : > { %v21244_v2 = vmul.f32 -1.442695, %v18596_v12  ;;  %v18599_v54 = vadd.f32 %v21291_v62, %v18558_v63 }
 0xb35   : > { %25173 = vpow2.f32 %v21244_v2  ;;  %v21245_v27 = vmul.f32 -1.442695, %v18599_v54 }
 0xb37   : > { %25175 = vpow2.f32 %v21245_v27 }
 0xb3f   : > { %v25174_v8 = vpop.eup %25173 }
 0xb40   : > { %v18611_v19 = vadd.f32 1.0, %v25174_v8 }
 0xb41   : > { %v25176_v20 = vpop.eup %25175 }
 0xb42   : > { %25177 = vrcp.f32 %v18611_v19  ;;  %v18612_v21 = vadd.f32 1.0, %v25176_v20 }
 0xb44   : > { %25179 = vrcp.f32 %v18612_v21 }
 0xb4c   : > { %v25178_v49 = vpop.eup %25177 }
 0xb4d   : > { %v18617_v51 = vsel %vm18604_vm2, %v25178_v49, %v18596_v12 }
 0xb4e   : > { %v25180_v22 = vpop.eup %25179  ;;  %18619 = vst [vmem:[%s451_s30] sm:$0xff] %v18617_v51 }
 0xb4f   : > { %v18618_v5 = vsel %vm18604_vm2, %v25180_v22, %v18599_v54 }
 0xb50   : > { %18620 = vst [vmem:[%s451_s30 + $0x8] sm:$0xff] %v18618_v5 }
 0xb51 PF: > { %s20_s28 = sadd.s32 1, %s25355_s28   ;;  %s26213_s13 = sld [smem:[#allocation12_spill]] }
 0xb52   : > { %p17_p12 = scmp.ge.s32.totalorder %s20_s28, 18   ;;  %s26214_s24 = smov %s25347_s26 }
 0xb53   : > { %s26215_s25 = smov %s25351_s27  ;;  %s26216_s26 = smov %s26219_s12 }
 0xb54   :  { %19 = sbr.rel (!%p17_p12) target bundleno = 7 (0x7), region = 109 }
 0xb57   : > { %s26217_s27 = smov %s26213_s13 }
 0xb5b   :  { %18650 = vsyncpa [#allocation3], 1 }
 0xb5c   :  { %18652 = vsyncpa [#allocation3 + $0x1], 1 }
 0xb5d   :  { %18653 = vsyncpa [#allocation5], 1 }
 0xb5e   :  { %18654 = vsyncpa [#allocation8], 1 }

</bundles_post_ra>
